<compile_context>
chip_gen: v7x
topology: tpu7x:2x2x1
jax: 0.10.0
libtpu: 0.0.40
codegen_flags: <defaults>
</compile_context>

<pallas_src>
import functools

import jax
import jax.numpy as jnp
from jax.experimental import pallas as pl
from jax.experimental.pallas import tpu as pltpu


def _bbox_mlp_kernel(n_layers, *refs):
    # refs = (objs_ref, graph_ref, w_0..w_{L-1}, b_0..b_{L-1}, out_ref)
    x1_ref, x2_ref = refs[0], refs[1]
    w_refs = refs[2: 2 + n_layers]
    b_refs = refs[2 + n_layers: 2 + 2 * n_layers]
    out_ref = refs[-1]

    # Elementwise add of the two object embeddings (VPU, f32).
    h = x1_ref[...] + x2_ref[...]

    # MLP hot path, fully fused in VMEM: f32 matmul on the MXU (full
    # precision; K is only 32/64 so the MXU is nowhere near the bottleneck),
    # then f32 bias add + ReLU.
    for w_ref, b_ref in zip(w_refs, b_refs):
        h = jnp.dot(h, w_ref[...],
                    preferred_element_type=jnp.float32,
                    precision=jax.lax.Precision.HIGHEST)
        h = h + b_ref[...]           # bias is [1, dim_out], broadcasts over rows
        h = jnp.maximum(h, 0.0)      # ReLU (also after the final layer)

    out_ref[...] = h.astype(out_ref.dtype)


def _mlp_reference(x, weights, biases):
    h = x
    for w, b in zip(weights, biases):
        h = jnp.maximum(
            jnp.dot(h, w, precision=jax.lax.Precision.HIGHEST) + b, 0.0)
    return h


def bounding_box_net(objs_vector, graph_objs_vector, weights, biases,
                     *, tile_b=8192, min_pallas_batch=1024):
    """Pallas forward pass of BouningBox_Net.

    objs_vector, graph_objs_vector: [batch, dim_list[0]] float32
    weights[i]: [dim_list[i], dim_list[i+1]]  (transposed vs. PyTorch Linear)
    biases[i]:  [1, dim_list[i+1]]
    """
    assert objs_vector.shape == graph_objs_vector.shape
    n_layers = len(weights)
    batch, dim_in = objs_vector.shape
    dim_out = weights[-1].shape[1]

    weights = [w.astype(jnp.float32) for w in weights]
    biases = [b.astype(jnp.float32) for b in biases]

    # ---- Small-batch fast path: custom-call overhead dominates below ~1K rows.
    if batch < min_pallas_batch:
        return _mlp_reference(objs_vector + graph_objs_vector, weights, biases)

    # ---- Batch tiling ------------------------------------------------------
    tile_b = int(min(tile_b, batch))
    # Prefer >= 2 grid steps so the "parallel" axis can shard across v7x's
    # two TensorCores (no-op on v5e/v6e's single core).
    if batch >= 16:
        half = (((batch + 1) // 2) + 7) // 8 * 8
        tile_b = min(tile_b, half)
    tile_b = max(8, ((tile_b + 7) // 8) * 8)   # sublane-aligned

    n_tiles = pl.cdiv(batch, tile_b)
    batch_p = n_tiles * tile_b
    if batch_p != batch:
        pad_rows = batch_p - batch
        objs_vector = jnp.pad(objs_vector, ((0, pad_rows), (0, 0)))
        graph_objs_vector = jnp.pad(graph_objs_vector, ((0, pad_rows), (0, 0)))

    kernel = functools.partial(_bbox_mlp_kernel, n_layers)

    # Activations: one (tile_b, dim) block per grid step (auto double-buffered).
    act_spec = pl.BlockSpec((tile_b, dim_in), lambda i: (i, 0))
    # Output block's last dim equals the full array dim (4), which is legal.
    out_spec = pl.BlockSpec((tile_b, dim_out), lambda i: (i, 0))
    # Weights / biases: full-array blocks with a constant block index ->
    # fetched once and kept resident in VMEM across the whole grid.
    w_specs = [pl.BlockSpec(w.shape, lambda i: (0, 0)) for w in weights]
    b_specs = [pl.BlockSpec(b.shape, lambda i: (0, 0)) for b in biases]

    flops = 2 * batch_p * sum(int(w.shape[0]) * int(w.shape[1]) for w in weights)
    bytes_accessed = (
        2 * batch_p * dim_in * 4                     # two f32 activation inputs
        + sum(int(w.size) * 4 for w in weights)      # f32 weights (resident)
        + sum(int(b.size) * 4 for b in biases)       # f32 biases
        + batch_p * dim_out * 4                      # f32 output (unpadded)
    )

    out_padded = pl.pallas_call(
        kernel,
        out_shape=jax.ShapeDtypeStruct((batch_p, dim_out), objs_vector.dtype),
        grid=(n_tiles,),
        in_specs=[act_spec, act_spec] + w_specs + b_specs,
        out_specs=out_spec,
        compiler_params=pltpu.CompilerParams(
            dimension_semantics=("parallel",),       # megacore sharding on v7x
            vmem_limit_bytes=32 * 1024 * 1024,       # safe on v5e/v6e/v7x
        ),
        cost_estimate=pl.CostEstimate(
            flops=flops, transcendentals=0, bytes_accessed=bytes_accessed),
    )(objs_vector, graph_objs_vector, *weights, *biases)

    # Slice the padded batch rows back off.
    return out_padded[:batch]


def _reference(objs_vector, graph_objs_vector, weights, biases):
    return _mlp_reference(objs_vector + graph_objs_vector, weights, biases)


if __name__ == "__main__":
    # dim_list = [32, 64, 4]  (bounding-box head: 4 outputs).
    dim_list = [32, 64, 4]

    key = jax.random.PRNGKey(0)

    # Deterministic parameter init (synthetic; PyTorch Linear weight is
    # [dim_out, dim_in], bias [dim_out] — we store W transposed, bias [1, d_out]).
    weights, biases = [], []
    for i in range(len(dim_list) - 1):
        d_in, d_out = dim_list[i], dim_list[i + 1]
        kw, kb, key = jax.random.split(key, 3)
        bound = 1.0 / (d_in ** 0.5)
        w = jax.random.uniform(kw, (d_in, d_out), jnp.float32, -bound, bound)
        b = jax.random.uniform(kb, (1, d_out), jnp.float32, -bound, bound)
        weights.append(w)
        biases.append(b)

    # --- Case 1: batch large enough to exercise the Pallas kernel (still
    # tiny: 2048 x 32 f32 = 256 KiB per input). -------------------------------
    batch = 2048
    k_obj, k_graph, key = jax.random.split(key, 3)
    objs_vector = jax.random.normal(k_obj, (batch, dim_list[0]), jnp.float32)
    graph_objs_vector = jax.random.normal(k_graph, (batch, dim_list[0]),
                                          jnp.float32)

    out = bounding_box_net(objs_vector, graph_objs_vector, weights, biases)
    out = jax.block_until_ready(out)
    ref = _reference(objs_vector, graph_objs_vector, weights, biases)
    assert out.shape == (batch, dim_list[-1])
    assert jnp.allclose(out, ref, atol=1e-4, rtol=1e-4), \
        "Pallas path mismatch vs. pure-JAX reference"

    # --- Case 2: tiny batch (batch=8) exercises the small-batch fast path. ---
    batch_small = 8
    k_obj, k_graph, key = jax.random.split(key, 3)
    objs_small = jax.random.normal(k_obj, (batch_small, dim_list[0]), jnp.float32)
    graph_small = jax.random.normal(k_graph, (batch_small, dim_list[0]),
                                    jnp.float32)
    out_small = bounding_box_net(objs_small, graph_small, weights, biases)
    out_small = jax.block_until_ready(out_small)
    ref_small = _reference(objs_small, graph_small, weights, biases)
    assert out_small.shape == (batch_small, dim_list[-1])
    assert jnp.allclose(out_small, ref_small, atol=1e-5, rtol=1e-5), \
        "small-batch path mismatch vs. pure-JAX reference"

    print("KERNEL_OK")
</pallas_src>

<mosaic_0001>
module attributes {stable_mosaic.version = 11 : i64} {
  func.func @_bbox_mlp_kernel(%arg0: i32, %arg1: memref<1024x32xf32, #tpu.memory_space<vmem>>, %arg2: memref<1024x32xf32, #tpu.memory_space<vmem>>, %arg3: memref<32x64xf32, #tpu.memory_space<vmem>>, %arg4: memref<64x4xf32, #tpu.memory_space<vmem>>, %arg5: memref<1x64xf32, #tpu.memory_space<vmem>>, %arg6: memref<1x4xf32, #tpu.memory_space<vmem>>, %arg7: memref<1024x4xf32, #tpu.memory_space<vmem>>) attributes {dimension_semantics = [#tpu.dimension_semantics<parallel>], iteration_bounds = array<i64: 2>, scalar_prefetch = 0 : i64, scratch_operands = 0 : i64, tpu.core_type = #tpu.core_type<tc>, window_params = [{transform_indices = @transform_0, window_bounds = array<i64: 1024, 32>}, {transform_indices = @transform_1, window_bounds = array<i64: 1024, 32>}, {pipeline_mode = #tpu.pipeline_mode<synchronous>, transform_indices = @transform_2, window_bounds = array<i64: 32, 64>}, {pipeline_mode = #tpu.pipeline_mode<synchronous>, transform_indices = @transform_3, window_bounds = array<i64: 64, 4>}, {pipeline_mode = #tpu.pipeline_mode<synchronous>, transform_indices = @transform_4, window_bounds = array<i64: 1, 64>}, {pipeline_mode = #tpu.pipeline_mode<synchronous>, transform_indices = @transform_5, window_bounds = array<i64: 1, 4>}, {transform_indices = @transform_6, window_bounds = array<i64: 1024, 4>}]} {
    %c0 = arith.constant 0 : index
    %c0_0 = arith.constant 0 : index
    %0 = vector.load %arg1[%c0, %c0_0] : memref<1024x32xf32, #tpu.memory_space<vmem>>, vector<1024x32xf32>
    %c0_1 = arith.constant 0 : index
    %c0_2 = arith.constant 0 : index
    %1 = vector.load %arg2[%c0_1, %c0_2] : memref<1024x32xf32, #tpu.memory_space<vmem>>, vector<1024x32xf32>
    %2 = arith.addf %0, %1 : vector<1024x32xf32>
    %c0_3 = arith.constant 0 : index
    %c0_4 = arith.constant 0 : index
    %3 = vector.load %arg3[%c0_3, %c0_4] : memref<32x64xf32, #tpu.memory_space<vmem>>, vector<32x64xf32>
    %cst = arith.constant dense<0.000000e+00> : vector<1024x64xf32>
    %4 = tpu.matmul %2, %3, %cst {dimension_numbers = #tpu.dot_dimension_numbers<[1], [0], [0], [1], [0, 0, 1, 1], [], []>, precision = #tpu.contract_precision<fp32>} : vector<1024x32xf32>, vector<32x64xf32>, vector<1024x64xf32> -> vector<1024x64xf32>
    %c0_5 = arith.constant 0 : index
    %c0_6 = arith.constant 0 : index
    %5 = vector.load %arg5[%c0_5, %c0_6] : memref<1x64xf32, #tpu.memory_space<vmem>>, vector<1x64xf32>
    %6 = vector.broadcast %5 : vector<1x64xf32> to vector<1024x64xf32>
    %7 = arith.addf %4, %6 : vector<1024x64xf32>
    %cst_7 = arith.constant 0.000000e+00 : f32
    %8 = vector.broadcast %cst_7 : f32 to vector<1024x64xf32>
    %9 = arith.maximumf %7, %8 : vector<1024x64xf32>
    %c0_8 = arith.constant 0 : index
    %c0_9 = arith.constant 0 : index
    %10 = vector.load %arg4[%c0_8, %c0_9] : memref<64x4xf32, #tpu.memory_space<vmem>>, vector<64x4xf32>
    %cst_10 = arith.constant dense<0.000000e+00> : vector<1024x4xf32>
    %11 = tpu.matmul %9, %10, %cst_10 {dimension_numbers = #tpu.dot_dimension_numbers<[1], [0], [0], [1], [0, 0, 1, 1], [], []>, precision = #tpu.contract_precision<fp32>} : vector<1024x64xf32>, vector<64x4xf32>, vector<1024x4xf32> -> vector<1024x4xf32>
    %c0_11 = arith.constant 0 : index
    %c0_12 = arith.constant 0 : index
    %12 = vector.load %arg6[%c0_11, %c0_12] : memref<1x4xf32, #tpu.memory_space<vmem>>, vector<1x4xf32>
    %13 = vector.broadcast %12 : vector<1x4xf32> to vector<1024x4xf32>
    %14 = arith.addf %11, %13 : vector<1024x4xf32>
    %cst_13 = arith.constant 0.000000e+00 : f32
    %15 = vector.broadcast %cst_13 : f32 to vector<1024x4xf32>
    %16 = arith.maximumf %14, %15 : vector<1024x4xf32>
    %c0_14 = arith.constant 0 : index
    %c0_15 = arith.constant 0 : index
    %17 = vector.load %arg7[%c0_14, %c0_15] : memref<1024x4xf32, #tpu.memory_space<vmem>>, vector<1024x4xf32>
    tpu.vector_store %arg7[%c0_14, %c0_15], %16 {strides = array<i32>} : memref<1024x4xf32, #tpu.memory_space<vmem>>, vector<1024x4xf32>,
    return
  }
  func.func @transform_0(%arg0: i32) -> (i32, i32) {
    %c0_i32 = arith.constant 0 : i32
    %c0_i32_0 = arith.constant 0 : i32
    return %arg0, %c0_i32 : i32, i32
  }
  func.func @transform_1(%arg0: i32) -> (i32, i32) {
    %c0_i32 = arith.constant 0 : i32
    %c0_i32_0 = arith.constant 0 : i32
    return %arg0, %c0_i32 : i32, i32
  }
  func.func @transform_2(%arg0: i32) -> (i32, i32) {
    %c0_i32 = arith.constant 0 : i32
    %c0_i32_0 = arith.constant 0 : i32
    %c0_i32_1 = arith.constant 0 : i32
    return %c0_i32, %c0_i32_0 : i32, i32
  }
  func.func @transform_3(%arg0: i32) -> (i32, i32) {
    %c0_i32 = arith.constant 0 : i32
    %c0_i32_0 = arith.constant 0 : i32
    %c0_i32_1 = arith.constant 0 : i32
    return %c0_i32, %c0_i32_0 : i32, i32
  }
  func.func @transform_4(%arg0: i32) -> (i32, i32) {
    %c0_i32 = arith.constant 0 : i32
    %c0_i32_0 = arith.constant 0 : i32
    %c0_i32_1 = arith.constant 0 : i32
    return %c0_i32, %c0_i32_0 : i32, i32
  }
  func.func @transform_5(%arg0: i32) -> (i32, i32) {
    %c0_i32 = arith.constant 0 : i32
    %c0_i32_0 = arith.constant 0 : i32
    %c0_i32_1 = arith.constant 0 : i32
    return %c0_i32, %c0_i32_0 : i32, i32
  }
  func.func @transform_6(%arg0: i32) -> (i32, i32) {
    %c0_i32 = arith.constant 0 : i32
    %c0_i32_0 = arith.constant 0 : i32
    return %arg0, %c0_i32 : i32, i32
  }
}

</mosaic_0001>

<bundles_post_ra>
// kernel: tpu_custom_call.1
= control target key start
LH: loop header
LB: loop body
LE: loop exit
PB: predicated region body
PF: predicated region fallthrough
CT: control target
= control target key end

     0   :  { %s19673_s21 = smov 0   ;;  %s24906_s0 = inlined_call_operand.vmem [shape: f32[2048,32], index: 0, kind: input, shape index: {}]   ;;  %s24907_s1 = inlined_call_operand.vmem [shape: f32[2048,32], index: 1, kind: input, shape index: {}]   ;;  %s24908_s2 = inlined_call_operand.vmem [shape: f32[32,64], index: 2, kind: input, shape index: {}]   ;;  %s24909_s3 = inlined_call_operand.vmem [shape: f32[64,4], index: 3, kind: input, shape index: {}]   ;;  %s24910_s4 = inlined_call_operand.vmem [shape: f32[1,64], index: 4, kind: input, shape index: {}]   ;;  %s24911_s5 = inlined_call_operand.vmem [shape: f32[1,4], index: 5, kind: input, shape index: {}]   ;;  %s24912_s6 = inlined_call_operand.vmem [shape: f32[2048,4], index: 6, kind: output, shape index: {}]  }
   0x1 LB: > { %s13854_s22 = sadd.s32 4294967295, %s19636_s21   ;;  %p13858_p0 = scmp.ge.s32.totalorder %s19636_s21, 1  ;;  %s19636_s21 = sphi %s19673_s21, %s16_s21  }
   0x2   : > { %p224_p1 = scmp.lt.s32.totalorder %s19636_s21, 3 }
   0x4   : > { %p225_p2 = pnand %p13858_p0, %p224_p1 }
   0x6   : > { %228 = sbr.rel (%p225_p2) target bundleno = 3308 (0xcec), region = 44 }
   0xd   : > { %v661_v0 = vld [vmem:[%s24908_s2] sm:$0xff]  ;;  %v662_v1 = vld [vmem:[%s24908_s2 + $0x8] sm:$0xff]  ;;  %v19690_v2 = vld [vmem:[%s24908_s2 + $0x10] sm:$0xff]  ;;  %s13859_s29 = sshll.u32 %s13854_s22, 7  ;;  %vm672_vm0 = vcmask 261120   ;;  %vm7146_vm1 = vcmask 523264  }
   0xe   : > { %v1058_v3 = vand.u32 4294901760, %v661_v0  ;;  %v1061_v4 = vand.u32 4294901760, %v662_v1  ;;  %v19695_v5 = vld [vmem:[%s24908_s2 + $0x18] sm:$0xff]  ;;  %v24931_v6 = vand.u32 4294901760, %v19690_v2  ;;  %p260_p3 = scmp.lt.s32.totalorder %s13859_s29, 255  ;;  %vm13657_vm2 = vcmask 31744  }
   0xf   : > { %v24930_v7 = vand.u32 4294901760, %v19695_v5 }
  0x10   : > { %v19699_v8 = vpack.c.bf16 %v1061_v4, %v1058_v3  ;;  %s27977_s29 = smov (!%p260_p3, %s13859_s29), 255  ;;  %v19701_v9 = vsub.f32 %v661_v0, %v1058_v3  ;;  %v19703_v10 = vsub.f32 %v662_v1, %v1061_v4 }
  0x11   : > { %v19709_v11 = vpack.c.bf16 %v24930_v7, %v24931_v6  ;;  %s19712_s8 = sshll.u32 %s27977_s29, 3 }
  0x12   : > { %26100 = vst [vmem:[#allocation2_spill] sm:$0xff] %v19701_v9  ;;  %26101 = vst [vmem:[#allocation3_spill] sm:$0xff] %v19703_v10  ;;  %17926 = vmatprep.subr.bf16.mxu0 %v19699_v8  ;;  %v24928_v12 = vand.u32 4294901760, %v19701_v9  ;;  %v24927_v13 = vand.u32 4294901760, %v19703_v10  ;;  %s19721_s11 = scalar_lea.vmem %s24906_s0, %s19712_s8  ;;  %s19727_s14 = scalar_lea.vmem %s24907_s1, %s19712_s8 }
  0x13   : > { %26102 = vst [vmem:[#allocation4_spill] sm:$0xff] %v19709_v11  ;;  %17928 = vmatpush3.bf16.msra.mxu0 %v19699_v8  ;;  %v277_v14 = vld [vmem:[%s19721_s11] sm:$0xff]  ;;  %v278_v18 = vld [vmem:[%s19721_s11 + $0x8] sm:$0xff]  ;;  %v279_v21 = vld [vmem:[%s19721_s11 + $0x10] sm:$0xff]  ;;  %s24502_s9 = scalar_lea.vmem %s24912_s6, %s19712_s8 }
  0x14   : > { %17930 = vmatprep.subr.bf16.mxu0 %v19709_v11  ;;  %v405_v15 = vld [vmem:[%s19727_s14] sm:$0xff]  ;;  %v2410_v16 = vsub.f32 %v19701_v9, %v24928_v12  ;;  %v2417_v17 = vsub.f32 %v19703_v10, %v24927_v13  ;;  %v406_v20 = vld [vmem:[%s19727_s14 + $0x8] sm:$0xff]  ;;  %v407_v22 = vld [vmem:[%s19727_s14 + $0x10] sm:$0xff] }
  0x15   : > { %v533_v19 = vadd.f32 %v405_v15, %v277_v14  ;;  %v534_v25 = vadd.f32 %v406_v20, %v278_v18  ;;  %v535_v26 = vadd.f32 %v407_v22, %v279_v21  ;;  %v280_v27 = vld [vmem:[%s19721_s11 + $0x18] sm:$0xff]  ;;  %v281_v29 = vld [vmem:[%s19721_s11 + $0x20] sm:$0xff]  ;;  %v282_v33 = vld [vmem:[%s19721_s11 + $0x28] sm:$0xff] }
  0x16   : > { %v2411_v23 = vand.u32 4294901760, %v2410_v16  ;;  %v2418_v24 = vand.u32 4294901760, %v2417_v17  ;;  %v408_v28 = vld [vmem:[%s19727_s14 + $0x18] sm:$0xff]  ;;  %v409_v32 = vld [vmem:[%s19727_s14 + $0x20] sm:$0xff]  ;;  %v410_v34 = vld [vmem:[%s19727_s14 + $0x28] sm:$0xff] }
  0x17   : > { %17932 = vmatpush3.bf16.msra.mxu0 %v19709_v11  ;;  %v674_v30 = vsel %vm672_vm0, %v533_v19, 0  ;;  %v536_v31 = vadd.f32 %v408_v28, %v280_v27  ;;  %v677_v37 = vsel %vm672_vm0, %v534_v25, 0  ;;  %v680_v38 = vsel %vm672_vm0, %v535_v26, 0  ;;  %v283_v39 = vld [vmem:[%s19721_s11 + $0x30] sm:$0xff]  ;;  %v284_v41 = vld [vmem:[%s19721_s11 + $0x38] sm:$0xff]  ;;  %v285_v17 = vld [vmem:[%s19721_s11 + $0x40] sm:$0xff] }
  0x18   : > { %v19750_v35 = vand.u32 4294901760, %v674_v30  ;;  %v17933_v36 = vpack.c.bf16 %v2418_v24, %v2411_v23  ;;  %v411_v40 = vld [vmem:[%s19727_s14 + $0x30] sm:$0xff]  ;;  %v19757_v42 = vand.u32 4294901760, %v677_v37  ;;  %v19759_v43 = vand.u32 4294901760, %v680_v38  ;;  %v412_v46 = vld [vmem:[%s19727_s14 + $0x38] sm:$0xff]  ;;  %v413_v18 = vld [vmem:[%s19727_s14 + $0x40] sm:$0xff] }
  0x19   : > { %v683_v44 = vsel %vm672_vm0, %v536_v31, 0  ;;  %v537_v45 = vadd.f32 %v409_v32, %v281_v29  ;;  %v538_v49 = vadd.f32 %v410_v34, %v282_v33  ;;  %v539_v50 = vadd.f32 %v411_v40, %v283_v39  ;;  %v286_v19 = vld [vmem:[%s19721_s11 + $0x48] sm:$0xff]  ;;  %v287_v25 = vld [vmem:[%s19721_s11 + $0x50] sm:$0xff]  ;;  %v288_v31 = vld [vmem:[%s19721_s11 + $0x58] sm:$0xff] }
  0x1a   : > { %26103 = vst [vmem:[#allocation5_spill] sm:$0xff] %v19750_v35  ;;  %26104 = vst [vmem:[#allocation6_spill] sm:$0xff] %v19757_v42  ;;  %v19764_v47 = vsub.f32 %v674_v30, %v19750_v35  ;;  %17934 = vmatprep.subr.bf16.mxu0 %v17933_v36  ;;  %v19766_v48 = vand.u32 4294901760, %v683_v44  ;;  %v19769_v51 = vsub.f32 %v677_v37, %v19757_v42  ;;  %v414_v24 = vld [vmem:[%s19727_s14 + $0x48] sm:$0xff]  ;;  %v415_v26 = vld [vmem:[%s19727_s14 + $0x50] sm:$0xff] }
  0x1b   : > { %26105 = vst [vmem:[#allocation7_spill] sm:$0xff] %v19759_v43  ;;  %v19772_v52 = vsub.f32 %v680_v38, %v19759_v43  ;;  %v686_v53 = vsel %vm672_vm0, %v537_v45, 0  ;;  %v540_v54 = vadd.f32 %v412_v46, %v284_v41  ;;  %v689_v58 = vsel %vm672_vm0, %v538_v49, 0  ;;  %v416_v32 = vld [vmem:[%s19727_s14 + $0x58] sm:$0xff]  ;;  %v289_v45 = vld [vmem:[%s19721_s11 + $0x60] sm:$0xff]  ;;  %v427_v13 = vld [vmem:[%s19727_s14 + $0xb0] sm:$0xff] }
  0x1c   : > { %26106 = vst [vmem:[#allocation8_spill] sm:$0xff] %v19764_v47  ;;  %26107 = vst [vmem:[#allocation9_spill] sm:$0xff] %v19766_v48  ;;  %v24924_v55 = vand.u32 4294901760, %v19764_v47  ;;  %v19777_v56 = vsub.f32 %v683_v44, %v19766_v48  ;;  %v19779_v57 = vand.u32 4294901760, %v686_v53  ;;  %v24923_v59 = vand.u32 4294901760, %v19769_v51 }
  0x1d   : > { %26108 = vst [vmem:[#allocation10_spill] sm:$0xff] %v19769_v51  ;;  %26109 = vst [vmem:[#allocation11_spill] sm:$0xff] %v19772_v52  ;;  %v24921_v60 = vand.u32 4294901760, %v19772_v52  ;;  %v19784_v61 = vand.u32 4294901760, %v689_v58  ;;  %v692_v62 = vsel %vm672_vm0, %v539_v50, 0  ;;  %v695_v16 = vsel %vm672_vm0, %v540_v54, 0 }
  0x1e   : > { %26110 = vst [vmem:[#allocation12_spill] sm:$0xff] %v19777_v56  ;;  %26111 = vst [vmem:[#allocation13_spill] sm:$0xff] %v19779_v57  ;;  %v1129_v63 = vsub.f32 %v19764_v47, %v24924_v55  ;;  %v24920_v0 = vand.u32 4294901760, %v19777_v56  ;;  %v19792_v1 = vsub.f32 %v686_v53, %v19779_v57  ;;  %v19794_v3 = vand.u32 4294901760, %v692_v62  ;;  %v417_v54 = vld [vmem:[%s19727_s14 + $0x60] sm:$0xff] }
  0x1f   : > { %26112 = vst [vmem:[#allocation14_spill] sm:$0xff] %v19784_v61  ;;  %v1139_v4 = vsub.f32 %v19769_v51, %v24923_v59  ;;  %v1149_v14 = vsub.f32 %v19772_v52, %v24921_v60  ;;  %v19803_v15 = vsub.f32 %v689_v58, %v19784_v61  ;;  %v19820_v30 = vand.u32 4294901760, %v695_v16  ;;  %v290_v58 = vld [vmem:[%s19721_s11 + $0x68] sm:$0xff]  ;;  %v297_v55 = vld [vmem:[%s19721_s11 + $0xa0] sm:$0xff] }
  0x20   : > { %26113 = vst [vmem:[#allocation15_spill] sm:$0xff] %v19792_v1  ;;  %26114 = vst [vmem:[#allocation16_spill] sm:$0xff] %v19794_v3  ;;  %v1130_v20 = vand.u32 4294901760, %v1129_v63  ;;  %v1159_v21 = vsub.f32 %v19777_v56, %v24920_v0  ;;  %v24919_v22 = vand.u32 4294901760, %v19792_v1  ;;  %v19814_v23 = vsub.f32 %v692_v62, %v19794_v3  ;;  %v418_v62 = vld [vmem:[%s19727_s14 + $0x68] sm:$0xff] }
  0x21   : > { %26115 = vst [vmem:[#allocation17_spill] sm:$0xff] %v19803_v15  ;;  %v1140_v27 = vand.u32 4294901760, %v1139_v4  ;;  %v1150_v28 = vand.u32 4294901760, %v1149_v14  ;;  %v24918_v29 = vand.u32 4294901760, %v19803_v15  ;;  %26117 = vst [vmem:[#allocation19_spill] sm:$0xff] %v19820_v30  ;;  %v541_v38 = vadd.f32 %v413_v18, %v285_v17  ;;  %v419_v17 = vld [vmem:[%s19727_s14 + $0x70] sm:$0xff] }
  0x22   : > { %26116 = vst [vmem:[#allocation18_spill] sm:$0xff] %v19814_v23  ;;  %15485 = vmatprep.mubr.f32.mxu0 %v1130_v20  ;;  %v1160_v33 = vand.u32 4294901760, %v1159_v21  ;;  %v1169_v34 = vsub.f32 %v19792_v1, %v24919_v22  ;;  %v24916_v37 = vand.u32 4294901760, %v19814_v23  ;;  %v19832_v40 = vsub.f32 %v695_v16, %v19820_v30 }
  0x23   : > { %15486 = vmatmul.mubr.f32.vlgmr.msra.gmra.mrb[0].mxu0 %v1140_v27  ;;  %v1179_v39 = vsub.f32 %v19803_v15, %v24918_v29  ;;  %v542_v41 = vadd.f32 %v414_v24, %v286_v19  ;;  %v543_v44 = vadd.f32 %v415_v26, %v287_v25  ;;  %v698_v50 = vsel %vm672_vm0, %v541_v38, 0 }
  0x24   : > { %26118 = vst [vmem:[#allocation20_spill] sm:$0xff] %v19832_v40  ;;  %17936 = vmatpush3.bf16.msra.mxu0 %v17933_v36  ;;  %15488 = vmatprep.mubr.f32.mxu0 %v1150_v28  ;;  %v1170_v46 = vand.u32 4294901760, %v1169_v34  ;;  %v1189_v49 = vsub.f32 %v19814_v23, %v24916_v37  ;;  %v544_v53 = vadd.f32 %v416_v32, %v288_v31  ;;  %v24915_v4 = vand.u32 4294901760, %v19832_v40  ;;  %v291_v36 = vld [vmem:[%s19721_s11 + $0x70] sm:$0xff] }
  0x25   : > { %v1180_v63 = vand.u32 4294901760, %v1179_v39  ;;  %v19843_v14 = vand.u32 4294901760, %v698_v50  ;;  %v701_v16 = vsel %vm672_vm0, %v542_v41, 0  ;;  %v704_v20 = vsel %vm672_vm0, %v543_v44, 0  ;;  %v292_v44 = vld [vmem:[%s19721_s11 + $0x78] sm:$0xff] }
  0x26   : > { %v1190_v18 = vand.u32 4294901760, %v1189_v49  ;;  %v19848_v19 = vand.u32 4294901760, %v701_v16  ;;  %v707_v21 = vsel %vm672_vm0, %v544_v53, 0  ;;  %v1199_v24 = vsub.f32 %v19832_v40, %v24915_v4  ;;  %v420_v49 = vld [vmem:[%s19727_s14 + $0x78] sm:$0xff] }
  0x27   : > { %26119 = vst [vmem:[#allocation21_spill] sm:$0xff] %v19843_v14  ;;  %15489 = vmatmul.mubr.f32.gmra.mrb[2].mxu0 %v1160_v33  ;;  %v19856_v25 = vsub.f32 %v698_v50, %v19843_v14  ;;  %v19858_v26 = vand.u32 4294901760, %v704_v20  ;;  %v19860_v27 = vand.u32 4294901760, %v707_v21  ;;  %v545_v31 = vadd.f32 %v417_v54, %v289_v45 }
  0x28   : > { %26120 = vst [vmem:[#allocation22_spill] sm:$0xff] %v19848_v19  ;;  %15491 = vmatprep.mubr.f32.mxu0 %v1170_v46  ;;  %v19863_v28 = vsub.f32 %v701_v16, %v19848_v19  ;;  %v546_v32 = vadd.f32 %v418_v62, %v290_v58  ;;  %v547_v34 = vadd.f32 %v419_v17, %v291_v36  ;;  %v1200_v38 = vand.u32 4294901760, %v1199_v24  ;;  %v421_v24 = vld [vmem:[%s19727_s14 + $0x80] sm:$0xff] }
  0x29   : > { %26121 = vst [vmem:[#allocation23_spill] sm:$0xff] %v19856_v25  ;;  %26122 = vst [vmem:[#allocation24_spill] sm:$0xff] %v19858_v26  ;;  %v24914_v33 = vand.u32 4294901760, %v19856_v25  ;;  %v19867_v39 = vsub.f32 %v704_v20, %v19858_v26  ;;  %v19870_v41 = vsub.f32 %v707_v21, %v19860_v27  ;;  %v710_v50 = vsel %vm672_vm0, %v545_v31, 0  ;;  %v293_v21 = vld [vmem:[%s19721_s11 + $0x80] sm:$0xff] }
  0x2a   : > { %26123 = vst [vmem:[#allocation25_spill] sm:$0xff] %v19860_v27  ;;  %26124 = vst [vmem:[#allocation26_spill] sm:$0xff] %v19863_v28  ;;  %v24913_v46 = vand.u32 4294901760, %v19863_v28  ;;  %v713_v45 = vsel %vm672_vm0, %v546_v32, 0  ;;  %v716_v53 = vsel %vm672_vm0, %v547_v34, 0  ;;  %v19883_v16 = vand.u32 4294901760, %v710_v50 }
  0x2b   : > { %26125 = vst [vmem:[#allocation27_spill] sm:$0xff] %v19867_v39  ;;  %26126 = vst [vmem:[#allocation28_spill] sm:$0xff] %v19870_v41  ;;  %15492 = vmatmul.mubr.f32.gmra.mrb[4].mxu0 %v1180_v63  ;;  %v1209_v54 = vsub.f32 %v19856_v25, %v24914_v33  ;;  %v24917_v58 = vand.u32 4294901760, %v19867_v39  ;;  %v24922_v62 = vand.u32 4294901760, %v19870_v41  ;;  %v19888_v17 = vand.u32 4294901760, %v713_v45  ;;  %v294_v34 = vld [vmem:[%s19721_s11 + $0x88] sm:$0xff] }
  0x2c   : > { %26127 = vst [vmem:[#allocation29_spill] sm:$0xff] %v19883_v16  ;;  %15494 = vmatprep.mubr.f32.mxu0 %v1190_v18  ;;  %v1219_v36 = vsub.f32 %v19863_v28, %v24913_v46  ;;  %v19890_v63 = vand.u32 4294901760, %v716_v53  ;;  %v548_v20 = vadd.f32 %v420_v49, %v292_v44  ;;  %v19898_v18 = vsub.f32 %v710_v50, %v19883_v16  ;;  %v422_v46 = vld [vmem:[%s19727_s14 + $0x88] sm:$0xff]  ;;  %v295_v33 = vld [vmem:[%s19721_s11 + $0x90] sm:$0xff]  ;;  %v424_v50 = vld [vmem:[%s19727_s14 + $0x98] sm:$0xff] }
  0x2d   : > { %26128 = vst [vmem:[#allocation30_spill] sm:$0xff] %v19888_v17  ;;  %v1210_v31 = vand.u32 4294901760, %v1209_v54  ;;  %v1229_v32 = vsub.f32 %v19867_v39, %v24917_v58  ;;  %v1239_v4 = vsub.f32 %v19870_v41, %v24922_v62  ;;  %v19907_v37 = vsub.f32 %v713_v45, %v19888_v17  ;;  %v423_v54 = vld [vmem:[%s19727_s14 + $0x90] sm:$0xff]  ;;  %v296_v58 = vld [vmem:[%s19721_s11 + $0x98] sm:$0xff] }
  0x2e   : > { %26129 = vst [vmem:[#allocation31_spill] sm:$0xff] %v19890_v63  ;;  %26130 = vst [vmem:[#allocation32_spill] sm:$0xff] %v19898_v18  ;;  %v19910_v44 = vsub.f32 %v716_v53, %v19890_v63  ;;  %v719_v49 = vsel %vm672_vm0, %v548_v20, 0  ;;  %v1220_v29 = vand.u32 4294901760, %v1219_v36  ;;  %v24925_v0 = vand.u32 4294901760, %v19898_v18 }
  0x2f   : > { %26131 = vst [vmem:[#allocation33_spill] sm:$0xff] %v19907_v37  ;;  %15495 = vmatmul.mubr.f32.gmra.mrb[6].mxu0 %v1200_v38  ;;  %v1230_v22 = vand.u32 4294901760, %v1229_v32  ;;  %v19917_v60 = vand.u32 4294901760, %v719_v49  ;;  %v24926_v45 = vand.u32 4294901760, %v19907_v37  ;;  %v549_v20 = vadd.f32 %v421_v24, %v293_v21 }
  0x30   : > { %26132 = vst [vmem:[#allocation34_spill] sm:$0xff] %v19910_v44  ;;  %15497 = vmatprep.mubr.f32.mxu0 %v1210_v31  ;;  %v24929_v53 = vand.u32 4294901760, %v19910_v44  ;;  %v550_v62 = vadd.f32 %v422_v46, %v294_v34  ;;  %v1249_v38 = vsub.f32 %v19898_v18, %v24925_v0  ;;  %v551_v32 = vadd.f32 %v423_v54, %v295_v33  ;;  %v425_v34 = vld [vmem:[%s19727_s14 + $0xa0] sm:$0xff]  ;;  %v426_v0 = vld [vmem:[%s19727_s14 + $0xa8] sm:$0xff] }
  0x31   : > { %26133 = vst [vmem:[#allocation35_spill] sm:$0xff] %v19917_v60  ;;  %v19925_v36 = vsub.f32 %v719_v49, %v19917_v60  ;;  %v552_v59 = vadd.f32 %v424_v50, %v296_v58  ;;  %v1259_v31 = vsub.f32 %v19907_v37, %v24926_v45  ;;  %v722_v21 = vsel %vm672_vm0, %v549_v20, 0  ;;  %v298_v49 = vld [vmem:[%s19721_s11 + $0xa8] sm:$0xff]  ;;  %v299_v45 = vld [vmem:[%s19721_s11 + $0xb0] sm:$0xff]  ;;  %v428_v37 = vld [vmem:[%s19727_s14 + $0xb8] sm:$0xff] }
  0x32   : > { %v1269_v46 = vsub.f32 %v19910_v44, %v24929_v53  ;;  %v725_v24 = vsel %vm672_vm0, %v550_v62, 0  ;;  %v1240_v33 = vand.u32 4294901760, %v1239_v4  ;;  %v19940_v54 = vand.u32 4294901760, %v722_v21 }
  0x33   : > { %26134 = vst [vmem:[#allocation36_spill] sm:$0xff] %v19925_v36  ;;  %15498 = vmatmul.mubr.f32.gmra.mrb[8].mxu0 %v1220_v29  ;;  %v19942_v50 = vand.u32 4294901760, %v725_v24  ;;  %v1250_v12 = vand.u32 4294901760, %v1249_v38  ;;  %v1260_v53 = vand.u32 4294901760, %v1259_v31  ;;  %v728_v20 = vsel %vm672_vm0, %v551_v32, 0 }
  0x34   : > { %26135 = vst [vmem:[#allocation37_spill] sm:$0xff] %v19940_v54  ;;  %15500 = vmatprep.mubr.f32.mxu0 %v1230_v22  ;;  %v731_v62 = vsel %vm672_vm0, %v552_v59, 0  ;;  %v1270_v7 = vand.u32 4294901760, %v1269_v46  ;;  %v19949_v29 = vsub.f32 %v722_v21, %v19940_v54  ;;  %v19954_v6 = vand.u32 4294901760, %v728_v20 }
  0x35   : > { %26136 = vst [vmem:[#allocation38_spill] sm:$0xff] %v19942_v50  ;;  %v19952_v4 = vsub.f32 %v725_v24, %v19942_v50  ;;  %v19956_v58 = vand.u32 4294901760, %v731_v62  ;;  %v553_v22 = vadd.f32 %v425_v34, %v297_v55  ;;  %v554_v38 = vadd.f32 %v426_v0, %v298_v49  ;;  %v300_v24 = vld [vmem:[%s19721_s11 + $0xb8] sm:$0xff] }
  0x36   : > { %26137 = vst [vmem:[#allocation39_spill] sm:$0xff] %v19949_v29  ;;  %26139 = vst [vmem:[#allocation41_spill] sm:$0xff] %v19954_v6  ;;  %v555_v31 = vadd.f32 %v427_v13, %v299_v45  ;;  %v26141_v32 = vand.u32 4294901760, %v19925_v36  ;;  %v24936_v59 = vand.u32 4294901760, %v19949_v29  ;;  %v19964_v21 = vsub.f32 %v728_v20, %v19954_v6 }
  0x37   : > { %26138 = vst [vmem:[#allocation40_spill] sm:$0xff] %v19952_v4  ;;  %26140 = vst [vmem:[#allocation42_spill] sm:$0xff] %v19956_v58  ;;  %15501 = vmatmul.mubr.f32.gmra.mrb[10].mxu0 %v1240_v33  ;;  %v24939_v46 = vand.u32 4294901760, %v19952_v4  ;;  %v19969_v55 = vsub.f32 %v731_v62, %v19956_v58  ;;  %v734_v13 = vsel %vm672_vm0, %v553_v22, 0  ;;  %v737_v0 = vsel %vm672_vm0, %v554_v38, 0 }
  0x38   : > { %v1279_v44 = vsub.f32 %v19925_v36, %v26141_v32  ;;  %26142 = vst [vmem:[#allocation43_spill] sm:$0xff] %v19964_v21  ;;  %15503 = vmatprep.mubr.f32.mxu0 %v1250_v12  ;;  %v740_v45 = vsel %vm672_vm0, %v555_v31, 0  ;;  %v1289_v34 = vsub.f32 %v19949_v29, %v24936_v59  ;;  %v19981_v33 = vand.u32 4294901760, %v734_v13  ;;  %v301_v31 = vld [vmem:[%s19721_s11 + $0xc0] sm:$0xff]  ;;  %v302_v12 = vld [vmem:[%s19721_s11 + $0xc8] sm:$0xff] }
  0x39   : > { %26143 = vst [vmem:[#allocation44_spill] sm:$0xff] %v19969_v55  ;;  %v1299_v49 = vsub.f32 %v19952_v4, %v24939_v46  ;;  %v19984_v62 = vand.u32 4294901760, %v737_v0  ;;  %v19986_v22 = vand.u32 4294901760, %v740_v45  ;;  %v556_v38 = vadd.f32 %v428_v37, %v300_v24  ;;  %v429_v32 = vld [vmem:[%s19727_s14 + $0xc0] sm:$0xff]  ;;  %v430_v4 = vld [vmem:[%s19727_s14 + $0xc8] sm:$0xff]  ;;  %v431_v24 = vld [vmem:[%s19727_s14 + $0xd0] sm:$0xff] }
  0x3a   : > { %26144 = vst [vmem:[#allocation45_spill] sm:$0xff] %v19981_v33  ;;  %v1280_v59 = vand.u32 4294901760, %v1279_v44  ;;  %v1290_v29 = vand.u32 4294901760, %v1289_v34  ;;  %v19991_v46 = vsub.f32 %v734_v13, %v19981_v33  ;;  %v26148_v20 = vand.u32 4294901760, %v19964_v21  ;;  %v303_v44 = vld [vmem:[%s19721_s11 + $0xd0] sm:$0xff] }
  0x3b   : > { %26145 = vst [vmem:[#allocation46_spill] sm:$0xff] %v19984_v62  ;;  %26146 = vst [vmem:[#allocation47_spill] sm:$0xff] %v19986_v22  ;;  %15504 = vmatmul.mubr.f32.gmra.mrb[12].mxu0 %v1260_v53  ;;  %v19999_v18 = vsub.f32 %v737_v0, %v19984_v62  ;;  %v20002_v37 = vsub.f32 %v740_v45, %v19986_v22  ;;  %v743_v53 = vsel %vm672_vm0, %v556_v38, 0  ;;  %v26151_v13 = vand.u32 4294901760, %v19969_v55  ;;  %v305_v45 = vld [vmem:[%s19721_s11 + $0xe0] sm:$0xff] }
  0x3c   : > { %26147 = vst [vmem:[#allocation48_spill] sm:$0xff] %v19991_v46  ;;  %15506 = vmatprep.mubr.f32.mxu0 %v1270_v7  ;;  %v1309_v36 = vsub.f32 %v19964_v21, %v26148_v20  ;;  %v24956_v34 = vand.u32 4294901760, %v19991_v46  ;;  %v20011_v20 = vand.u32 4294901760, %v743_v53  ;;  %v557_v0 = vadd.f32 %v429_v32, %v301_v31  ;;  %v304_v31 = vld [vmem:[%s19721_s11 + $0xd8] sm:$0xff] }
  0x3d   : > { %26149 = vst [vmem:[#allocation49_spill] sm:$0xff] %v19999_v18  ;;  %26150 = vst [vmem:[#allocation50_spill] sm:$0xff] %v20002_v37  ;;  %v1319_v7 = vsub.f32 %v19969_v55, %v26151_v13  ;;  %v1300_v21 = vand.u32 4294901760, %v1299_v49  ;;  %v558_v41 = vadd.f32 %v430_v4, %v302_v12  ;;  %v559_v49 = vadd.f32 %v431_v24, %v303_v44  ;;  %v432_v32 = vld [vmem:[%s19727_s14 + $0xd8] sm:$0xff]  ;;  %v306_v12 = vld [vmem:[%s19721_s11 + $0xe8] sm:$0xff] }
  0x3e   : > { %26152 = vst [vmem:[#allocation51_spill] sm:$0xff] %v20011_v20  ;;  %v1329_v39 = vsub.f32 %v19991_v46, %v24956_v34  ;;  %v20019_v13 = vsub.f32 %v743_v53, %v20011_v20  ;;  %v746_v55 = vsel %vm672_vm0, %v557_v0, 0  ;;  %v1310_v38 = vand.u32 4294901760, %v1309_v36  ;;  %v434_v34 = vld [vmem:[%s19727_s14 + $0xe8] sm:$0xff]  ;;  %v307_v24 = vld [vmem:[%s19721_s11 + $0xf0] sm:$0xff] }
  0x3f   : > { %15507 = vmatmul.mubr.f32.gmra.mrb[14].mxu0 %v1280_v59  ;;  %v20025_v28 = vand.u32 4294901760, %v746_v55  ;;  %v749_v4 = vsel %vm672_vm0, %v558_v41, 0  ;;  %v433_v59 = vld [vmem:[%s19727_s14 + $0xe0] sm:$0xff]  ;;  %v1320_v46 = vand.u32 4294901760, %v1319_v7  ;;  %v752_v44 = vsel %vm672_vm0, %v559_v49, 0  ;;  %v435_v0 = vld [vmem:[%s19727_s14 + $0xf0] sm:$0xff] }
  0x40   : > { %26153 = vst [vmem:[#allocation52_spill] sm:$0xff] %v20019_v13  ;;  %15509 = vmatprep.mubr.f32.mxu0 %v1290_v29  ;;  %v20032_v25 = vand.u32 4294901760, %v749_v4  ;;  %v26156_v29 = vand.u32 4294901760, %v19999_v18  ;;  %v26157_v41 = vand.u32 4294901760, %v20002_v37  ;;  %v20046_v53 = vand.u32 4294901760, %v752_v44 }
  0x41   : > { %26154 = vst [vmem:[#allocation53_spill] sm:$0xff] %v20025_v28  ;;  %v20044_v7 = vsub.f32 %v746_v55, %v20025_v28  ;;  %v1330_v23 = vand.u32 4294901760, %v1329_v39  ;;  %v560_v15 = vadd.f32 %v432_v32, %v304_v31  ;;  %v561_v1 = vadd.f32 %v433_v59, %v305_v45  ;;  %v308_v55 = vld [vmem:[%s19721_s11 + $0xf8] sm:$0xff] }
  0x42   : > { %26155 = vst [vmem:[#allocation54_spill] sm:$0xff] %v20032_v25  ;;  %v1339_v36 = vsub.f32 %v19999_v18, %v26156_v29  ;;  %v1349_v40 = vsub.f32 %v20002_v37, %v26157_v41  ;;  %26159 = vst [vmem:[#allocation56_spill] sm:$0xff] %v20046_v53  ;;  %v20049_v49 = vsub.f32 %v749_v4, %v20032_v25  ;;  %v436_v37 = vld [vmem:[%s19727_s14 + $0xf8] sm:$0xff]  ;;  %v26162_v11 = vand.u32 4294901760, %v20019_v13 }
  0x43   : > { %26158 = vst [vmem:[#allocation55_spill] sm:$0xff] %v20044_v7  ;;  %15510 = vmatmul.mubr.f32.gmra.mrb[16].mxu0 %v1300_v21  ;;  %v24977_v56 = vand.u32 4294901760, %v20044_v7  ;;  %v20053_v29 = vsub.f32 %v752_v44, %v20046_v53  ;;  %v562_v18 = vadd.f32 %v434_v34, %v306_v12  ;;  %v563_v41 = vadd.f32 %v435_v0, %v307_v24  ;;  %v438_v0 = vld [vmem:[%s19727_s14 + $0x108] sm:$0xff] }
  0x44   : > { %26160 = vst [vmem:[#allocation57_spill] sm:$0xff] %v20049_v49  ;;  %15512 = vmatprep.mubr.f32.mxu0 %v1310_v38  ;;  %v1359_v39 = vsub.f32 %v20019_v13, %v26162_v11  ;;  %v755_v21 = vsel %vm672_vm0, %v560_v15, 0  ;;  %v758_v31 = vsel %vm672_vm0, %v561_v1, 0  ;;  %v1340_v45 = vand.u32 4294901760, %v1339_v36  ;;  %v309_v1 = vld [vmem:[%s19721_s11 + $0x100] sm:$0xff] }
  0x45   : > { %26161 = vst [vmem:[#allocation58_spill] sm:$0xff] %v20053_v29  ;;  %v24984_v38 = vand.u32 4294901760, %v20049_v49  ;;  %v20063_v32 = vand.u32 4294901760, %v755_v21  ;;  %v20065_v34 = vand.u32 4294901760, %v758_v31  ;;  %v1350_v4 = vand.u32 4294901760, %v1349_v40 }
  0x46   : > { %v761_v59 = vsel %vm672_vm0, %v562_v18, 0  ;;  %v764_v11 = vsel %vm672_vm0, %v563_v41, 0  ;;  %v564_v15 = vadd.f32 %v436_v37, %v308_v55  ;;  %v1369_v12 = vsub.f32 %v20044_v7, %v24977_v56  ;;  %v437_v18 = vld [vmem:[%s19727_s14 + $0x100] sm:$0xff]  ;;  %v311_v55 = vld [vmem:[%s19721_s11 + $0x110] sm:$0xff] }
  0x47   : > { %26163 = vst [vmem:[#allocation59_spill] sm:$0xff] %v20063_v32  ;;  %26164 = vst [vmem:[#allocation60_spill] sm:$0xff] %v20065_v34  ;;  %15513 = vmatmul.mubr.f32.gmra.mrb[18].mxu0 %v1320_v46  ;;  %v20075_v24 = vsub.f32 %v755_v21, %v20063_v32  ;;  %v20078_v40 = vsub.f32 %v758_v31, %v20065_v34  ;;  %v310_v46 = vld [vmem:[%s19721_s11 + $0x108] sm:$0xff]  ;;  %v1360_v36 = vand.u32 4294901760, %v1359_v39  ;;  %v20083_v41 = vand.u32 4294901760, %v761_v59  ;;  %v439_v56 = vld [vmem:[%s19727_s14 + $0x110] sm:$0xff] }
  0x48   : > { %15515 = vmatprep.mubr.f32.mxu0 %v1330_v23  ;;  %v20085_v37 = vand.u32 4294901760, %v764_v11  ;;  %v767_v23 = vsel %vm672_vm0, %v564_v15, 0  ;;  %v1379_v21 = vsub.f32 %v20049_v49, %v24984_v38  ;;  %v565_v13 = vadd.f32 %v437_v18, %v309_v1 }
  0x49   : > { %26165 = vst [vmem:[#allocation61_spill] sm:$0xff] %v20075_v24  ;;  %26166 = vst [vmem:[#allocation62_spill] sm:$0xff] %v20078_v40  ;;  %v20095_v7 = vand.u32 4294901760, %v767_v23  ;;  %v20098_v39 = vsub.f32 %v761_v59, %v20083_v41  ;;  %v566_v52 = vadd.f32 %v438_v0, %v310_v46  ;;  %v1370_v38 = vand.u32 4294901760, %v1369_v12  ;;  %v312_v46 = vld [vmem:[%s19721_s11 + $0x118] sm:$0xff]  ;;  %v313_v0 = vld [vmem:[%s19721_s11 + $0x120] sm:$0xff] }
  0x4a   : > { %26167 = vst [vmem:[#allocation63_spill] sm:$0xff] %v20083_v41  ;;  %26168 = vst [vmem:[#allocation64_spill] sm:$0xff] %v20085_v37  ;;  %v20101_v15 = vsub.f32 %v764_v11, %v20085_v37  ;;  %v26172_v44 = vand.u32 4294901760, %v20053_v29  ;;  %v567_v49 = vadd.f32 %v439_v56, %v311_v55  ;;  %v26173_v51 = vand.u32 4294901760, %v20075_v24  ;;  %v441_v55 = vld [vmem:[%s19727_s14 + $0x120] sm:$0xff]  ;;  %v443_v37 = vld [vmem:[%s19727_s14 + $0x130] sm:$0xff] }
  0x4b   : > { %26169 = vst [vmem:[#allocation65_spill] sm:$0xff] %v20095_v7  ;;  %15516 = vmatmul.mubr.f32.gmra.mrb[20].mxu0 %v1340_v45  ;;  %26170 = vst [vmem:[#allocation66_spill] sm:$0xff] %v20098_v39  ;;  %v26174_v59 = vand.u32 4294901760, %v20078_v40  ;;  %v770_v1 = vsel %vm672_vm0, %v565_v13, 0  ;;  %v773_v18 = vsel %vm672_vm0, %v566_v52, 0  ;;  %v1380_v13 = vand.u32 4294901760, %v1379_v21 }
  0x4c   : > { %26171 = vst [vmem:[#allocation67_spill] sm:$0xff] %v20101_v15  ;;  %15518 = vmatprep.mubr.f32.mxu0 %v1350_v4  ;;  %v1389_v31 = vsub.f32 %v20053_v29, %v26172_v44  ;;  %v1399_v45 = vsub.f32 %v20075_v24, %v26173_v51  ;;  %v440_v4 = vld [vmem:[%s19727_s14 + $0x118] sm:$0xff]  ;;  %v20119_v44 = vsub.f32 %v767_v23, %v20095_v7  ;;  %v20121_v51 = vand.u32 4294901760, %v770_v1  ;;  %v314_v24 = vld [vmem:[%s19721_s11 + $0x128] sm:$0xff]  ;;  %v315_v21 = vld [vmem:[%s19721_s11 + $0x130] sm:$0xff] }
  0x4d   : > { %v1409_v11 = vsub.f32 %v20078_v40, %v26174_v59  ;;  %v20125_v52 = vand.u32 4294901760, %v773_v18  ;;  %v776_v59 = vsel %vm672_vm0, %v567_v49, 0  ;;  %v568_v40 = vadd.f32 %v440_v4, %v312_v46  ;;  %v442_v29 = vld [vmem:[%s19727_s14 + $0x128] sm:$0xff]  ;;  %v316_v46 = vld [vmem:[%s19721_s11 + $0x138] sm:$0xff] }
  0x4e   : > { %26175 = vst [vmem:[#allocation68_spill] sm:$0xff] %v20119_v44  ;;  %26176 = vst [vmem:[#allocation69_spill] sm:$0xff] %v20121_v51  ;;  %v1390_v12 = vand.u32 4294901760, %v1389_v31  ;;  %v20129_v56 = vsub.f32 %v770_v1, %v20121_v51  ;;  %v20131_v23 = vand.u32 4294901760, %v776_v59  ;;  %v1400_v47 = vand.u32 4294901760, %v1399_v45  ;;  %v444_v4 = vld [vmem:[%s19727_s14 + $0x138] sm:$0xff] }
  0x4f   : > { %15519 = vmatmul.mubr.f32.gmra.mrb[22].mxu0 %v1360_v36  ;;  %26177 = vst [vmem:[#allocation70_spill] sm:$0xff] %v20125_v52  ;;  %v1410_v7 = vand.u32 4294901760, %v1409_v11  ;;  %v569_v36 = vadd.f32 %v441_v55, %v313_v0  ;;  %v26180_v41 = vand.u32 4294901760, %v20098_v39  ;;  %v779_v51 = vsel %vm672_vm0, %v568_v40, 0  ;;  %v445_v55 = vld [vmem:[%s19727_s14 + $0x140] sm:$0xff] }
  0x50   : > { %15521 = vmatprep.mubr.f32.mxu0 %v1370_v38  ;;  %26178 = vst [vmem:[#allocation71_spill] sm:$0xff] %v20129_v56  ;;  %26179 = vst [vmem:[#allocation72_spill] sm:$0xff] %v20131_v23  ;;  %v26181_v38 = vand.u32 4294901760, %v20101_v15  ;;  %v20148_v45 = vsub.f32 %v773_v18, %v20125_v52  ;;  %v20150_v11 = vand.u32 4294901760, %v779_v51  ;;  %v570_v0 = vadd.f32 %v442_v29, %v314_v24  ;;  %v320_v52 = vld [vmem:[%s19721_s11 + $0x158] sm:$0xff] }
  0x51   : > { %v1419_v49 = vsub.f32 %v20098_v39, %v26180_v41  ;;  %v782_v41 = vsel %vm672_vm0, %v569_v36, 0  ;;  %v20155_v40 = vsub.f32 %v776_v59, %v20131_v23  ;;  %v317_v36 = vld [vmem:[%s19721_s11 + $0x140] sm:$0xff]  ;;  %v26187_v29 = vand.u32 4294901760, %v20119_v44 }
  0x52   : > { %v1429_v31 = vsub.f32 %v20101_v15, %v26181_v38  ;;  %26182 = vst [vmem:[#allocation73_spill] sm:$0xff] %v20148_v45  ;;  %26183 = vst [vmem:[#allocation74_spill] sm:$0xff] %v20150_v11  ;;  %v20157_v38 = vand.u32 4294901760, %v782_v41  ;;  %v20160_v18 = vsub.f32 %v779_v51, %v20150_v11  ;;  %v785_v1 = vsel %vm672_vm0, %v570_v0, 0 }
  0x53   : > { %15522 = vmatmul.mubr.f32.gmra.mrb[24].mxu0 %v1380_v13  ;;  %26184 = vst [vmem:[#allocation75_spill] sm:$0xff] %v20155_v40  ;;  %v571_v13 = vadd.f32 %v443_v37, %v315_v21  ;;  %v572_v15 = vadd.f32 %v444_v4, %v316_v46  ;;  %v1439_v24 = vsub.f32 %v20119_v44, %v26187_v29  ;;  %v20170_v59 = vand.u32 4294901760, %v785_v1  ;;  %v318_v37 = vld [vmem:[%s19721_s11 + $0x148] sm:$0xff]  ;;  %v319_v4 = vld [vmem:[%s19721_s11 + $0x150] sm:$0xff] }
  0x54   : > { %15524 = vmatprep.mubr.f32.mxu0 %v1390_v12  ;;  %26185 = vst [vmem:[#allocation76_spill] sm:$0xff] %v20157_v38  ;;  %26186 = vst [vmem:[#allocation77_spill] sm:$0xff] %v20160_v18  ;;  %v20168_v12 = vsub.f32 %v782_v41, %v20157_v38  ;;  %v446_v21 = vld [vmem:[%s19727_s14 + $0x148] sm:$0xff]  ;;  %v1420_v51 = vand.u32 4294901760, %v1419_v49  ;;  %v447_v29 = vld [vmem:[%s19727_s14 + $0x150] sm:$0xff]  ;;  %v1430_v41 = vand.u32 4294901760, %v1429_v31  ;;  %v573_v39 = vadd.f32 %v445_v55, %v317_v36 }
  0x55   : > { %26189 = vst [vmem:[#allocation79_spill] sm:$0xff] %v20170_v59  ;;  %v788_v0 = vsel %vm672_vm0, %v571_v13, 0  ;;  %v791_v46 = vsel %vm672_vm0, %v572_v15, 0  ;;  %v26190_v44 = vand.u32 4294901760, %v20129_v56  ;;  %v574_v13 = vadd.f32 %v446_v21, %v318_v37 }
  0x56   : > { %26188 = vst [vmem:[#allocation78_spill] sm:$0xff] %v20168_v12  ;;  %v25027_v23 = vand.u32 4294901760, %v20168_v12  ;;  %v20189_v15 = vsub.f32 %v785_v1, %v20170_v59  ;;  %v575_v31 = vadd.f32 %v447_v29, %v319_v4  ;;  %v1440_v11 = vand.u32 4294901760, %v1439_v24  ;;  %v324_v59 = vld [vmem:[%s19721_s11 + $0x178] sm:$0xff] }
  0x57   : > { %15525 = vmatmul.mubr.f32.gmra.mrb[26].mxu0 %v1400_v47  ;;  %v1449_v38 = vsub.f32 %v20129_v56, %v26190_v44  ;;  %v20184_v47 = vand.u32 4294901760, %v788_v0  ;;  %v448_v44 = vld [vmem:[%s19727_s14 + $0x158] sm:$0xff]  ;;  %v26194_v56 = vand.u32 4294901760, %v20148_v45  ;;  %v794_v55 = vsel %vm672_vm0, %v573_v39, 0 }
  0x58   : > { %15527 = vmatprep.mubr.f32.mxu0 %v1410_v7  ;;  %26192 = vst [vmem:[#allocation81_spill] sm:$0xff] %v20189_v15  ;;  %v20191_v7 = vand.u32 4294901760, %v791_v46  ;;  %v797_v36 = vsel %vm672_vm0, %v574_v13, 0  ;;  %v26195_v37 = vand.u32 4294901760, %v20155_v40  ;;  %v20206_v24 = vand.u32 4294901760, %v794_v55 }
  0x59   : > { %26191 = vst [vmem:[#allocation80_spill] sm:$0xff] %v20184_v47  ;;  %v1459_v49 = vsub.f32 %v20148_v45, %v26194_v56  ;;  %v1450_v1 = vand.u32 4294901760, %v1449_v38  ;;  %v20204_v4 = vsub.f32 %v788_v0, %v20184_v47  ;;  %v449_v56 = vld [vmem:[%s19727_s14 + $0x160] sm:$0xff]  ;;  %v26198_v39 = vand.u32 4294901760, %v20160_v18  ;;  %v322_v45 = vld [vmem:[%s19721_s11 + $0x168] sm:$0xff] }
  0x5a   : > { %26193 = vst [vmem:[#allocation82_spill] sm:$0xff] %v20191_v7  ;;  %v1469_v21 = vsub.f32 %v20155_v40, %v26195_v37  ;;  %26197 = vst [vmem:[#allocation84_spill] sm:$0xff] %v20206_v24  ;;  %v800_v13 = vsel %vm672_vm0, %v575_v31, 0  ;;  %v1489_v38 = vsub.f32 %v20168_v12, %v25027_v23  ;;  %v20219_v0 = vsub.f32 %v791_v46, %v20191_v7  ;;  %v450_v47 = vld [vmem:[%s19727_s14 + $0x168] sm:$0xff]  ;;  %v323_v23 = vld [vmem:[%s19721_s11 + $0x170] sm:$0xff] }
  0x5b   : > { %15528 = vmatmul.mubr.f32.gmra.mrb[28].mxu0 %v1420_v51  ;;  %26196 = vst [vmem:[#allocation83_spill] sm:$0xff] %v20204_v4  ;;  %v321_v51 = vld [vmem:[%s19721_s11 + $0x160] sm:$0xff]  ;;  %v1479_v29 = vsub.f32 %v20160_v18, %v26198_v39  ;;  %v20221_v40 = vand.u32 4294901760, %v797_v36  ;;  %v1460_v39 = vand.u32 4294901760, %v1459_v49  ;;  %v20225_v31 = vand.u32 4294901760, %v800_v13  ;;  %v451_v7 = vld [vmem:[%s19727_s14 + $0x170] sm:$0xff] }
  0x5c   : > { %15530 = vmatprep.mubr.f32.mxu0 %v1430_v41  ;;  %v576_v41 = vadd.f32 %v448_v44, %v320_v52  ;;  %26199 = vst [vmem:[#allocation85_spill] sm:$0xff] %v20219_v0  ;;  %v577_v44 = vadd.f32 %v449_v56, %v321_v51  ;;  %v1470_v37 = vand.u32 4294901760, %v1469_v21  ;;  %v25040_v12 = vand.u32 4294901760, %v20204_v4 }
  0x5d   : > { %26200 = vst [vmem:[#allocation86_spill] sm:$0xff] %v20221_v40  ;;  %26201 = vst [vmem:[#allocation87_spill] sm:$0xff] %v20225_v31  ;;  %v20231_v46 = vsub.f32 %v794_v55, %v20206_v24  ;;  %v1480_v49 = vand.u32 4294901760, %v1479_v29  ;;  %v578_v32 = vadd.f32 %v450_v47, %v322_v45  ;;  %v1490_v51 = vand.u32 4294901760, %v1489_v38  ;;  %v325_v38 = vld [vmem:[%s19721_s11 + $0x180] sm:$0xff]  ;;  %v326_v55 = vld [vmem:[%s19721_s11 + $0x188] sm:$0xff] }
  0x5e   : > { %v803_v52 = vsel %vm672_vm0, %v576_v41, 0  ;;  %v806_v34 = vsel %vm672_vm0, %v577_v44, 0  ;;  %v20244_v56 = vsub.f32 %v797_v36, %v20221_v40  ;;  %v20247_v41 = vsub.f32 %v800_v13, %v20225_v31  ;;  %v453_v13 = vld [vmem:[%s19727_s14 + $0x180] sm:$0xff]  ;;  %v456_v24 = vld [vmem:[%s19727_s14 + $0x198] sm:$0xff] }
  0x5f   : > { %15531 = vmatmul.mubr.f32.gmra.mrb[30].mxu0 %v1440_v11  ;;  %26202 = vst [vmem:[#allocation88_spill] sm:$0xff] %v20231_v46  ;;  %v20233_v18 = vand.u32 4294901760, %v803_v52  ;;  %v452_v11 = vld [vmem:[%s19727_s14 + $0x178] sm:$0xff]  ;;  %v809_v29 = vsel %vm672_vm0, %v578_v32, 0  ;;  %v579_v45 = vadd.f32 %v451_v7, %v323_v23  ;;  %v1509_v44 = vsub.f32 %v20204_v4, %v25040_v12  ;;  %v454_v32 = vld [vmem:[%s19727_s14 + $0x188] sm:$0xff]  ;;  %v455_v4 = vld [vmem:[%s19727_s14 + $0x190] sm:$0xff] }
  0x60   : > { %15533 = vmatprep.mubr.f32.mxu0 %v1450_v1  ;;  %v26204_v1 = vand.u32 4294901760, %v20189_v15  ;;  %26205 = vst [vmem:[#allocation90_spill] sm:$0xff] %v20244_v56  ;;  %26206 = vst [vmem:[#allocation91_spill] sm:$0xff] %v20247_v41  ;;  %v580_v47 = vadd.f32 %v452_v11, %v324_v59  ;;  %v20263_v23 = vand.u32 4294901760, %v809_v29  ;;  %v581_v31 = vadd.f32 %v453_v13, %v325_v38 }
  0x61   : > { %26203 = vst [vmem:[#allocation89_spill] sm:$0xff] %v20233_v18  ;;  %v20256_v36 = vsub.f32 %v803_v52, %v20233_v18  ;;  %v812_v59 = vsel %vm672_vm0, %v579_v45, 0  ;;  %v1510_v45 = vand.u32 4294901760, %v1509_v44  ;;  %v26215_v38 = vand.u32 4294901760, %v20244_v56 }
  0x62   : > { %v1499_v21 = vsub.f32 %v20189_v15, %v26204_v1  ;;  %26209 = vst [vmem:[#allocation94_spill] sm:$0xff] %v20263_v23  ;;  %v20270_v52 = vand.u32 4294901760, %v812_v59  ;;  %v327_v1 = vld [vmem:[%s19721_s11 + $0x190] sm:$0xff]  ;;  %v815_v18 = vsel %vm672_vm0, %v580_v47, 0  ;;  %v20286_v15 = vsub.f32 %v809_v29, %v20263_v23 }
  0x63   : > { %15534 = vmatmul.mubr.f32.gmra.mrb[32].mxu0 %v1460_v39  ;;  %26207 = vst [vmem:[#allocation92_spill] sm:$0xff] %v20256_v36  ;;  %v20258_v39 = vand.u32 4294901760, %v806_v34  ;;  %v25065_v12 = vand.u32 4294901760, %v20256_v36  ;;  %v818_v47 = vsel %vm672_vm0, %v581_v31, 0  ;;  %v1539_v44 = vsub.f32 %v20244_v56, %v26215_v38  ;;  %v330_v56 = vld [vmem:[%s19721_s11 + $0x1a8] sm:$0xff] }
  0x64   : > { %15536 = vmatprep.mubr.f32.mxu0 %v1470_v37  ;;  %v1500_v7 = vand.u32 4294901760, %v1499_v21  ;;  %v26210_v37 = vand.u32 4294901760, %v20219_v0  ;;  %26211 = vst [vmem:[#allocation95_spill] sm:$0xff] %v20270_v52  ;;  %v582_v21 = vadd.f32 %v454_v32, %v326_v55  ;;  %26214 = vst [vmem:[#allocation97_spill] sm:$0xff] %v20286_v15  ;;  %v583_v55 = vadd.f32 %v455_v4, %v327_v1  ;;  %v329_v32 = vld [vmem:[%s19721_s11 + $0x1a0] sm:$0xff] }
  0x65   : > { %26208 = vst [vmem:[#allocation93_spill] sm:$0xff] %v20258_v39  ;;  %v20281_v40 = vsub.f32 %v806_v34, %v20258_v39  ;;  %v20293_v13 = vsub.f32 %v812_v59, %v20270_v52  ;;  %v20295_v34 = vand.u32 4294901760, %v815_v18  ;;  %v26218_v29 = vand.u32 4294901760, %v20247_v41 }
  0x66   : > { %v1519_v11 = vsub.f32 %v20219_v0, %v26210_v37  ;;  %v26212_v37 = vand.u32 4294901760, %v20231_v46  ;;  %v20302_v31 = vand.u32 4294901760, %v818_v47  ;;  %v821_v1 = vsel %vm672_vm0, %v582_v21, 0 }
  0x67   : > { %15537 = vmatmul.mubr.f32.gmra.mrb[34].mxu0 %v1480_v49  ;;  %26213 = vst [vmem:[#allocation96_spill] sm:$0xff] %v20281_v40  ;;  %v328_v49 = vld [vmem:[%s19721_s11 + $0x198] sm:$0xff]  ;;  %26216 = vst [vmem:[#allocation98_spill] sm:$0xff] %v20293_v13  ;;  %v1549_v4 = vsub.f32 %v20247_v41, %v26218_v29  ;;  %v1559_v38 = vsub.f32 %v20256_v36, %v25065_v12  ;;  %v824_v41 = vsel %vm672_vm0, %v583_v55, 0  ;;  %v20319_v23 = vand.u32 4294901760, %v821_v1  ;;  %v459_v12 = vld [vmem:[%s19727_s14 + $0x1b0] sm:$0xff] }
  0x68   : > { %15539 = vmatprep.mubr.f32.mxu0 %v1490_v51  ;;  %v1529_v0 = vsub.f32 %v20231_v46, %v26212_v37  ;;  %v1520_v51 = vand.u32 4294901760, %v1519_v11  ;;  %26217 = vst [vmem:[#allocation99_spill] sm:$0xff] %v20295_v34  ;;  %v457_v37 = vld [vmem:[%s19727_s14 + $0x1a0] sm:$0xff]  ;;  %26219 = vst [vmem:[#allocation100_spill] sm:$0xff] %v20302_v31  ;;  %v584_v11 = vadd.f32 %v456_v24, %v328_v49  ;;  %v458_v46 = vld [vmem:[%s19727_s14 + $0x1a8] sm:$0xff] }
  0x69   : > { %v585_v24 = vadd.f32 %v457_v37, %v329_v32  ;;  %v331_v49 = vld [vmem:[%s19721_s11 + $0x1b0] sm:$0xff]  ;;  %v20317_v52 = vsub.f32 %v815_v18, %v20295_v34  ;;  %26221 = vst [vmem:[#allocation102_spill] sm:$0xff] %v20319_v23  ;;  %v460_v36 = vld [vmem:[%s19727_s14 + $0x1b8] sm:$0xff]  ;;  %v1550_v39 = vand.u32 4294901760, %v1549_v4  ;;  %v20325_v29 = vsub.f32 %v818_v47, %v20302_v31  ;;  %v333_v31 = vld [vmem:[%s19721_s11 + $0x1c0] sm:$0xff] }
  0x6a   : > { %v1530_v59 = vand.u32 4294901760, %v1529_v0  ;;  %v827_v21 = vsel %vm672_vm0, %v584_v11, 0  ;;  %v1560_v32 = vand.u32 4294901760, %v1559_v38  ;;  %v26223_v18 = vand.u32 4294901760, %v20281_v40 }
  0x6b   : > { %15540 = vmatmul.mubr.f32.gmra.mrb[36].mxu0 %v1500_v7  ;;  %26220 = vst [vmem:[#allocation101_spill] sm:$0xff] %v20317_v52  ;;  %v332_v7 = vld [vmem:[%s19721_s11 + $0x1b8] sm:$0xff]  ;;  %26222 = vst [vmem:[#allocation103_spill] sm:$0xff] %v20325_v29  ;;  %v830_v55 = vsel %vm672_vm0, %v585_v24, 0  ;;  %v20331_v11 = vand.u32 4294901760, %v824_v41  ;;  %v20333_v0 = vand.u32 4294901760, %v827_v21  ;;  %v587_v24 = vadd.f32 %v459_v12, %v331_v49 }
  0x6c   : > { %15542 = vmatprep.mubr.f32.mxu0 %v1510_v45  ;;  %v1540_v45 = vand.u32 4294901760, %v1539_v44  ;;  %v586_v44 = vadd.f32 %v458_v46, %v330_v56  ;;  %v1569_v37 = vsub.f32 %v20281_v40, %v26223_v18  ;;  %v588_v46 = vadd.f32 %v460_v36, %v332_v7  ;;  %v334_v49 = vld [vmem:[%s19721_s11 + $0x1c8] sm:$0xff] }
  0x6d   : > { %26224 = vst [vmem:[#allocation104_spill] sm:$0xff] %v20331_v11  ;;  %26225 = vst [vmem:[#allocation105_spill] sm:$0xff] %v20333_v0  ;;  %v26227_v56 = vand.u32 4294901760, %v20293_v13  ;;  %v20344_v18 = vsub.f32 %v821_v1, %v20319_v23  ;;  %v20346_v40 = vand.u32 4294901760, %v830_v55  ;;  %v836_v36 = vsel %vm672_vm0, %v587_v24, 0 }
  0x6e   : > { %v833_v4 = vsel %vm672_vm0, %v586_v44, 0  ;;  %v839_v7 = vsel %vm672_vm0, %v588_v46, 0  ;;  %v1570_v1 = vand.u32 4294901760, %v1569_v37  ;;  %v20358_v38 = vsub.f32 %v824_v41, %v20331_v11  ;;  %v463_v44 = vld [vmem:[%s19727_s14 + $0x1d0] sm:$0xff]  ;;  %v465_v41 = vld [vmem:[%s19727_s14 + $0x1e0] sm:$0xff] }
  0x6f   : > { %15543 = vmatmul.mubr.f32.gmra.mrb[38].mxu0 %v1520_v51  ;;  %v26226_v51 = vand.u32 4294901760, %v20286_v15  ;;  %26228 = vst [vmem:[#allocation106_spill] sm:$0xff] %v20344_v18  ;;  %26229 = vst [vmem:[#allocation107_spill] sm:$0xff] %v20346_v40  ;;  %v20351_v12 = vand.u32 4294901760, %v833_v4  ;;  %v20367_v34 = vand.u32 4294901760, %v839_v7  ;;  %v26235_v46 = vand.u32 4294901760, %v20317_v52 }
  0x70   : > { %15545 = vmatprep.mubr.f32.mxu0 %v1530_v59  ;;  %v1589_v59 = vsub.f32 %v20293_v13, %v26227_v56  ;;  %v462_v56 = vld [vmem:[%s19727_s14 + $0x1c8] sm:$0xff]  ;;  %26231 = vst [vmem:[#allocation109_spill] sm:$0xff] %v20358_v38  ;;  %v20361_v13 = vsub.f32 %v827_v21, %v20333_v0  ;;  %v20374_v37 = vsub.f32 %v830_v55, %v20346_v40  ;;  %v26237_v11 = vand.u32 4294901760, %v20325_v29 }
  0x71   : > { %v1579_v47 = vsub.f32 %v20286_v15, %v26226_v51  ;;  %v461_v51 = vld [vmem:[%s19727_s14 + $0x1c0] sm:$0xff]  ;;  %26230 = vst [vmem:[#allocation108_spill] sm:$0xff] %v20351_v12  ;;  %v20363_v15 = vand.u32 4294901760, %v836_v36  ;;  %26234 = vst [vmem:[#allocation112_spill] sm:$0xff] %v20367_v34  ;;  %v590_v21 = vadd.f32 %v462_v56, %v334_v49  ;;  %v464_v49 = vld [vmem:[%s19727_s14 + $0x1d8] sm:$0xff]  ;;  %v20391_v56 = vsub.f32 %v839_v7, %v20367_v34 }
  0x72   : > { %26232 = vst [vmem:[#allocation110_spill] sm:$0xff] %v20361_v13  ;;  %v589_v24 = vadd.f32 %v461_v51, %v333_v31  ;;  %26236 = vst [vmem:[#allocation113_spill] sm:$0xff] %v20374_v37  ;;  %v1590_v0 = vand.u32 4294901760, %v1589_v59  ;;  %v20380_v31 = vsub.f32 %v833_v4, %v20351_v12  ;;  %v336_v59 = vld [vmem:[%s19721_s11 + $0x1d8] sm:$0xff]  ;;  %v26241_v4 = vand.u32 4294901760, %v20344_v18 }
  0x73   : > { %15546 = vmatmul.mubr.f32.gmra.mrb[40].mxu0 %v1540_v45  ;;  %26233 = vst [vmem:[#allocation111_spill] sm:$0xff] %v20363_v15  ;;  %v335_v45 = vld [vmem:[%s19721_s11 + $0x1d0] sm:$0xff]  ;;  %v1580_v23 = vand.u32 4294901760, %v1579_v47  ;;  %v1609_v47 = vsub.f32 %v20325_v29, %v26237_v11  ;;  %v20385_v55 = vsub.f32 %v836_v36, %v20363_v15  ;;  %26240 = vst [vmem:[#allocation116_spill] sm:$0xff] %v20391_v56  ;;  %v337_v36 = vld [vmem:[%s19721_s11 + $0x1e0] sm:$0xff]  ;;  %v26251_v40 = vand.u32 4294901760, %v20391_v56 }
  0x74   : > { %15548 = vmatprep.mubr.f32.mxu0 %v1550_v39  ;;  %v1599_v39 = vsub.f32 %v20317_v52, %v26235_v46  ;;  %26238 = vst [vmem:[#allocation114_spill] sm:$0xff] %v20380_v31  ;;  %v591_v51 = vadd.f32 %v463_v44, %v335_v45  ;;  %v1619_v44 = vsub.f32 %v20344_v18, %v26241_v4  ;;  %v845_v45 = vsel %vm672_vm0, %v590_v21, 0  ;;  %v466_v52 = vld [vmem:[%s19727_s14 + $0x1e8] sm:$0xff] }
  0x75   : > { %26239 = vst [vmem:[#allocation115_spill] sm:$0xff] %v20385_v55  ;;  %v1610_v29 = vand.u32 4294901760, %v1609_v47  ;;  %v26243_v4 = vand.u32 4294901760, %v20358_v38  ;;  %v26244_v21 = vand.u32 4294901760, %v20361_v13  ;;  %v20414_v34 = vand.u32 4294901760, %v845_v45 }
  0x76   : > { %v1600_v11 = vand.u32 4294901760, %v1599_v39  ;;  %v848_v7 = vsel %vm672_vm0, %v591_v51, 0  ;;  %v592_v39 = vadd.f32 %v464_v49, %v336_v59  ;;  %v1620_v47 = vand.u32 4294901760, %v1619_v44 }
  0x77   : > { %15549 = vmatmul.mubr.f32.gmra.mrb[42].mxu0 %v1560_v32  ;;  %v842_v32 = vsel %vm672_vm0, %v589_v24, 0  ;;  %v1639_v18 = vsub.f32 %v20361_v13, %v26244_v21  ;;  %v338_v24 = vld [vmem:[%s19721_s11 + $0x1e8] sm:$0xff]  ;;  %26245 = vst [vmem:[#allocation118_spill] sm:$0xff] %v20414_v34  ;;  %v26246_v59 = vand.u32 4294901760, %v20374_v37  ;;  %v467_v21 = vld [vmem:[%s19727_s14 + $0x1f0] sm:$0xff]  ;;  %v26250_v12 = vand.u32 4294901760, %v20385_v55 }
  0x78   : > { %15551 = vmatprep.mubr.f32.mxu0 %v1570_v1  ;;  %v20401_v46 = vand.u32 4294901760, %v842_v32  ;;  %v1629_v1 = vsub.f32 %v20358_v38, %v26243_v4  ;;  %v20419_v4 = vand.u32 4294901760, %v848_v7  ;;  %v339_v38 = vld [vmem:[%s19721_s11 + $0x1f0] sm:$0xff]  ;;  %v594_v44 = vadd.f32 %v466_v52, %v338_v24 }
  0x79   : > { %v1649_v49 = vsub.f32 %v20374_v37, %v26246_v59  ;;  %v468_v59 = vld [vmem:[%s19727_s14 + $0x1f8] sm:$0xff]  ;;  %v1640_v15 = vand.u32 4294901760, %v1639_v18  ;;  %v595_v24 = vadd.f32 %v467_v21, %v339_v38  ;;  %v19621_v38 = vld [vmem:[%s24908_s2 + $0x10] sm:$0xff] }
  0x7a   : > { %26242 = vst [vmem:[#allocation117_spill] sm:$0xff] %v20401_v46  ;;  %26247 = vst [vmem:[#allocation119_spill] sm:$0xff] %v20419_v4  ;;  %v20429_v51 = vsub.f32 %v842_v32, %v20401_v46  ;;  %v1630_v37 = vand.u32 4294901760, %v1629_v1  ;;  %v20445_v32 = vsub.f32 %v845_v45, %v20414_v34  ;;  %v20451_v18 = vsub.f32 %v848_v7, %v20419_v4  ;;  %v342_v45 = vld [vmem:[%s19721_s11 + $0x208] sm:$0xff] }
  0x7b   : > { %15552 = vmatmul.mubr.f32.gmra.mrb[44].mxu0 %v1580_v23  ;;  %v26248_v23 = vand.u32 4294901760, %v20380_v31  ;;  %v1650_v1 = vand.u32 4294901760, %v1649_v49  ;;  %v26255_v7 = vand.u32 4294901760, %v19690_v2 }
  0x7c   : > { %15554 = vmatprep.mubr.f32.mxu0 %v1590_v0  ;;  %v593_v0 = vadd.f32 %v465_v41, %v337_v36  ;;  %26249 = vst [vmem:[#allocation120_spill] sm:$0xff] %v20429_v51  ;;  %v851_v41 = vsel %vm672_vm0, %v592_v39, 0  ;;  %v340_v36 = vld [vmem:[%s19721_s11 + $0x1f8] sm:$0xff]  ;;  %26252 = vst [vmem:[#allocation121_spill] sm:$0xff] %v20445_v32  ;;  %v341_v39 = vld [vmem:[%s19721_s11 + $0x200] sm:$0xff]  ;;  %v26263_v4 = vand.u32 4294901760, %v20445_v32 }
  0x7d   : > { %v20426_v13 = vsub.f32 %v20380_v31, %v26248_v23  ;;  %v20442_v23 = vsub.f32 %v20391_v56, %v26251_v40  ;;  %26253 = vst [vmem:[#allocation122_spill] sm:$0xff] %v20451_v18  ;;  %v20463_v49 = vsub.f32 %v19621_v38, %v26255_v7  ;;  %v470_v56 = vld [vmem:[%s19727_s14 + $0x208] sm:$0xff]  ;;  %v343_v7 = vld [vmem:[%s19721_s11 + $0x210] sm:$0xff] }
  0x7e   : > { %v854_v52 = vsel %vm672_vm0, %v593_v0, 0  ;;  %v857_v0 = vsel %vm672_vm0, %v594_v44, 0  ;;  %v26257_v44 = vand.u32 4294901760, %v19695_v5  ;;  %v598_v31 = vadd.f32 %v470_v56, %v342_v45  ;;  %v473_v45 = vld [vmem:[%s19727_s14 + $0x220] sm:$0xff] }
  0x7f   : > { %15555 = vmatmul.mubr.f32.gmra.mrb[46].mxu0 %v1600_v11  ;;  %v20437_v11 = vsub.f32 %v20385_v55, %v26250_v12  ;;  %v20453_v12 = vand.u32 4294901760, %v851_v41  ;;  %v596_v55 = vadd.f32 %v468_v59, %v340_v36  ;;  %v1660_v40 = vand.u32 4294901760, %v20426_v13  ;;  %v19622_v36 = vld [vmem:[%s24908_s2 + $0x18] sm:$0xff] }
  0x80   : > { %15557 = vmatprep.mubr.f32.mxu0 %v1610_v29  ;;  %v469_v29 = vld [vmem:[%s19727_s14 + $0x200] sm:$0xff]  ;;  %v20473_v59 = vsub.f32 %v19622_v36, %v26257_v44  ;;  %v1680_v2 = vand.u32 4294901760, %v20442_v23  ;;  %v20487_v36 = vand.u32 4294901760, %v857_v0  ;;  %v26260_v23 = vand.u32 4294901760, %v20429_v51 }
  0x81   : > { %26254 = vst [vmem:[#allocation123_spill] sm:$0xff] %v20453_v12  ;;  %v1670_v21 = vand.u32 4294901760, %v20437_v11  ;;  %v597_v13 = vadd.f32 %v469_v29, %v341_v39  ;;  %v25118_v11 = vand.u32 4294901760, %v20463_v49  ;;  %v471_v39 = vld [vmem:[%s19727_s14 + $0x210] sm:$0xff]  ;;  %v20485_v5 = vsub.f32 %v851_v41, %v20453_v12 }
  0x82   : > { %26259 = vst [vmem:[#allocation126_spill] sm:$0xff] %v20487_v36  ;;  %v863_v44 = vsel %vm672_vm0, %v596_v55, 0  ;;  %v25127_v29 = vand.u32 4294901760, %v20473_v59  ;;  %v599_v12 = vadd.f32 %v471_v39, %v343_v7  ;;  %v20520_v39 = vsub.f32 %v857_v0, %v20487_v36  ;;  %v348_v7 = vld [vmem:[%s19721_s11 + $0x238] sm:$0xff] }
  0x83   : > { %15558 = vmatmul.mubr.f32.gmra.mrb[48].mxu0 %v1620_v47  ;;  %v20466_v47 = vand.u32 4294901760, %v854_v52  ;;  %26258 = vst [vmem:[#allocation125_spill] sm:$0xff] %v20485_v5  ;;  %v2424_v38 = vsub.f32 %v20463_v49, %v25118_v11  ;;  %v1699_v11 = vsub.f32 %v20445_v32, %v26263_v4  ;;  %v20508_v34 = vand.u32 4294901760, %v863_v44  ;;  %v346_v32 = vld [vmem:[%s19721_s11 + $0x228] sm:$0xff] }
  0x84   : > { %15560 = vmatprep.mubr.f32.mxu0 %v1630_v37  ;;  %v860_v37 = vsel %vm672_vm0, %v595_v24, 0  ;;  %v1689_v24 = vsub.f32 %v20429_v51, %v26260_v23  ;;  %v344_v23 = vld [vmem:[%s19721_s11 + $0x218] sm:$0xff]  ;;  %26266 = vst [vmem:[#allocation130_spill] sm:$0xff] %v20520_v39  ;;  %v869_v4 = vsel %vm672_vm0, %v598_v31, 0  ;;  %v872_v53 = vsel %vm672_vm0, %v599_v12, 0 }
  0x85   : > { %26256 = vst [vmem:[#allocation124_spill] sm:$0xff] %v20466_v47  ;;  %v20498_v41 = vsub.f32 %v854_v52, %v20466_v47  ;;  %v20500_v55 = vand.u32 4294901760, %v860_v37  ;;  %v472_v51 = vld [vmem:[%s19727_s14 + $0x218] sm:$0xff]  ;;  %26264 = vst [vmem:[#allocation129_spill] sm:$0xff] %v20508_v34  ;;  %v2425_v56 = vand.u32 4294901760, %v2424_v38  ;;  %v2431_v52 = vsub.f32 %v20473_v59, %v25127_v29  ;;  %v474_v38 = vld [vmem:[%s19727_s14 + $0x228] sm:$0xff] }
  0x86   : > { %v26265_v47 = vand.u32 4294901760, %v20451_v18  ;;  %v600_v25 = vadd.f32 %v472_v51, %v344_v23  ;;  %v20535_v36 = vand.u32 4294901760, %v869_v4  ;;  %v602_v12 = vadd.f32 %v474_v38, %v346_v32  ;;  %v475_v51 = vld [vmem:[%s19727_s14 + $0x230] sm:$0xff] }
  0x87   : > { %15561 = vmatmul.mubr.f32.gmra.mrb[50].mxu0 %v1640_v15  ;;  %26261 = vst [vmem:[#allocation127_spill] sm:$0xff] %v20498_v41  ;;  %26262 = vst [vmem:[#allocation128_spill] sm:$0xff] %v20500_v55  ;;  %v866_v15 = vsel %vm672_vm0, %v597_v13, 0  ;;  %v2432_v29 = vand.u32 4294901760, %v2431_v52  ;;  %v20530_v0 = vsub.f32 %v860_v37, %v20500_v55  ;;  %v347_v52 = vld [vmem:[%s19721_s11 + $0x230] sm:$0xff]  ;;  %v20539_v23 = vand.u32 4294901760, %v872_v53 }
  0x88   : > { %15563 = vmatprep.mubr.f32.mxu0 %v1650_v1  ;;  %v345_v1 = vld [vmem:[%s19721_s11 + $0x220] sm:$0xff]  ;;  %v1709_v13 = vsub.f32 %v20451_v18, %v26265_v47  ;;  %v20525_v46 = vand.u32 4294901760, %v866_v15  ;;  %v1690_v47 = vand.u32 4294901760, %v1689_v24  ;;  %v20533_v18 = vsub.f32 %v863_v44, %v20508_v34  ;;  %26270 = vst [vmem:[#allocation134_spill] sm:$0xff] %v20535_v36 }
  0x89   : > { %26268 = vst [vmem:[#allocation132_spill] sm:$0xff] %v20530_v0  ;;  %v601_v31 = vadd.f32 %v473_v45, %v345_v1  ;;  %26271 = vst [vmem:[#allocation135_spill] sm:$0xff] %v20539_v23  ;;  %v26272_v37 = vand.u32 4294901760, %v20485_v5  ;;  %v875_v32 = vsel %vm672_vm0, %v600_v25, 0  ;;  %v349_v45 = vld [vmem:[%s19721_s11 + $0x240] sm:$0xff]  ;;  %v25140_v38 = vand.u32 4294901760, %v20530_v0 }
  0x8a   : > { %26267 = vst [vmem:[#allocation131_spill] sm:$0xff] %v20525_v46  ;;  %26269 = vst [vmem:[#allocation133_spill] sm:$0xff] %v20533_v18  ;;  %v1710_v24 = vand.u32 4294901760, %v1709_v13  ;;  %v26274_v13 = vand.u32 4294901760, %v20498_v41  ;;  %v603_v1 = vadd.f32 %v475_v51, %v347_v52  ;;  %v881_v25 = vsel %vm672_vm0, %v602_v12, 0  ;;  %v351_v51 = vld [vmem:[%s19721_s11 + $0x250] sm:$0xff] }
  0x8b   : > { %15564 = vmatmul.mubr.f32.gmra.mrb[52].mxu0 %v1660_v40  ;;  %v17937_v40 = vpack.c.bf16 %v2432_v29, %v2425_v56  ;;  %v1719_v44 = vsub.f32 %v20485_v5, %v26272_v37  ;;  %v20547_v29 = vsub.f32 %v866_v15, %v20525_v46  ;;  %v476_v56 = vld [vmem:[%s19727_s14 + $0x238] sm:$0xff]  ;;  %v878_v37 = vsel %vm672_vm0, %v601_v31, 0 }
  0x8c   : > { %15566 = vmatprep.mubr.f32.mxu0 %v1670_v21  ;;  %v1700_v21 = vand.u32 4294901760, %v1699_v11  ;;  %v477_v11 = vld [vmem:[%s19727_s14 + $0x240] sm:$0xff]  ;;  %v20560_v5 = vsub.f32 %v869_v4, %v20535_v36  ;;  %v20566_v46 = vand.u32 4294901760, %v875_v32  ;;  %v26278_v52 = vand.u32 4294901760, %v20520_v39 }
  0x8d   : > { %26273 = vst [vmem:[#allocation136_spill] sm:$0xff] %v20547_v29  ;;  %17938 = vmatprep.subr.bf16.mxu0 %v17937_v40  ;;  %v1720_v31 = vand.u32 4294901760, %v1719_v44  ;;  %v20572_v15 = vand.u32 4294901760, %v878_v37  ;;  %v1749_v12 = vsub.f32 %v20530_v0, %v25140_v38  ;;  %v26281_v44 = vand.u32 4294901760, %v20533_v18  ;;  %v353_v36 = vld [vmem:[%s19721_s11 + $0x260] sm:$0xff] }
  0x8e   : > { %17940 = vmatpush3.bf16.msra.mxu0 %v17937_v40  ;;  %26275 = vst [vmem:[#allocation137_spill] sm:$0xff] %v20560_v5  ;;  %26277 = vst [vmem:[#allocation139_spill] sm:$0xff] %v20566_v46  ;;  %v605_v40 = vadd.f32 %v477_v11, %v349_v45  ;;  %v1739_v4 = vsub.f32 %v20520_v39, %v26278_v52  ;;  %v478_v52 = vld [vmem:[%s19727_s14 + $0x248] sm:$0xff]  ;;  %v20590_v38 = vsub.f32 %v875_v32, %v20566_v46 }
  0x8f   : > { %15567 = vmatmul.mubr.f32.gmra.mrb[54].mxu0 %v1680_v2  ;;  %v1729_v2 = vsub.f32 %v20498_v41, %v26274_v13  ;;  %v604_v13 = vadd.f32 %v476_v56, %v348_v7  ;;  %26279 = vst [vmem:[#allocation140_spill] sm:$0xff] %v20572_v15  ;;  %v20577_v7 = vand.u32 4294901760, %v881_v25  ;;  %v884_v56 = vsel %vm672_vm0, %v603_v1, 0 }
  0x90   : > { %15569 = vmatprep.mubr.f32.mxu0 %v1690_v47  ;;  %v20564_v47 = vsub.f32 %v872_v53, %v20539_v23  ;;  %v1759_v45 = vsub.f32 %v20533_v18, %v26281_v44  ;;  %26282 = vst [vmem:[#allocation142_spill] sm:$0xff] %v20590_v38  ;;  %v890_v1 = vsel %vm672_vm0, %v605_v40, 0  ;;  %v1740_v44 = vand.u32 4294901760, %v1739_v4  ;;  %v352_v40 = vld [vmem:[%s19721_s11 + $0x258] sm:$0xff] }
  0x91   : > { %v1730_v53 = vand.u32 4294901760, %v1729_v2  ;;  %26280 = vst [vmem:[#allocation141_spill] sm:$0xff] %v20577_v7  ;;  %v887_v0 = vsel %vm672_vm0, %v604_v13, 0  ;;  %v26283_v11 = vand.u32 4294901760, %v20547_v29  ;;  %v20598_v39 = vsub.f32 %v878_v37, %v20572_v15  ;;  %v480_v23 = vld [vmem:[%s19727_s14 + $0x258] sm:$0xff] }
  0x92   : > { %26276 = vst [vmem:[#allocation138_spill] sm:$0xff] %v20564_v47  ;;  %v20600_v41 = vand.u32 4294901760, %v884_v56  ;;  %v1750_v32 = vand.u32 4294901760, %v1749_v12  ;;  %v20603_v2 = vsub.f32 %v881_v25, %v20577_v7  ;;  %v20609_v4 = vand.u32 4294901760, %v890_v1  ;;  %v483_v7 = vld [vmem:[%s19727_s14 + $0x270] sm:$0xff] }
  0x93   : > { %15570 = vmatmul.mubr.f32.gmra.mrb[56].mxu0 %v1700_v21  ;;  %v350_v21 = vld [vmem:[%s19721_s11 + $0x248] sm:$0xff]  ;;  %v1769_v18 = vsub.f32 %v20547_v29, %v26283_v11  ;;  %26284 = vst [vmem:[#allocation143_spill] sm:$0xff] %v20598_v39  ;;  %v481_v11 = vld [vmem:[%s19727_s14 + $0x260] sm:$0xff]  ;;  %v1760_v37 = vand.u32 4294901760, %v1759_v45  ;;  %v26289_v29 = vand.u32 4294901760, %v20560_v5  ;;  %v26290_v25 = vand.u32 4294901760, %v20564_v47 }
  0x94   : > { %15572 = vmatprep.mubr.f32.mxu0 %v1710_v24  ;;  %v479_v24 = vld [vmem:[%s19727_s14 + $0x250] sm:$0xff]  ;;  %26285 = vst [vmem:[#allocation144_spill] sm:$0xff] %v20600_v41  ;;  %26286 = vst [vmem:[#allocation145_spill] sm:$0xff] %v20603_v2  ;;  %v606_v13 = vadd.f32 %v478_v52, %v350_v21  ;;  %v608_v45 = vadd.f32 %v480_v23, %v352_v40  ;;  %v20633_v52 = vsub.f32 %v890_v1, %v20609_v4  ;;  %v356_v1 = vld [vmem:[%s19721_s11 + $0x278] sm:$0xff] }
  0x95   : > { %v607_v46 = vadd.f32 %v479_v24, %v351_v51  ;;  %26288 = vst [vmem:[#allocation147_spill] sm:$0xff] %v20609_v4  ;;  %v1789_v12 = vsub.f32 %v20564_v47, %v26290_v25  ;;  %v1770_v21 = vand.u32 4294901760, %v1769_v18  ;;  %v20622_v24 = vsub.f32 %v884_v56, %v20600_v41  ;;  %v482_v18 = vld [vmem:[%s19727_s14 + $0x268] sm:$0xff]  ;;  %v484_v47 = vld [vmem:[%s19727_s14 + $0x278] sm:$0xff]  ;;  %v485_v41 = vld [vmem:[%s19727_s14 + $0x280] sm:$0xff] }
  0x96   : > { %v609_v25 = vadd.f32 %v481_v11, %v353_v36  ;;  %26293 = vst [vmem:[#allocation150_spill] sm:$0xff] %v20633_v52 }
  0x97   : > { %15573 = vmatmul.mubr.f32.gmra.mrb[58].mxu0 %v1720_v31  ;;  %v20607_v31 = vand.u32 4294901760, %v887_v0  ;;  %26291 = vst [vmem:[#allocation148_spill] sm:$0xff] %v20622_v24  ;;  %v1790_v23 = vand.u32 4294901760, %v1789_v12 }
  0x98   : > { %15575 = vmatprep.mubr.f32.mxu0 %v1730_v53  ;;  %v1779_v53 = vsub.f32 %v20560_v5, %v26289_v29  ;;  %v893_v29 = vsel %vm672_vm0, %v606_v13, 0  ;;  %v896_v5 = vsel %vm672_vm0, %v607_v46, 0  ;;  %v355_v13 = vld [vmem:[%s19721_s11 + $0x270] sm:$0xff]  ;;  %v902_v4 = vsel %vm672_vm0, %v609_v25, 0 }
  0x99   : > { %26287 = vst [vmem:[#allocation146_spill] sm:$0xff] %v20607_v31  ;;  %v20630_v51 = vsub.f32 %v887_v0, %v20607_v31  ;;  %v20640_v46 = vand.u32 4294901760, %v893_v29  ;;  %v20642_v36 = vand.u32 4294901760, %v896_v5  ;;  %v899_v0 = vsel %vm672_vm0, %v608_v45, 0 }
  0x9a   : > { %v1780_v56 = vand.u32 4294901760, %v1779_v53  ;;  %v26297_v53 = vand.u32 4294901760, %v20598_v39  ;;  %v20657_v31 = vand.u32 4294901760, %v899_v0  ;;  %v20667_v25 = vand.u32 4294901760, %v902_v4 }
  0x9b   : > { %15576 = vmatmul.mubr.f32.gmra.mrb[60].mxu0 %v1740_v44  ;;  %v354_v44 = vld [vmem:[%s19721_s11 + $0x268] sm:$0xff]  ;;  %26292 = vst [vmem:[#allocation149_spill] sm:$0xff] %v20630_v51  ;;  %26295 = vst [vmem:[#allocation151_spill] sm:$0xff] %v20640_v46 }
  0x9c   : > { %15578 = vmatprep.mubr.f32.mxu0 %v1750_v32  ;;  %v26294_v32 = vand.u32 4294901760, %v20590_v38  ;;  %26296 = vst [vmem:[#allocation152_spill] sm:$0xff] %v20642_v36  ;;  %v610_v11 = vadd.f32 %v482_v18, %v354_v44  ;;  %v1809_v12 = vsub.f32 %v20598_v39, %v26297_v53  ;;  %v611_v18 = vadd.f32 %v483_v7, %v355_v13  ;;  %v357_v39 = vld [vmem:[%s19721_s11 + $0x280] sm:$0xff]  ;;  %v358_v7 = vld [vmem:[%s19721_s11 + $0x288] sm:$0xff] }
  0x9d   : > { %26299 = vst [vmem:[#allocation153_spill] sm:$0xff] %v20657_v31  ;;  %v612_v53 = vadd.f32 %v484_v47, %v356_v1  ;;  %26302 = vst [vmem:[#allocation156_spill] sm:$0xff] %v20667_v25  ;;  %v26303_v47 = vand.u32 4294901760, %v20622_v24 }
  0x9e   : > { %v1799_v40 = vsub.f32 %v20590_v38, %v26294_v32  ;;  %v26298_v32 = vand.u32 4294901760, %v20603_v2  ;;  %v20665_v38 = vsub.f32 %v896_v5, %v20642_v36  ;;  %v905_v44 = vsel %vm672_vm0, %v610_v11, 0 }
  0x9f   : > { %15579 = vmatmul.mubr.f32.gmra.mrb[62].mxu0 %v1760_v37  ;;  %v1810_v13 = vand.u32 4294901760, %v1809_v12  ;;  %v1829_v1 = vsub.f32 %v20622_v24, %v26303_v47  ;;  %v26305_v36 = vand.u32 4294901760, %v20633_v52  ;;  %v20685_v12 = vsub.f32 %v899_v0, %v20657_v31 }
  0xa0   : > { %15581 = vmatprep.mubr.f32.mxu0 %v1770_v21  ;;  %v1819_v37 = vsub.f32 %v20603_v2, %v26298_v32  ;;  %v1800_v21 = vand.u32 4294901760, %v1799_v40  ;;  %v20662_v32 = vsub.f32 %v893_v29, %v20640_v46  ;;  %26301 = vst [vmem:[#allocation155_spill] sm:$0xff] %v20665_v38  ;;  %v486_v40 = vld [vmem:[%s19727_s14 + $0x288] sm:$0xff]  ;;  %v487_v2 = vld [vmem:[%s19727_s14 + $0x290] sm:$0xff]  ;;  %v26304_v29 = vand.u32 4294901760, %v20630_v51 }
  0xa1   : > { %v1849_v11 = vsub.f32 %v20633_v52, %v26305_v36  ;;  %v908_v46 = vsel %vm672_vm0, %v611_v18, 0  ;;  %26306 = vst [vmem:[#allocation157_spill] sm:$0xff] %v20685_v12  ;;  %v911_v47 = vsel %vm672_vm0, %v612_v53, 0  ;;  %v614_v24 = vadd.f32 %v486_v40, %v358_v7  ;;  %v360_v18 = vld [vmem:[%s19721_s11 + $0x298] sm:$0xff]  ;;  %v489_v40 = vld [vmem:[%s19727_s14 + $0x2a0] sm:$0xff] }
  0xa2   : > { %26300 = vst [vmem:[#allocation154_spill] sm:$0xff] %v20662_v32  ;;  %v1820_v45 = vand.u32 4294901760, %v1819_v37  ;;  %v1839_v5 = vsub.f32 %v20630_v51, %v26304_v29  ;;  %v20687_v37 = vand.u32 4294901760, %v905_v44  ;;  %v25189_v29 = vand.u32 4294901760, %v20662_v32  ;;  %v488_v7 = vld [vmem:[%s19727_s14 + $0x298] sm:$0xff] }
  0xa3   : > { %15582 = vmatmul.mubr.f32.gmra.mrb[64].mxu0 %v1780_v56  ;;  %v359_v56 = vld [vmem:[%s19721_s11 + $0x290] sm:$0xff]  ;;  %v20693_v36 = vsub.f32 %v902_v4, %v20667_v25  ;;  %v20695_v0 = vand.u32 4294901760, %v908_v46  ;;  %v20698_v31 = vand.u32 4294901760, %v911_v47  ;;  %v1850_v51 = vand.u32 4294901760, %v1849_v11 }
  0xa4   : > { %15584 = vmatprep.mubr.f32.mxu0 %v1790_v23  ;;  %v613_v23 = vadd.f32 %v485_v41, %v357_v39  ;;  %26307 = vst [vmem:[#allocation158_spill] sm:$0xff] %v20687_v37  ;;  %v615_v41 = vadd.f32 %v487_v2, %v359_v56  ;;  %v1830_v39 = vand.u32 4294901760, %v1829_v1  ;;  %v1840_v52 = vand.u32 4294901760, %v1839_v5  ;;  %v363_v11 = vld [vmem:[%s19721_s11 + $0x2b0] sm:$0xff] }
  0xa5   : > { %26308 = vst [vmem:[#allocation159_spill] sm:$0xff] %v20693_v36  ;;  %26309 = vst [vmem:[#allocation160_spill] sm:$0xff] %v20695_v0  ;;  %v20706_v2 = vsub.f32 %v905_v44, %v20687_v37  ;;  %v1859_v1 = vsub.f32 %v20662_v32, %v25189_v29  ;;  %v26312_v56 = vand.u32 4294901760, %v20665_v38  ;;  %v20718_v44 = vsub.f32 %v908_v46, %v20695_v0  ;;  %v362_v37 = vld [vmem:[%s19721_s11 + $0x2a8] sm:$0xff] }
  0xa6   : > { %26310 = vst [vmem:[#allocation161_spill] sm:$0xff] %v20698_v31  ;;  %v914_v53 = vsel %vm672_vm0, %v613_v23, 0  ;;  %v920_v23 = vsel %vm672_vm0, %v615_v41, 0  ;;  %v490_v29 = vld [vmem:[%s19727_s14 + $0x2a8] sm:$0xff]  ;;  %v20725_v32 = vsub.f32 %v911_v47, %v20698_v31  ;;  %v26319_v47 = vand.u32 4294901760, %v20693_v36 }
  0xa7   : > { %15585 = vmatmul.mubr.f32.gmra.mrb[66].mxu0 %v1800_v21  ;;  %v361_v21 = vld [vmem:[%s19721_s11 + $0x2a0] sm:$0xff]  ;;  %26311 = vst [vmem:[#allocation162_spill] sm:$0xff] %v20706_v2  ;;  %v1869_v5 = vsub.f32 %v20665_v38, %v26312_v56  ;;  %26313 = vst [vmem:[#allocation163_spill] sm:$0xff] %v20718_v44  ;;  %v26317_v56 = vand.u32 4294901760, %v20685_v12  ;;  %v618_v38 = vadd.f32 %v490_v29, %v362_v37  ;;  %v26322_v29 = vand.u32 4294901760, %v20706_v2 }
  0xa8   : > { %15587 = vmatprep.mubr.f32.mxu0 %v1810_v13  ;;  %v917_v13 = vsel %vm672_vm0, %v614_v24, 0  ;;  %v20720_v24 = vand.u32 4294901760, %v914_v53  ;;  %v617_v4 = vadd.f32 %v489_v40, %v361_v21  ;;  %26315 = vst [vmem:[#allocation165_spill] sm:$0xff] %v20725_v32  ;;  %v1889_v40 = vsub.f32 %v20693_v36, %v26319_v47 }
  0xa9   : > { %v20727_v25 = vand.u32 4294901760, %v917_v13  ;;  %v1879_v41 = vsub.f32 %v20685_v12, %v26317_v56  ;;  %v1870_v21 = vand.u32 4294901760, %v1869_v5  ;;  %v493_v56 = vld [vmem:[%s19727_s14 + $0x2c0] sm:$0xff] }
  0xaa   : > { %26314 = vst [vmem:[#allocation164_spill] sm:$0xff] %v20720_v24  ;;  %v20742_v12 = vsub.f32 %v914_v53, %v20720_v24  ;;  %v926_v31 = vsel %vm672_vm0, %v617_v4, 0  ;;  %v1899_v53 = vsub.f32 %v20706_v2, %v26322_v29  ;;  %v365_v4 = vld [vmem:[%s19721_s11 + $0x2c0] sm:$0xff]  ;;  %v26326_v29 = vand.u32 4294901760, %v20718_v44 }
  0xab   : > { %15588 = vmatmul.mubr.f32.gmra.mrb[68].mxu0 %v1820_v45  ;;  %v616_v45 = vadd.f32 %v488_v7, %v360_v18  ;;  %26316 = vst [vmem:[#allocation166_spill] sm:$0xff] %v20727_v25  ;;  %v491_v18 = vld [vmem:[%s19727_s14 + $0x2b0] sm:$0xff]  ;;  %v1860_v7 = vand.u32 4294901760, %v1859_v1  ;;  %v492_v1 = vld [vmem:[%s19727_s14 + $0x2b8] sm:$0xff]  ;;  %v20750_v47 = vsub.f32 %v917_v13, %v20727_v25  ;;  %v20762_v5 = vand.u32 4294901760, %v926_v31 }
  0xac   : > { %15590 = vmatprep.mubr.f32.mxu0 %v1830_v39  ;;  %v20733_v39 = vand.u32 4294901760, %v920_v23  ;;  %26320 = vst [vmem:[#allocation168_spill] sm:$0xff] %v20742_v12  ;;  %v619_v37 = vadd.f32 %v491_v18, %v363_v11  ;;  %v929_v13 = vsel %vm672_vm0, %v618_v38, 0  ;;  %v494_v18 = vld [vmem:[%s19727_s14 + $0x2c8] sm:$0xff]  ;;  %v1890_v25 = vand.u32 4294901760, %v1889_v40 }
  0xad   : > { %v923_v46 = vsel %vm672_vm0, %v616_v45, 0  ;;  %26321 = vst [vmem:[#allocation169_spill] sm:$0xff] %v20750_v47  ;;  %26325 = vst [vmem:[#allocation172_spill] sm:$0xff] %v20762_v5  ;;  %v1909_v2 = vsub.f32 %v20718_v44, %v26326_v29  ;;  %v26327_v24 = vand.u32 4294901760, %v20725_v32  ;;  %v1900_v40 = vand.u32 4294901760, %v1899_v53 }
  0xae   : > { %26318 = vst [vmem:[#allocation167_spill] sm:$0xff] %v20733_v39  ;;  %v20756_v45 = vsub.f32 %v920_v23, %v20733_v39  ;;  %v20760_v36 = vand.u32 4294901760, %v923_v46  ;;  %v367_v39 = vld [vmem:[%s19721_s11 + $0x2d0] sm:$0xff]  ;;  %v20779_v15 = vand.u32 4294901760, %v929_v13  ;;  %v20785_v44 = vsub.f32 %v926_v31, %v20762_v5 }
  0xaf   : > { %15591 = vmatmul.mubr.f32.gmra.mrb[70].mxu0 %v1840_v52  ;;  %v364_v52 = vld [vmem:[%s19721_s11 + $0x2b8] sm:$0xff]  ;;  %v1919_v0 = vsub.f32 %v20725_v32, %v26327_v24  ;;  %v1910_v53 = vand.u32 4294901760, %v1909_v2  ;;  %v369_v32 = vld [vmem:[%s19721_s11 + $0x2e0] sm:$0xff] }
  0xb0   : > { %15593 = vmatprep.mubr.f32.mxu0 %v1850_v51  ;;  %v1880_v51 = vand.u32 4294901760, %v1879_v41  ;;  %26323 = vst [vmem:[#allocation170_spill] sm:$0xff] %v20756_v45  ;;  %26324 = vst [vmem:[#allocation171_spill] sm:$0xff] %v20760_v36  ;;  %v620_v11 = vadd.f32 %v492_v1, %v364_v52  ;;  %v366_v41 = vld [vmem:[%s19721_s11 + $0x2c8] sm:$0xff]  ;;  %v932_v52 = vsel %vm672_vm0, %v619_v37, 0  ;;  %v20782_v23 = vsub.f32 %v923_v46, %v20760_v36  ;;  %v368_v37 = vld [vmem:[%s19721_s11 + $0x2d8] sm:$0xff] }
  0xb1   : > { %26328 = vst [vmem:[#allocation173_spill] sm:$0xff] %v20779_v15  ;;  %v622_v29 = vadd.f32 %v494_v18, %v366_v41  ;;  %26330 = vst [vmem:[#allocation175_spill] sm:$0xff] %v20785_v44  ;;  %v20793_v41 = vand.u32 4294901760, %v932_v52  ;;  %v26333_v46 = vand.u32 4294901760, %v20750_v47 }
  0xb2   : > { %26329 = vst [vmem:[#allocation174_spill] sm:$0xff] %v20782_v23  ;;  %v935_v24 = vsel %vm672_vm0, %v620_v11, 0 }
  0xb3   : > { %15594 = vmatmul.mubr.f32.gmra.mrb[72].mxu0 %v1860_v7  ;;  %v495_v7 = vld [vmem:[%s19727_s14 + $0x2d0] sm:$0xff]  ;;  %26332 = vst [vmem:[#allocation176_spill] sm:$0xff] %v20793_v41  ;;  %v1939_v18 = vsub.f32 %v20750_v47, %v26333_v46  ;;  %v20804_v2 = vand.u32 4294901760, %v935_v24  ;;  %v941_v11 = vsel %vm672_vm0, %v622_v29, 0 }
  0xb4   : > { %15596 = vmatprep.mubr.f32.mxu0 %v1870_v21  ;;  %v621_v21 = vadd.f32 %v493_v56, %v365_v4  ;;  %v623_v38 = vadd.f32 %v495_v7, %v367_v39  ;;  %v496_v56 = vld [vmem:[%s19727_s14 + $0x2d8] sm:$0xff]  ;;  %v26331_v4 = vand.u32 4294901760, %v20742_v12  ;;  %v497_v39 = vld [vmem:[%s19727_s14 + $0x2e0] sm:$0xff]  ;;  %v20820_v5 = vand.u32 4294901760, %v941_v11 }
  0xb5   : > { %26335 = vst [vmem:[#allocation178_spill] sm:$0xff] %v20804_v2  ;;  %v624_v7 = vadd.f32 %v496_v56, %v368_v37  ;;  %v625_v37 = vadd.f32 %v497_v39, %v369_v32  ;;  %v370_v56 = vld [vmem:[%s19721_s11 + $0x2e8] sm:$0xff]  ;;  %v26343_v39 = vand.u32 4294901760, %v20785_v44 }
  0xb6   : > { %v1929_v1 = vsub.f32 %v20742_v12, %v26331_v4  ;;  %v938_v31 = vsel %vm672_vm0, %v621_v21, 0  ;;  %v944_v47 = vsel %vm672_vm0, %v623_v38, 0  ;;  %v20814_v12 = vsub.f32 %v932_v52, %v20793_v41  ;;  %26339 = vst [vmem:[#allocation181_spill] sm:$0xff] %v20820_v5  ;;  %v499_v21 = vld [vmem:[%s19727_s14 + $0x2f0] sm:$0xff]  ;;  %v500_v41 = vld [vmem:[%s19727_s14 + $0x2f8] sm:$0xff] }
  0xb7   : > { %15597 = vmatmul.mubr.f32.gmra.mrb[74].mxu0 %v1880_v51  ;;  %v1920_v51 = vand.u32 4294901760, %v1919_v0  ;;  %v26336_v0 = vand.u32 4294901760, %v20756_v45  ;;  %v20816_v29 = vand.u32 4294901760, %v938_v31  ;;  %v20826_v38 = vsub.f32 %v935_v24, %v20804_v2 }
  0xb8   : > { %15599 = vmatprep.mubr.f32.mxu0 %v1890_v25  ;;  %v20802_v25 = vsub.f32 %v929_v13, %v20779_v15  ;;  %v1930_v13 = vand.u32 4294901760, %v1929_v1  ;;  %26337 = vst [vmem:[#allocation179_spill] sm:$0xff] %v20814_v12  ;;  %v1940_v15 = vand.u32 4294901760, %v1939_v18  ;;  %v20828_v1 = vand.u32 4294901760, %v944_v47 }
  0xb9   : > { %v1949_v4 = vsub.f32 %v20756_v45, %v26336_v0  ;;  %26338 = vst [vmem:[#allocation180_spill] sm:$0xff] %v20816_v29  ;;  %v371_v0 = vld [vmem:[%s19721_s11 + $0x2f0] sm:$0xff]  ;;  %26340 = vst [vmem:[#allocation182_spill] sm:$0xff] %v20826_v38  ;;  %v947_v52 = vsel %vm672_vm0, %v624_v7, 0  ;;  %v1969_v45 = vsub.f32 %v20785_v44, %v26343_v39  ;;  %v20839_v2 = vsub.f32 %v938_v31, %v20816_v29  ;;  %v374_v44 = vld [vmem:[%s19721_s11 + $0x308] sm:$0xff] }
  0xba   : > { %26334 = vst [vmem:[#allocation177_spill] sm:$0xff] %v20802_v25  ;;  %26341 = vst [vmem:[#allocation183_spill] sm:$0xff] %v20828_v1  ;;  %v627_v7 = vadd.f32 %v499_v21, %v371_v0  ;;  %v20845_v36 = vsub.f32 %v941_v11, %v20820_v5  ;;  %v20854_v31 = vsub.f32 %v944_v47, %v20828_v1  ;;  %v501_v21 = vld [vmem:[%s19727_s14 + $0x300] sm:$0xff]  ;;  %v512_v29 = vld [vmem:[%s19727_s14 + $0x358] sm:$0xff] }
  0xbb   : > { %15600 = vmatmul.mubr.f32.gmra.mrb[76].mxu0 %v1900_v40  ;;  %v498_v40 = vld [vmem:[%s19727_s14 + $0x2e8] sm:$0xff]  ;;  %v1950_v32 = vand.u32 4294901760, %v1949_v4  ;;  %26344 = vst [vmem:[#allocation184_spill] sm:$0xff] %v20839_v2  ;;  %v372_v4 = vld [vmem:[%s19721_s11 + $0x2f8] sm:$0xff]  ;;  %v1970_v24 = vand.u32 4294901760, %v1969_v45  ;;  %v26352_v45 = vand.u32 4294901760, %v20826_v38 }
  0xbc   : > { %15602 = vmatprep.mubr.f32.mxu0 %v1910_v53  ;;  %v26342_v53 = vand.u32 4294901760, %v20782_v23  ;;  %v626_v46 = vadd.f32 %v498_v40, %v370_v56  ;;  %26345 = vst [vmem:[#allocation185_spill] sm:$0xff] %v20845_v36  ;;  %26348 = vst [vmem:[#allocation187_spill] sm:$0xff] %v20854_v31  ;;  %v628_v39 = vadd.f32 %v500_v41, %v372_v4  ;;  %v26357_v1 = vand.u32 4294901760, %v20845_v36 }
  0xbd   : > { %v1999_v4 = vsub.f32 %v20826_v38, %v26352_v45 }
  0xbe   : > { %v1959_v18 = vsub.f32 %v20782_v23, %v26342_v53  ;;  %v20847_v53 = vand.u32 4294901760, %v947_v52  ;;  %v26347_v23 = vand.u32 4294901760, %v20802_v25  ;;  %v953_v11 = vsel %vm672_vm0, %v626_v46, 0 }
  0xbf   : > { %15603 = vmatmul.mubr.f32.gmra.mrb[78].mxu0 %v1920_v51  ;;  %v950_v51 = vsel %vm672_vm0, %v625_v37, 0  ;;  %v373_v37 = vld [vmem:[%s19721_s11 + $0x300] sm:$0xff]  ;;  %v20876_v47 = vand.u32 4294901760, %v953_v11 }
  0xc0   : > { %15605 = vmatprep.mubr.f32.mxu0 %v1930_v13  ;;  %26346 = vst [vmem:[#allocation186_spill] sm:$0xff] %v20847_v53  ;;  %v1979_v13 = vsub.f32 %v20802_v25, %v26347_v23  ;;  %v1960_v40 = vand.u32 4294901760, %v1959_v18  ;;  %v20858_v0 = vand.u32 4294901760, %v950_v51  ;;  %v26350_v23 = vand.u32 4294901760, %v20814_v12 }
  0xc1   : > { %v956_v25 = vsel %vm672_vm0, %v627_v7, 0  ;;  %v20870_v46 = vsub.f32 %v947_v52, %v20847_v53  ;;  %v629_v41 = vadd.f32 %v501_v21, %v373_v37  ;;  %26353 = vst [vmem:[#allocation190_spill] sm:$0xff] %v20876_v47  ;;  %v375_v7 = vld [vmem:[%s19721_s11 + $0x310] sm:$0xff]  ;;  %v376_v21 = vld [vmem:[%s19721_s11 + $0x318] sm:$0xff] }
  0xc2   : > { %26349 = vst [vmem:[#allocation188_spill] sm:$0xff] %v20858_v0  ;;  %v1989_v56 = vsub.f32 %v20814_v12, %v26350_v23  ;;  %v503_v12 = vld [vmem:[%s19727_s14 + $0x310] sm:$0xff]  ;;  %v20881_v18 = vsub.f32 %v950_v51, %v20858_v0  ;;  %v20883_v52 = vand.u32 4294901760, %v956_v25  ;;  %v504_v53 = vld [vmem:[%s19727_s14 + $0x318] sm:$0xff]  ;;  %v26356_v23 = vand.u32 4294901760, %v20839_v2 }
  0xc3   : > { %15606 = vmatmul.mubr.f32.gmra.mrb[80].mxu0 %v1940_v15  ;;  %v502_v15 = vld [vmem:[%s19727_s14 + $0x308] sm:$0xff]  ;;  %26351 = vst [vmem:[#allocation189_spill] sm:$0xff] %v20870_v46  ;;  %v962_v0 = vsel %vm672_vm0, %v629_v41, 0  ;;  %v631_v5 = vadd.f32 %v503_v12, %v375_v7  ;;  %v379_v12 = vld [vmem:[%s19721_s11 + $0x330] sm:$0xff] }
  0xc4   : > { %15608 = vmatprep.mubr.f32.mxu0 %v1950_v32  ;;  %v1980_v32 = vand.u32 4294901760, %v1979_v13  ;;  %26354 = vst [vmem:[#allocation191_spill] sm:$0xff] %v20881_v18  ;;  %26355 = vst [vmem:[#allocation192_spill] sm:$0xff] %v20883_v52  ;;  %v959_v13 = vsel %vm672_vm0, %v628_v39, 0  ;;  %v630_v37 = vadd.f32 %v502_v15, %v374_v44  ;;  %v1990_v45 = vand.u32 4294901760, %v1989_v56  ;;  %v377_v39 = vld [vmem:[%s19721_s11 + $0x320] sm:$0xff] }
  0xc5   : > { %v2009_v38 = vsub.f32 %v20839_v2, %v26356_v23  ;;  %v505_v44 = vld [vmem:[%s19727_s14 + $0x320] sm:$0xff]  ;;  %v2000_v15 = vand.u32 4294901760, %v1999_v4  ;;  %v20901_v56 = vand.u32 4294901760, %v959_v13  ;;  %v632_v23 = vadd.f32 %v504_v53, %v376_v21  ;;  %v378_v2 = vld [vmem:[%s19721_s11 + $0x328] sm:$0xff] }
  0xc6   : > { %v20908_v41 = vsub.f32 %v956_v25, %v20883_v52  ;;  %v965_v4 = vsel %vm672_vm0, %v630_v37, 0  ;;  %v20911_v7 = vand.u32 4294901760, %v962_v0  ;;  %v506_v53 = vld [vmem:[%s19727_s14 + $0x328] sm:$0xff] }
  0xc7   : > { %15609 = vmatmul.mubr.f32.gmra.mrb[82].mxu0 %v1960_v40  ;;  %v2019_v40 = vsub.f32 %v20845_v36, %v26357_v1  ;;  %26359 = vst [vmem:[#allocation194_spill] sm:$0xff] %v20901_v56  ;;  %v26360_v1 = vand.u32 4294901760, %v20854_v31  ;;  %v633_v36 = vadd.f32 %v505_v44, %v377_v39  ;;  %v20925_v37 = vand.u32 4294901760, %v965_v4 }
  0xc8   : > { %15611 = vmatprep.mubr.f32.mxu0 %v1970_v24  ;;  %v20899_v24 = vsub.f32 %v953_v11, %v20876_v47  ;;  %26361 = vst [vmem:[#allocation195_spill] sm:$0xff] %v20908_v41  ;;  %v2010_v11 = vand.u32 4294901760, %v2009_v38  ;;  %26362 = vst [vmem:[#allocation196_spill] sm:$0xff] %v20911_v7  ;;  %v20923_v38 = vsub.f32 %v959_v13, %v20901_v56  ;;  %v26366_v39 = vand.u32 4294901760, %v20881_v18  ;;  %v508_v56 = vld [vmem:[%s19727_s14 + $0x338] sm:$0xff] }
  0xc9   : > { %v2029_v51 = vsub.f32 %v20854_v31, %v26360_v1  ;;  %v2020_v21 = vand.u32 4294901760, %v2019_v40  ;;  %v968_v1 = vsel %vm672_vm0, %v631_v5, 0  ;;  %v507_v31 = vld [vmem:[%s19727_s14 + $0x330] sm:$0xff]  ;;  %26365 = vst [vmem:[#allocation198_spill] sm:$0xff] %v20925_v37  ;;  %v20933_v25 = vsub.f32 %v962_v0, %v20911_v7 }
  0xca   : > { %26358 = vst [vmem:[#allocation193_spill] sm:$0xff] %v20899_v24  ;;  %26364 = vst [vmem:[#allocation197_spill] sm:$0xff] %v20923_v38  ;;  %v2049_v5 = vsub.f32 %v20881_v18, %v26366_v39  ;;  %v20935_v13 = vand.u32 4294901760, %v968_v1  ;;  %v26370_v39 = vand.u32 4294901760, %v20899_v24  ;;  %v20947_v0 = vsub.f32 %v965_v4, %v20925_v37  ;;  %v510_v18 = vld [vmem:[%s19727_s14 + $0x348] sm:$0xff]  ;;  %v383_v37 = vld [vmem:[%s19721_s11 + $0x350] sm:$0xff] }
  0xcb   : > { %15612 = vmatmul.mubr.f32.gmra.mrb[84].mxu0 %v1980_v32  ;;  %v26363_v32 = vand.u32 4294901760, %v20870_v46  ;;  %v2030_v40 = vand.u32 4294901760, %v2029_v51  ;;  %26367 = vst [vmem:[#allocation199_spill] sm:$0xff] %v20933_v25  ;;  %v380_v51 = vld [vmem:[%s19721_s11 + $0x338] sm:$0xff]  ;;  %v26376_v7 = vand.u32 4294901760, %v20923_v38 }
  0xcc   : > { %15614 = vmatprep.mubr.f32.mxu0 %v1990_v45  ;;  %v971_v45 = vsel %vm672_vm0, %v632_v23, 0  ;;  %26368 = vst [vmem:[#allocation200_spill] sm:$0xff] %v20935_v13  ;;  %v635_v23 = vadd.f32 %v507_v31, %v379_v12  ;;  %v2059_v44 = vsub.f32 %v20899_v24, %v26370_v39  ;;  %26371 = vst [vmem:[#allocation202_spill] sm:$0xff] %v20947_v0  ;;  %v2050_v31 = vand.u32 4294901760, %v2049_v5  ;;  %v382_v24 = vld [vmem:[%s19721_s11 + $0x348] sm:$0xff] }
  0xcd   : > { %v2039_v47 = vsub.f32 %v20870_v46, %v26363_v32  ;;  %v634_v32 = vadd.f32 %v506_v53, %v378_v2  ;;  %v974_v46 = vsel %vm672_vm0, %v633_v36, 0  ;;  %v509_v36 = vld [vmem:[%s19727_s14 + $0x340] sm:$0xff]  ;;  %v26372_v12 = vand.u32 4294901760, %v20908_v41 }
  0xce   : > { %v20954_v53 = vand.u32 4294901760, %v974_v46  ;;  %v20959_v2 = vsub.f32 %v968_v1, %v20935_v13  ;;  %v636_v5 = vadd.f32 %v508_v56, %v380_v51  ;;  %v511_v1 = vld [vmem:[%s19727_s14 + $0x350] sm:$0xff]  ;;  %v384_v13 = vld [vmem:[%s19721_s11 + $0x358] sm:$0xff]  ;;  %v2060_v56 = vand.u32 4294901760, %v2059_v44 }
  0xcf   : > { %15615 = vmatmul.mubr.f32.gmra.mrb[86].mxu0 %v2000_v15  ;;  %v20938_v15 = vand.u32 4294901760, %v971_v45  ;;  %v2040_v52 = vand.u32 4294901760, %v2039_v47  ;;  %v2069_v47 = vsub.f32 %v20908_v41, %v26372_v12  ;;  %v977_v39 = vsel %vm672_vm0, %v634_v32, 0 }
  0xd0   : > { %15617 = vmatprep.mubr.f32.mxu0 %v2010_v11  ;;  %v381_v11 = vld [vmem:[%s19721_s11 + $0x340] sm:$0xff]  ;;  %26373 = vst [vmem:[#allocation203_spill] sm:$0xff] %v20954_v53  ;;  %26374 = vst [vmem:[#allocation204_spill] sm:$0xff] %v20959_v2  ;;  %v2079_v32 = vsub.f32 %v20923_v38, %v26376_v7  ;;  %v20972_v4 = vand.u32 4294901760, %v977_v39  ;;  %v638_v51 = vadd.f32 %v510_v18, %v382_v24  ;;  %v26381_v24 = vand.u32 4294901760, %v20947_v0 }
  0xd1   : > { %26369 = vst [vmem:[#allocation201_spill] sm:$0xff] %v20938_v15  ;;  %v20965_v12 = vsub.f32 %v971_v45, %v20938_v15  ;;  %v637_v41 = vadd.f32 %v509_v36, %v381_v11  ;;  %v2070_v7 = vand.u32 4294901760, %v2069_v47  ;;  %v26380_v11 = vand.u32 4294901760, %v20933_v25 }
  0xd2   : > { %26377 = vst [vmem:[#allocation206_spill] sm:$0xff] %v20972_v4  ;;  %v639_v38 = vadd.f32 %v511_v1, %v383_v37  ;;  %v2080_v18 = vand.u32 4294901760, %v2079_v32  ;;  %v20993_v47 = vsub.f32 %v977_v39, %v20972_v4  ;;  %v514_v37 = vld [vmem:[%s19727_s14 + $0x368] sm:$0xff]  ;;  %v515_v32 = vld [vmem:[%s19727_s14 + $0x370] sm:$0xff]  ;;  %v26385_v39 = vand.u32 4294901760, %v20959_v2 }
  0xd3   : > { %15618 = vmatmul.mubr.f32.gmra.mrb[88].mxu0 %v2020_v21  ;;  %v980_v21 = vsel %vm672_vm0, %v635_v23, 0  ;;  %26375 = vst [vmem:[#allocation205_spill] sm:$0xff] %v20965_v12  ;;  %v20978_v23 = vsub.f32 %v974_v46, %v20954_v53  ;;  %v2089_v36 = vsub.f32 %v20933_v25, %v26380_v11  ;;  %v986_v46 = vsel %vm672_vm0, %v637_v41, 0  ;;  %v385_v11 = vld [vmem:[%s19721_s11 + $0x360] sm:$0xff] }
  0xd4   : > { %15620 = vmatprep.mubr.f32.mxu0 %v2030_v40  ;;  %v20980_v45 = vand.u32 4294901760, %v980_v21  ;;  %v640_v53 = vadd.f32 %v512_v29, %v384_v13  ;;  %26382 = vst [vmem:[#allocation209_spill] sm:$0xff] %v20993_v47  ;;  %v513_v40 = vld [vmem:[%s19727_s14 + $0x360] sm:$0xff]  ;;  %v989_v29 = vsel %vm672_vm0, %v638_v51, 0  ;;  %v387_v13 = vld [vmem:[%s19721_s11 + $0x370] sm:$0xff]  ;;  %v992_v44 = vsel %vm672_vm0, %v639_v38, 0 }
  0xd5   : > { %26378 = vst [vmem:[#allocation207_spill] sm:$0xff] %v20978_v23  ;;  %v2090_v1 = vand.u32 4294901760, %v2089_v36  ;;  %v641_v51 = vadd.f32 %v513_v40, %v385_v11  ;;  %v21019_v36 = vand.u32 4294901760, %v989_v29  ;;  %v643_v15 = vadd.f32 %v515_v32, %v387_v13 }
  0xd6   : > { %26379 = vst [vmem:[#allocation208_spill] sm:$0xff] %v20980_v45  ;;  %v21000_v25 = vsub.f32 %v980_v21, %v20980_v45  ;;  %v995_v45 = vsel %vm672_vm0, %v640_v53, 0 }
  0xd7   : > { %15621 = vmatmul.mubr.f32.gmra.mrb[90].mxu0 %v2040_v52  ;;  %v983_v52 = vsel %vm672_vm0, %v636_v5, 0  ;;  %v386_v5 = vld [vmem:[%s19721_s11 + $0x368] sm:$0xff]  ;;  %26388 = vst [vmem:[#allocation213_spill] sm:$0xff] %v21019_v36 }
  0xd8   : > { %15623 = vmatprep.mubr.f32.mxu0 %v2050_v31  ;;  %v2099_v31 = vsub.f32 %v20947_v0, %v26381_v24  ;;  %26383 = vst [vmem:[#allocation210_spill] sm:$0xff] %v21000_v25  ;;  %v21002_v41 = vand.u32 4294901760, %v983_v52  ;;  %v2109_v24 = vsub.f32 %v20959_v2, %v26385_v39  ;;  %v21011_v0 = vand.u32 4294901760, %v986_v46 }
  0xd9   : > { %v642_v4 = vadd.f32 %v514_v37, %v386_v5  ;;  %v26389_v2 = vand.u32 4294901760, %v20978_v23  ;;  %v21031_v5 = vand.u32 4294901760, %v992_v44  ;;  %v516_v37 = vld [vmem:[%s19727_s14 + $0x378] sm:$0xff] }
  0xda   : > { %26384 = vst [vmem:[#allocation211_spill] sm:$0xff] %v21002_v41  ;;  %26386 = vst [vmem:[#allocation212_spill] sm:$0xff] %v21011_v0  ;;  %v2100_v39 = vand.u32 4294901760, %v2099_v31  ;;  %v21026_v53 = vsub.f32 %v983_v52, %v21002_v41  ;;  %v2110_v40 = vand.u32 4294901760, %v2109_v24  ;;  %v21029_v11 = vsub.f32 %v986_v46, %v21011_v0  ;;  %v388_v31 = vld [vmem:[%s19721_s11 + $0x378] sm:$0xff]  ;;  %v389_v24 = vld [vmem:[%s19721_s11 + $0x380] sm:$0xff] }
  0xdb   : > { %15624 = vmatmul.mubr.f32.gmra.mrb[92].mxu0 %v2060_v56  ;;  %v26387_v56 = vand.u32 4294901760, %v20965_v12  ;;  %v2129_v34 = vsub.f32 %v20978_v23, %v26389_v2  ;;  %26392 = vst [vmem:[#allocation216_spill] sm:$0xff] %v21031_v5  ;;  %v998_v2 = vsel %vm672_vm0, %v641_v51, 0  ;;  %v21042_v52 = vsub.f32 %v989_v29, %v21019_v36  ;;  %v518_v23 = vld [vmem:[%s19727_s14 + $0x388] sm:$0xff]  ;;  %v392_v36 = vld [vmem:[%s19721_s11 + $0x398] sm:$0xff]  ;;  %v393_v0 = vld [vmem:[%s19721_s11 + $0x3a0] sm:$0xff] }
  0xdc   : > { %15626 = vmatprep.mubr.f32.mxu0 %v2070_v7  ;;  %v25298_v7 = vand.u32 4294901760, %v20993_v47  ;;  %26390 = vst [vmem:[#allocation214_spill] sm:$0xff] %v21026_v53  ;;  %26391 = vst [vmem:[#allocation215_spill] sm:$0xff] %v21029_v11  ;;  %v1001_v46 = vsel %vm672_vm0, %v642_v4, 0  ;;  %v21054_v4 = vsub.f32 %v992_v44, %v21031_v5  ;;  %v391_v44 = vld [vmem:[%s19721_s11 + $0x390] sm:$0xff]  ;;  %v26401_v29 = vand.u32 4294901760, %v21026_v53 }
  0xdd   : > { %v2119_v21 = vsub.f32 %v20965_v12, %v26387_v56  ;;  %26394 = vst [vmem:[#allocation218_spill] sm:$0xff] %v21042_v52  ;;  %v517_v56 = vld [vmem:[%s19727_s14 + $0x380] sm:$0xff]  ;;  %v2130_v38 = vand.u32 4294901760, %v2129_v34  ;;  %v21059_v34 = vand.u32 4294901760, %v998_v2  ;;  %v21063_v12 = vand.u32 4294901760, %v1001_v46 }
  0xde   : > { %v2139_v32 = vsub.f32 %v20993_v47, %v25298_v7  ;;  %v644_v47 = vadd.f32 %v516_v37, %v388_v31  ;;  %26396 = vst [vmem:[#allocation219_spill] sm:$0xff] %v21054_v4  ;;  %v645_v7 = vadd.f32 %v517_v56, %v389_v24  ;;  %v519_v37 = vld [vmem:[%s19727_s14 + $0x390] sm:$0xff]  ;;  %v26402_v24 = vand.u32 4294901760, %v21029_v11 }
  0xdf   : > { %15627 = vmatmul.mubr.f32.gmra.mrb[94].mxu0 %v2080_v18  ;;  %v21033_v18 = vand.u32 4294901760, %v995_v45  ;;  %v2120_v13 = vand.u32 4294901760, %v2119_v21  ;;  %v26395_v21 = vand.u32 4294901760, %v21000_v25  ;;  %26398 = vst [vmem:[#allocation221_spill] sm:$0xff] %v21059_v34  ;;  %26399 = vst [vmem:[#allocation222_spill] sm:$0xff] %v21063_v12 }
  0xe0   : > { %15629 = vmatprep.mubr.f32.mxu0 %v2090_v1  ;;  %v1004_v1 = vsel %vm672_vm0, %v643_v15, 0 }
  0xe1   : > { %26393 = vst [vmem:[#allocation217_spill] sm:$0xff] %v21033_v18  ;;  %v2149_v51 = vsub.f32 %v21000_v25, %v26395_v21  ;;  %v21057_v15 = vsub.f32 %v995_v45, %v21033_v18  ;;  %v21065_v21 = vand.u32 4294901760, %v1004_v1  ;;  %v2159_v25 = vsub.f32 %v21026_v53, %v26401_v29  ;;  %v521_v29 = vld [vmem:[%s19727_s14 + $0x3a0] sm:$0xff] }
  0xe2   : > { %v1007_v18 = vsel %vm672_vm0, %v644_v47, 0  ;;  %v21087_v47 = vsub.f32 %v1001_v46, %v21063_v12  ;;  %v649_v53 = vadd.f32 %v521_v29, %v393_v0 }
  0xe3   : > { %15630 = vmatmul.mubr.f32.gmra.mrb[96].mxu0 %v2100_v39  ;;  %26397 = vst [vmem:[#allocation220_spill] sm:$0xff] %v21057_v15  ;;  %v390_v39 = vld [vmem:[%s19721_s11 + $0x388] sm:$0xff]  ;;  %26400 = vst [vmem:[#allocation223_spill] sm:$0xff] %v21065_v21  ;;  %v2150_v45 = vand.u32 4294901760, %v2149_v51  ;;  %v520_v51 = vld [vmem:[%s19727_s14 + $0x398] sm:$0xff]  ;;  %v21096_v31 = vand.u32 4294901760, %v1007_v18 }
  0xe4   : > { %15632 = vmatprep.mubr.f32.mxu0 %v2110_v40  ;;  %v2140_v40 = vand.u32 4294901760, %v2139_v32  ;;  %v646_v5 = vadd.f32 %v518_v23, %v390_v39  ;;  %v2169_v32 = vsub.f32 %v21029_v11, %v26402_v24  ;;  %26404 = vst [vmem:[#allocation225_spill] sm:$0xff] %v21087_v47  ;;  %v21090_v23 = vsub.f32 %v1004_v1, %v21065_v21  ;;  %v394_v1 = vld [vmem:[%s19721_s11 + $0x3a8] sm:$0xff] }
  0xe5   : > { %v647_v39 = vadd.f32 %v519_v37, %v391_v44  ;;  %v26406_v24 = vand.u32 4294901760, %v21042_v52  ;;  %26407 = vst [vmem:[#allocation227_spill] sm:$0xff] %v21096_v31  ;;  %v2160_v56 = vand.u32 4294901760, %v2159_v25  ;;  %v648_v11 = vadd.f32 %v520_v51, %v392_v36 }
  0xe6   : > { %26405 = vst [vmem:[#allocation226_spill] sm:$0xff] %v21090_v23  ;;  %v1013_v46 = vsel %vm672_vm0, %v646_v5, 0  ;;  %v2170_v21 = vand.u32 4294901760, %v2169_v32  ;;  %v26410_v25 = vand.u32 4294901760, %v21057_v15  ;;  %v21116_v32 = vsub.f32 %v1007_v18, %v21096_v31 }
  0xe7   : > { %15633 = vmatmul.mubr.f32.gmra.mrb[98].mxu0 %v2120_v13  ;;  %v21081_v13 = vsub.f32 %v998_v2, %v21059_v34  ;;  %v2179_v2 = vsub.f32 %v21042_v52, %v26406_v24  ;;  %v522_v24 = vld [vmem:[%s19727_s14 + $0x3a8] sm:$0xff]  ;;  %v395_v52 = vld [vmem:[%s19721_s11 + $0x3b0] sm:$0xff]  ;;  %v21118_v51 = vand.u32 4294901760, %v1013_v46  ;;  %v1019_v29 = vsel %vm672_vm0, %v648_v11, 0 }
  0xe8   : > { %15635 = vmatprep.mubr.f32.mxu0 %v2130_v38  ;;  %v1010_v38 = vsel %vm672_vm0, %v645_v7, 0  ;;  %v26408_v7 = vand.u32 4294901760, %v21054_v4  ;;  %v523_v34 = vld [vmem:[%s19727_s14 + $0x3b0] sm:$0xff]  ;;  %v2199_v5 = vsub.f32 %v21057_v15, %v26410_v25  ;;  %26411 = vst [vmem:[#allocation229_spill] sm:$0xff] %v21116_v32  ;;  %v650_v25 = vadd.f32 %v522_v24, %v394_v1  ;;  %v396_v15 = vld [vmem:[%s19721_s11 + $0x3b8] sm:$0xff]  ;;  %v525_v1 = vld [vmem:[%s19727_s14 + $0x3c0] sm:$0xff] }
  0xe9   : > { %26403 = vst [vmem:[#allocation224_spill] sm:$0xff] %v21081_v13  ;;  %v25331_v37 = vand.u32 4294901760, %v21081_v13  ;;  %v21104_v12 = vand.u32 4294901760, %v1010_v38  ;;  %26412 = vst [vmem:[#allocation230_spill] sm:$0xff] %v21118_v51  ;;  %v651_v0 = vadd.f32 %v523_v34, %v395_v52  ;;  %v26415_v11 = vand.u32 4294901760, %v21087_v47 }
  0xea   : > { %v2189_v44 = vsub.f32 %v21054_v4, %v26408_v7  ;;  %v1022_v7 = vsel %vm672_vm0, %v649_v53, 0  ;;  %v2200_v4 = vand.u32 4294901760, %v2199_v5  ;;  %v26416_v52 = vand.u32 4294901760, %v21090_v23 }
  0xeb   : > { %15636 = vmatmul.mubr.f32.gmra.mrb[100].mxu0 %v2140_v40  ;;  %26409 = vst [vmem:[#allocation228_spill] sm:$0xff] %v21104_v12  ;;  %v1016_v40 = vsel %vm672_vm0, %v647_v39, 0  ;;  %v2209_v39 = vsub.f32 %v21081_v13, %v25331_v37  ;;  %v21126_v18 = vsub.f32 %v1010_v38, %v21104_v12  ;;  %v2219_v53 = vsub.f32 %v21087_v47, %v26415_v11 }
  0xec   : > { %15638 = vmatprep.mubr.f32.mxu0 %v2150_v45  ;;  %v2180_v45 = vand.u32 4294901760, %v2179_v2  ;;  %v2190_v36 = vand.u32 4294901760, %v2189_v44  ;;  %v21128_v2 = vand.u32 4294901760, %v1016_v40  ;;  %v2229_v34 = vsub.f32 %v21090_v23, %v26416_v52 }
  0xed   : > { %26413 = vst [vmem:[#allocation231_spill] sm:$0xff] %v21126_v18  ;;  %v21142_v38 = vsub.f32 %v1013_v46, %v21118_v51  ;;  %v21144_v24 = vand.u32 4294901760, %v1019_v29  ;;  %v21146_v5 = vand.u32 4294901760, %v1022_v7  ;;  %v1025_v11 = vsel %vm672_vm0, %v650_v25, 0  ;;  %v398_v51 = vld [vmem:[%s19721_s11 + $0x3c8] sm:$0xff]  ;;  %v527_v46 = vld [vmem:[%s19727_s14 + $0x3d0] sm:$0xff] }
  0xee   : > { %26414 = vst [vmem:[#allocation232_spill] sm:$0xff] %v21128_v2  ;;  %v1028_v37 = vsel %vm672_vm0, %v651_v0, 0  ;;  %v21152_v23 = vpack.c.bf16 %v19703_v10, %v19701_v9  ;;  %v2210_v44 = vand.u32 4294901760, %v2209_v39  ;;  %v21156_v47 = vsub.f32 %v1016_v40, %v21128_v2  ;;  %v526_v25 = vld [vmem:[%s19727_s14 + $0x3c8] sm:$0xff]  ;;  %v399_v39 = vld [vmem:[%s19721_s11 + $0x3d0] sm:$0xff]  ;;  %v528_v2 = vld [vmem:[%s19727_s14 + $0x3d8] sm:$0xff] }
  0xef   : > { %15639 = vmatmul.mubr.f32.gmra.mrb[102].mxu0 %v2160_v56  ;;  %v524_v56 = vld [vmem:[%s19727_s14 + $0x3b8] sm:$0xff]  ;;  %26417 = vst [vmem:[#allocation233_spill] sm:$0xff] %v21142_v38  ;;  %26418 = vst [vmem:[#allocation234_spill] sm:$0xff] %v21144_v24  ;;  %v2230_v0 = vand.u32 4294901760, %v2229_v34  ;;  %v26424_v40 = vand.u32 4294901760, %v21116_v32 }
  0xf0   : > { %15641 = vmatprep.mubr.f32.mxu0 %v2170_v21  ;;  %v397_v21 = vld [vmem:[%s19721_s11 + $0x3c0] sm:$0xff]  ;;  %26419 = vst [vmem:[#allocation235_spill] sm:$0xff] %v21146_v5  ;;  %v652_v52 = vadd.f32 %v524_v56, %v396_v15  ;;  %26420 = vst [vmem:[#allocation236_spill] sm:$0xff] %v21156_v47  ;;  %17942 = vmatprep.subr.bf16.mxu0 %v21152_v23  ;;  %v21162_v15 = vsub.f32 %v1019_v29, %v21144_v24  ;;  %v21164_v56 = vand.u32 4294901760, %v1025_v11 }
  0xf1   : > { %v653_v13 = vadd.f32 %v525_v1, %v397_v21  ;;  %v21175_v29 = vsub.f32 %v1022_v7, %v21146_v5  ;;  %v26426_v1 = vand.u32 4294901760, %v21126_v18  ;;  %v654_v24 = vadd.f32 %v526_v25, %v398_v51 }
  0xf2   : > { %26421 = vst [vmem:[#allocation237_spill] sm:$0xff] %v21162_v15  ;;  %26422 = vst [vmem:[#allocation238_spill] sm:$0xff] %v21164_v56  ;;  %v1031_v34 = vsel %vm672_vm0, %v652_v52, 0  ;;  %v21187_v7 = vsub.f32 %v1025_v11, %v21164_v56  ;;  %v26429_v51 = vand.u32 4294901760, %v21142_v38  ;;  %v402_v56 = vld [vmem:[%s19721_s11 + $0x3e8] sm:$0xff] }
  0xf3   : > { %15642 = vmatmul.mubr.f32.gmra.mrb[104].mxu0 %v2180_v45  ;;  %v2220_v45 = vand.u32 4294901760, %v2219_v53  ;;  %v2239_v53 = vsub.f32 %v21116_v32, %v26424_v40  ;;  %26425 = vst [vmem:[#allocation240_spill] sm:$0xff] %v21175_v29  ;;  %v2249_v10 = vsub.f32 %v21126_v18, %v26426_v1  ;;  %v1034_v9 = vsel %vm672_vm0, %v653_v13, 0  ;;  %v400_v32 = vld [vmem:[%s19721_s11 + $0x3d8] sm:$0xff]  ;;  %v401_v1 = vld [vmem:[%s19721_s11 + $0x3e0] sm:$0xff] }
  0xf4   : > { %15644 = vmatprep.mubr.f32.mxu0 %v2190_v36  ;;  %v21166_v36 = vand.u32 4294901760, %v1028_v37  ;;  %v655_v40 = vadd.f32 %v527_v46, %v399_v39  ;;  %v2259_v46 = vsub.f32 %v21142_v38, %v26429_v51  ;;  %v21200_v11 = vand.u32 4294901760, %v1034_v9  ;;  %v530_v51 = vld [vmem:[%s19727_s14 + $0x3e8] sm:$0xff] }
  0xf5   : > { %v2240_v13 = vand.u32 4294901760, %v2239_v53  ;;  %v26431_v39 = vand.u32 4294901760, %v21156_v47  ;;  %v1037_v18 = vsel %vm672_vm0, %v654_v24, 0  ;;  %v26432_v38 = vand.u32 4294901760, %v21162_v15  ;;  %v403_v24 = vld [vmem:[%s19721_s11 + $0x3f0] sm:$0xff] }
  0xf6   : > { %26423 = vst [vmem:[#allocation239_spill] sm:$0xff] %v21166_v36  ;;  %v21190_v52 = vsub.f32 %v1028_v37, %v21166_v36  ;;  %26430 = vst [vmem:[#allocation243_spill] sm:$0xff] %v21200_v11  ;;  %v2250_v37 = vand.u32 4294901760, %v2249_v10  ;;  %v1040_v53 = vsel %vm672_vm0, %v655_v40, 0  ;;  %v658_v5 = vadd.f32 %v530_v51, %v402_v56 }
  0xf7   : > { %15645 = vmatmul.mubr.f32.gmra.mrb[106].mxu0 %v2200_v4  ;;  %v529_v4 = vld [vmem:[%s19727_s14 + $0x3e0] sm:$0xff]  ;;  %v2269_v21 = vsub.f32 %v21156_v47, %v26431_v39  ;;  %v2279_v25 = vsub.f32 %v21162_v15, %v26432_v38  ;;  %v21225_v38 = vand.u32 4294901760, %v1037_v18  ;;  %v21227_v10 = vand.u32 4294901760, %v1040_v53  ;;  %v532_v47 = vld [vmem:[%s19727_s14 + $0x3f8] sm:$0xff] }
  0xf8   : > { %15647 = vmatprep.mubr.f32.mxu0 %v2210_v44  ;;  %26427 = vst [vmem:[#allocation241_spill] sm:$0xff] %v21190_v52  ;;  %v21192_v44 = vand.u32 4294901760, %v1031_v34  ;;  %v657_v36 = vadd.f32 %v529_v4, %v401_v1  ;;  %v26434_v4 = vand.u32 4294901760, %v21175_v29  ;;  %v21223_v1 = vsub.f32 %v1034_v9, %v21200_v11 }
  0xf9   : > { %26436 = vst [vmem:[#allocation246_spill] sm:$0xff] %v21225_v38  ;;  %v2270_v39 = vand.u32 4294901760, %v2269_v21  ;;  %26437 = vst [vmem:[#allocation247_spill] sm:$0xff] %v21227_v10 }
  0xfa   : > { %26428 = vst [vmem:[#allocation242_spill] sm:$0xff] %v21192_v44  ;;  %v2289_v40 = vsub.f32 %v21175_v29, %v26434_v4  ;;  %26435 = vst [vmem:[#allocation245_spill] sm:$0xff] %v21223_v1  ;;  %v1046_v15 = vsel %vm672_vm0, %v657_v36, 0  ;;  %v26438_v4 = vand.u32 4294901760, %v21187_v7  ;;  %v26439_v29 = vand.u32 4294901760, %v21190_v52 }
  0xfb   : > { %15648 = vmatmul.mubr.f32.gmra.mrb[108].mxu0 %v2220_v45  ;;  %v656_v45 = vadd.f32 %v528_v2, %v400_v32  ;;  %v531_v32 = vld [vmem:[%s19727_s14 + $0x3f0] sm:$0xff]  ;;  %v2260_v2 = vand.u32 4294901760, %v2259_v46  ;;  %v404_v46 = vld [vmem:[%s19721_s11 + $0x3f8] sm:$0xff]  ;;  %v25368_v56 = vand.u32 4294901760, %v21223_v1  ;;  %v21242_v36 = vsub.f32 %v1037_v18, %v21225_v38 }
  0xfc   : > { %15650 = vmatprep.mubr.f32.mxu0 %v2230_v0  ;;  %v21215_v0 = vsub.f32 %v1031_v34, %v21192_v44  ;;  %v2280_v44 = vand.u32 4294901760, %v2279_v25  ;;  %v2299_v9 = vsub.f32 %v21187_v7, %v26438_v4  ;;  %v2290_v11 = vand.u32 4294901760, %v2289_v40 }
  0xfd   : > { %v1043_v34 = vsel %vm672_vm0, %v656_v45, 0  ;;  %26440 = vst [vmem:[#allocation248_spill] sm:$0xff] %v21242_v36  ;;  %v21247_v25 = vsub.f32 %v1040_v53, %v21227_v10  ;;  %v21249_v51 = vand.u32 4294901760, %v1046_v15  ;;  %v25370_v53 = vand.u32 4294901760, %v21242_v36 }
  0xfe   : > { %26433 = vst [vmem:[#allocation244_spill] sm:$0xff] %v21215_v0  ;;  %v25369_v21 = vand.u32 4294901760, %v21215_v0  ;;  %v21244_v45 = vand.u32 4294901760, %v1043_v34 }
  0xff   : > { %15651 = vmatmul.mubr.f32.gmra.mrb[110].mxu0 %v2240_v13  ;;  %v659_v13 = vadd.f32 %v531_v32, %v403_v24  ;;  %26442 = vst [vmem:[#allocation250_spill] sm:$0xff] %v21247_v25  ;;  %26443 = vst [vmem:[#allocation251_spill] sm:$0xff] %v21249_v51  ;;  %v1049_v24 = vsel %vm672_vm0, %v658_v5, 0 }
 0x100   : > { %15653 = vmatprep.mubr.f32.mxu0 %v2250_v37  ;;  %v2309_v37 = vsub.f32 %v21190_v52, %v26439_v29  ;;  %26441 = vst [vmem:[#allocation249_spill] sm:$0xff] %v21244_v45  ;;  %v660_v29 = vadd.f32 %v532_v47, %v404_v46  ;;  %v2319_v18 = vsub.f32 %v21215_v0, %v25369_v21  ;;  %v21263_v5 = vand.u32 4294901760, %v1049_v24 }
 0x101   : > { %v1052_v32 = vsel %vm672_vm0, %v659_v13, 0  ;;  %v21261_v4 = vsub.f32 %v1043_v34, %v21244_v45  ;;  %v25371_v47 = vand.u32 4294901760, %v21247_v25  ;;  %v21267_v13 = vsub.f32 %v1046_v15, %v21249_v51 }
 0x102   : > { %v2310_v40 = vand.u32 4294901760, %v2309_v37  ;;  %26445 = vst [vmem:[#allocation253_spill] sm:$0xff] %v21263_v5  ;;  %v21269_v46 = vand.u32 4294901760, %v1052_v32  ;;  %v2339_v37 = vsub.f32 %v21242_v36, %v25370_v53 }
 0x103   : > { %15654 = vmatmul.mubr.f32.gmra.mrb[112].mxu0 %v2260_v2  ;;  %v2300_v2 = vand.u32 4294901760, %v2299_v9  ;;  %26444 = vst [vmem:[#allocation252_spill] sm:$0xff] %v21261_v4  ;;  %26446 = vst [vmem:[#allocation254_spill] sm:$0xff] %v21267_v13  ;;  %v2320_v9 = vand.u32 4294901760, %v2319_v18  ;;  %v25372_v34 = vand.u32 4294901760, %v21261_v4  ;;  %v2349_v21 = vsub.f32 %v21247_v25, %v25371_v47 }
 0x104   : > { %15656 = vmatprep.mubr.f32.mxu0 %v2270_v39  ;;  %v2329_v39 = vsub.f32 %v21223_v1, %v25368_v56  ;;  %26447 = vst [vmem:[#allocation255_spill] sm:$0xff] %v21269_v46  ;;  %v21277_v56 = vsub.f32 %v1049_v24, %v21263_v5  ;;  %v2340_v18 = vand.u32 4294901760, %v2339_v37 }
 0x105   : > { %v2359_v24 = vsub.f32 %v21261_v4, %v25372_v34 }
 0x106   : > { %v2330_v15 = vand.u32 4294901760, %v2329_v39  ;;  %v25377_v53 = vand.u32 4294901760, %v21277_v56  ;;  %v2350_v39 = vand.u32 4294901760, %v2349_v21 }
 0x107   : > { %15657 = vmatmul.mubr.f32.gmra.mrb[114].mxu0 %v2280_v44  ;;  %v1055_v44 = vsel %vm672_vm0, %v660_v29, 0  ;;  %v25378_v29 = vand.u32 4294901760, %v21267_v13 }
 0x108   : > { %15659 = vmatprep.mubr.f32.mxu0 %v2290_v11  ;;  %v21279_v11 = vand.u32 4294901760, %v1055_v44  ;;  %v2379_v37 = vsub.f32 %v21277_v56, %v25377_v53  ;;  %v26463_v53 = vld [vmem:[#allocation80_spill] sm:$0xff] }
 0x109   : > { %v2369_v47 = vsub.f32 %v21267_v13, %v25378_v29  ;;  %v26464_v29 = vld [vmem:[#allocation82_spill] sm:$0xff] }
 0x10a   : > { %26448 = vst [vmem:[#allocation256_spill] sm:$0xff] %v21279_v11 }
 0x10b   : > { %15660 = vmatmul.mubr.f32.gmra.mrb[116].mxu0 %v2300_v2  ;;  %v21286_v2 = vsub.f32 %v1052_v32, %v21269_v46  ;;  %v2370_v4 = vand.u32 4294901760, %v2369_v47  ;;  %v17945_v47 = vpack.c.bf16 %v20473_v59, %v20463_v49 }
 0x10c   : > { %15662 = vmatprep.mubr.f32.mxu0 %v2310_v40  ;;  %v21293_v40 = vsub.f32 %v1055_v44, %v21279_v11  ;;  %v2380_v44 = vand.u32 4294901760, %v2379_v37  ;;  %v26454_v37 = vld [vmem:[#allocation63_spill] sm:$0xff] }
 0x10d   : > { %26449 = vst [vmem:[#allocation257_spill] sm:$0xff] %v21286_v2  ;;  %v25376_v32 = vand.u32 4294901760, %v21286_v2 }
 0x10e   : > { %v25375_v34 = vand.u32 4294901760, %v21293_v40 }
 0x10f   : > { %15663 = vmatmul.mubr.f32.gmra.mrb[118].mxu0 %v2320_v9  ;;  %v2360_v9 = vand.u32 4294901760, %v2359_v24  ;;  %v2389_v21 = vsub.f32 %v21286_v2, %v25376_v32  ;;  %v26462_v32 = vld [vmem:[#allocation79_spill] sm:$0xff] }
 0x110   : > { %15665 = vmatprep.mubr.f32.mxu0 %v2330_v15  ;;  %v2399_v15 = vsub.f32 %v21293_v40, %v25375_v34  ;;  %v26461_v34 = vld [vmem:[#allocation76_spill] sm:$0xff] }
 0x112   : > { %v2400_v24 = vand.u32 4294901760, %v2399_v15  ;;  %v26457_v15 = vld [vmem:[#allocation69_spill] sm:$0xff] }
 0x113   : > { %15666 = vmatmul.mubr.f32.gmra.mrb[120].mxu0 %v2340_v18  ;;  %v2390_v18 = vand.u32 4294901760, %v2389_v21  ;;  %v26455_v21 = vld [vmem:[#allocation64_spill] sm:$0xff] }
 0x114   : > { %15668 = vmatprep.mubr.f32.mxu0 %v2350_v39  ;;  %v26452_v39 = vld [vmem:[#allocation59_spill] sm:$0xff] }
 0x117   : > { %15669 = vmatmul.mubr.f32.gmra.mrb[122].mxu0 %v2360_v9  ;;  %v26453_v9 = vld [vmem:[#allocation60_spill] sm:$0xff] }
 0x118   : > { %15671 = vmatprep.mubr.f32.mxu0 %v2370_v4  ;;  %v26451_v4 = vld [vmem:[#allocation56_spill] sm:$0xff] }
 0x11b   : > { %15672 = vmatmul.mubr.f32.gmra.mrb[124].mxu0 %v2380_v44  ;;  %v26456_v44 = vld [vmem:[#allocation65_spill] sm:$0xff] }
 0x11c   : > { %15674 = vmatprep.mubr.f32.mxu0 %v2390_v18  ;;  %v26458_v18 = vld [vmem:[#allocation70_spill] sm:$0xff] }
 0x11f   : > { %15675 = vmatmul.mubr.f32.gmra.mrb[126].mxu0 %v2400_v24  ;;  %v26459_v24 = vld [vmem:[#allocation72_spill] sm:$0xff] }
 0x120   : > { %15685 = vmatprep.mubr.f32.mxu0 %v19750_v35  ;;  %v26593_v35 = vld [vmem:[#allocation109_spill] sm:$0xff] }
 0x123   : > { %15686 = vmatmul.mubr.f32.vlgmr.msra.gmra.mrb[0].mxu0 %v19757_v42  ;;  %v26592_v42 = vld [vmem:[#allocation106_spill] sm:$0xff] }
 0x124   : > { %17944 = vmatpush3.bf16.msra.mxu0 %v21152_v23  ;;  %15688 = vmatprep.mubr.f32.mxu0 %v19759_v43  ;;  %v26450_v23 = vld [vmem:[#allocation54_spill] sm:$0xff]  ;;  %v26591_v43 = vld [vmem:[#allocation103_spill] sm:$0xff] }
 0x125   : > { %17946 = vmatprep.subr.bf16.mxu0 %v17945_v47 }
 0x127   : > { %15689 = vmatmul.mubr.f32.gmra.mrb[2].mxu0 %v19766_v48  ;;  %v26589_v48 = vld [vmem:[#allocation98_spill] sm:$0xff] }
 0x128   : > { %15691 = vmatprep.mubr.f32.mxu0 %v19779_v57  ;;  %17948 = vmatpush3.bf16.msra.mxu0 %v17945_v47  ;;  %v26460_v47 = vld [vmem:[#allocation74_spill] sm:$0xff]  ;;  %v26588_v57 = vld [vmem:[#allocation97_spill] sm:$0xff] }
 0x129   : > { %17950 = vmatprep.subr.bf16.mxu0 %v19699_v8 }
 0x12b   : > { %15692 = vmatmul.mubr.f32.gmra.mrb[4].mxu0 %v19784_v61  ;;  %v26587_v61 = vld [vmem:[#allocation96_spill] sm:$0xff] }
 0x12c   : > { %15694 = vmatprep.mubr.f32.mxu0 %v19794_v3  ;;  %v26586_v3 = vld [vmem:[#allocation92_spill] sm:$0xff] }
 0x12f   : > { %15695 = vmatmul.mubr.f32.gmra.mrb[6].mxu0 %v19820_v30  ;;  %v26585_v30 = vld [vmem:[#allocation91_spill] sm:$0xff] }
 0x130   : > { %15697 = vmatprep.mubr.f32.mxu0 %v19843_v14  ;;  %v26584_v14 = vld [vmem:[#allocation90_spill] sm:$0xff] }
 0x133   : > { %15698 = vmatmul.mubr.f32.gmra.mrb[8].mxu0 %v19848_v19  ;;  %v26583_v19 = vld [vmem:[#allocation88_spill] sm:$0xff] }
 0x134   : > { %15700 = vmatprep.mubr.f32.mxu0 %v19858_v26  ;;  %v26582_v26 = vld [vmem:[#allocation85_spill] sm:$0xff] }
 0x137   : > { %15701 = vmatmul.mubr.f32.gmra.mrb[10].mxu0 %v19860_v27  ;;  %v26581_v27 = vld [vmem:[#allocation83_spill] sm:$0xff] }
 0x138   : > { %15703 = vmatprep.mubr.f32.mxu0 %v19883_v16  ;;  %v26580_v16 = vld [vmem:[#allocation81_spill] sm:$0xff] }
 0x13b   : > { %15704 = vmatmul.mubr.f32.gmra.mrb[12].mxu0 %v19888_v17  ;;  %v26579_v17 = vld [vmem:[#allocation78_spill] sm:$0xff] }
 0x13c   : > { %15706 = vmatprep.mubr.f32.mxu0 %v19890_v63  ;;  %v26578_v63 = vld [vmem:[#allocation77_spill] sm:$0xff] }
 0x13f   : > { %15707 = vmatmul.mubr.f32.gmra.mrb[14].mxu0 %v19917_v60  ;;  %v26577_v60 = vld [vmem:[#allocation75_spill] sm:$0xff] }
 0x140   : > { %15709 = vmatprep.mubr.f32.mxu0 %v19940_v54  ;;  %v26576_v54 = vld [vmem:[#allocation73_spill] sm:$0xff] }
 0x143   : > { %15710 = vmatmul.mubr.f32.gmra.mrb[16].mxu0 %v19942_v50  ;;  %v26575_v50 = vld [vmem:[#allocation71_spill] sm:$0xff] }
 0x144   : > { %15712 = vmatprep.mubr.f32.mxu0 %v19954_v6  ;;  %v26574_v6 = vld [vmem:[#allocation68_spill] sm:$0xff] }
 0x147   : > { %15713 = vmatmul.mubr.f32.gmra.mrb[18].mxu0 %v19956_v58  ;;  %v26573_v58 = vld [vmem:[#allocation67_spill] sm:$0xff] }
 0x148   : > { %15715 = vmatprep.mubr.f32.mxu0 %v19981_v33  ;;  %v26572_v33 = vld [vmem:[#allocation66_spill] sm:$0xff] }
 0x14b   : > { %15716 = vmatmul.mubr.f32.gmra.mrb[20].mxu0 %v19984_v62  ;;  %v26571_v62 = vld [vmem:[#allocation62_spill] sm:$0xff] }
 0x14c   : > { %15718 = vmatprep.mubr.f32.mxu0 %v19986_v22  ;;  %v26570_v22 = vld [vmem:[#allocation61_spill] sm:$0xff] }
 0x14f   : > { %15719 = vmatmul.mubr.f32.gmra.mrb[22].mxu0 %v20011_v20  ;;  %v26569_v20 = vld [vmem:[#allocation58_spill] sm:$0xff] }
 0x150   : > { %15721 = vmatprep.mubr.f32.mxu0 %v20025_v28  ;;  %v26568_v28 = vld [vmem:[#allocation57_spill] sm:$0xff] }
 0x153   : > { %15722 = vmatmul.mubr.f32.gmra.mrb[24].mxu0 %v26450_v23  ;;  %v26567_v23 = vld [vmem:[#allocation55_spill] sm:$0xff] }
 0x154   : > { %15724 = vmatprep.mubr.f32.mxu0 %v26451_v4  ;;  %v26566_v4 = vld [vmem:[#allocation52_spill] sm:$0xff] }
 0x157   : > { %15725 = vmatmul.mubr.f32.gmra.mrb[26].mxu0 %v26452_v39  ;;  %v26565_v39 = vld [vmem:[#allocation50_spill] sm:$0xff] }
 0x158   : > { %15727 = vmatprep.mubr.f32.mxu0 %v26453_v9  ;;  %v26564_v9 = vld [vmem:[#allocation49_spill] sm:$0xff] }
 0x15b   : > { %15728 = vmatmul.mubr.f32.gmra.mrb[28].mxu0 %v26454_v37  ;;  %v26465_v37 = vld [vmem:[#allocation84_spill] sm:$0xff] }
 0x15c   : > { %15730 = vmatprep.mubr.f32.mxu0 %v26455_v21  ;;  %v26466_v21 = vld [vmem:[#allocation86_spill] sm:$0xff] }
 0x15f   : > { %15731 = vmatmul.mubr.f32.gmra.mrb[30].mxu0 %v26456_v44  ;;  %v26467_v44 = vld [vmem:[#allocation87_spill] sm:$0xff] }
 0x160   : > { %15733 = vmatprep.mubr.f32.mxu0 %v26457_v15  ;;  %v26468_v15 = vld [vmem:[#allocation89_spill] sm:$0xff] }
 0x163   : > { %15734 = vmatmul.mubr.f32.gmra.mrb[32].mxu0 %v26458_v18  ;;  %v26469_v18 = vld [vmem:[#allocation93_spill] sm:$0xff] }
 0x164   : > { %15736 = vmatprep.mubr.f32.mxu0 %v26459_v24  ;;  %v26470_v24 = vld [vmem:[#allocation94_spill] sm:$0xff] }
 0x167   : > { %15737 = vmatmul.mubr.f32.gmra.mrb[34].mxu0 %v26460_v47  ;;  %v26471_v47 = vld [vmem:[#allocation95_spill] sm:$0xff] }
 0x168   : > { %15739 = vmatprep.mubr.f32.mxu0 %v26461_v34  ;;  %v26472_v34 = vld [vmem:[#allocation99_spill] sm:$0xff] }
 0x16b   : > { %15740 = vmatmul.mubr.f32.gmra.mrb[36].mxu0 %v26462_v32  ;;  %v26473_v32 = vld [vmem:[#allocation100_spill] sm:$0xff] }
 0x16c   : > { %15742 = vmatprep.mubr.f32.mxu0 %v26463_v53  ;;  %v26474_v53 = vld [vmem:[#allocation102_spill] sm:$0xff] }
 0x16f   : > { %15743 = vmatmul.mubr.f32.gmra.mrb[38].mxu0 %v26464_v29  ;;  %v26475_v29 = vld [vmem:[#allocation104_spill] sm:$0xff] }
 0x170   : > { %15745 = vmatprep.mubr.f32.mxu0 %v26465_v37  ;;  %v26476_v37 = vld [vmem:[#allocation105_spill] sm:$0xff] }
 0x173   : > { %15746 = vmatmul.mubr.f32.gmra.mrb[40].mxu0 %v26466_v21  ;;  %v26477_v21 = vld [vmem:[#allocation107_spill] sm:$0xff] }
 0x174   : > { %15748 = vmatprep.mubr.f32.mxu0 %v26467_v44  ;;  %v26478_v44 = vld [vmem:[#allocation108_spill] sm:$0xff] }
 0x177   : > { %15749 = vmatmul.mubr.f32.gmra.mrb[42].mxu0 %v26468_v15  ;;  %v26479_v15 = vld [vmem:[#allocation111_spill] sm:$0xff] }
 0x178   : > { %15751 = vmatprep.mubr.f32.mxu0 %v26469_v18  ;;  %v26480_v18 = vld [vmem:[#allocation112_spill] sm:$0xff] }
 0x17b   : > { %15752 = vmatmul.mubr.f32.gmra.mrb[44].mxu0 %v26470_v24  ;;  %v26481_v24 = vld [vmem:[#allocation117_spill] sm:$0xff] }
 0x17c   : > { %15754 = vmatprep.mubr.f32.mxu0 %v26471_v47  ;;  %v26482_v47 = vld [vmem:[#allocation118_spill] sm:$0xff] }
 0x17f   : > { %15755 = vmatmul.mubr.f32.gmra.mrb[46].mxu0 %v26472_v34  ;;  %v26483_v34 = vld [vmem:[#allocation119_spill] sm:$0xff] }
 0x180   : > { %15757 = vmatprep.mubr.f32.mxu0 %v26473_v32  ;;  %v26484_v32 = vld [vmem:[#allocation123_spill] sm:$0xff] }
 0x183   : > { %15758 = vmatmul.mubr.f32.gmra.mrb[48].mxu0 %v26474_v53  ;;  %v26485_v53 = vld [vmem:[#allocation124_spill] sm:$0xff] }
 0x184   : > { %15760 = vmatprep.mubr.f32.mxu0 %v26475_v29  ;;  %v26486_v29 = vld [vmem:[#allocation126_spill] sm:$0xff] }
 0x187   : > { %15761 = vmatmul.mubr.f32.gmra.mrb[50].mxu0 %v26476_v37  ;;  %v26563_v37 = vld [vmem:[#allocation48_spill] sm:$0xff] }
 0x188   : > { %15763 = vmatprep.mubr.f32.mxu0 %v26477_v21  ;;  %v26487_v21 = vld [vmem:[#allocation129_spill] sm:$0xff] }
 0x18b   : > { %15764 = vmatmul.mubr.f32.gmra.mrb[52].mxu0 %v26478_v44  ;;  %v26488_v44 = vld [vmem:[#allocation131_spill] sm:$0xff] }
 0x18c   : > { %15766 = vmatprep.mubr.f32.mxu0 %v26479_v15  ;;  %v26489_v15 = vld [vmem:[#allocation134_spill] sm:$0xff] }
 0x18f   : > { %15767 = vmatmul.mubr.f32.gmra.mrb[54].mxu0 %v26480_v18  ;;  %v26490_v18 = vld [vmem:[#allocation135_spill] sm:$0xff] }
 0x190   : > { %15769 = vmatprep.mubr.f32.mxu0 %v26481_v24  ;;  %v26491_v24 = vld [vmem:[#allocation139_spill] sm:$0xff] }
 0x193   : > { %15770 = vmatmul.mubr.f32.gmra.mrb[56].mxu0 %v26482_v47  ;;  %v26492_v47 = vld [vmem:[#allocation140_spill] sm:$0xff] }
 0x194   : > { %15772 = vmatprep.mubr.f32.mxu0 %v26483_v34  ;;  %v26493_v34 = vld [vmem:[#allocation141_spill] sm:$0xff] }
 0x197   : > { %15773 = vmatmul.mubr.f32.gmra.mrb[58].mxu0 %v26484_v32  ;;  %v26494_v32 = vld [vmem:[#allocation144_spill] sm:$0xff] }
 0x198   : > { %15775 = vmatprep.mubr.f32.mxu0 %v26485_v53  ;;  %v26495_v53 = vld [vmem:[#allocation146_spill] sm:$0xff] }
 0x19b   : > { %15776 = vmatmul.mubr.f32.gmra.mrb[60].mxu0 %v26486_v29  ;;  %v26496_v29 = vld [vmem:[#allocation147_spill] sm:$0xff] }
 0x19c   : > { %15778 = vmatprep.mubr.f32.mxu0 %v20500_v55  ;;  %v26497_v55 = vld [vmem:[#allocation151_spill] sm:$0xff] }
 0x19f   : > { %15779 = vmatmul.mubr.f32.gmra.mrb[62].mxu0 %v26487_v21  ;;  %v26498_v21 = vld [vmem:[#allocation152_spill] sm:$0xff] }
 0x1a0   : > { %15781 = vmatprep.mubr.f32.mxu0 %v26488_v44  ;;  %v26499_v44 = vld [vmem:[#allocation153_spill] sm:$0xff] }
 0x1a3   : > { %15782 = vmatmul.mubr.f32.gmra.mrb[64].mxu0 %v26489_v15  ;;  %v26500_v15 = vld [vmem:[#allocation156_spill] sm:$0xff] }
 0x1a4   : > { %15784 = vmatprep.mubr.f32.mxu0 %v26490_v18  ;;  %v26501_v18 = vld [vmem:[#allocation158_spill] sm:$0xff] }
 0x1a7   : > { %15785 = vmatmul.mubr.f32.gmra.mrb[66].mxu0 %v26491_v24  ;;  %v26502_v24 = vld [vmem:[#allocation160_spill] sm:$0xff] }
 0x1a8   : > { %15787 = vmatprep.mubr.f32.mxu0 %v26492_v47  ;;  %v26503_v47 = vld [vmem:[#allocation161_spill] sm:$0xff] }
 0x1ab   : > { %15788 = vmatmul.mubr.f32.gmra.mrb[68].mxu0 %v26493_v34  ;;  %v26504_v34 = vld [vmem:[#allocation164_spill] sm:$0xff] }
 0x1ac   : > { %15790 = vmatprep.mubr.f32.mxu0 %v26494_v32  ;;  %v26505_v32 = vld [vmem:[#allocation166_spill] sm:$0xff] }
 0x1af   : > { %15791 = vmatmul.mubr.f32.gmra.mrb[70].mxu0 %v26495_v53  ;;  %v26506_v53 = vld [vmem:[#allocation167_spill] sm:$0xff] }
 0x1b0   : > { %15793 = vmatprep.mubr.f32.mxu0 %v26496_v29  ;;  %v26507_v29 = vld [vmem:[#allocation171_spill] sm:$0xff] }
 0x1b3   : > { %15794 = vmatmul.mubr.f32.gmra.mrb[72].mxu0 %v26497_v55  ;;  %v26508_v55 = vld [vmem:[#allocation172_spill] sm:$0xff] }
 0x1b4   : > { %15796 = vmatprep.mubr.f32.mxu0 %v26498_v21  ;;  %v26509_v21 = vld [vmem:[#allocation173_spill] sm:$0xff] }
 0x1b7   : > { %15797 = vmatmul.mubr.f32.gmra.mrb[74].mxu0 %v26499_v44  ;;  %v26510_v44 = vld [vmem:[#allocation176_spill] sm:$0xff] }
 0x1b8   : > { %15799 = vmatprep.mubr.f32.mxu0 %v26500_v15  ;;  %v26511_v15 = vld [vmem:[#allocation178_spill] sm:$0xff] }
 0x1bb   : > { %15800 = vmatmul.mubr.f32.gmra.mrb[76].mxu0 %v26501_v18  ;;  %v26512_v18 = vld [vmem:[#allocation180_spill] sm:$0xff] }
 0x1bc   : > { %15802 = vmatprep.mubr.f32.mxu0 %v26502_v24  ;;  %v26513_v24 = vld [vmem:[#allocation181_spill] sm:$0xff] }
 0x1bf   : > { %15803 = vmatmul.mubr.f32.gmra.mrb[78].mxu0 %v26503_v47  ;;  %v26514_v47 = vld [vmem:[#allocation183_spill] sm:$0xff] }
 0x1c0   : > { %15805 = vmatprep.mubr.f32.mxu0 %v26504_v34  ;;  %v26515_v34 = vld [vmem:[#allocation186_spill] sm:$0xff] }
 0x1c3   : > { %15806 = vmatmul.mubr.f32.gmra.mrb[80].mxu0 %v26505_v32  ;;  %v26516_v32 = vld [vmem:[#allocation188_spill] sm:$0xff] }
 0x1c4   : > { %15808 = vmatprep.mubr.f32.mxu0 %v26506_v53  ;;  %v26517_v53 = vld [vmem:[#allocation190_spill] sm:$0xff] }
 0x1c7   : > { %15809 = vmatmul.mubr.f32.gmra.mrb[82].mxu0 %v26507_v29  ;;  %v26518_v29 = vld [vmem:[#allocation192_spill] sm:$0xff] }
 0x1c8   : > { %15811 = vmatprep.mubr.f32.mxu0 %v26508_v55  ;;  %v26519_v55 = vld [vmem:[#allocation194_spill] sm:$0xff] }
 0x1cb   : > { %15812 = vmatmul.mubr.f32.gmra.mrb[84].mxu0 %v26509_v21  ;;  %v26520_v21 = vld [vmem:[#allocation196_spill] sm:$0xff] }
 0x1cc   : > { %15814 = vmatprep.mubr.f32.mxu0 %v26510_v44  ;;  %v26521_v44 = vld [vmem:[#allocation198_spill] sm:$0xff] }
 0x1cf   : > { %15815 = vmatmul.mubr.f32.gmra.mrb[86].mxu0 %v26511_v15  ;;  %v26522_v15 = vld [vmem:[#allocation200_spill] sm:$0xff] }
 0x1d0   : > { %15817 = vmatprep.mubr.f32.mxu0 %v26512_v18  ;;  %v26523_v18 = vld [vmem:[#allocation201_spill] sm:$0xff] }
 0x1d3   : > { %15818 = vmatmul.mubr.f32.gmra.mrb[88].mxu0 %v26513_v24  ;;  %v26524_v24 = vld [vmem:[#allocation203_spill] sm:$0xff] }
 0x1d4   : > { %15820 = vmatprep.mubr.f32.mxu0 %v26514_v47  ;;  %v26525_v47 = vld [vmem:[#allocation206_spill] sm:$0xff] }
 0x1d7   : > { %15821 = vmatmul.mubr.f32.gmra.mrb[90].mxu0 %v26515_v34  ;;  %v26526_v34 = vld [vmem:[#allocation208_spill] sm:$0xff] }
 0x1d8   : > { %15823 = vmatprep.mubr.f32.mxu0 %v26516_v32  ;;  %v26562_v32 = vld [vmem:[#allocation44_spill] sm:$0xff] }
 0x1db   : > { %15824 = vmatmul.mubr.f32.gmra.mrb[92].mxu0 %v26517_v53  ;;  %v26527_v53 = vld [vmem:[#allocation212_spill] sm:$0xff] }
 0x1dc   : > { %15826 = vmatprep.mubr.f32.mxu0 %v26518_v29  ;;  %v26528_v29 = vld [vmem:[#allocation213_spill] sm:$0xff] }
 0x1df   : > { %15827 = vmatmul.mubr.f32.gmra.mrb[94].mxu0 %v26519_v55  ;;  %v26529_v55 = vld [vmem:[#allocation216_spill] sm:$0xff] }
 0x1e0   : > { %15829 = vmatprep.mubr.f32.mxu0 %v26520_v21  ;;  %v26530_v21 = vld [vmem:[#allocation217_spill] sm:$0xff] }
 0x1e3   : > { %15830 = vmatmul.mubr.f32.gmra.mrb[96].mxu0 %v26521_v44  ;;  %v26531_v44 = vld [vmem:[#allocation221_spill] sm:$0xff] }
 0x1e4   : > { %15832 = vmatprep.mubr.f32.mxu0 %v26522_v15  ;;  %v26532_v15 = vld [vmem:[#allocation222_spill] sm:$0xff] }
 0x1e7   : > { %15833 = vmatmul.mubr.f32.gmra.mrb[98].mxu0 %v26523_v18  ;;  %v26533_v18 = vld [vmem:[#allocation223_spill] sm:$0xff] }
 0x1e8   : > { %15835 = vmatprep.mubr.f32.mxu0 %v26524_v24  ;;  %v26561_v24 = vld [vmem:[#allocation43_spill] sm:$0xff] }
 0x1eb   : > { %15836 = vmatmul.mubr.f32.gmra.mrb[100].mxu0 %v26525_v47  ;;  %v26560_v47 = vld [vmem:[#allocation40_spill] sm:$0xff] }
 0x1ec   : > { %15838 = vmatprep.mubr.f32.mxu0 %v26526_v34  ;;  %v26534_v34 = vld [vmem:[#allocation230_spill] sm:$0xff] }
 0x1ef   : > { %15839 = vmatmul.mubr.f32.gmra.mrb[102].mxu0 %v21002_v41  ;;  %v26535_v41 = vld [vmem:[#allocation232_spill] sm:$0xff] }
 0x1f0   : > { %15841 = vmatprep.mubr.f32.mxu0 %v26527_v53  ;;  %v26536_v53 = vld [vmem:[#allocation234_spill] sm:$0xff] }
 0x1f3   : > { %15842 = vmatmul.mubr.f32.gmra.mrb[104].mxu0 %v26528_v29  ;;  %v26537_v29 = vld [vmem:[#allocation235_spill] sm:$0xff] }
 0x1f4   : > { %15844 = vmatprep.mubr.f32.mxu0 %v26529_v55  ;;  %v26538_v55 = vld [vmem:[#allocation238_spill] sm:$0xff] }
 0x1f7   : > { %15845 = vmatmul.mubr.f32.gmra.mrb[106].mxu0 %v26530_v21  ;;  %v26539_v21 = vld [vmem:[#allocation239_spill] sm:$0xff] }
 0x1f8   : > { %15847 = vmatprep.mubr.f32.mxu0 %v26531_v44  ;;  %v26540_v44 = vld [vmem:[#allocation242_spill] sm:$0xff] }
 0x1fb   : > { %15848 = vmatmul.mubr.f32.gmra.mrb[108].mxu0 %v26532_v15  ;;  %v26541_v15 = vld [vmem:[#allocation243_spill] sm:$0xff] }
 0x1fc   : > { %15850 = vmatprep.mubr.f32.mxu0 %v26533_v18  ;;  %v26559_v18 = vld [vmem:[#allocation39_spill] sm:$0xff] }
 0x1ff   : > { %15851 = vmatmul.mubr.f32.gmra.mrb[110].mxu0 %v21096_v31  ;;  %v26558_v31 = vld [vmem:[#allocation36_spill] sm:$0xff] }
 0x200   : > { %15853 = vmatprep.mubr.f32.mxu0 %v21104_v12  ;;  %v26557_v12 = vld [vmem:[#allocation34_spill] sm:$0xff] }
 0x203   : > { %15854 = vmatmul.mubr.f32.gmra.mrb[112].mxu0 %v26534_v34  ;;  %v26556_v34 = vld [vmem:[#allocation33_spill] sm:$0xff] }
 0x204   : > { %15856 = vmatprep.mubr.f32.mxu0 %v26535_v41  ;;  %v26555_v41 = vld [vmem:[#allocation32_spill] sm:$0xff] }
 0x207   : > { %15857 = vmatmul.mubr.f32.gmra.mrb[114].mxu0 %v26536_v53  ;;  %v26554_v53 = vld [vmem:[#allocation28_spill] sm:$0xff] }
 0x208   : > { %15859 = vmatprep.mubr.f32.mxu0 %v26537_v29  ;;  %v26553_v29 = vld [vmem:[#allocation27_spill] sm:$0xff] }
 0x20b   : > { %15860 = vmatmul.mubr.f32.gmra.mrb[116].mxu0 %v26538_v55  ;;  %v26542_v55 = vld [vmem:[#allocation8_spill] sm:$0xff] }
 0x20c   : > { %15862 = vmatprep.mubr.f32.mxu0 %v26539_v21  ;;  %v26543_v21 = vld [vmem:[#allocation10_spill] sm:$0xff] }
 0x20f   : > { %15863 = vmatmul.mubr.f32.gmra.mrb[118].mxu0 %v26540_v44  ;;  %v26552_v44 = vld [vmem:[#allocation26_spill] sm:$0xff] }
 0x210   : > { %15865 = vmatprep.mubr.f32.mxu0 %v26541_v15  ;;  %v26544_v15 = vld [vmem:[#allocation11_spill] sm:$0xff] }
 0x213   : > { %15866 = vmatmul.mubr.f32.gmra.mrb[120].mxu0 %v21225_v38  ;;  %v26545_v38 = vld [vmem:[#allocation4_spill] sm:$0xff] }
 0x214   : > { %15868 = vmatprep.mubr.f32.mxu0 %v21227_v10  ;;  %v26546_v10 = vld [vmem:[#allocation12_spill] sm:$0xff] }
 0x217   : > { %15869 = vmatmul.mubr.f32.gmra.mrb[122].mxu0 %v21244_v45  ;;  %v26547_v45 = vld [vmem:[#allocation15_spill] sm:$0xff] }
 0x218   : > { %15871 = vmatprep.mubr.f32.mxu0 %v21249_v51  ;;  %v26551_v51 = vld [vmem:[#allocation23_spill] sm:$0xff] }
 0x21b   : > { %15872 = vmatmul.mubr.f32.gmra.mrb[124].mxu0 %v21263_v5  ;;  %v26548_v5 = vld [vmem:[#allocation17_spill] sm:$0xff] }
 0x21c   : > { %15874 = vmatprep.mubr.f32.mxu0 %v21269_v46  ;;  %v26549_v46 = vld [vmem:[#allocation18_spill] sm:$0xff] }
 0x21f   : > { %15875 = vmatmul.mubr.f32.gmra.mrb[126].mxu0 %v21279_v11  ;;  %v26550_v11 = vld [vmem:[#allocation20_spill] sm:$0xff] }
 0x220   : > { %15885 = vmatprep.mubr.f32.mxu0 %v26542_v55 }
 0x223   : > { %15886 = vmatmul.mubr.f32.vlgmr.msra.gmra.mrb[0].mxu0 %v26543_v21 }
 0x224   : > { %17952 = vmatpush3.bf16.msra.mxu0 %v19699_v8  ;;  %15888 = vmatprep.mubr.f32.mxu0 %v26544_v15 }
 0x225   : > { %17954 = vmatprep.subr.bf16.mxu0 %v26545_v38 }
 0x227   : > { %15889 = vmatmul.mubr.f32.gmra.mrb[2].mxu0 %v26546_v10 }
 0x228   : > { %15891 = vmatprep.mubr.f32.mxu0 %v26547_v45  ;;  %17956 = vmatpush3.bf16.msra.mxu0 %v26545_v38  ;;  %v26590_v38 = vld [vmem:[#allocation101_spill] sm:$0xff] }
 0x22b   : > { %15892 = vmatmul.mubr.f32.gmra.mrb[4].mxu0 %v26548_v5 }
 0x22c   : > { %15894 = vmatprep.mubr.f32.mxu0 %v26549_v46 }
 0x22f   : > { %15895 = vmatmul.mubr.f32.gmra.mrb[6].mxu0 %v26550_v11 }
 0x230   : > { %15897 = vmatprep.mubr.f32.mxu0 %v26551_v51 }
 0x233   : > { %15898 = vmatmul.mubr.f32.gmra.mrb[8].mxu0 %v26552_v44 }
 0x234   : > { %15900 = vmatprep.mubr.f32.mxu0 %v26553_v29 }
 0x237   : > { %15901 = vmatmul.mubr.f32.gmra.mrb[10].mxu0 %v26554_v53 }
 0x238   : > { %15903 = vmatprep.mubr.f32.mxu0 %v26555_v41 }
 0x23b   : > { %15904 = vmatmul.mubr.f32.gmra.mrb[12].mxu0 %v26556_v34 }
 0x23c   : > { %15906 = vmatprep.mubr.f32.mxu0 %v26557_v12 }
 0x23f   : > { %15907 = vmatmul.mubr.f32.gmra.mrb[14].mxu0 %v26558_v31 }
 0x240   : > { %15909 = vmatprep.mubr.f32.mxu0 %v26559_v18 }
 0x243   : > { %15910 = vmatmul.mubr.f32.gmra.mrb[16].mxu0 %v26560_v47 }
 0x244   : > { %15912 = vmatprep.mubr.f32.mxu0 %v26561_v24 }
 0x247   : > { %15913 = vmatmul.mubr.f32.gmra.mrb[18].mxu0 %v26562_v32 }
 0x248   : > { %15915 = vmatprep.mubr.f32.mxu0 %v26563_v37 }
 0x24b   : > { %15916 = vmatmul.mubr.f32.gmra.mrb[20].mxu0 %v26564_v9 }
 0x24c   : > { %15918 = vmatprep.mubr.f32.mxu0 %v26565_v39 }
 0x24f   : > { %15919 = vmatmul.mubr.f32.gmra.mrb[22].mxu0 %v26566_v4 }
 0x250   : > { %15921 = vmatprep.mubr.f32.mxu0 %v26567_v23 }
 0x253   : > { %15922 = vmatmul.mubr.f32.gmra.mrb[24].mxu0 %v26568_v28 }
 0x254   : > { %15924 = vmatprep.mubr.f32.mxu0 %v26569_v20 }
 0x257   : > { %15925 = vmatmul.mubr.f32.gmra.mrb[26].mxu0 %v26570_v22 }
 0x258   : > { %15927 = vmatprep.mubr.f32.mxu0 %v26571_v62 }
 0x25b   : > { %15928 = vmatmul.mubr.f32.gmra.mrb[28].mxu0 %v26572_v33 }
 0x25c   : > { %15930 = vmatprep.mubr.f32.mxu0 %v26573_v58 }
 0x25f   : > { %15931 = vmatmul.mubr.f32.gmra.mrb[30].mxu0 %v26574_v6 }
 0x260   : > { %15933 = vmatprep.mubr.f32.mxu0 %v26575_v50 }
 0x263   : > { %15934 = vmatmul.mubr.f32.gmra.mrb[32].mxu0 %v26576_v54 }
 0x264   : > { %15936 = vmatprep.mubr.f32.mxu0 %v26577_v60 }
 0x267   : > { %15937 = vmatmul.mubr.f32.gmra.mrb[34].mxu0 %v26578_v63 }
 0x268   : > { %15939 = vmatprep.mubr.f32.mxu0 %v26579_v17 }
 0x26b   : > { %15940 = vmatmul.mubr.f32.gmra.mrb[36].mxu0 %v26580_v16 }
 0x26c   : > { %15942 = vmatprep.mubr.f32.mxu0 %v26581_v27 }
 0x26f   : > { %15943 = vmatmul.mubr.f32.gmra.mrb[38].mxu0 %v26582_v26  ;;  %v26610_v26 = vld [vmem:[#allocation3_spill] sm:$0xff] }
 0x270   : > { %15945 = vmatprep.mubr.f32.mxu0 %v26583_v19  ;;  %v26594_v19 = vld [vmem:[#allocation110_spill] sm:$0xff] }
 0x273   : > { %15946 = vmatmul.mubr.f32.gmra.mrb[40].mxu0 %v26584_v14  ;;  %v26595_v14 = vld [vmem:[#allocation113_spill] sm:$0xff] }
 0x274   : > { %15948 = vmatprep.mubr.f32.mxu0 %v26585_v30  ;;  %v26596_v30 = vld [vmem:[#allocation114_spill] sm:$0xff] }
 0x277   : > { %15949 = vmatmul.mubr.f32.gmra.mrb[42].mxu0 %v26586_v3  ;;  %v26597_v3 = vld [vmem:[#allocation115_spill] sm:$0xff] }
 0x278   : > { %15951 = vmatprep.mubr.f32.mxu0 %v26587_v61  ;;  %v26598_v61 = vld [vmem:[#allocation116_spill] sm:$0xff] }
 0x27b   : > { %15952 = vmatmul.mubr.f32.gmra.mrb[44].mxu0 %v26588_v57  ;;  %v26599_v57 = vld [vmem:[#allocation120_spill] sm:$0xff] }
 0x27c   : > { %15954 = vmatprep.mubr.f32.mxu0 %v26589_v48  ;;  %v26600_v48 = vld [vmem:[#allocation121_spill] sm:$0xff] }
 0x27f   : > { %15955 = vmatmul.mubr.f32.gmra.mrb[46].mxu0 %v26590_v38  ;;  %v26601_v38 = vld [vmem:[#allocation122_spill] sm:$0xff] }
 0x280   : > { %15957 = vmatprep.mubr.f32.mxu0 %v26591_v43  ;;  %v26602_v43 = vld [vmem:[#allocation125_spill] sm:$0xff] }
 0x283   : > { %15958 = vmatmul.mubr.f32.gmra.mrb[48].mxu0 %v26592_v42  ;;  %v26603_v42 = vld [vmem:[#allocation127_spill] sm:$0xff] }
 0x284   : > { %15960 = vmatprep.mubr.f32.mxu0 %v26593_v35  ;;  %v26604_v35 = vld [vmem:[#allocation130_spill] sm:$0xff] }
 0x287   : > { %15961 = vmatmul.mubr.f32.gmra.mrb[50].mxu0 %v26594_v19  ;;  %v26605_v19 = vld [vmem:[#allocation132_spill] sm:$0xff] }
 0x288   : > { %15963 = vmatprep.mubr.f32.mxu0 %v26595_v14  ;;  %v26606_v14 = vld [vmem:[#allocation133_spill] sm:$0xff] }
 0x28b   : > { %15964 = vmatmul.mubr.f32.gmra.mrb[52].mxu0 %v26596_v30  ;;  %v26607_v30 = vld [vmem:[#allocation136_spill] sm:$0xff] }
 0x28c   : > { %15966 = vmatprep.mubr.f32.mxu0 %v26597_v3  ;;  %v26608_v3 = vld [vmem:[#allocation2_spill] sm:$0xff] }
 0x28f   : > { %15967 = vmatmul.mubr.f32.gmra.mrb[54].mxu0 %v26598_v61  ;;  %v26609_v61 = vand.u32 4294901760, %v26608_v3  ;;  %v26619_v3 = vld [vmem:[#allocation150_spill] sm:$0xff] }
 0x290   : > { %15969 = vmatprep.mubr.f32.mxu0 %v26599_v57  ;;  %v26611_v57 = vand.u32 4294901760, %v26610_v26  ;;  %v26622_v26 = vld [vmem:[#allocation157_spill] sm:$0xff] }
 0x292   : > { %v21513_v27 = vpack.c.bf16 %v26611_v57, %v26609_v61  ;;  %v26620_v57 = vld [vmem:[#allocation154_spill] sm:$0xff]  ;;  %v26621_v61 = vld [vmem:[#allocation155_spill] sm:$0xff] }
 0x293   : > { %15970 = vmatmul.mubr.f32.gmra.mrb[56].mxu0 %v26600_v48 }
 0x294   : > { %15972 = vmatprep.mubr.f32.mxu0 %v26601_v38  ;;  %17958 = vmatprep.subr.bf16.mxu0 %v21513_v27  ;;  %v26612_v38 = vld [vmem:[#allocation137_spill] sm:$0xff] }
 0x297   : > { %15973 = vmatmul.mubr.f32.gmra.mrb[58].mxu0 %v26602_v43  ;;  %v26613_v43 = vld [vmem:[#allocation138_spill] sm:$0xff] }
 0x298   : > { %15975 = vmatprep.mubr.f32.mxu0 %v26603_v42  ;;  %v26614_v42 = vld [vmem:[#allocation142_spill] sm:$0xff] }
 0x29b   : > { %15976 = vmatmul.mubr.f32.gmra.mrb[60].mxu0 %v26604_v35  ;;  %v26615_v35 = vld [vmem:[#allocation143_spill] sm:$0xff] }
 0x29c   : > { %15978 = vmatprep.mubr.f32.mxu0 %v26605_v19  ;;  %v26616_v19 = vld [vmem:[#allocation145_spill] sm:$0xff] }
 0x29f   : > { %15979 = vmatmul.mubr.f32.gmra.mrb[62].mxu0 %v26606_v14  ;;  %v26617_v14 = vld [vmem:[#allocation148_spill] sm:$0xff] }
 0x2a0   : > { %15981 = vmatprep.mubr.f32.mxu0 %v26607_v30  ;;  %v26618_v30 = vld [vmem:[#allocation149_spill] sm:$0xff] }
 0x2a3   : > { %15982 = vmatmul.mubr.f32.gmra.mrb[64].mxu0 %v26612_v38  ;;  %v26623_v38 = vld [vmem:[#allocation159_spill] sm:$0xff] }
 0x2a4   : > { %15984 = vmatprep.mubr.f32.mxu0 %v26613_v43  ;;  %v26624_v43 = vld [vmem:[#allocation162_spill] sm:$0xff] }
 0x2a7   : > { %15985 = vmatmul.mubr.f32.gmra.mrb[66].mxu0 %v26614_v42  ;;  %v26625_v42 = vld [vmem:[#allocation163_spill] sm:$0xff] }
 0x2a8   : > { %15987 = vmatprep.mubr.f32.mxu0 %v26615_v35  ;;  %v26626_v35 = vld [vmem:[#allocation165_spill] sm:$0xff] }
 0x2ab   : > { %15988 = vmatmul.mubr.f32.gmra.mrb[68].mxu0 %v26616_v19  ;;  %v26627_v19 = vld [vmem:[#allocation168_spill] sm:$0xff] }
 0x2ac   : > { %15990 = vmatprep.mubr.f32.mxu0 %v26617_v14  ;;  %v26628_v14 = vld [vmem:[#allocation169_spill] sm:$0xff] }
 0x2af   : > { %15991 = vmatmul.mubr.f32.gmra.mrb[70].mxu0 %v26618_v30  ;;  %v26629_v30 = vld [vmem:[#allocation170_spill] sm:$0xff] }
 0x2b0   : > { %15993 = vmatprep.mubr.f32.mxu0 %v26619_v3  ;;  %v26630_v3 = vld [vmem:[#allocation174_spill] sm:$0xff] }
 0x2b3   : > { %15994 = vmatmul.mubr.f32.gmra.mrb[72].mxu0 %v26620_v57  ;;  %v26631_v57 = vld [vmem:[#allocation175_spill] sm:$0xff] }
 0x2b4   : > { %15996 = vmatprep.mubr.f32.mxu0 %v26621_v61  ;;  %v26632_v61 = vld [vmem:[#allocation177_spill] sm:$0xff] }
 0x2b7   : > { %15997 = vmatmul.mubr.f32.gmra.mrb[74].mxu0 %v26622_v26  ;;  %v26633_v26 = vld [vmem:[#allocation179_spill] sm:$0xff] }
 0x2b8   : > { %15999 = vmatprep.mubr.f32.mxu0 %v26623_v38  ;;  %v26634_v38 = vld [vmem:[#allocation182_spill] sm:$0xff] }
 0x2bb   : > { %16000 = vmatmul.mubr.f32.gmra.mrb[76].mxu0 %v26624_v43  ;;  %v26635_v43 = vld [vmem:[#allocation184_spill] sm:$0xff] }
 0x2bc   : > { %16002 = vmatprep.mubr.f32.mxu0 %v26625_v42  ;;  %v26636_v42 = vld [vmem:[#allocation185_spill] sm:$0xff] }
 0x2bf   : > { %16003 = vmatmul.mubr.f32.gmra.mrb[78].mxu0 %v26626_v35  ;;  %v26637_v35 = vld [vmem:[#allocation187_spill] sm:$0xff] }
 0x2c0   : > { %16005 = vmatprep.mubr.f32.mxu0 %v26627_v19  ;;  %v26638_v19 = vld [vmem:[#allocation189_spill] sm:$0xff] }
 0x2c3   : > { %16006 = vmatmul.mubr.f32.gmra.mrb[80].mxu0 %v26628_v14  ;;  %v26639_v14 = vld [vmem:[#allocation191_spill] sm:$0xff] }
 0x2c4   : > { %16008 = vmatprep.mubr.f32.mxu0 %v26629_v30  ;;  %v26640_v30 = vld [vmem:[#allocation193_spill] sm:$0xff] }
 0x2c7   : > { %16009 = vmatmul.mubr.f32.gmra.mrb[82].mxu0 %v26630_v3  ;;  %v26641_v3 = vld [vmem:[#allocation195_spill] sm:$0xff] }
 0x2c8   : > { %16011 = vmatprep.mubr.f32.mxu0 %v26631_v57  ;;  %v26642_v57 = vld [vmem:[#allocation197_spill] sm:$0xff] }
 0x2cb   : > { %16012 = vmatmul.mubr.f32.gmra.mrb[84].mxu0 %v26632_v61  ;;  %v26643_v61 = vld [vmem:[#allocation199_spill] sm:$0xff] }
 0x2cc   : > { %16014 = vmatprep.mubr.f32.mxu0 %v26633_v26  ;;  %v26644_v26 = vld [vmem:[#allocation202_spill] sm:$0xff] }
 0x2cf   : > { %16015 = vmatmul.mubr.f32.gmra.mrb[86].mxu0 %v26634_v38  ;;  %v26645_v38 = vld [vmem:[#allocation204_spill] sm:$0xff] }
 0x2d0   : > { %16017 = vmatprep.mubr.f32.mxu0 %v26635_v43  ;;  %v26646_v43 = vld [vmem:[#allocation205_spill] sm:$0xff] }
 0x2d3   : > { %16018 = vmatmul.mubr.f32.gmra.mrb[88].mxu0 %v26636_v42  ;;  %v26647_v42 = vld [vmem:[#allocation207_spill] sm:$0xff] }
 0x2d4   : > { %16020 = vmatprep.mubr.f32.mxu0 %v26637_v35  ;;  %v26648_v35 = vld [vmem:[#allocation209_spill] sm:$0xff] }
 0x2d7   : > { %16021 = vmatmul.mubr.f32.gmra.mrb[90].mxu0 %v26638_v19  ;;  %v26649_v19 = vld [vmem:[#allocation210_spill] sm:$0xff] }
 0x2d8   : > { %16023 = vmatprep.mubr.f32.mxu0 %v26639_v14  ;;  %v26650_v14 = vld [vmem:[#allocation214_spill] sm:$0xff] }
 0x2db   : > { %16024 = vmatmul.mubr.f32.gmra.mrb[92].mxu0 %v26640_v30  ;;  %v26651_v30 = vld [vmem:[#allocation215_spill] sm:$0xff] }
 0x2dc   : > { %16026 = vmatprep.mubr.f32.mxu0 %v26641_v3  ;;  %v26652_v3 = vld [vmem:[#allocation218_spill] sm:$0xff] }
 0x2df   : > { %16027 = vmatmul.mubr.f32.gmra.mrb[94].mxu0 %v26642_v57  ;;  %v26653_v57 = vld [vmem:[#allocation219_spill] sm:$0xff] }
 0x2e0   : > { %16029 = vmatprep.mubr.f32.mxu0 %v26643_v61  ;;  %v26654_v61 = vld [vmem:[#allocation220_spill] sm:$0xff] }
 0x2e3   : > { %16030 = vmatmul.mubr.f32.gmra.mrb[96].mxu0 %v26644_v26  ;;  %v26655_v26 = vld [vmem:[#allocation224_spill] sm:$0xff] }
 0x2e4   : > { %16032 = vmatprep.mubr.f32.mxu0 %v26645_v38  ;;  %v26656_v38 = vld [vmem:[#allocation225_spill] sm:$0xff] }
 0x2e7   : > { %16033 = vmatmul.mubr.f32.gmra.mrb[98].mxu0 %v26646_v43  ;;  %v26657_v43 = vld [vmem:[#allocation226_spill] sm:$0xff] }
 0x2e8   : > { %16035 = vmatprep.mubr.f32.mxu0 %v26647_v42  ;;  %v26658_v42 = vld [vmem:[#allocation229_spill] sm:$0xff] }
 0x2eb   : > { %16036 = vmatmul.mubr.f32.gmra.mrb[100].mxu0 %v26648_v35  ;;  %v26659_v35 = vld [vmem:[#allocation231_spill] sm:$0xff] }
 0x2ec   : > { %16038 = vmatprep.mubr.f32.mxu0 %v26649_v19  ;;  %v26660_v19 = vld [vmem:[#allocation233_spill] sm:$0xff] }
 0x2ef   : > { %16039 = vmatmul.mubr.f32.gmra.mrb[102].mxu0 %v26650_v14  ;;  %v26661_v14 = vld [vmem:[#allocation236_spill] sm:$0xff] }
 0x2f0   : > { %16041 = vmatprep.mubr.f32.mxu0 %v26651_v30  ;;  %v26662_v30 = vld [vmem:[#allocation237_spill] sm:$0xff] }
 0x2f3   : > { %16042 = vmatmul.mubr.f32.gmra.mrb[104].mxu0 %v26652_v3  ;;  %v26663_v3 = vld [vmem:[#allocation240_spill] sm:$0xff] }
 0x2f4   : > { %16044 = vmatprep.mubr.f32.mxu0 %v26653_v57 }
 0x2f7   : > { %16045 = vmatmul.mubr.f32.gmra.mrb[106].mxu0 %v26654_v61 }
 0x2f8   : > { %16047 = vmatprep.mubr.f32.mxu0 %v26655_v26 }
 0x2fb   : > { %16048 = vmatmul.mubr.f32.gmra.mrb[108].mxu0 %v26656_v38 }
 0x2fc   : > { %16050 = vmatprep.mubr.f32.mxu0 %v26657_v43 }
 0x2ff   : > { %16051 = vmatmul.mubr.f32.gmra.mrb[110].mxu0 %v26658_v42 }
 0x300   : > { %16053 = vmatprep.mubr.f32.mxu0 %v26659_v35  ;;  %v26664_v35 = vld [vmem:[#allocation252_spill] sm:$0xff] }
 0x303   : > { %16054 = vmatmul.mubr.f32.gmra.mrb[112].mxu0 %v26660_v19 }
 0x304   : > { %16056 = vmatprep.mubr.f32.mxu0 %v26661_v14 }
 0x307   : > { %16057 = vmatmul.mubr.f32.gmra.mrb[114].mxu0 %v26662_v30 }
 0x308   : > { %16059 = vmatprep.mubr.f32.mxu0 %v26663_v3 }
 0x30b   : > { %16060 = vmatmul.mubr.f32.gmra.mrb[116].mxu0 %v21187_v7 }
 0x30c   : > { %16062 = vmatprep.mubr.f32.mxu0 %v21190_v52  ;;  %v26665_v52 = vand.u32 4294901760, %v26542_v55  ;;  %v26671_v55 = vand.u32 4294901760, %v26547_v45  ;;  %v26680_v45 = vand.u32 4294901760, %v26556_v34  ;;  %v26690_v34 = vand.u32 4294901760, %v26566_v4 }
 0x30d   : > { %v26697_v4 = vand.u32 4294901760, %v26573_v58  ;;  %v26704_v58 = vand.u32 4294901760, %v26580_v16  ;;  %v26717_v16 = vld [vmem:[#allocation96_spill] sm:$0xff] }
 0x30f   : > { %16063 = vmatmul.mubr.f32.gmra.mrb[118].mxu0 %v21215_v0  ;;  %v26666_v0 = vand.u32 4294901760, %v20463_v49  ;;  %v26672_v49 = vand.u32 4294901760, %v26548_v5  ;;  %v26683_v5 = vand.u32 4294901760, %v26559_v18 }
 0x310   : > { %16065 = vmatprep.mubr.f32.mxu0 %v21223_v1  ;;  %v26667_v1 = vand.u32 4294901760, %v20473_v59  ;;  %v26673_v59 = vand.u32 4294901760, %v26549_v46  ;;  %v26687_v46 = vand.u32 4294901760, %v26563_v37 }
 0x313   : > { %16066 = vmatmul.mubr.f32.gmra.mrb[120].mxu0 %v21242_v36  ;;  %v17961_v36 = vpack.c.bf16 %v26667_v1, %v26666_v0  ;;  %v26677_v0 = vand.u32 4294901760, %v26553_v29  ;;  %v26678_v1 = vand.u32 4294901760, %v26554_v53  ;;  %v26685_v53 = vand.u32 4294901760, %v26561_v24 }
 0x314   : > { %16068 = vmatprep.mubr.f32.mxu0 %v21247_v25  ;;  %v26668_v25 = vand.u32 4294901760, %v26543_v21  ;;  %v26692_v29 = vand.u32 4294901760, %v26568_v28  ;;  %v26699_v28 = vand.u32 4294901760, %v26575_v50  ;;  %v26707_v50 = vld [vmem:[#allocation85_spill] sm:$0xff] }
 0x315   : > { %v26708_v21 = vand.u32 4294901760, %v26707_v50 }
 0x317   : > { %16069 = vmatmul.mubr.f32.gmra.mrb[122].mxu0 %v26664_v35 }
 0x318   : > { %16071 = vmatprep.mubr.f32.mxu0 %v21267_v13  ;;  %v26669_v13 = vand.u32 4294901760, %v26544_v15 }
 0x31b   : > { %16072 = vmatmul.mubr.f32.gmra.mrb[124].mxu0 %v21277_v56 }
 0x31c   : > { %16074 = vmatprep.mubr.f32.mxu0 %v21286_v2  ;;  %v26670_v2 = vand.u32 4294901760, %v26546_v10  ;;  %v26676_v10 = vand.u32 4294901760, %v26552_v44 }
 0x31f   : > { %16075 = vmatmul.mubr.f32.gmra.mrb[126].mxu0 %v21293_v40 }
 0x320   : > { %16085 = vmatprep.mubr.f32.mxu0 %v26665_v52  ;;  %v26675_v52 = vand.u32 4294901760, %v26551_v51  ;;  %v26682_v51 = vand.u32 4294901760, %v26558_v31  ;;  %v26689_v31 = vand.u32 4294901760, %v26565_v39  ;;  %v26696_v39 = vand.u32 4294901760, %v26572_v33 }
 0x321   : > { %v26703_v33 = vand.u32 4294901760, %v26579_v17  ;;  %v26715_v17 = vld [vmem:[#allocation92_spill] sm:$0xff] }
 0x322   : > { %v26716_v24 = vand.u32 4294901760, %v26715_v17  ;;  %v26764_v17 = vld [vmem:[#allocation143_spill] sm:$0xff] }
 0x323   : > { %16086 = vmatmul.mubr.f32.vlgmr.msra.gmra.mrb[0].mxu0 %v26668_v25  ;;  %v26681_v25 = vand.u32 4294901760, %v26557_v12  ;;  %v26688_v12 = vand.u32 4294901760, %v26564_v9  ;;  %v26695_v9 = vand.u32 4294901760, %v26571_v62  ;;  %v26702_v62 = vand.u32 4294901760, %v26578_v63  ;;  %v26713_v63 = vld [vmem:[#allocation91_spill] sm:$0xff] }
 0x324   : > { %17960 = vmatpush3.bf16.msra.mxu0 %v21513_v27  ;;  %16088 = vmatprep.mubr.f32.mxu0 %v26669_v13  ;;  %v26674_v27 = vand.u32 4294901760, %v26550_v11  ;;  %v26684_v13 = vand.u32 4294901760, %v26560_v47  ;;  %v26691_v11 = vand.u32 4294901760, %v26567_v23  ;;  %v26698_v23 = vand.u32 4294901760, %v26574_v6  ;;  %v26705_v6 = vld [vmem:[#allocation83_spill] sm:$0xff] }
 0x325   : > { %17962 = vmatprep.subr.bf16.mxu0 %v17961_v36  ;;  %v26706_v37 = vand.u32 4294901760, %v26705_v6  ;;  %v26714_v18 = vand.u32 4294901760, %v26713_v63  ;;  %v26718_v47 = vand.u32 4294901760, %v26717_v16  ;;  %v26762_v63 = vld [vmem:[#allocation142_spill] sm:$0xff]  ;;  %v26766_v16 = vld [vmem:[#allocation145_spill] sm:$0xff] }
 0x327   : > { %16089 = vmatmul.mubr.f32.gmra.mrb[2].mxu0 %v26670_v2  ;;  %v26693_v2 = vand.u32 4294901760, %v26569_v20  ;;  %v26700_v20 = vand.u32 4294901760, %v26576_v54  ;;  %v26709_v54 = vld [vmem:[#allocation88_spill] sm:$0xff] }
 0x328   : > { %16091 = vmatprep.mubr.f32.mxu0 %v26671_v55  ;;  %17964 = vmatpush3.bf16.msra.mxu0 %v17961_v36  ;;  %v26679_v36 = vand.u32 4294901760, %v26555_v41  ;;  %v26686_v41 = vand.u32 4294901760, %v26562_v32  ;;  %v26694_v32 = vand.u32 4294901760, %v26570_v22  ;;  %v26701_v22 = vand.u32 4294901760, %v26577_v60  ;;  %v26711_v60 = vld [vmem:[#allocation90_spill] sm:$0xff]  ;;  %v26719_v55 = vld [vmem:[#allocation97_spill] sm:$0xff] }
 0x329   : > { %17966 = vmatprep.subr.bf16.mxu0 %v19699_v8  ;;  %v26710_v44 = vand.u32 4294901760, %v26709_v54  ;;  %v26712_v15 = vand.u32 4294901760, %v26711_v60  ;;  %v26758_v54 = vld [vmem:[#allocation137_spill] sm:$0xff]  ;;  %v26760_v60 = vld [vmem:[#allocation138_spill] sm:$0xff] }
 0x32b   : > { %16092 = vmatmul.mubr.f32.gmra.mrb[4].mxu0 %v26672_v49  ;;  %v26720_v49 = vand.u32 4294901760, %v26719_v55  ;;  %v26768_v55 = vld [vmem:[#allocation148_spill] sm:$0xff] }
 0x32c   : > { %16094 = vmatprep.mubr.f32.mxu0 %v26673_v59  ;;  %v26721_v59 = vld [vmem:[#allocation98_spill] sm:$0xff] }
 0x32f   : > { %16095 = vmatmul.mubr.f32.gmra.mrb[6].mxu0 %v26674_v27  ;;  %v26722_v27 = vand.u32 4294901760, %v26721_v59  ;;  %v26770_v59 = vld [vmem:[#allocation149_spill] sm:$0xff] }
 0x330   : > { %16097 = vmatprep.mubr.f32.mxu0 %v26675_v52  ;;  %v26723_v52 = vld [vmem:[#allocation101_spill] sm:$0xff] }
 0x333   : > { %16098 = vmatmul.mubr.f32.gmra.mrb[8].mxu0 %v26676_v10  ;;  %v26724_v10 = vand.u32 4294901760, %v26723_v52  ;;  %v26772_v52 = vld [vmem:[#allocation150_spill] sm:$0xff] }
 0x334   : > { %16100 = vmatprep.mubr.f32.mxu0 %v26677_v0  ;;  %v26725_v0 = vld [vmem:[#allocation103_spill] sm:$0xff] }
 0x337   : > { %16101 = vmatmul.mubr.f32.gmra.mrb[10].mxu0 %v26678_v1  ;;  %v26726_v1 = vand.u32 4294901760, %v26725_v0  ;;  %v26774_v0 = vld [vmem:[#allocation154_spill] sm:$0xff] }
 0x338   : > { %16103 = vmatprep.mubr.f32.mxu0 %v26679_v36  ;;  %v26727_v36 = vld [vmem:[#allocation106_spill] sm:$0xff] }
 0x33b   : > { %16104 = vmatmul.mubr.f32.gmra.mrb[12].mxu0 %v26680_v45  ;;  %v26728_v45 = vand.u32 4294901760, %v26727_v36  ;;  %v26776_v36 = vld [vmem:[#allocation155_spill] sm:$0xff] }
 0x33c   : > { %16106 = vmatprep.mubr.f32.mxu0 %v26681_v25  ;;  %v26729_v25 = vld [vmem:[#allocation109_spill] sm:$0xff] }
 0x33f   : > { %16107 = vmatmul.mubr.f32.gmra.mrb[14].mxu0 %v26682_v51  ;;  %v26730_v51 = vand.u32 4294901760, %v26729_v25  ;;  %v26778_v25 = vld [vmem:[#allocation157_spill] sm:$0xff] }
 0x340   : > { %16109 = vmatprep.mubr.f32.mxu0 %v26683_v5  ;;  %v26731_v5 = vld [vmem:[#allocation110_spill] sm:$0xff] }
 0x343   : > { %16110 = vmatmul.mubr.f32.gmra.mrb[16].mxu0 %v26684_v13  ;;  %v26732_v13 = vand.u32 4294901760, %v26731_v5  ;;  %v26780_v5 = vld [vmem:[#allocation159_spill] sm:$0xff] }
 0x344   : > { %16112 = vmatprep.mubr.f32.mxu0 %v26685_v53  ;;  %v26733_v53 = vld [vmem:[#allocation113_spill] sm:$0xff] }
 0x347   : > { %16113 = vmatmul.mubr.f32.gmra.mrb[18].mxu0 %v26686_v41  ;;  %v26734_v41 = vand.u32 4294901760, %v26733_v53  ;;  %v26782_v53 = vld [vmem:[#allocation162_spill] sm:$0xff] }
 0x348   : > { %16115 = vmatprep.mubr.f32.mxu0 %v26687_v46  ;;  %v26735_v46 = vld [vmem:[#allocation114_spill] sm:$0xff] }
 0x34b   : > { %16116 = vmatmul.mubr.f32.gmra.mrb[20].mxu0 %v26688_v12  ;;  %v26736_v12 = vand.u32 4294901760, %v26735_v46  ;;  %v26784_v46 = vld [vmem:[#allocation163_spill] sm:$0xff] }
 0x34c   : > { %16118 = vmatprep.mubr.f32.mxu0 %v26689_v31  ;;  %v26737_v31 = vld [vmem:[#allocation115_spill] sm:$0xff] }
 0x34f   : > { %16119 = vmatmul.mubr.f32.gmra.mrb[22].mxu0 %v26690_v34  ;;  %v26738_v34 = vand.u32 4294901760, %v26737_v31  ;;  %v26786_v31 = vld [vmem:[#allocation165_spill] sm:$0xff] }
 0x350   : > { %16121 = vmatprep.mubr.f32.mxu0 %v26691_v11  ;;  %v26739_v11 = vld [vmem:[#allocation116_spill] sm:$0xff] }
 0x353   : > { %16122 = vmatmul.mubr.f32.gmra.mrb[24].mxu0 %v26692_v29  ;;  %v26740_v29 = vand.u32 4294901760, %v26739_v11  ;;  %v26788_v11 = vld [vmem:[#allocation168_spill] sm:$0xff] }
 0x354   : > { %16124 = vmatprep.mubr.f32.mxu0 %v26693_v2  ;;  %v26741_v2 = vld [vmem:[#allocation120_spill] sm:$0xff] }
 0x357   : > { %16125 = vmatmul.mubr.f32.gmra.mrb[26].mxu0 %v26694_v32  ;;  %v26742_v32 = vand.u32 4294901760, %v26741_v2  ;;  %v26790_v2 = vld [vmem:[#allocation169_spill] sm:$0xff] }
 0x358   : > { %16127 = vmatprep.mubr.f32.mxu0 %v26695_v9  ;;  %v26743_v9 = vand.u32 4294901760, %v26600_v48  ;;  %v26756_v48 = vld [vmem:[#allocation136_spill] sm:$0xff] }
 0x35b   : > { %16128 = vmatmul.mubr.f32.gmra.mrb[28].mxu0 %v26696_v39  ;;  %v26744_v39 = vld [vmem:[#allocation122_spill] sm:$0xff] }
 0x35c   : > { %16130 = vmatprep.mubr.f32.mxu0 %v26697_v4  ;;  %v26745_v4 = vand.u32 4294901760, %v26744_v39 }
 0x35f   : > { %16131 = vmatmul.mubr.f32.gmra.mrb[30].mxu0 %v26698_v23  ;;  %v26746_v23 = vld [vmem:[#allocation125_spill] sm:$0xff] }
 0x360   : > { %16133 = vmatprep.mubr.f32.mxu0 %v26699_v28  ;;  %v26747_v28 = vand.u32 4294901760, %v26746_v23 }
 0x363   : > { %16134 = vmatmul.mubr.f32.gmra.mrb[32].mxu0 %v26700_v20  ;;  %v26748_v20 = vld [vmem:[#allocation127_spill] sm:$0xff] }
 0x364   : > { %16136 = vmatprep.mubr.f32.mxu0 %v26701_v22  ;;  %v26749_v22 = vand.u32 4294901760, %v26748_v20 }
 0x367   : > { %16137 = vmatmul.mubr.f32.gmra.mrb[34].mxu0 %v26702_v62  ;;  %v26750_v62 = vld [vmem:[#allocation130_spill] sm:$0xff] }
 0x368   : > { %16139 = vmatprep.mubr.f32.mxu0 %v26703_v33  ;;  %v26751_v33 = vand.u32 4294901760, %v26750_v62 }
 0x36b   : > { %16140 = vmatmul.mubr.f32.gmra.mrb[36].mxu0 %v26704_v58  ;;  %v26752_v58 = vld [vmem:[#allocation132_spill] sm:$0xff] }
 0x36c   : > { %16142 = vmatprep.mubr.f32.mxu0 %v26706_v37  ;;  %v26753_v6 = vand.u32 4294901760, %v26752_v58  ;;  %v26754_v37 = vld [vmem:[#allocation133_spill] sm:$0xff] }
 0x36d   : > { %v26755_v50 = vand.u32 4294901760, %v26754_v37 }
 0x36f   : > { %16143 = vmatmul.mubr.f32.gmra.mrb[38].mxu0 %v26708_v21  ;;  %v26757_v21 = vand.u32 4294901760, %v26756_v48 }
 0x370   : > { %16145 = vmatprep.mubr.f32.mxu0 %v26710_v44  ;;  %v26759_v44 = vand.u32 4294901760, %v26758_v54 }
 0x373   : > { %16146 = vmatmul.mubr.f32.gmra.mrb[40].mxu0 %v26712_v15  ;;  %v26761_v15 = vand.u32 4294901760, %v26760_v60 }
 0x374   : > { %16148 = vmatprep.mubr.f32.mxu0 %v26714_v18  ;;  %v26763_v18 = vand.u32 4294901760, %v26762_v63 }
 0x377   : > { %16149 = vmatmul.mubr.f32.gmra.mrb[42].mxu0 %v26716_v24  ;;  %v26765_v24 = vand.u32 4294901760, %v26764_v17 }
 0x378   : > { %16151 = vmatprep.mubr.f32.mxu0 %v26718_v47  ;;  %v26767_v47 = vand.u32 4294901760, %v26766_v16 }
 0x37b   : > { %16152 = vmatmul.mubr.f32.gmra.mrb[44].mxu0 %v26720_v49  ;;  %v26769_v49 = vand.u32 4294901760, %v26768_v55 }
 0x37c   : > { %16154 = vmatprep.mubr.f32.mxu0 %v26722_v27  ;;  %v26771_v27 = vand.u32 4294901760, %v26770_v59 }
 0x37f   : > { %16155 = vmatmul.mubr.f32.gmra.mrb[46].mxu0 %v26724_v10  ;;  %v26773_v10 = vand.u32 4294901760, %v26772_v52 }
 0x380   : > { %16157 = vmatprep.mubr.f32.mxu0 %v26726_v1  ;;  %v26775_v1 = vand.u32 4294901760, %v26774_v0 }
 0x383   : > { %16158 = vmatmul.mubr.f32.gmra.mrb[48].mxu0 %v26728_v45  ;;  %v26777_v45 = vand.u32 4294901760, %v26776_v36 }
 0x384   : > { %16160 = vmatprep.mubr.f32.mxu0 %v26730_v51  ;;  %v26779_v51 = vand.u32 4294901760, %v26778_v25 }
 0x387   : > { %16161 = vmatmul.mubr.f32.gmra.mrb[50].mxu0 %v26732_v13  ;;  %v26781_v13 = vand.u32 4294901760, %v26780_v5 }
 0x388   : > { %16163 = vmatprep.mubr.f32.mxu0 %v26734_v41  ;;  %v26783_v41 = vand.u32 4294901760, %v26782_v53 }
 0x38b   : > { %16164 = vmatmul.mubr.f32.gmra.mrb[52].mxu0 %v26736_v12  ;;  %v26785_v12 = vand.u32 4294901760, %v26784_v46 }
 0x38c   : > { %16166 = vmatprep.mubr.f32.mxu0 %v26738_v34  ;;  %v26787_v34 = vand.u32 4294901760, %v26786_v31 }
 0x38f   : > { %16167 = vmatmul.mubr.f32.gmra.mrb[54].mxu0 %v26740_v29  ;;  %v26789_v29 = vand.u32 4294901760, %v26788_v11 }
 0x390   : > { %16169 = vmatprep.mubr.f32.mxu0 %v26742_v32  ;;  %v26791_v32 = vand.u32 4294901760, %v26790_v2 }
 0x393   : > { %16170 = vmatmul.mubr.f32.gmra.mrb[56].mxu0 %v26743_v9  ;;  %v26792_v9 = vld [vmem:[#allocation170_spill] sm:$0xff] }
 0x394   : > { %16172 = vmatprep.mubr.f32.mxu0 %v26745_v4  ;;  %v26793_v39 = vand.u32 4294901760, %v26792_v9  ;;  %v26794_v4 = vld [vmem:[#allocation174_spill] sm:$0xff]  ;;  %v26841_v9 = vand.u32 4294901760, %v26654_v61  ;;  %v26849_v61 = vand.u32 4294901760, %v26661_v14  ;;  %v26859_v14 = vld [vmem:[#allocation248_spill] sm:$0xff] }
 0x395   : > { %v26795_v23 = vand.u32 4294901760, %v26794_v4  ;;  %v26843_v4 = vand.u32 4294901760, %v26656_v38  ;;  %v26851_v38 = vand.u32 4294901760, %v26663_v3  ;;  %v26863_v3 = vand.u32 4294901760, %v26664_v35  ;;  %v26872_v35 = vld [vmem:[#allocation7_spill] sm:$0xff] }
 0x397   : > { %16173 = vmatmul.mubr.f32.gmra.mrb[58].mxu0 %v26747_v28  ;;  %v26796_v28 = vld [vmem:[#allocation175_spill] sm:$0xff] }
 0x398   : > { %16175 = vmatprep.mubr.f32.mxu0 %v26749_v22  ;;  %v26797_v20 = vand.u32 4294901760, %v26796_v28  ;;  %v26798_v22 = vld [vmem:[#allocation177_spill] sm:$0xff]  ;;  %v26845_v28 = vand.u32 4294901760, %v26658_v42 }
 0x399   : > { %v26799_v62 = vand.u32 4294901760, %v26798_v22  ;;  %v26853_v42 = vld [vmem:[#allocation241_spill] sm:$0xff] }
 0x39b   : > { %16176 = vmatmul.mubr.f32.gmra.mrb[60].mxu0 %v26751_v33  ;;  %v26800_v33 = vld [vmem:[#allocation179_spill] sm:$0xff] }
 0x39c   : > { %16178 = vmatprep.mubr.f32.mxu0 %v26753_v6  ;;  %v26801_v58 = vand.u32 4294901760, %v26800_v33  ;;  %v26802_v6 = vld [vmem:[#allocation182_spill] sm:$0xff]  ;;  %v26855_v33 = vld [vmem:[#allocation244_spill] sm:$0xff] }
 0x39d   : > { %v26803_v37 = vand.u32 4294901760, %v26802_v6 }
 0x39f   : > { %16179 = vmatmul.mubr.f32.gmra.mrb[62].mxu0 %v26755_v50  ;;  %v26804_v50 = vld [vmem:[#allocation184_spill] sm:$0xff] }
 0x3a0   : > { %16181 = vmatprep.mubr.f32.mxu0 %v26757_v21  ;;  %v26805_v48 = vand.u32 4294901760, %v26804_v50  ;;  %v26806_v21 = vld [vmem:[#allocation185_spill] sm:$0xff] }
 0x3a1   : > { %v26807_v54 = vand.u32 4294901760, %v26806_v21  ;;  %v26866_v21 = vand.u32 4294901760, %v21277_v56  ;;  %v26875_v56 = vld [vmem:[#allocation13_spill] sm:$0xff] }
 0x3a3   : > { %16182 = vmatmul.mubr.f32.gmra.mrb[64].mxu0 %v26759_v44  ;;  %v26808_v44 = vld [vmem:[#allocation187_spill] sm:$0xff] }
 0x3a4   : > { %16184 = vmatprep.mubr.f32.mxu0 %v26761_v15  ;;  %v26809_v60 = vand.u32 4294901760, %v26808_v44  ;;  %v26810_v15 = vld [vmem:[#allocation189_spill] sm:$0xff] }
 0x3a5   : > { %v26811_v63 = vand.u32 4294901760, %v26810_v15  ;;  %v26870_v15 = vld [vmem:[#allocation5_spill] sm:$0xff] }
 0x3a7   : > { %16185 = vmatmul.mubr.f32.gmra.mrb[66].mxu0 %v26763_v18  ;;  %v26812_v18 = vld [vmem:[#allocation191_spill] sm:$0xff] }
 0x3a8   : > { %16187 = vmatprep.mubr.f32.mxu0 %v26765_v24  ;;  %v26813_v17 = vand.u32 4294901760, %v26812_v18  ;;  %v26814_v24 = vld [vmem:[#allocation193_spill] sm:$0xff]  ;;  %v26873_v18 = vld [vmem:[#allocation4_spill] sm:$0xff] }
 0x3a9   : > { %v26815_v16 = vand.u32 4294901760, %v26814_v24  ;;  %v26876_v24 = vld [vmem:[#allocation14_spill] sm:$0xff] }
 0x3ab   : > { %16188 = vmatmul.mubr.f32.gmra.mrb[68].mxu0 %v26767_v47  ;;  %v26816_v47 = vld [vmem:[#allocation195_spill] sm:$0xff] }
 0x3ac   : > { %16190 = vmatprep.mubr.f32.mxu0 %v26769_v49  ;;  %v26817_v55 = vand.u32 4294901760, %v26816_v47  ;;  %v26818_v49 = vld [vmem:[#allocation197_spill] sm:$0xff] }
 0x3ad   : > { %v26819_v59 = vand.u32 4294901760, %v26818_v49  ;;  %v26879_v47 = vld [vmem:[#allocation21_spill] sm:$0xff] }
 0x3ae   : > { %v26882_v49 = vld [vmem:[#allocation25_spill] sm:$0xff] }
 0x3af   : > { %16191 = vmatmul.mubr.f32.gmra.mrb[70].mxu0 %v26771_v27  ;;  %v26820_v27 = vld [vmem:[#allocation199_spill] sm:$0xff] }
 0x3b0   : > { %16193 = vmatprep.mubr.f32.mxu0 %v26773_v10  ;;  %v26821_v52 = vand.u32 4294901760, %v26820_v27  ;;  %v26822_v10 = vld [vmem:[#allocation202_spill] sm:$0xff] }
 0x3b1   : > { %v26823_v0 = vand.u32 4294901760, %v26822_v10  ;;  %v26884_v27 = vld [vmem:[#allocation30_spill] sm:$0xff]  ;;  %v26886_v10 = vld [vmem:[#allocation35_spill] sm:$0xff] }
 0x3b3   : > { %16194 = vmatmul.mubr.f32.gmra.mrb[72].mxu0 %v26775_v1  ;;  %v26824_v1 = vld [vmem:[#allocation204_spill] sm:$0xff] }
 0x3b4   : > { %16196 = vmatprep.mubr.f32.mxu0 %v26777_v45  ;;  %v26825_v36 = vand.u32 4294901760, %v26824_v1  ;;  %v26826_v45 = vld [vmem:[#allocation205_spill] sm:$0xff]  ;;  %v26888_v1 = vld [vmem:[#allocation38_spill] sm:$0xff] }
 0x3b5   : > { %v26827_v25 = vand.u32 4294901760, %v26826_v45  ;;  %v26890_v45 = vld [vmem:[#allocation42_spill] sm:$0xff] }
 0x3b7   : > { %16197 = vmatmul.mubr.f32.gmra.mrb[74].mxu0 %v26779_v51  ;;  %v26828_v51 = vld [vmem:[#allocation207_spill] sm:$0xff] }
 0x3b8   : > { %16199 = vmatprep.mubr.f32.mxu0 %v26781_v13  ;;  %v26829_v5 = vand.u32 4294901760, %v26828_v51  ;;  %v26830_v13 = vld [vmem:[#allocation209_spill] sm:$0xff]  ;;  %v26892_v51 = vld [vmem:[#allocation46_spill] sm:$0xff] }
 0x3b9   : > { %v26831_v53 = vand.u32 4294901760, %v26830_v13  ;;  %v26894_v13 = vld [vmem:[#allocation51_spill] sm:$0xff] }
 0x3bb   : > { %16200 = vmatmul.mubr.f32.gmra.mrb[76].mxu0 %v26783_v41  ;;  %v26832_v41 = vld [vmem:[#allocation210_spill] sm:$0xff] }
 0x3bc   : > { %16202 = vmatprep.mubr.f32.mxu0 %v26785_v12  ;;  %v26833_v46 = vand.u32 4294901760, %v26832_v41  ;;  %v26834_v12 = vld [vmem:[#allocation214_spill] sm:$0xff] }
 0x3bd   : > { %v26835_v31 = vand.u32 4294901760, %v26834_v12  ;;  %v26896_v41 = vld [vmem:[#allocation54_spill] sm:$0xff]  ;;  %v26898_v12 = vld [vmem:[#allocation59_spill] sm:$0xff] }
 0x3bf   : > { %16203 = vmatmul.mubr.f32.gmra.mrb[78].mxu0 %v26787_v34  ;;  %v26836_v34 = vld [vmem:[#allocation215_spill] sm:$0xff] }
 0x3c0   : > { %16205 = vmatprep.mubr.f32.mxu0 %v26789_v29  ;;  %v26837_v11 = vand.u32 4294901760, %v26836_v34  ;;  %v26838_v29 = vld [vmem:[#allocation218_spill] sm:$0xff]  ;;  %v26900_v34 = vld [vmem:[#allocation63_spill] sm:$0xff] }
 0x3c1   : > { %v26839_v2 = vand.u32 4294901760, %v26838_v29  ;;  %v26902_v29 = vld [vmem:[#allocation65_spill] sm:$0xff] }
 0x3c3   : > { %16206 = vmatmul.mubr.f32.gmra.mrb[80].mxu0 %v26791_v32  ;;  %v26840_v32 = vand.u32 4294901760, %v26653_v57  ;;  %v26848_v57 = vand.u32 4294901760, %v26660_v19  ;;  %v26857_v19 = vld [vmem:[#allocation245_spill] sm:$0xff] }
 0x3c4   : > { %16208 = vmatprep.mubr.f32.mxu0 %v26793_v39  ;;  %v26842_v39 = vand.u32 4294901760, %v26655_v26  ;;  %v26850_v26 = vand.u32 4294901760, %v26662_v30  ;;  %v26858_v6 = vand.u32 4294901760, %v26857_v19  ;;  %v26861_v30 = vld [vmem:[#allocation250_spill] sm:$0xff]  ;;  %v26921_v19 = vld [vmem:[#allocation104_spill] sm:$0xff] }
 0x3c5   : > { %v26862_v50 = vand.u32 4294901760, %v26861_v30  ;;  %v26925_v30 = vld [vmem:[#allocation111_spill] sm:$0xff] }
 0x3c7   : > { %16209 = vmatmul.mubr.f32.gmra.mrb[82].mxu0 %v26795_v23  ;;  %v26844_v23 = vand.u32 4294901760, %v26657_v43  ;;  %v26852_v43 = vand.u32 4294901760, %v21187_v7  ;;  %v26864_v7 = vld [vmem:[#allocation254_spill] sm:$0xff] }
 0x3c8   : > { %16211 = vmatprep.mubr.f32.mxu0 %v26797_v20  ;;  %v26846_v20 = vld [vmem:[#allocation231_spill] sm:$0xff] }
 0x3c9   : > { %v26847_v22 = vand.u32 4294901760, %v26846_v20  ;;  %v26910_v20 = vld [vmem:[#allocation82_spill] sm:$0xff] }
 0x3cb   : > { %16212 = vmatmul.mubr.f32.gmra.mrb[84].mxu0 %v26799_v62  ;;  %v26854_v62 = vand.u32 4294901760, %v26853_v42  ;;  %v26917_v42 = vld [vmem:[#allocation95_spill] sm:$0xff] }
 0x3cc   : > { %16214 = vmatprep.mubr.f32.mxu0 %v26801_v58  ;;  %v26856_v58 = vand.u32 4294901760, %v26855_v33  ;;  %v26919_v33 = vld [vmem:[#allocation100_spill] sm:$0xff] }
 0x3cf   : > { %16215 = vmatmul.mubr.f32.gmra.mrb[86].mxu0 %v26803_v37  ;;  %v26860_v37 = vand.u32 4294901760, %v26859_v14  ;;  %v26923_v14 = vld [vmem:[#allocation107_spill] sm:$0xff] }
 0x3d0   : > { %16217 = vmatprep.mubr.f32.mxu0 %v26805_v48  ;;  %v26865_v48 = vand.u32 4294901760, %v26864_v7  ;;  %v26928_v7 = vld [vmem:[#allocation118_spill] sm:$0xff] }
 0x3d3   : > { %16218 = vmatmul.mubr.f32.gmra.mrb[88].mxu0 %v26807_v54  ;;  %v26867_v54 = vld [vmem:[#allocation257_spill] sm:$0xff] }
 0x3d4   : > { %16220 = vmatprep.mubr.f32.mxu0 %v26809_v60  ;;  %v26868_v44 = vand.u32 4294901760, %v26867_v54  ;;  %v26869_v60 = vand.u32 4294901760, %v21293_v40  ;;  %v26877_v40 = vld [vmem:[#allocation16_spill] sm:$0xff] }
 0x3d5   : > { %v26931_v54 = vld [vmem:[#allocation124_spill] sm:$0xff] }
 0x3d7   : > { %16221 = vmatmul.mubr.f32.gmra.mrb[90].mxu0 %v26811_v63  ;;  %v26871_v63 = vld [vmem:[#allocation6_spill] sm:$0xff] }
 0x3d8   : > { %16223 = vmatprep.mubr.f32.mxu0 %v26813_v17  ;;  %v26874_v17 = vld [vmem:[#allocation9_spill] sm:$0xff] }
 0x3db   : > { %16224 = vmatmul.mubr.f32.gmra.mrb[92].mxu0 %v26815_v16  ;;  %v26878_v16 = vld [vmem:[#allocation19_spill] sm:$0xff] }
 0x3dc   : > { %16226 = vmatprep.mubr.f32.mxu0 %v26817_v55  ;;  %v26880_v55 = vld [vmem:[#allocation22_spill] sm:$0xff] }
 0x3df   : > { %16227 = vmatmul.mubr.f32.gmra.mrb[94].mxu0 %v26819_v59  ;;  %v26883_v59 = vld [vmem:[#allocation29_spill] sm:$0xff] }
 0x3e0   : > { %16229 = vmatprep.mubr.f32.mxu0 %v26821_v52  ;;  %v26885_v52 = vld [vmem:[#allocation31_spill] sm:$0xff] }
 0x3e3   : > { %16230 = vmatmul.mubr.f32.gmra.mrb[96].mxu0 %v26823_v0  ;;  %v26887_v0 = vld [vmem:[#allocation37_spill] sm:$0xff] }
 0x3e4   : > { %16232 = vmatprep.mubr.f32.mxu0 %v26825_v36  ;;  %v26889_v36 = vld [vmem:[#allocation41_spill] sm:$0xff] }
 0x3e7   : > { %16233 = vmatmul.mubr.f32.gmra.mrb[98].mxu0 %v26827_v25  ;;  %v26891_v25 = vld [vmem:[#allocation45_spill] sm:$0xff] }
 0x3e8   : > { %16235 = vmatprep.mubr.f32.mxu0 %v26829_v5  ;;  %v26893_v5 = vld [vmem:[#allocation47_spill] sm:$0xff] }
 0x3eb   : > { %16236 = vmatmul.mubr.f32.gmra.mrb[100].mxu0 %v26831_v53  ;;  %v26895_v53 = vld [vmem:[#allocation53_spill] sm:$0xff] }
 0x3ec   : > { %16238 = vmatprep.mubr.f32.mxu0 %v26833_v46  ;;  %v26897_v46 = vld [vmem:[#allocation56_spill] sm:$0xff] }
 0x3ef   : > { %16239 = vmatmul.mubr.f32.gmra.mrb[102].mxu0 %v26835_v31  ;;  %v26899_v31 = vld [vmem:[#allocation60_spill] sm:$0xff] }
 0x3f0   : > { %16241 = vmatprep.mubr.f32.mxu0 %v26837_v11  ;;  %v26901_v11 = vld [vmem:[#allocation64_spill] sm:$0xff] }
 0x3f3   : > { %16242 = vmatmul.mubr.f32.gmra.mrb[104].mxu0 %v26839_v2  ;;  %v26903_v2 = vld [vmem:[#allocation69_spill] sm:$0xff] }
 0x3f4   : > { %16244 = vmatprep.mubr.f32.mxu0 %v26840_v32  ;;  %v26904_v32 = vld [vmem:[#allocation70_spill] sm:$0xff] }
 0x3f7   : > { %16245 = vmatmul.mubr.f32.gmra.mrb[106].mxu0 %v26841_v9  ;;  %v26905_v9 = vld [vmem:[#allocation72_spill] sm:$0xff] }
 0x3f8   : > { %16247 = vmatprep.mubr.f32.mxu0 %v26842_v39  ;;  %v26906_v39 = vld [vmem:[#allocation74_spill] sm:$0xff] }
 0x3fb   : > { %16248 = vmatmul.mubr.f32.gmra.mrb[108].mxu0 %v26843_v4  ;;  %v26907_v4 = vld [vmem:[#allocation76_spill] sm:$0xff] }
 0x3fc   : > { %16250 = vmatprep.mubr.f32.mxu0 %v26844_v23  ;;  %v26908_v23 = vld [vmem:[#allocation79_spill] sm:$0xff] }
 0x3ff   : > { %16251 = vmatmul.mubr.f32.gmra.mrb[110].mxu0 %v26845_v28  ;;  %v26909_v28 = vld [vmem:[#allocation80_spill] sm:$0xff] }
 0x400   : > { %16253 = vmatprep.mubr.f32.mxu0 %v26847_v22  ;;  %v26911_v22 = vld [vmem:[#allocation84_spill] sm:$0xff] }
 0x403   : > { %16254 = vmatmul.mubr.f32.gmra.mrb[112].mxu0 %v26848_v57  ;;  %v26912_v57 = vld [vmem:[#allocation86_spill] sm:$0xff] }
 0x404   : > { %16256 = vmatprep.mubr.f32.mxu0 %v26849_v61  ;;  %v26913_v61 = vld [vmem:[#allocation87_spill] sm:$0xff] }
 0x407   : > { %16257 = vmatmul.mubr.f32.gmra.mrb[114].mxu0 %v26850_v26  ;;  %v26914_v26 = vld [vmem:[#allocation89_spill] sm:$0xff] }
 0x408   : > { %16259 = vmatprep.mubr.f32.mxu0 %v26851_v38  ;;  %v26915_v38 = vld [vmem:[#allocation93_spill] sm:$0xff] }
 0x40b   : > { %16260 = vmatmul.mubr.f32.gmra.mrb[116].mxu0 %v26852_v43  ;;  %v26916_v43 = vld [vmem:[#allocation94_spill] sm:$0xff] }
 0x40c   : > { %16262 = vmatprep.mubr.f32.mxu0 %v26854_v62  ;;  %v26918_v62 = vld [vmem:[#allocation99_spill] sm:$0xff] }
 0x40f   : > { %16263 = vmatmul.mubr.f32.gmra.mrb[118].mxu0 %v26856_v58  ;;  %v26920_v58 = vld [vmem:[#allocation102_spill] sm:$0xff] }
 0x410   : > { %16265 = vmatprep.mubr.f32.mxu0 %v26858_v6  ;;  %v26922_v6 = vld [vmem:[#allocation105_spill] sm:$0xff] }
 0x413   : > { %16266 = vmatmul.mubr.f32.gmra.mrb[120].mxu0 %v26860_v37  ;;  %v26924_v37 = vld [vmem:[#allocation108_spill] sm:$0xff] }
 0x414   : > { %16268 = vmatprep.mubr.f32.mxu0 %v26862_v50  ;;  %v26926_v50 = vld [vmem:[#allocation112_spill] sm:$0xff] }
 0x417   : > { %16269 = vmatmul.mubr.f32.gmra.mrb[122].mxu0 %v26863_v3  ;;  %v26927_v3 = vld [vmem:[#allocation117_spill] sm:$0xff] }
 0x418   : > { %16271 = vmatprep.mubr.f32.mxu0 %v26865_v48  ;;  %v26929_v48 = vld [vmem:[#allocation119_spill] sm:$0xff] }
 0x41b   : > { %16272 = vmatmul.mubr.f32.gmra.mrb[124].mxu0 %v26866_v21  ;;  %v26930_v21 = vld [vmem:[#allocation123_spill] sm:$0xff] }
 0x41c   : > { %16274 = vmatprep.mubr.f32.mxu0 %v26868_v44  ;;  %v26932_v44 = vld [vmem:[#allocation126_spill] sm:$0xff] }
 0x41f   : > { %16275 = vmatmul.mubr.f32.gmra.mrb[126].mxu0 %v26869_v60  ;;  %v26933_v60 = vld [vmem:[#allocation128_spill] sm:$0xff] }
 0x420   : > { %16285 = vmatprep.mubr.f32.mxu0 %v26870_v15 }
 0x423   : > { %16286 = vmatmul.mubr.f32.vlgmr.msra.gmra.mrb[0].mxu0 %v26871_v63 }
 0x424   : > { %17968 = vmatpush3.bf16.msra.mxu0 %v19699_v8  ;;  %16288 = vmatprep.mubr.f32.mxu0 %v26872_v35  ;;  %v26881_v8 = vld [vmem:[#allocation24_spill] sm:$0xff] }
 0x425   : > { %17970 = vmatprep.subr.bf16.mxu0 %v26873_v18 }
 0x427   : > { %16289 = vmatmul.mubr.f32.gmra.mrb[2].mxu0 %v26874_v17 }
 0x428   : > { %16291 = vmatprep.mubr.f32.mxu0 %v26875_v56  ;;  %17972 = vmatpush3.bf16.msra.mxu0 %v26873_v18  ;;  %v26934_v18 = vld [vmem:[#allocation129_spill] sm:$0xff] }
 0x42b   : > { %16292 = vmatmul.mubr.f32.gmra.mrb[4].mxu0 %v26876_v24 }
 0x42c   : > { %16294 = vmatprep.mubr.f32.mxu0 %v26877_v40 }
 0x42f   : > { %16295 = vmatmul.mubr.f32.gmra.mrb[6].mxu0 %v26878_v16 }
 0x430   : > { %16297 = vmatprep.mubr.f32.mxu0 %v26879_v47 }
 0x433   : > { %16298 = vmatmul.mubr.f32.gmra.mrb[8].mxu0 %v26880_v55 }
 0x434   : > { %16300 = vmatprep.mubr.f32.mxu0 %v26881_v8 }
 0x437   : > { %16301 = vmatmul.mubr.f32.gmra.mrb[10].mxu0 %v26882_v49 }
 0x438   : > { %16303 = vmatprep.mubr.f32.mxu0 %v26883_v59 }
 0x43b   : > { %16304 = vmatmul.mubr.f32.gmra.mrb[12].mxu0 %v26884_v27 }
 0x43c   : > { %16306 = vmatprep.mubr.f32.mxu0 %v26885_v52 }
 0x43f   : > { %16307 = vmatmul.mubr.f32.gmra.mrb[14].mxu0 %v26886_v10 }
 0x440   : > { %16309 = vmatprep.mubr.f32.mxu0 %v26887_v0 }
 0x443   : > { %16310 = vmatmul.mubr.f32.gmra.mrb[16].mxu0 %v26888_v1 }
 0x444   : > { %16312 = vmatprep.mubr.f32.mxu0 %v26889_v36 }
 0x447   : > { %16313 = vmatmul.mubr.f32.gmra.mrb[18].mxu0 %v26890_v45 }
 0x448   : > { %16315 = vmatprep.mubr.f32.mxu0 %v26891_v25 }
 0x44b   : > { %16316 = vmatmul.mubr.f32.gmra.mrb[20].mxu0 %v26892_v51 }
 0x44c   : > { %16318 = vmatprep.mubr.f32.mxu0 %v26893_v5 }
 0x44f   : > { %16319 = vmatmul.mubr.f32.gmra.mrb[22].mxu0 %v26894_v13 }
 0x450   : > { %16321 = vmatprep.mubr.f32.mxu0 %v26895_v53 }
 0x453   : > { %16322 = vmatmul.mubr.f32.gmra.mrb[24].mxu0 %v26896_v41 }
 0x454   : > { %16324 = vmatprep.mubr.f32.mxu0 %v26897_v46 }
 0x457   : > { %16325 = vmatmul.mubr.f32.gmra.mrb[26].mxu0 %v26898_v12 }
 0x458   : > { %16327 = vmatprep.mubr.f32.mxu0 %v26899_v31 }
 0x45b   : > { %16328 = vmatmul.mubr.f32.gmra.mrb[28].mxu0 %v26900_v34 }
 0x45c   : > { %16330 = vmatprep.mubr.f32.mxu0 %v26901_v11 }
 0x45f   : > { %16331 = vmatmul.mubr.f32.gmra.mrb[30].mxu0 %v26902_v29 }
 0x460   : > { %16333 = vmatprep.mubr.f32.mxu0 %v26903_v2 }
 0x463   : > { %16334 = vmatmul.mubr.f32.gmra.mrb[32].mxu0 %v26904_v32 }
 0x464   : > { %16336 = vmatprep.mubr.f32.mxu0 %v26905_v9 }
 0x467   : > { %16337 = vmatmul.mubr.f32.gmra.mrb[34].mxu0 %v26906_v39 }
 0x468   : > { %16339 = vmatprep.mubr.f32.mxu0 %v26907_v4 }
 0x46b   : > { %16340 = vmatmul.mubr.f32.gmra.mrb[36].mxu0 %v26908_v23 }
 0x46c   : > { %16342 = vmatprep.mubr.f32.mxu0 %v26909_v28 }
 0x46f   : > { %16343 = vmatmul.mubr.f32.gmra.mrb[38].mxu0 %v26910_v20 }
 0x470   : > { %16345 = vmatprep.mubr.f32.mxu0 %v26911_v22 }
 0x473   : > { %16346 = vmatmul.mubr.f32.gmra.mrb[40].mxu0 %v26912_v57 }
 0x474   : > { %16348 = vmatprep.mubr.f32.mxu0 %v26913_v61 }
 0x477   : > { %16349 = vmatmul.mubr.f32.gmra.mrb[42].mxu0 %v26914_v26 }
 0x478   : > { %16351 = vmatprep.mubr.f32.mxu0 %v26915_v38 }
 0x47b   : > { %16352 = vmatmul.mubr.f32.gmra.mrb[44].mxu0 %v26916_v43 }
 0x47c   : > { %16354 = vmatprep.mubr.f32.mxu0 %v26917_v42 }
 0x47f   : > { %16355 = vmatmul.mubr.f32.gmra.mrb[46].mxu0 %v26918_v62 }
 0x480   : > { %16357 = vmatprep.mubr.f32.mxu0 %v26919_v33 }
 0x483   : > { %16358 = vmatmul.mubr.f32.gmra.mrb[48].mxu0 %v26920_v58 }
 0x484   : > { %16360 = vmatprep.mubr.f32.mxu0 %v26921_v19 }
 0x487   : > { %16361 = vmatmul.mubr.f32.gmra.mrb[50].mxu0 %v26922_v6 }
 0x488   : > { %16363 = vmatprep.mubr.f32.mxu0 %v26923_v14 }
 0x48b   : > { %16364 = vmatmul.mubr.f32.gmra.mrb[52].mxu0 %v26924_v37  ;;  %v26935_v37 = vld [vmem:[#allocation131_spill] sm:$0xff] }
 0x48c   : > { %16366 = vmatprep.mubr.f32.mxu0 %v26925_v30  ;;  %v26936_v30 = vld [vmem:[#allocation134_spill] sm:$0xff] }
 0x48f   : > { %16367 = vmatmul.mubr.f32.gmra.mrb[54].mxu0 %v26926_v50  ;;  %v26937_v50 = vld [vmem:[#allocation135_spill] sm:$0xff] }
 0x490   : > { %16369 = vmatprep.mubr.f32.mxu0 %v26927_v3  ;;  %v26938_v3 = vld [vmem:[#allocation139_spill] sm:$0xff] }
 0x493   : > { %16370 = vmatmul.mubr.f32.gmra.mrb[56].mxu0 %v26928_v7  ;;  %v26939_v7 = vld [vmem:[#allocation140_spill] sm:$0xff] }
 0x494   : > { %16372 = vmatprep.mubr.f32.mxu0 %v26929_v48  ;;  %v26940_v48 = vld [vmem:[#allocation141_spill] sm:$0xff] }
 0x497   : > { %16373 = vmatmul.mubr.f32.gmra.mrb[58].mxu0 %v26930_v21  ;;  %v26941_v21 = vld [vmem:[#allocation144_spill] sm:$0xff] }
 0x498   : > { %16375 = vmatprep.mubr.f32.mxu0 %v26931_v54  ;;  %v26942_v54 = vld [vmem:[#allocation146_spill] sm:$0xff] }
 0x49b   : > { %16376 = vmatmul.mubr.f32.gmra.mrb[60].mxu0 %v26932_v44  ;;  %v26943_v44 = vld [vmem:[#allocation147_spill] sm:$0xff] }
 0x49c   : > { %16378 = vmatprep.mubr.f32.mxu0 %v26933_v60  ;;  %v26944_v60 = vld [vmem:[#allocation151_spill] sm:$0xff] }
 0x49f   : > { %16379 = vmatmul.mubr.f32.gmra.mrb[62].mxu0 %v26934_v18  ;;  %v26945_v18 = vld [vmem:[#allocation152_spill] sm:$0xff] }
 0x4a0   : > { %16381 = vmatprep.mubr.f32.mxu0 %v26935_v37  ;;  %v26946_v37 = vld [vmem:[#allocation153_spill] sm:$0xff] }
 0x4a3   : > { %16382 = vmatmul.mubr.f32.gmra.mrb[64].mxu0 %v26936_v30  ;;  %v26947_v30 = vld [vmem:[#allocation156_spill] sm:$0xff] }
 0x4a4   : > { %16384 = vmatprep.mubr.f32.mxu0 %v26937_v50  ;;  %v26948_v50 = vld [vmem:[#allocation158_spill] sm:$0xff] }
 0x4a7   : > { %16385 = vmatmul.mubr.f32.gmra.mrb[66].mxu0 %v26938_v3  ;;  %v26949_v3 = vld [vmem:[#allocation160_spill] sm:$0xff] }
 0x4a8   : > { %16387 = vmatprep.mubr.f32.mxu0 %v26939_v7  ;;  %v26950_v7 = vld [vmem:[#allocation161_spill] sm:$0xff] }
 0x4ab   : > { %16388 = vmatmul.mubr.f32.gmra.mrb[68].mxu0 %v26940_v48  ;;  %v26951_v48 = vld [vmem:[#allocation164_spill] sm:$0xff] }
 0x4ac   : > { %16390 = vmatprep.mubr.f32.mxu0 %v26941_v21  ;;  %v26952_v21 = vld [vmem:[#allocation166_spill] sm:$0xff] }
 0x4af   : > { %16391 = vmatmul.mubr.f32.gmra.mrb[70].mxu0 %v26942_v54  ;;  %v26953_v54 = vld [vmem:[#allocation167_spill] sm:$0xff] }
 0x4b0   : > { %16393 = vmatprep.mubr.f32.mxu0 %v26943_v44  ;;  %v26954_v44 = vld [vmem:[#allocation171_spill] sm:$0xff] }
 0x4b3   : > { %16394 = vmatmul.mubr.f32.gmra.mrb[72].mxu0 %v26944_v60  ;;  %v26955_v60 = vld [vmem:[#allocation172_spill] sm:$0xff] }
 0x4b4   : > { %16396 = vmatprep.mubr.f32.mxu0 %v26945_v18  ;;  %v26956_v18 = vld [vmem:[#allocation173_spill] sm:$0xff] }
 0x4b7   : > { %16397 = vmatmul.mubr.f32.gmra.mrb[74].mxu0 %v26946_v37  ;;  %v26957_v37 = vld [vmem:[#allocation176_spill] sm:$0xff] }
 0x4b8   : > { %16399 = vmatprep.mubr.f32.mxu0 %v26947_v30  ;;  %v26958_v30 = vld [vmem:[#allocation178_spill] sm:$0xff] }
 0x4bb   : > { %16400 = vmatmul.mubr.f32.gmra.mrb[76].mxu0 %v26948_v50  ;;  %v26959_v50 = vld [vmem:[#allocation180_spill] sm:$0xff] }
 0x4bc   : > { %16402 = vmatprep.mubr.f32.mxu0 %v26949_v3  ;;  %v26960_v3 = vld [vmem:[#allocation181_spill] sm:$0xff] }
 0x4bf   : > { %16403 = vmatmul.mubr.f32.gmra.mrb[78].mxu0 %v26950_v7  ;;  %v26961_v7 = vld [vmem:[#allocation183_spill] sm:$0xff] }
 0x4c0   : > { %16405 = vmatprep.mubr.f32.mxu0 %v26951_v48  ;;  %v26962_v48 = vld [vmem:[#allocation186_spill] sm:$0xff] }
 0x4c3   : > { %16406 = vmatmul.mubr.f32.gmra.mrb[80].mxu0 %v26952_v21  ;;  %v26963_v21 = vld [vmem:[#allocation188_spill] sm:$0xff] }
 0x4c4   : > { %16408 = vmatprep.mubr.f32.mxu0 %v26953_v54  ;;  %v26964_v54 = vld [vmem:[#allocation190_spill] sm:$0xff] }
 0x4c7   : > { %16409 = vmatmul.mubr.f32.gmra.mrb[82].mxu0 %v26954_v44  ;;  %v26965_v44 = vld [vmem:[#allocation192_spill] sm:$0xff] }
 0x4c8   : > { %16411 = vmatprep.mubr.f32.mxu0 %v26955_v60  ;;  %v26966_v60 = vld [vmem:[#allocation194_spill] sm:$0xff] }
 0x4cb   : > { %16412 = vmatmul.mubr.f32.gmra.mrb[84].mxu0 %v26956_v18  ;;  %v26967_v18 = vld [vmem:[#allocation196_spill] sm:$0xff] }
 0x4cc   : > { %16414 = vmatprep.mubr.f32.mxu0 %v26957_v37  ;;  %v26968_v37 = vld [vmem:[#allocation198_spill] sm:$0xff] }
 0x4cf   : > { %16415 = vmatmul.mubr.f32.gmra.mrb[86].mxu0 %v26958_v30  ;;  %v26969_v30 = vld [vmem:[#allocation200_spill] sm:$0xff] }
 0x4d0   : > { %16417 = vmatprep.mubr.f32.mxu0 %v26959_v50  ;;  %v26970_v50 = vld [vmem:[#allocation201_spill] sm:$0xff] }
 0x4d3   : > { %16418 = vmatmul.mubr.f32.gmra.mrb[88].mxu0 %v26960_v3  ;;  %v26971_v3 = vld [vmem:[#allocation203_spill] sm:$0xff] }
 0x4d4   : > { %16420 = vmatprep.mubr.f32.mxu0 %v26961_v7  ;;  %v26972_v7 = vld [vmem:[#allocation206_spill] sm:$0xff] }
 0x4d7   : > { %16421 = vmatmul.mubr.f32.gmra.mrb[90].mxu0 %v26962_v48  ;;  %v26973_v48 = vld [vmem:[#allocation208_spill] sm:$0xff] }
 0x4d8   : > { %16423 = vmatprep.mubr.f32.mxu0 %v26963_v21  ;;  %v26974_v21 = vld [vmem:[#allocation211_spill] sm:$0xff] }
 0x4db   : > { %16424 = vmatmul.mubr.f32.gmra.mrb[92].mxu0 %v26964_v54  ;;  %v26975_v54 = vld [vmem:[#allocation212_spill] sm:$0xff] }
 0x4dc   : > { %16426 = vmatprep.mubr.f32.mxu0 %v26965_v44  ;;  %v26976_v44 = vld [vmem:[#allocation213_spill] sm:$0xff] }
 0x4df   : > { %16427 = vmatmul.mubr.f32.gmra.mrb[94].mxu0 %v26966_v60  ;;  %v26977_v60 = vld [vmem:[#allocation216_spill] sm:$0xff] }
 0x4e0   : > { %16429 = vmatprep.mubr.f32.mxu0 %v26967_v18  ;;  %v26978_v18 = vld [vmem:[#allocation217_spill] sm:$0xff] }
 0x4e3   : > { %16430 = vmatmul.mubr.f32.gmra.mrb[96].mxu0 %v26968_v37  ;;  %v26979_v37 = vld [vmem:[#allocation221_spill] sm:$0xff] }
 0x4e4   : > { %16432 = vmatprep.mubr.f32.mxu0 %v26969_v30  ;;  %v26980_v30 = vld [vmem:[#allocation222_spill] sm:$0xff] }
 0x4e7   : > { %16433 = vmatmul.mubr.f32.gmra.mrb[98].mxu0 %v26970_v50  ;;  %v26981_v50 = vld [vmem:[#allocation223_spill] sm:$0xff] }
 0x4e8   : > { %16435 = vmatprep.mubr.f32.mxu0 %v26971_v3  ;;  %v26982_v3 = vld [vmem:[#allocation227_spill] sm:$0xff] }
 0x4eb   : > { %16436 = vmatmul.mubr.f32.gmra.mrb[100].mxu0 %v26972_v7  ;;  %v26983_v7 = vld [vmem:[#allocation228_spill] sm:$0xff] }
 0x4ec   : > { %16438 = vmatprep.mubr.f32.mxu0 %v26973_v48  ;;  %v26984_v48 = vld [vmem:[#allocation230_spill] sm:$0xff] }
 0x4ef   : > { %16439 = vmatmul.mubr.f32.gmra.mrb[102].mxu0 %v26974_v21  ;;  %v26985_v21 = vld [vmem:[#allocation232_spill] sm:$0xff] }
 0x4f0   : > { %16441 = vmatprep.mubr.f32.mxu0 %v26975_v54  ;;  %v26986_v54 = vld [vmem:[#allocation234_spill] sm:$0xff] }
 0x4f3   : > { %16442 = vmatmul.mubr.f32.gmra.mrb[104].mxu0 %v26976_v44  ;;  %v26987_v44 = vld [vmem:[#allocation235_spill] sm:$0xff] }
 0x4f4   : > { %16444 = vmatprep.mubr.f32.mxu0 %v26977_v60  ;;  %v26988_v60 = vld [vmem:[#allocation238_spill] sm:$0xff] }
 0x4f7   : > { %16445 = vmatmul.mubr.f32.gmra.mrb[106].mxu0 %v26978_v18  ;;  %v26989_v18 = vld [vmem:[#allocation239_spill] sm:$0xff] }
 0x4f8   : > { %16447 = vmatprep.mubr.f32.mxu0 %v26979_v37  ;;  %v26990_v37 = vld [vmem:[#allocation242_spill] sm:$0xff] }
 0x4fb   : > { %16448 = vmatmul.mubr.f32.gmra.mrb[108].mxu0 %v26980_v30  ;;  %v26991_v30 = vld [vmem:[#allocation243_spill] sm:$0xff] }
 0x4fc   : > { %16450 = vmatprep.mubr.f32.mxu0 %v26981_v50  ;;  %v26992_v50 = vld [vmem:[#allocation246_spill] sm:$0xff] }
 0x4ff   : > { %16451 = vmatmul.mubr.f32.gmra.mrb[110].mxu0 %v26982_v3  ;;  %v26993_v3 = vld [vmem:[#allocation247_spill] sm:$0xff] }
 0x500   : > { %16453 = vmatprep.mubr.f32.mxu0 %v26983_v7  ;;  %v26994_v7 = vld [vmem:[#allocation249_spill] sm:$0xff] }
 0x503   : > { %16454 = vmatmul.mubr.f32.gmra.mrb[112].mxu0 %v26984_v48  ;;  %v26995_v48 = vld [vmem:[#allocation251_spill] sm:$0xff] }
 0x504   : > { %16456 = vmatprep.mubr.f32.mxu0 %v26985_v21  ;;  %v26996_v21 = vld [vmem:[#allocation253_spill] sm:$0xff] }
 0x507   : > { %16457 = vmatmul.mubr.f32.gmra.mrb[114].mxu0 %v26986_v54  ;;  %v26997_v54 = vld [vmem:[#allocation255_spill] sm:$0xff] }
 0x508   : > { %16459 = vmatprep.mubr.f32.mxu0 %v26987_v44  ;;  %v26998_v44 = vld [vmem:[#allocation256_spill] sm:$0xff] }
 0x50b   : > { %16460 = vmatmul.mubr.f32.gmra.mrb[116].mxu0 %v26988_v60 }
 0x50c   : > { %16462 = vmatprep.mubr.f32.mxu0 %v26989_v18 }
 0x50f   : > { %16463 = vmatmul.mubr.f32.gmra.mrb[118].mxu0 %v26990_v37 }
 0x510   : > { %16465 = vmatprep.mubr.f32.mxu0 %v26991_v30 }
 0x513   : > { %16466 = vmatmul.mubr.f32.gmra.mrb[120].mxu0 %v26992_v50 }
 0x514   : > { %16468 = vmatprep.mubr.f32.mxu0 %v26993_v3 }
 0x517   : > { %16469 = vmatmul.mubr.f32.gmra.mrb[122].mxu0 %v26994_v7 }
 0x518   : > { %16471 = vmatprep.mubr.f32.mxu0 %v26995_v48 }
 0x51b   : > { %16472 = vmatmul.mubr.f32.gmra.mrb[124].mxu0 %v26996_v21 }
 0x51c   : > { %16474 = vmatprep.mubr.f32.mxu0 %v26997_v54 }
 0x51f   : > { %16475 = vmatmul.mubr.f32.gmra.mrb[126].mxu0 %v26998_v44 }
 0x520   : > { %16485 = vmatprep.mubr.f32.mxu0 %v26870_v15  ;;  %v7131_v15 = vld [vmem:[%s24909_s3] sm:$0xff] }
 0x523   : > { %16486 = vmatmul.mubr.f32.vlgmr.msra.gmra.mrb[0].mxu0 %v26871_v63  ;;  %v7132_v63 = vld [vmem:[%s24909_s3 + $0x8] sm:$0xff] }
 0x524   : > { %16488 = vmatprep.mubr.f32.mxu0 %v26872_v35  ;;  %v7532_v35 = vand.u32 4294901760, %v7131_v15 }
 0x527   : > { %16489 = vmatmul.mubr.f32.gmra.mrb[2].mxu0 %v26874_v17  ;;  %v7535_v17 = vand.u32 4294901760, %v7132_v63 }
 0x528   : > { %16491 = vmatprep.mubr.f32.mxu0 %v26875_v56 }
 0x529   : > { %v22023_v56 = vpack.c.bf16 %v7535_v17, %v7532_v35 }
 0x52b   : > { %16492 = vmatmul.mubr.f32.gmra.mrb[4].mxu0 %v26876_v24  ;;  %26999 = vst [vmem:[#allocation8_spill] sm:$0xff] %v22023_v56  ;;  %v22029_v24 = vld [vmem:[%s24909_s3 + $0x10] sm:$0xff]  ;;  %18069 = vmatprep.subr.bf16.mxu1 %v22023_v56 }
 0x52c   : > { %16494 = vmatprep.mubr.f32.mxu0 %v26877_v40  ;;  %v22034_v40 = vld [vmem:[%s24909_s3 + $0x18] sm:$0xff]  ;;  %18073 = vmatpush3.bf16.msra.mxu1 %v22023_v56 }
 0x52d   : > { %17974 = vmatprep.subr.bf16.mxu0 %v22023_v56 }
 0x52e   : > { %17976 = vmatpush3.bf16.msra.mxu0 %v22023_v56 }
 0x52f   : > { %16495 = vmatmul.mubr.f32.gmra.mrb[6].mxu0 %v26878_v16  ;;  %v7538_v16 = vand.u32 4294901760, %v22029_v24 }
 0x530   : > { %16497 = vmatprep.mubr.f32.mxu0 %v26879_v47  ;;  %v7541_v47 = vand.u32 4294901760, %v22034_v40 }
 0x533   : > { %16498 = vmatmul.mubr.f32.gmra.mrb[8].mxu0 %v26880_v55  ;;  %v22046_v55 = vpack.c.bf16 %v7541_v47, %v7538_v16 }
 0x534   : > { %16500 = vmatprep.mubr.f32.mxu0 %v26881_v8  ;;  %v22053_v8 = vld [vmem:[%s24909_s3 + $0x20] sm:$0xff] }
 0x535   : > { %27000 = vst [vmem:[#allocation10_spill] sm:$0xff] %v22046_v55  ;;  %18070 = vmatprep.subr.bf16.mxu1 %v22046_v55  ;;  %17978 = vmatprep.subr.bf16.mxu0 %v22046_v55 }
 0x536   : > { %18074 = vmatpush3.bf16.msra.mxu1 %v22046_v55  ;;  %17980 = vmatpush3.bf16.msra.mxu0 %v22046_v55 }
 0x537   : > { %16501 = vmatmul.mubr.f32.gmra.mrb[10].mxu0 %v26882_v49  ;;  %v22058_v49 = vld [vmem:[%s24909_s3 + $0x28] sm:$0xff] }
 0x538   : > { %16503 = vmatprep.mubr.f32.mxu0 %v26883_v59  ;;  %v25475_v59 = vand.u32 4294901760, %v22053_v8 }
 0x53b   : > { %16504 = vmatmul.mubr.f32.gmra.mrb[12].mxu0 %v26884_v27  ;;  %v25472_v27 = vand.u32 4294901760, %v22058_v49 }
 0x53c   : > { %16506 = vmatprep.mubr.f32.mxu0 %v26885_v52 }
 0x53d   : > { %v22070_v52 = vpack.c.bf16 %v25472_v27, %v25475_v59 }
 0x53f   : > { %16507 = vmatmul.mubr.f32.gmra.mrb[14].mxu0 %v26886_v10  ;;  %27001 = vst [vmem:[#allocation11_spill] sm:$0xff] %v22070_v52  ;;  %v22077_v10 = vld [vmem:[%s24909_s3 + $0x30] sm:$0xff]  ;;  %18071 = vmatprep.subr.bf16.mxu1 %v22070_v52 }
 0x540   : > { %16509 = vmatprep.mubr.f32.mxu0 %v26887_v0  ;;  %v22082_v0 = vld [vmem:[%s24909_s3 + $0x38] sm:$0xff]  ;;  %18075 = vmatpush3.bf16.msra.mxu1 %v22070_v52 }
 0x541   : > { %17982 = vmatprep.subr.bf16.mxu0 %v22070_v52 }
 0x542   : > { %17984 = vmatpush3.bf16.msra.mxu0 %v22070_v52 }
 0x543   : > { %16510 = vmatmul.mubr.f32.gmra.mrb[16].mxu0 %v26888_v1  ;;  %v25468_v1 = vand.u32 4294901760, %v22077_v10 }
 0x544   : > { %16512 = vmatprep.mubr.f32.mxu0 %v26889_v36  ;;  %v25466_v36 = vand.u32 4294901760, %v22082_v0 }
 0x547   : > { %16513 = vmatmul.mubr.f32.gmra.mrb[18].mxu0 %v26890_v45  ;;  %v22094_v45 = vpack.c.bf16 %v25466_v36, %v25468_v1 }
 0x548   : > { %16515 = vmatprep.mubr.f32.mxu0 %v26891_v25  ;;  %v27003_v25 = vld [vmem:[#allocation108_spill] sm:$0xff] }
 0x549   : > { %27002 = vst [vmem:[#allocation12_spill] sm:$0xff] %v22094_v45  ;;  %18072 = vmatprep.subr.bf16.mxu1 %v22094_v45  ;;  %17986 = vmatprep.subr.bf16.mxu0 %v22094_v45 }
 0x54a   : > { %18076 = vmatpush3.bf16.msra.mxu1 %v22094_v45  ;;  %17988 = vmatpush3.bf16.msra.mxu0 %v22094_v45 }
 0x54b   : > { %16516 = vmatmul.mubr.f32.gmra.mrb[20].mxu0 %v26892_v51  ;;  %v27004_v51 = vld [vmem:[#allocation111_spill] sm:$0xff] }
 0x54c   : > { %16518 = vmatprep.mubr.f32.mxu0 %v26893_v5  ;;  %v27005_v5 = vld [vmem:[#allocation112_spill] sm:$0xff] }
 0x54f   : > { %16519 = vmatmul.mubr.f32.gmra.mrb[22].mxu0 %v26894_v13  ;;  %v27006_v13 = vld [vmem:[#allocation117_spill] sm:$0xff] }
 0x550   : > { %16521 = vmatprep.mubr.f32.mxu0 %v26895_v53  ;;  %v27007_v53 = vld [vmem:[#allocation118_spill] sm:$0xff] }
 0x553   : > { %16522 = vmatmul.mubr.f32.gmra.mrb[24].mxu0 %v26896_v41  ;;  %v22108_v41 = vsub.f32 %v7131_v15, %v7532_v35  ;;  %v27027_v15 = vld [vmem:[#allocation158_spill] sm:$0xff]  ;;  %v27029_v35 = vld [vmem:[#allocation161_spill] sm:$0xff] }
 0x554   : > { %16524 = vmatprep.mubr.f32.mxu0 %v26897_v46  ;;  %v22110_v46 = vsub.f32 %v7132_v63, %v7535_v17  ;;  %v27028_v63 = vld [vmem:[#allocation160_spill] sm:$0xff] }
 0x555   : > { %v27030_v17 = vld [vmem:[#allocation164_spill] sm:$0xff] }
 0x557   : > { %16525 = vmatmul.mubr.f32.gmra.mrb[26].mxu0 %v26898_v12  ;;  %v27008_v12 = vld [vmem:[#allocation119_spill] sm:$0xff] }
 0x558   : > { %16527 = vmatprep.mubr.f32.mxu0 %v26899_v31  ;;  %v25465_v31 = vand.u32 4294901760, %v22108_v41 }
 0x55b   : > { %16528 = vmatmul.mubr.f32.gmra.mrb[28].mxu0 %v26900_v34  ;;  %v25464_v34 = vand.u32 4294901760, %v22110_v46 }
 0x55c   : > { %16530 = vmatprep.mubr.f32.mxu0 %v26901_v11  ;;  %v27009_v11 = vld [vmem:[#allocation123_spill] sm:$0xff] }
 0x55f   : > { %16531 = vmatmul.mubr.f32.gmra.mrb[30].mxu0 %v26902_v29  ;;  %v8888_v29 = vsub.f32 %v22108_v41, %v25465_v31 }
 0x560   : > { %16533 = vmatprep.mubr.f32.mxu0 %v26903_v2  ;;  %v8895_v2 = vsub.f32 %v22110_v46, %v25464_v34 }
 0x563   : > { %16534 = vmatmul.mubr.f32.gmra.mrb[32].mxu0 %v26904_v32  ;;  %v27010_v32 = vld [vmem:[#allocation124_spill] sm:$0xff] }
 0x564   : > { %16536 = vmatprep.mubr.f32.mxu0 %v26905_v9  ;;  %v8889_v9 = vand.u32 4294901760, %v8888_v29  ;;  %v27038_v29 = vld [vmem:[#allocation180_spill] sm:$0xff] }
 0x567   : > { %16537 = vmatmul.mubr.f32.gmra.mrb[34].mxu0 %v26906_v39  ;;  %v8896_v39 = vand.u32 4294901760, %v8895_v2  ;;  %v27039_v2 = vld [vmem:[#allocation181_spill] sm:$0xff] }
 0x568   : > { %16539 = vmatprep.mubr.f32.mxu0 %v26907_v4  ;;  %v27011_v4 = vld [vmem:[#allocation126_spill] sm:$0xff] }
 0x56b   : > { %16540 = vmatmul.mubr.f32.gmra.mrb[36].mxu0 %v26908_v23  ;;  %v22124_v23 = vpack.c.bf16 %v8896_v39, %v8889_v9  ;;  %v27041_v9 = vld [vmem:[#allocation186_spill] sm:$0xff]  ;;  %v27042_v39 = vld [vmem:[#allocation188_spill] sm:$0xff] }
 0x56c   : > { %16542 = vmatprep.mubr.f32.mxu0 %v26909_v28  ;;  %v27012_v28 = vld [vmem:[#allocation128_spill] sm:$0xff] }
 0x56d   : > { %17990 = vmatprep.subr.bf16.mxu1 %v22124_v23 }
 0x56f   : > { %16543 = vmatmul.mubr.f32.gmra.mrb[38].mxu0 %v26910_v20  ;;  %v27013_v20 = vld [vmem:[#allocation129_spill] sm:$0xff] }
 0x570   : > { %16545 = vmatprep.mubr.f32.mxu0 %v26911_v22  ;;  %v27014_v22 = vld [vmem:[#allocation131_spill] sm:$0xff] }
 0x573   : > { %16546 = vmatmul.mubr.f32.gmra.mrb[40].mxu0 %v26912_v57  ;;  %v27015_v57 = vld [vmem:[#allocation134_spill] sm:$0xff] }
 0x574   : > { %16548 = vmatprep.mubr.f32.mxu0 %v26913_v61  ;;  %v27016_v61 = vld [vmem:[#allocation135_spill] sm:$0xff] }
 0x577   : > { %16549 = vmatmul.mubr.f32.gmra.mrb[42].mxu0 %v26914_v26  ;;  %v27017_v26 = vld [vmem:[#allocation139_spill] sm:$0xff] }
 0x578   : > { %16551 = vmatprep.mubr.f32.mxu0 %v26915_v38  ;;  %v27018_v38 = vld [vmem:[#allocation140_spill] sm:$0xff] }
 0x57b   : > { %16552 = vmatmul.mubr.f32.gmra.mrb[44].mxu0 %v26916_v43  ;;  %v27019_v43 = vld [vmem:[#allocation141_spill] sm:$0xff] }
 0x57c   : > { %16554 = vmatprep.mubr.f32.mxu0 %v26917_v42  ;;  %v27020_v42 = vld [vmem:[#allocation144_spill] sm:$0xff] }
 0x57f   : > { %16555 = vmatmul.mubr.f32.gmra.mrb[46].mxu0 %v26918_v62  ;;  %v27021_v62 = vld [vmem:[#allocation146_spill] sm:$0xff] }
 0x580   : > { %16557 = vmatprep.mubr.f32.mxu0 %v26919_v33  ;;  %v27022_v33 = vld [vmem:[#allocation147_spill] sm:$0xff] }
 0x583   : > { %16558 = vmatmul.mubr.f32.gmra.mrb[48].mxu0 %v26920_v58  ;;  %v27023_v58 = vld [vmem:[#allocation151_spill] sm:$0xff] }
 0x584   : > { %16560 = vmatprep.mubr.f32.mxu0 %v26921_v19  ;;  %v27024_v19 = vld [vmem:[#allocation152_spill] sm:$0xff] }
 0x587   : > { %16561 = vmatmul.mubr.f32.gmra.mrb[50].mxu0 %v26922_v6  ;;  %v27025_v6 = vld [vmem:[#allocation153_spill] sm:$0xff] }
 0x588   : > { %16563 = vmatprep.mubr.f32.mxu0 %v26923_v14  ;;  %v27026_v14 = vld [vmem:[#allocation156_spill] sm:$0xff] }
 0x58b   : > { %16564 = vmatmul.mubr.f32.gmra.mrb[52].mxu0 %v27003_v25  ;;  %v27031_v25 = vld [vmem:[#allocation166_spill] sm:$0xff] }
 0x58c   : > { %16566 = vmatprep.mubr.f32.mxu0 %v27004_v51  ;;  %v27032_v51 = vld [vmem:[#allocation167_spill] sm:$0xff] }
 0x58f   : > { %16567 = vmatmul.mubr.f32.gmra.mrb[54].mxu0 %v27005_v5  ;;  %v27033_v5 = vld [vmem:[#allocation171_spill] sm:$0xff] }
 0x590   : > { %16569 = vmatprep.mubr.f32.mxu0 %v27006_v13  ;;  %v27034_v13 = vld [vmem:[#allocation172_spill] sm:$0xff] }
 0x593   : > { %16570 = vmatmul.mubr.f32.gmra.mrb[56].mxu0 %v27007_v53  ;;  %v27035_v53 = vld [vmem:[#allocation173_spill] sm:$0xff] }
 0x594   : > { %16572 = vmatprep.mubr.f32.mxu0 %v27008_v12  ;;  %v27036_v12 = vld [vmem:[#allocation176_spill] sm:$0xff] }
 0x597   : > { %16573 = vmatmul.mubr.f32.gmra.mrb[58].mxu0 %v27009_v11  ;;  %v27037_v11 = vld [vmem:[#allocation178_spill] sm:$0xff] }
 0x598   : > { %16575 = vmatprep.mubr.f32.mxu0 %v27010_v32  ;;  %v27040_v32 = vld [vmem:[#allocation183_spill] sm:$0xff] }
 0x59b   : > { %16576 = vmatmul.mubr.f32.gmra.mrb[60].mxu0 %v27011_v4  ;;  %v27043_v4 = vld [vmem:[#allocation190_spill] sm:$0xff] }
 0x59c   : > { %16578 = vmatprep.mubr.f32.mxu0 %v27012_v28  ;;  %v27044_v28 = vld [vmem:[#allocation192_spill] sm:$0xff] }
 0x59f   : > { %16579 = vmatmul.mubr.f32.gmra.mrb[62].mxu0 %v27013_v20  ;;  %v27045_v20 = vld [vmem:[#allocation194_spill] sm:$0xff] }
 0x5a0   : > { %16581 = vmatprep.mubr.f32.mxu0 %v27014_v22  ;;  %v27046_v22 = vld [vmem:[#allocation196_spill] sm:$0xff] }
 0x5a3   : > { %16582 = vmatmul.mubr.f32.gmra.mrb[64].mxu0 %v27015_v57  ;;  %v27047_v57 = vld [vmem:[#allocation198_spill] sm:$0xff] }
 0x5a4   : > { %16584 = vmatprep.mubr.f32.mxu0 %v27016_v61  ;;  %v27048_v61 = vld [vmem:[#allocation200_spill] sm:$0xff] }
 0x5a7   : > { %16585 = vmatmul.mubr.f32.gmra.mrb[66].mxu0 %v27017_v26  ;;  %v27049_v26 = vld [vmem:[#allocation201_spill] sm:$0xff] }
 0x5a8   : > { %16587 = vmatprep.mubr.f32.mxu0 %v27018_v38  ;;  %v27050_v38 = vld [vmem:[#allocation203_spill] sm:$0xff] }
 0x5ab   : > { %16588 = vmatmul.mubr.f32.gmra.mrb[68].mxu0 %v27019_v43  ;;  %v27051_v43 = vld [vmem:[#allocation206_spill] sm:$0xff] }
 0x5ac   : > { %16590 = vmatprep.mubr.f32.mxu0 %v27020_v42  ;;  %v27052_v42 = vld [vmem:[#allocation208_spill] sm:$0xff] }
 0x5af   : > { %16591 = vmatmul.mubr.f32.gmra.mrb[70].mxu0 %v27021_v62  ;;  %v27053_v62 = vld [vmem:[#allocation211_spill] sm:$0xff] }
 0x5b0   : > { %16593 = vmatprep.mubr.f32.mxu0 %v27022_v33  ;;  %v27054_v33 = vld [vmem:[#allocation212_spill] sm:$0xff] }
 0x5b3   : > { %16594 = vmatmul.mubr.f32.gmra.mrb[72].mxu0 %v27023_v58  ;;  %v22173_v58 = vsub.f32 %v22029_v24, %v7538_v16 }
 0x5b4   : > { %16596 = vmatprep.mubr.f32.mxu0 %v27024_v19  ;;  %v27055_v19 = vld [vmem:[#allocation213_spill] sm:$0xff] }
 0x5b7   : > { %16597 = vmatmul.mubr.f32.gmra.mrb[74].mxu0 %v27025_v6  ;;  %v22179_v6 = vsub.f32 %v22034_v40, %v7541_v47  ;;  %v27058_v47 = vld [vmem:[#allocation221_spill] sm:$0xff] }
 0x5b8   : > { %16599 = vmatprep.mubr.f32.mxu0 %v27026_v14  ;;  %v22184_v14 = vld [vmem:[%s24910_s4] ss:$0 sm:$0xff] }
 0x5bb   : > { %16600 = vmatmul.mubr.f32.gmra.mrb[76].mxu0 %v27027_v15  ;;  %v27056_v15 = vld [vmem:[#allocation216_spill] sm:$0xff] }
 0x5bc   : > { %16602 = vmatprep.mubr.f32.mxu0 %v27028_v63 }
 0x5bf   : > { %16603 = vmatmul.mubr.f32.gmra.mrb[78].mxu0 %v27029_v35  ;;  %v25461_v35 = vand.u32 4294901760, %v22173_v58 }
 0x5c0   : > { %16605 = vmatprep.mubr.f32.mxu0 %v27030_v17  ;;  %v27057_v17 = vld [vmem:[#allocation217_spill] sm:$0xff] }
 0x5c3   : > { %16606 = vmatmul.mubr.f32.gmra.mrb[80].mxu0 %v27031_v25  ;;  %v25460_v25 = vand.u32 4294901760, %v22179_v6 }
 0x5c4   : > { %16608 = vmatprep.mubr.f32.mxu0 %v27032_v51 }
 0x5c7   : > { %16609 = vmatmul.mubr.f32.gmra.mrb[82].mxu0 %v27033_v5 }
 0x5c8   : > { %16611 = vmatprep.mubr.f32.mxu0 %v27034_v13 }
 0x5cb   : > { %16612 = vmatmul.mubr.f32.gmra.mrb[84].mxu0 %v27035_v53  ;;  %v8902_v53 = vsub.f32 %v22173_v58, %v25461_v35  ;;  %v27079_v35 = vld [vmem:[#allocation235_spill] sm:$0xff] }
 0x5cc   : > { %16614 = vmatprep.mubr.f32.mxu0 %v27036_v12 }
 0x5cf   : > { %16615 = vmatmul.mubr.f32.gmra.mrb[86].mxu0 %v27037_v11 }
 0x5d0   : > { %16617 = vmatprep.mubr.f32.mxu0 %v27038_v29 }
 0x5d3   : > { %16618 = vmatmul.mubr.f32.gmra.mrb[88].mxu0 %v27039_v2  ;;  %v27059_v2 = vld [vmem:[#allocation222_spill] sm:$0xff] }
 0x5d4   : > { %16620 = vmatprep.mubr.f32.mxu0 %v27040_v32  ;;  %v8909_v32 = vsub.f32 %v22179_v6, %v25460_v25 }
 0x5d7   : > { %16621 = vmatmul.mubr.f32.gmra.mrb[90].mxu0 %v27041_v9 }
 0x5d8   : > { %16623 = vmatprep.mubr.f32.mxu0 %v27042_v39 }
 0x5db   : > { %16624 = vmatmul.mubr.f32.gmra.mrb[92].mxu0 %v27043_v4 }
 0x5dc   : > { %16626 = vmatprep.mubr.f32.mxu0 %v27044_v28  ;;  %v27061_v28 = vld [vmem:[#allocation223_spill] sm:$0xff] }
 0x5df   : > { %16627 = vmatmul.mubr.f32.gmra.mrb[94].mxu0 %v27045_v20 }
 0x5e0   : > { %16629 = vmatprep.mubr.f32.mxu0 %v27046_v22 }
 0x5e3   : > { %16630 = vmatmul.mubr.f32.gmra.mrb[96].mxu0 %v27047_v57 }
 0x5e4   : > { %16632 = vmatprep.mubr.f32.mxu0 %v27048_v61 }
 0x5e7   : > { %16633 = vmatmul.mubr.f32.gmra.mrb[98].mxu0 %v27049_v26 }
 0x5e8   : > { %16635 = vmatprep.mubr.f32.mxu0 %v27050_v38  ;;  %v8903_v38 = vand.u32 4294901760, %v8902_v53 }
 0x5eb   : > { %16636 = vmatmul.mubr.f32.gmra.mrb[100].mxu0 %v27051_v43 }
 0x5ec   : > { %16638 = vmatprep.mubr.f32.mxu0 %v27052_v42 }
 0x5ef   : > { %16639 = vmatmul.mubr.f32.gmra.mrb[102].mxu0 %v27053_v62 }
 0x5f0   : > { %16641 = vmatprep.mubr.f32.mxu0 %v27054_v33 }
 0x5f3   : > { %16642 = vmatmul.mubr.f32.gmra.mrb[104].mxu0 %v27055_v19  ;;  %v27065_v19 = vld [vmem:[#allocation227_spill] sm:$0xff] }
 0x5f4   : > { %16644 = vmatprep.mubr.f32.mxu0 %v27056_v15  ;;  %v8910_v15 = vand.u32 4294901760, %v8909_v32 }
 0x5f6   : > { %v16487_v63 = vpop.f32.mrb[0].mxu0 }
 0x5f7   : > { %v18077_v24 = vadd.f32 %v16487_v63, %v22184_v14  ;;  %v6237_v16 = vpop.f32.mrb[1].mxu0  ;;  %16645 = vmatmul.mubr.f32.gmra.mrb[106].mxu0 %v27057_v17 }
 0x5f8   : > { %v18078_v40 = vadd.f32 %v22184_v14, %v6237_v16  ;;  %16647 = vmatprep.mubr.f32.mxu0 %v27058_v47 }
 0x5f9   : > { %v7004_v51 = vmax.f32 %v18077_v24, 0.0 }
 0x5fa   : > { %v7003_v5 = vmax.f32 %v18078_v40, 0.0  ;;  %v16490_v13 = vpop.f32.mrb[2].mxu0  ;;  %v27067_v40 = vld [vmem:[#allocation228_spill] sm:$0xff] }
 0x5fb   : > { %v7151_v12 = vsel %vm7146_vm1, %v7004_v51, 0  ;;  %v18079_v11 = vadd.f32 %v16490_v13, %v22184_v14  ;;  %v6249_v29 = vpop.f32.mrb[3].mxu0  ;;  %16648 = vmatmul.mubr.f32.gmra.mrb[108].mxu0 %v27059_v2 }
 0x5fc   : > { %v22202_v9 = vand.u32 4294901760, %v7151_v12  ;;  %v7148_v39 = vsel %vm7146_vm1, %v7003_v5, 0  ;;  %v18080_v4 = vadd.f32 %v22184_v14, %v6249_v29  ;;  %16650 = vmatprep.mubr.f32.mxu0 %v27061_v28 }
 0x5fd   : > { %v22207_v20 = vand.u32 4294901760, %v7148_v39  ;;  %v7006_v22 = vmax.f32 %v18079_v11, 0.0 }
 0x5fe   : > { %27060 = vst [vmem:[#allocation15_spill] sm:$0xff] %v22202_v9  ;;  %v22210_v57 = vsub.f32 %v7151_v12, %v22202_v9  ;;  %v7005_v61 = vmax.f32 %v18080_v4, 0.0  ;;  %v16493_v26 = vpop.f32.mrb[4].mxu0  ;;  %v27071_v4 = vld [vmem:[#allocation230_spill] sm:$0xff] }
 0x5ff   : > { %27062 = vst [vmem:[#allocation17_spill] sm:$0xff] %v22207_v20  ;;  %v22213_v43 = vsub.f32 %v7148_v39, %v22207_v20  ;;  %v7157_v42 = vsel %vm7146_vm1, %v7006_v22, 0  ;;  %v18081_v62 = vadd.f32 %v16493_v26, %v22184_v14  ;;  %v6261_v33 = vpop.f32.mrb[5].mxu0  ;;  %16651 = vmatmul.mubr.f32.gmra.mrb[110].mxu0 %v27065_v19 }
 0x600   : > { %27063 = vst [vmem:[#allocation18_spill] sm:$0xff] %v22210_v57  ;;  %v25459_v63 = vand.u32 4294901760, %v22210_v57  ;;  %v22219_v24 = vand.u32 4294901760, %v7157_v42  ;;  %v7154_v16 = vsel %vm7146_vm1, %v7005_v61, 0  ;;  %v18082_v17 = vadd.f32 %v22184_v14, %v6261_v33  ;;  %16653 = vmatprep.mubr.f32.mxu0 %v27067_v40 }
 0x601   : > { %27064 = vst [vmem:[#allocation20_spill] sm:$0xff] %v22213_v43  ;;  %v22224_v47 = vand.u32 4294901760, %v7154_v16  ;;  %v7008_v51 = vmax.f32 %v18081_v62, 0.0  ;;  %v25462_v5 = vand.u32 4294901760, %v22213_v43  ;;  %v22251_v62 = vpack.c.bf16 %v8910_v15, %v8903_v38 }
 0x602   : > { %27066 = vst [vmem:[#allocation23_spill] sm:$0xff] %v22219_v24  ;;  %v22230_v13 = vsub.f32 %v22210_v57, %v25459_v63  ;;  %v22233_v53 = vsub.f32 %v7157_v42, %v22219_v24  ;;  %v7007_v12 = vmax.f32 %v18082_v17, 0.0  ;;  %v16496_v11 = vpop.f32.mrb[6].mxu0  ;;  %v27073_v42 = vld [vmem:[#allocation232_spill] sm:$0xff] }
 0x603   : > { %27068 = vst [vmem:[#allocation26_spill] sm:$0xff] %v22224_v47  ;;  %v22236_v29 = vsub.f32 %v7154_v16, %v22224_v47  ;;  %v7163_v2 = vsel %vm7146_vm1, %v7008_v51, 0  ;;  %v18083_v32 = vadd.f32 %v16496_v11, %v22184_v14  ;;  %v6273_v39 = vpop.f32.mrb[7].mxu0  ;;  %16654 = vmatmul.mubr.f32.gmra.mrb[112].mxu0 %v27071_v4  ;;  %v22244_v28 = vsub.f32 %v22213_v43, %v25462_v5 }
 0x604   : > { %27069 = vst [vmem:[#allocation27_spill] sm:$0xff] %v22233_v53  ;;  %v22246_v22 = vand.u32 4294901760, %v7163_v2  ;;  %v7160_v61 = vsel %vm7146_vm1, %v7007_v12, 0  ;;  %v18084_v26 = vadd.f32 %v22184_v14, %v6273_v39  ;;  %16656 = vmatprep.mubr.f32.mxu0 %v27073_v42  ;;  %v25467_v17 = vand.u32 4294901760, %v22233_v53  ;;  %v27077_v42 = vld [vmem:[#allocation234_spill] sm:$0xff] }
 0x605   : > { %27070 = vst [vmem:[#allocation28_spill] sm:$0xff] %v22236_v29  ;;  %v22253_v33 = vand.u32 4294901760, %v7160_v61  ;;  %v7010_v19 = vmax.f32 %v18083_v32, 0.0  ;;  %v25463_v16 = vand.u32 4294901760, %v22236_v29 }
 0x606   : > { %27072 = vst [vmem:[#allocation32_spill] sm:$0xff] %v22246_v22  ;;  %v22259_v51 = vsub.f32 %v7163_v2, %v22246_v22  ;;  %v7009_v11 = vmax.f32 %v18084_v26, 0.0  ;;  %v16499_v12 = vpop.f32.mrb[8].mxu0 }
 0x607   : > { %27074 = vst [vmem:[#allocation33_spill] sm:$0xff] %v22253_v33  ;;  %v22263_v4 = vsub.f32 %v7160_v61, %v22253_v33  ;;  %v7169_v38 = vsel %vm7146_vm1, %v7010_v19, 0  ;;  %v18085_v15 = vadd.f32 %v16499_v12, %v22184_v14  ;;  %v6285_v32 = vpop.f32.mrb[9].mxu0  ;;  %16657 = vmatmul.mubr.f32.gmra.mrb[114].mxu0 %v27077_v42  ;;  %v7627_v63 = vsub.f32 %v22236_v29, %v25463_v16 }
 0x608   : > { %27075 = vst [vmem:[#allocation34_spill] sm:$0xff] %v22259_v51  ;;  %v22271_v2 = vand.u32 4294901760, %v7169_v38  ;;  %v7166_v26 = vsel %vm7146_vm1, %v7009_v11, 0  ;;  %v18086_v25 = vadd.f32 %v22184_v14, %v6285_v32  ;;  %16659 = vmatprep.mubr.f32.mxu0 %v27079_v35  ;;  %v7637_v61 = vsub.f32 %v22233_v53, %v25467_v17 }
 0x609   : > { %27076 = vst [vmem:[#allocation36_spill] sm:$0xff] %v22263_v4  ;;  %v22279_v19 = vand.u32 4294901760, %v7166_v26  ;;  %v7012_v12 = vmax.f32 %v18085_v15, 0.0  ;;  %v7628_v42 = vand.u32 4294901760, %v7627_v63  ;;  %v25470_v5 = vand.u32 4294901760, %v22263_v4 }
 0x60a   : > { %27078 = vst [vmem:[#allocation39_spill] sm:$0xff] %v22271_v2  ;;  %v22283_v16 = vsub.f32 %v7169_v38, %v22271_v2  ;;  %v7011_v34 = vmax.f32 %v18086_v25, 0.0  ;;  %v16502_v31 = vpop.f32.mrb[10].mxu0  ;;  %v7638_v11 = vand.u32 4294901760, %v7637_v61  ;;  %v25469_v32 = vand.u32 4294901760, %v22259_v51 }
 0x60b   : > { %27080 = vst [vmem:[#allocation40_spill] sm:$0xff] %v22279_v19  ;;  %v22287_v35 = vsub.f32 %v7166_v26, %v22279_v19  ;;  %v7175_v36 = vsel %vm7146_vm1, %v7012_v12, 0  ;;  %v18087_v17 = vadd.f32 %v16502_v31, %v22184_v14  ;;  %v6297_v1 = vpop.f32.mrb[11].mxu0  ;;  %16660 = vmatmul.mubr.f32.gmra.mrb[116].mxu0 %v26988_v60  ;;  %16696 = vmatprep.mubr.f32.mxu1 %v7628_v42 }
 0x60c   : > { %27081 = vst [vmem:[#allocation43_spill] sm:$0xff] %v22283_v16  ;;  %v7647_v63 = vsub.f32 %v22263_v4, %v25470_v5  ;;  %v22295_v25 = vand.u32 4294901760, %v7175_v36  ;;  %v7172_v38 = vsel %vm7146_vm1, %v7011_v34, 0  ;;  %v18088_v15 = vadd.f32 %v22184_v14, %v6297_v1  ;;  %16697 = vmatmul.mubr.f32.vlgmr.msra.gmra.mrb[0].mxu1 %v7638_v11  ;;  %16662 = vmatprep.mubr.f32.mxu0 %v26989_v18 }
 0x60d   : > { %27082 = vst [vmem:[#allocation44_spill] sm:$0xff] %v22287_v35  ;;  %v7657_v31 = vsub.f32 %v22259_v51, %v25469_v32  ;;  %v22303_v26 = vand.u32 4294901760, %v7172_v38  ;;  %v7014_v60 = vmax.f32 %v18087_v17, 0.0  ;;  %17992 = vmatpush3.bf16.msra.mxu1 %v22124_v23  ;;  %v25471_v12 = vand.u32 4294901760, %v22287_v35 }
 0x60e   : > { %27083 = vst [vmem:[#allocation48_spill] sm:$0xff] %v22295_v25  ;;  %v7648_v61 = vand.u32 4294901760, %v7647_v63  ;;  %v22308_v42 = vsub.f32 %v7175_v36, %v22295_v25  ;;  %v7013_v34 = vmax.f32 %v18088_v15, 0.0  ;;  %v16505_v1 = vpop.f32.mrb[12].mxu0  ;;  %v25473_v18 = vand.u32 4294901760, %v22283_v16  ;;  %17994 = vmatprep.subr.bf16.mxu1 %v22251_v62 }
 0x60f   : > { %27084 = vst [vmem:[#allocation49_spill] sm:$0xff] %v22303_v26  ;;  %v7658_v11 = vand.u32 4294901760, %v7657_v31  ;;  %v22313_v32 = vsub.f32 %v7172_v38, %v22303_v26  ;;  %v7181_v17 = vsel %vm7146_vm1, %v7014_v60, 0  ;;  %v18089_v23 = vadd.f32 %v16505_v1, %v22184_v14  ;;  %v6309_v63 = vpop.f32.mrb[13].mxu0  ;;  %16663 = vmatmul.mubr.f32.gmra.mrb[118].mxu0 %v26990_v37 }
 0x610   : > { %27085 = vst [vmem:[#allocation50_spill] sm:$0xff] %v22308_v42  ;;  %16699 = vmatprep.mubr.f32.mxu1 %v7648_v61  ;;  %v7667_v36 = vsub.f32 %v22287_v35, %v25471_v12  ;;  %v22321_v15 = vand.u32 4294901760, %v7181_v17  ;;  %v7178_v31 = vsel %vm7146_vm1, %v7013_v34, 0  ;;  %v18090_v5 = vadd.f32 %v22184_v14, %v6309_v63  ;;  %16665 = vmatprep.mubr.f32.mxu0 %v26991_v30 }
 0x611   : > { %27086 = vst [vmem:[#allocation52_spill] sm:$0xff] %v22313_v32  ;;  %16700 = vmatmul.mubr.f32.gmra.mrb[2].mxu1 %v7658_v11  ;;  %v7677_v38 = vsub.f32 %v22283_v16, %v25473_v18  ;;  %v22329_v60 = vand.u32 4294901760, %v7178_v31  ;;  %v7016_v37 = vmax.f32 %v18089_v23, 0.0  ;;  %v25474_v1 = vand.u32 4294901760, %v22313_v32 }
 0x612   : > { %27087 = vst [vmem:[#allocation55_spill] sm:$0xff] %v22321_v15  ;;  %v7668_v61 = vand.u32 4294901760, %v7667_v36  ;;  %17996 = vmatpush3.bf16.msra.mxu1 %v22251_v62  ;;  %v22334_v12 = vsub.f32 %v7181_v17, %v22321_v15  ;;  %v7015_v34 = vmax.f32 %v18090_v5, 0.0  ;;  %v16508_v63 = vpop.f32.mrb[14].mxu0  ;;  %v25476_v30 = vand.u32 4294901760, %v22308_v42 }
 0x613   : > { %27088 = vst [vmem:[#allocation57_spill] sm:$0xff] %v22329_v60  ;;  %v7678_v11 = vand.u32 4294901760, %v7677_v38  ;;  %v22338_v27 = vsub.f32 %v7178_v31, %v22329_v60  ;;  %v7187_v18 = vsel %vm7146_vm1, %v7016_v37, 0  ;;  %v18091_v23 = vadd.f32 %v16508_v63, %v22184_v14  ;;  %v6321_v36 = vpop.f32.mrb[15].mxu0  ;;  %16666 = vmatmul.mubr.f32.gmra.mrb[120].mxu0 %v26992_v50 }
 0x614   : > { %27089 = vst [vmem:[#allocation58_spill] sm:$0xff] %v22334_v12  ;;  %16702 = vmatprep.mubr.f32.mxu1 %v7668_v61  ;;  %v7687_v62 = vsub.f32 %v22313_v32, %v25474_v1  ;;  %v22346_v5 = vand.u32 4294901760, %v7187_v18  ;;  %v7184_v17 = vsel %vm7146_vm1, %v7015_v34, 0  ;;  %v18092_v38 = vadd.f32 %v22184_v14, %v6321_v36  ;;  %16668 = vmatprep.mubr.f32.mxu0 %v26993_v3 }
 0x615   : > { %27090 = vst [vmem:[#allocation61_spill] sm:$0xff] %v22338_v27  ;;  %16703 = vmatmul.mubr.f32.gmra.mrb[4].mxu1 %v7678_v11  ;;  %v7697_v31 = vsub.f32 %v22308_v42, %v25476_v30  ;;  %v22354_v37 = vand.u32 4294901760, %v7184_v17  ;;  %v7018_v50 = vmax.f32 %v18091_v23, 0.0  ;;  %v25477_v63 = vand.u32 4294901760, %v22338_v27 }
 0x616   : > { %27091 = vst [vmem:[#allocation62_spill] sm:$0xff] %v22346_v5  ;;  %v7688_v61 = vand.u32 4294901760, %v7687_v62  ;;  %v22358_v1 = vsub.f32 %v7187_v18, %v22346_v5  ;;  %v7017_v59 = vmax.f32 %v18092_v38, 0.0  ;;  %v16511_v34 = vpop.f32.mrb[16].mxu0  ;;  %v25480_v11 = vand.u32 4294901760, %v22334_v12 }
 0x617   : > { %27092 = vst [vmem:[#allocation66_spill] sm:$0xff] %v22354_v37  ;;  %v7698_v40 = vand.u32 4294901760, %v7697_v31  ;;  %v22362_v3 = vsub.f32 %v7184_v17, %v22354_v37  ;;  %v7193_v36 = vsel %vm7146_vm1, %v7018_v50, 0  ;;  %v18093_v30 = vadd.f32 %v16511_v34, %v22184_v14  ;;  %v6333_v39 = vpop.f32.mrb[17].mxu0  ;;  %16669 = vmatmul.mubr.f32.gmra.mrb[122].mxu0 %v26994_v7 }
 0x618   : > { %27093 = vst [vmem:[#allocation67_spill] sm:$0xff] %v22358_v1  ;;  %16705 = vmatprep.mubr.f32.mxu1 %v7688_v61  ;;  %v7707_v18 = vsub.f32 %v22338_v27, %v25477_v63  ;;  %v22370_v23 = vand.u32 4294901760, %v7193_v36  ;;  %v7190_v62 = vsel %vm7146_vm1, %v7017_v59, 0  ;;  %v18094_v38 = vadd.f32 %v22184_v14, %v6333_v39  ;;  %16671 = vmatprep.mubr.f32.mxu0 %v26995_v48 }
 0x619   : > { %27094 = vst [vmem:[#allocation68_spill] sm:$0xff] %v22362_v3  ;;  %16706 = vmatmul.mubr.f32.gmra.mrb[6].mxu1 %v7698_v40  ;;  %v7717_v17 = vsub.f32 %v22334_v12, %v25480_v11  ;;  %v22378_v31 = vand.u32 4294901760, %v7190_v62  ;;  %v7020_v7 = vmax.f32 %v18093_v30, 0.0  ;;  %v25483_v61 = vand.u32 4294901760, %v22362_v3 }
 0x61a   : > { %27095 = vst [vmem:[#allocation71_spill] sm:$0xff] %v22370_v23  ;;  %v7708_v50 = vand.u32 4294901760, %v7707_v18  ;;  %v22382_v34 = vsub.f32 %v7193_v36, %v22370_v23  ;;  %v7019_v63 = vmax.f32 %v18094_v38, 0.0  ;;  %v16514_v59 = vpop.f32.mrb[18].mxu0  ;;  %v25486_v40 = vand.u32 4294901760, %v22358_v1 }
 0x61b   : > { %27096 = vst [vmem:[#allocation73_spill] sm:$0xff] %v22378_v31  ;;  %v7718_v27 = vand.u32 4294901760, %v7717_v17  ;;  %v22386_v48 = vsub.f32 %v7190_v62, %v22378_v31  ;;  %v7199_v39 = vsel %vm7146_vm1, %v7020_v7, 0  ;;  %v18095_v11 = vadd.f32 %v16514_v59, %v22184_v14  ;;  %v6345_v12 = vpop.f32.mrb[19].mxu0  ;;  %16672 = vmatmul.mubr.f32.gmra.mrb[124].mxu0 %v26996_v21 }
 0x61c   : > { %27097 = vst [vmem:[#allocation75_spill] sm:$0xff] %v22382_v34  ;;  %16708 = vmatprep.mubr.f32.mxu1 %v7708_v50  ;;  %v7727_v30 = vsub.f32 %v22362_v3, %v25483_v61  ;;  %v22394_v36 = vand.u32 4294901760, %v7199_v39  ;;  %v7196_v18 = vsel %vm7146_vm1, %v7019_v63, 0  ;;  %v18096_v38 = vadd.f32 %v22184_v14, %v6345_v12  ;;  %16674 = vmatprep.mubr.f32.mxu0 %v26997_v54 }
 0x61d   : > { %27098 = vst [vmem:[#allocation77_spill] sm:$0xff] %v22386_v48  ;;  %16709 = vmatmul.mubr.f32.gmra.mrb[8].mxu1 %v7718_v27  ;;  %v7737_v62 = vsub.f32 %v22358_v1, %v25486_v40  ;;  %v22402_v17 = vand.u32 4294901760, %v7196_v18  ;;  %v7022_v21 = vmax.f32 %v18095_v11, 0.0  ;;  %v25489_v50 = vand.u32 4294901760, %v22386_v48 }
 0x61e   : > { %27099 = vst [vmem:[#allocation78_spill] sm:$0xff] %v22394_v36  ;;  %v7728_v7 = vand.u32 4294901760, %v7727_v30  ;;  %v22406_v59 = vsub.f32 %v7199_v39, %v22394_v36  ;;  %v7021_v61 = vmax.f32 %v18096_v38, 0.0  ;;  %v16517_v63 = vpop.f32.mrb[20].mxu0  ;;  %v25492_v27 = vand.u32 4294901760, %v22382_v34 }
 0x61f   : > { %27100 = vst [vmem:[#allocation81_spill] sm:$0xff] %v22402_v17  ;;  %v7738_v3 = vand.u32 4294901760, %v7737_v62  ;;  %v22410_v54 = vsub.f32 %v7196_v18, %v22402_v17  ;;  %v7205_v12 = vsel %vm7146_vm1, %v7022_v21, 0  ;;  %v18097_v40 = vadd.f32 %v16517_v63, %v22184_v14  ;;  %v6357_v1 = vpop.f32.mrb[21].mxu0  ;;  %16675 = vmatmul.mubr.f32.gmra.mrb[126].mxu0 %v26998_v44 }
 0x620   : > { %27101 = vst [vmem:[#allocation121_spill] sm:$0xff] %v22406_v59  ;;  %16711 = vmatprep.mubr.f32.mxu1 %v7728_v7  ;;  %v7747_v11 = vsub.f32 %v22386_v48, %v25489_v50  ;;  %v22418_v39 = vand.u32 4294901760, %v7205_v12  ;;  %v7202_v30 = vsel %vm7146_vm1, %v7021_v61, 0  ;;  %v18098_v38 = vadd.f32 %v22184_v14, %v6357_v1 }
 0x621   : > { %27102 = vst [vmem:[#allocation2_spill] sm:$0xff] %v22410_v54  ;;  %v27104_v18 = vand.u32 4294901760, %v22244_v28  ;;  %16712 = vmatmul.mubr.f32.gmra.mrb[10].mxu1 %v7738_v3  ;;  %v7757_v62 = vsub.f32 %v22382_v34, %v25492_v27  ;;  %v22427_v44 = vand.u32 4294901760, %v7202_v30  ;;  %v7024_v21 = vmax.f32 %v18097_v40, 0.0 }
 0x622   : > { %27103 = vst [vmem:[#allocation3_spill] sm:$0xff] %v22418_v39  ;;  %v7748_v7 = vand.u32 4294901760, %v7747_v11  ;;  %v25495_v63 = vand.u32 4294901760, %v22410_v54  ;;  %v22431_v50 = vsub.f32 %v7205_v12, %v22418_v39  ;;  %v7023_v61 = vmax.f32 %v18098_v38, 0.0  ;;  %v16520_v48 = vpop.f32.mrb[22].mxu0 }
 0x623   : > { %16693 = vmatprep.mubr.f32.mxu0 %v27104_v18  ;;  %27105 = vst [vmem:[#allocation219_spill] sm:$0xff] %v22427_v44  ;;  %v7758_v1 = vand.u32 4294901760, %v7757_v62  ;;  %v25500_v28 = vand.u32 4294901760, %v22406_v59  ;;  %v22435_v3 = vsub.f32 %v7202_v30, %v22427_v44  ;;  %v7211_v18 = vsel %vm7146_vm1, %v7024_v21, 0  ;;  %v6369_v34 = vpop.f32.mrb[23].mxu0 }
 0x624   : > { %27106 = vst [vmem:[#allocation220_spill] sm:$0xff] %v22431_v50  ;;  %v18099_v27 = vadd.f32 %v16520_v48, %v22184_v14  ;;  %v27108_v40 = vand.u32 4294901760, %v22230_v13  ;;  %16714 = vmatprep.mubr.f32.mxu1 %v7748_v7  ;;  %v7767_v12 = vsub.f32 %v22410_v54, %v25495_v63  ;;  %v22444_v11 = vand.u32 4294901760, %v7211_v18 }
 0x625   : > { %27107 = vst [vmem:[#allocation224_spill] sm:$0xff] %v22435_v3  ;;  %v7208_v38 = vsel %vm7146_vm1, %v7023_v61, 0  ;;  %v18100_v30 = vadd.f32 %v22184_v14, %v6369_v34  ;;  %16715 = vmatmul.mubr.f32.gmra.mrb[12].mxu1 %v7758_v1  ;;  %v7777_v48 = vsub.f32 %v22406_v59, %v25500_v28  ;;  %v25505_v7 = vand.u32 4294901760, %v22435_v3 }
 0x626   : > { %16694 = vmatmul.mubr.f32.vlgmr.msra.gmra.mrb[128].mxu0 %v27108_v40  ;;  %27109 = vst [vmem:[#allocation225_spill] sm:$0xff] %v22444_v11  ;;  %v22451_v62 = vand.u32 4294901760, %v7208_v38  ;;  %v7026_v13 = vmax.f32 %v18099_v27, 0.0  ;;  %v7768_v21 = vand.u32 4294901760, %v7767_v12  ;;  %v22455_v40 = vsub.f32 %v7211_v18, %v22444_v11  ;;  %v16523_v54 = vpop.f32.mrb[24].mxu0 }
 0x627   : > { %v7025_v63 = vmax.f32 %v18100_v30, 0.0  ;;  %v7778_v42 = vand.u32 4294901760, %v7777_v48  ;;  %v25510_v61 = vand.u32 4294901760, %v22431_v50  ;;  %v18101_v28 = vadd.f32 %v16523_v54, %v22184_v14  ;;  %v6381_v59 = vpop.f32.mrb[25].mxu0 }
 0x628   : > { %27110 = vst [vmem:[#allocation226_spill] sm:$0xff] %v22451_v62  ;;  %27111 = vst [vmem:[#allocation229_spill] sm:$0xff] %v22455_v40  ;;  %v22459_v34 = vsub.f32 %v7208_v38, %v22451_v62  ;;  %v7217_v1 = vsel %vm7146_vm1, %v7026_v13, 0  ;;  %16717 = vmatprep.mubr.f32.mxu1 %v7768_v21  ;;  %v7787_v27 = vsub.f32 %v22435_v3, %v25505_v7 }
 0x629   : > { %v22466_v18 = vand.u32 4294901760, %v7217_v1  ;;  %v7214_v12 = vsel %vm7146_vm1, %v7025_v63, 0  ;;  %v18102_v30 = vadd.f32 %v22184_v14, %v6381_v59  ;;  %16718 = vmatmul.mubr.f32.gmra.mrb[14].mxu1 %v7778_v42  ;;  %v7797_v38 = vsub.f32 %v22431_v50, %v25510_v61 }
 0x62a   : > { %27112 = vst [vmem:[#allocation233_spill] sm:$0xff] %v22459_v34  ;;  %v22473_v48 = vand.u32 4294901760, %v7214_v12  ;;  %v7028_v54 = vmax.f32 %v18101_v28, 0.0  ;;  %v7788_v13 = vand.u32 4294901760, %v7787_v27  ;;  %v25515_v21 = vand.u32 4294901760, %v22459_v34  ;;  %v16526_v3 = vpop.f32.mrb[26].mxu0 }
 0x62b   : > { %27113 = vst [vmem:[#allocation236_spill] sm:$0xff] %v22466_v18  ;;  %v22477_v32 = vsub.f32 %v7217_v1, %v22466_v18  ;;  %v7027_v7 = vmax.f32 %v18102_v30, 0.0  ;;  %v7798_v16 = vand.u32 4294901760, %v7797_v38  ;;  %v25520_v63 = vand.u32 4294901760, %v22455_v40  ;;  %v6393_v50 = vpop.f32.mrb[27].mxu0 }
 0x62c   : > { %27114 = vst [vmem:[#allocation237_spill] sm:$0xff] %v22473_v48  ;;  %v22481_v42 = vsub.f32 %v7214_v12, %v22473_v48  ;;  %v7223_v59 = vsel %vm7146_vm1, %v7028_v54, 0  ;;  %v18103_v61 = vadd.f32 %v16526_v3, %v22184_v14  ;;  %16720 = vmatprep.mubr.f32.mxu1 %v7788_v13  ;;  %v7807_v28 = vsub.f32 %v22459_v34, %v25515_v21 }
 0x62d   : > { %27115 = vst [vmem:[#allocation240_spill] sm:$0xff] %v22477_v32  ;;  %v22488_v1 = vand.u32 4294901760, %v7223_v59  ;;  %v7220_v27 = vsel %vm7146_vm1, %v7027_v7, 0  ;;  %v18104_v30 = vadd.f32 %v22184_v14, %v6393_v50  ;;  %16721 = vmatmul.mubr.f32.gmra.mrb[16].mxu1 %v7798_v16  ;;  %v7817_v12 = vsub.f32 %v22455_v40, %v25520_v63 }
 0x62e   : > { %27116 = vst [vmem:[#allocation252_spill] sm:$0xff] %v22481_v42  ;;  %v22495_v38 = vand.u32 4294901760, %v7220_v27  ;;  %v7030_v3 = vmax.f32 %v18103_v61, 0.0  ;;  %v7808_v54 = vand.u32 4294901760, %v7807_v28  ;;  %v25525_v13 = vand.u32 4294901760, %v22481_v42  ;;  %v16529_v34 = vpop.f32.mrb[28].mxu0 }
 0x62f   : > { %27117 = vst [vmem:[#allocation83_spill] sm:$0xff] %v22488_v1  ;;  %v22499_v45 = vsub.f32 %v7223_v59, %v22488_v1  ;;  %v7029_v21 = vmax.f32 %v18104_v30, 0.0  ;;  %v7818_v35 = vand.u32 4294901760, %v7817_v12  ;;  %v25530_v7 = vand.u32 4294901760, %v22477_v32  ;;  %v6405_v40 = vpop.f32.mrb[29].mxu0 }
 0x630   : > { %27118 = vst [vmem:[#allocation85_spill] sm:$0xff] %v22495_v38  ;;  %v22503_v16 = vsub.f32 %v7220_v27, %v22495_v38  ;;  %v7229_v50 = vsel %vm7146_vm1, %v7030_v3, 0  ;;  %v18105_v63 = vadd.f32 %v16529_v34, %v22184_v14  ;;  %16723 = vmatprep.mubr.f32.mxu1 %v7808_v54  ;;  %v7827_v61 = vsub.f32 %v22481_v42, %v25525_v13 }
 0x631   : > { %27119 = vst [vmem:[#allocation88_spill] sm:$0xff] %v22499_v45  ;;  %v22510_v59 = vand.u32 4294901760, %v7229_v50  ;;  %v7226_v28 = vsel %vm7146_vm1, %v7029_v21, 0  ;;  %v18106_v30 = vadd.f32 %v22184_v14, %v6405_v40  ;;  %16724 = vmatmul.mubr.f32.gmra.mrb[18].mxu1 %v7818_v35  ;;  %v7837_v27 = vsub.f32 %v22477_v32, %v25530_v7 }
 0x632   : > { %27120 = vst [vmem:[#allocation90_spill] sm:$0xff] %v22503_v16  ;;  %v22517_v12 = vand.u32 4294901760, %v7226_v28  ;;  %v7032_v34 = vmax.f32 %v18105_v63, 0.0  ;;  %v7828_v3 = vand.u32 4294901760, %v7827_v61  ;;  %v25535_v54 = vand.u32 4294901760, %v22503_v16  ;;  %v16532_v42 = vpop.f32.mrb[30].mxu0 }
 0x633   : > { %27121 = vst [vmem:[#allocation91_spill] sm:$0xff] %v22510_v59  ;;  %v22521_v51 = vsub.f32 %v7229_v50, %v22510_v59  ;;  %v7031_v13 = vmax.f32 %v18106_v30, 0.0  ;;  %v7838_v52 = vand.u32 4294901760, %v7837_v27  ;;  %v25540_v21 = vand.u32 4294901760, %v22499_v45  ;;  %v6417_v32 = vpop.f32.mrb[31].mxu0 }
 0x634   : > { %27122 = vst [vmem:[#allocation92_spill] sm:$0xff] %v22517_v12  ;;  %v22525_v35 = vsub.f32 %v7226_v28, %v22517_v12  ;;  %v7235_v40 = vsel %vm7146_vm1, %v7032_v34, 0  ;;  %v18107_v7 = vadd.f32 %v16532_v42, %v22184_v14  ;;  %16726 = vmatprep.mubr.f32.mxu1 %v7828_v3  ;;  %v7847_v63 = vsub.f32 %v22503_v16, %v25535_v54 }
 0x635   : > { %27123 = vst [vmem:[#allocation96_spill] sm:$0xff] %v22521_v51  ;;  %v22532_v50 = vand.u32 4294901760, %v7235_v40  ;;  %v7232_v61 = vsel %vm7146_vm1, %v7031_v13, 0  ;;  %v18108_v30 = vadd.f32 %v22184_v14, %v6417_v32  ;;  %16727 = vmatmul.mubr.f32.gmra.mrb[20].mxu1 %v7838_v52  ;;  %v7857_v28 = vsub.f32 %v22499_v45, %v25540_v21 }
 0x636   : > { %27124 = vst [vmem:[#allocation97_spill] sm:$0xff] %v22525_v35  ;;  %v22539_v27 = vand.u32 4294901760, %v7232_v61  ;;  %v7034_v42 = vmax.f32 %v18107_v7, 0.0  ;;  %v7848_v34 = vand.u32 4294901760, %v7847_v63  ;;  %v25545_v3 = vand.u32 4294901760, %v22525_v35  ;;  %v16535_v16 = vpop.f32.mrb[32].mxu0 }
 0x637   : > { %27125 = vst [vmem:[#allocation98_spill] sm:$0xff] %v22532_v50  ;;  %v22543_v4 = vsub.f32 %v7235_v40, %v22532_v50  ;;  %v7033_v54 = vmax.f32 %v18108_v30, 0.0  ;;  %v7858_v53 = vand.u32 4294901760, %v7857_v28  ;;  %v25550_v13 = vand.u32 4294901760, %v22521_v51  ;;  %v6429_v45 = vpop.f32.mrb[33].mxu0 }
 0x638   : > { %27126 = vst [vmem:[#allocation101_spill] sm:$0xff] %v22539_v27  ;;  %v22547_v52 = vsub.f32 %v7232_v61, %v22539_v27  ;;  %v7241_v32 = vsel %vm7146_vm1, %v7034_v42, 0  ;;  %v18109_v21 = vadd.f32 %v16535_v16, %v22184_v14  ;;  %16729 = vmatprep.mubr.f32.mxu1 %v7848_v34  ;;  %v7867_v7 = vsub.f32 %v22525_v35, %v25545_v3 }
 0x639   : > { %27127 = vst [vmem:[#allocation103_spill] sm:$0xff] %v22543_v4  ;;  %v22554_v40 = vand.u32 4294901760, %v7241_v32  ;;  %v7238_v63 = vsel %vm7146_vm1, %v7033_v54, 0  ;;  %v18110_v30 = vadd.f32 %v22184_v14, %v6429_v45  ;;  %16730 = vmatmul.mubr.f32.gmra.mrb[22].mxu1 %v7858_v53  ;;  %v7877_v61 = vsub.f32 %v22521_v51, %v25550_v13 }
 0x63a   : > { %27128 = vst [vmem:[#allocation106_spill] sm:$0xff] %v22547_v52  ;;  %v22561_v28 = vand.u32 4294901760, %v7238_v63  ;;  %v7036_v16 = vmax.f32 %v18109_v21, 0.0  ;;  %v7868_v42 = vand.u32 4294901760, %v7867_v7  ;;  %v25555_v34 = vand.u32 4294901760, %v22547_v52  ;;  %v16538_v35 = vpop.f32.mrb[34].mxu0 }
 0x63b   : > { %27129 = vst [vmem:[#allocation109_spill] sm:$0xff] %v22554_v40  ;;  %v22565_v55 = vsub.f32 %v7241_v32, %v22554_v40  ;;  %v7035_v3 = vmax.f32 %v18110_v30, 0.0  ;;  %v7878_v29 = vand.u32 4294901760, %v7877_v61  ;;  %v25560_v54 = vand.u32 4294901760, %v22543_v4  ;;  %v6441_v51 = vpop.f32.mrb[35].mxu0 }
 0x63c   : > { %27130 = vst [vmem:[#allocation110_spill] sm:$0xff] %v22561_v28  ;;  %v22569_v45 = vsub.f32 %v7238_v63, %v22561_v28  ;;  %v7247_v53 = vsel %vm7146_vm1, %v7036_v16, 0  ;;  %v18111_v13 = vadd.f32 %v16538_v35, %v22184_v14  ;;  %16732 = vmatprep.mubr.f32.mxu1 %v7868_v42  ;;  %v7887_v21 = vsub.f32 %v22547_v52, %v25555_v34 }
 0x63d   : > { %27131 = vst [vmem:[#allocation113_spill] sm:$0xff] %v22565_v55  ;;  %v22576_v32 = vand.u32 4294901760, %v7247_v53  ;;  %v7244_v7 = vsel %vm7146_vm1, %v7035_v3, 0  ;;  %v18112_v30 = vadd.f32 %v22184_v14, %v6441_v51  ;;  %16733 = vmatmul.mubr.f32.gmra.mrb[24].mxu1 %v7878_v29  ;;  %v7897_v63 = vsub.f32 %v22543_v4, %v25560_v54 }
 0x63e   : > { %27132 = vst [vmem:[#allocation114_spill] sm:$0xff] %v22569_v45  ;;  %v22583_v61 = vand.u32 4294901760, %v7244_v7  ;;  %v7038_v35 = vmax.f32 %v18111_v13, 0.0  ;;  %v7888_v16 = vand.u32 4294901760, %v7887_v21  ;;  %v25565_v42 = vand.u32 4294901760, %v22569_v45  ;;  %v16541_v52 = vpop.f32.mrb[36].mxu0 }
 0x63f   : > { %27133 = vst [vmem:[#allocation115_spill] sm:$0xff] %v22576_v32  ;;  %v22587_v57 = vsub.f32 %v7247_v53, %v22576_v32  ;;  %v7037_v34 = vmax.f32 %v18112_v30, 0.0  ;;  %v7898_v43 = vand.u32 4294901760, %v7897_v63  ;;  %v25570_v3 = vand.u32 4294901760, %v22565_v55  ;;  %v6453_v4 = vpop.f32.mrb[37].mxu0 }
 0x640   : > { %27134 = vst [vmem:[#allocation116_spill] sm:$0xff] %v22583_v61  ;;  %v22591_v29 = vsub.f32 %v7244_v7, %v22583_v61  ;;  %v7253_v51 = vsel %vm7146_vm1, %v7038_v35, 0  ;;  %v18113_v54 = vadd.f32 %v16541_v52, %v22184_v14  ;;  %16735 = vmatprep.mubr.f32.mxu1 %v7888_v16  ;;  %v7907_v13 = vsub.f32 %v22569_v45, %v25565_v42 }
 0x641   : > { %27135 = vst [vmem:[#allocation120_spill] sm:$0xff] %v22587_v57  ;;  %v22598_v53 = vand.u32 4294901760, %v7253_v51  ;;  %v7250_v21 = vsel %vm7146_vm1, %v7037_v34, 0  ;;  %v18114_v30 = vadd.f32 %v22184_v14, %v6453_v4  ;;  %16736 = vmatmul.mubr.f32.gmra.mrb[26].mxu1 %v7898_v43  ;;  %v7917_v7 = vsub.f32 %v22565_v55, %v25570_v3 }
 0x642   : > { %27136 = vst [vmem:[#allocation122_spill] sm:$0xff] %v22591_v29  ;;  %v22605_v63 = vand.u32 4294901760, %v7250_v21  ;;  %v7040_v52 = vmax.f32 %v18113_v54, 0.0  ;;  %v7908_v35 = vand.u32 4294901760, %v7907_v13  ;;  %v25575_v16 = vand.u32 4294901760, %v22591_v29  ;;  %v16544_v45 = vpop.f32.mrb[38].mxu0 }
 0x643   : > { %27137 = vst [vmem:[#allocation125_spill] sm:$0xff] %v22598_v53  ;;  %v22609_v56 = vsub.f32 %v7253_v51, %v22598_v53  ;;  %v7039_v42 = vmax.f32 %v18114_v30, 0.0  ;;  %v7918_v32 = vand.u32 4294901760, %v7917_v7  ;;  %v25580_v34 = vand.u32 4294901760, %v22587_v57  ;;  %v6465_v55 = vpop.f32.mrb[39].mxu0 }
 0x644   : > { %27138 = vst [vmem:[#allocation127_spill] sm:$0xff] %v22605_v63  ;;  %v22613_v43 = vsub.f32 %v7250_v21, %v22605_v63  ;;  %v7259_v4 = vsel %vm7146_vm1, %v7040_v52, 0  ;;  %v18115_v3 = vadd.f32 %v16544_v45, %v22184_v14  ;;  %16738 = vmatprep.mubr.f32.mxu1 %v7908_v35  ;;  %v7927_v54 = vsub.f32 %v22591_v29, %v25575_v16 }
 0x645   : > { %27139 = vst [vmem:[#allocation130_spill] sm:$0xff] %v22609_v56  ;;  %v22620_v51 = vand.u32 4294901760, %v7259_v4  ;;  %v7256_v13 = vsel %vm7146_vm1, %v7039_v42, 0  ;;  %v18116_v30 = vadd.f32 %v22184_v14, %v6465_v55  ;;  %16739 = vmatmul.mubr.f32.gmra.mrb[28].mxu1 %v7918_v32  ;;  %v7937_v21 = vsub.f32 %v22587_v57, %v25580_v34 }
 0x646   : > { %27140 = vst [vmem:[#allocation132_spill] sm:$0xff] %v22613_v43  ;;  %v22627_v7 = vand.u32 4294901760, %v7256_v13  ;;  %v7042_v45 = vmax.f32 %v18115_v3, 0.0  ;;  %v7928_v52 = vand.u32 4294901760, %v7927_v54  ;;  %v25585_v35 = vand.u32 4294901760, %v22613_v43  ;;  %v16547_v29 = vpop.f32.mrb[40].mxu0 }
 0x647   : > { %27141 = vst [vmem:[#allocation133_spill] sm:$0xff] %v22620_v51  ;;  %v22631_v53 = vsub.f32 %v7259_v4, %v22620_v51  ;;  %v7041_v16 = vmax.f32 %v18116_v30, 0.0  ;;  %v7938_v63 = vand.u32 4294901760, %v7937_v21  ;;  %v25590_v42 = vand.u32 4294901760, %v22609_v56  ;;  %v6477_v57 = vpop.f32.mrb[41].mxu0 }
 0x648   : > { %27142 = vst [vmem:[#allocation136_spill] sm:$0xff] %v22627_v7  ;;  %v22635_v55 = vsub.f32 %v7256_v13, %v22627_v7  ;;  %v7265_v32 = vsel %vm7146_vm1, %v7042_v45, 0  ;;  %v18117_v34 = vadd.f32 %v16547_v29, %v22184_v14  ;;  %16741 = vmatprep.mubr.f32.mxu1 %v7928_v52  ;;  %v7947_v3 = vsub.f32 %v22613_v43, %v25585_v35 }
 0x649   : > { %27143 = vst [vmem:[#allocation137_spill] sm:$0xff] %v22631_v53  ;;  %v22642_v4 = vand.u32 4294901760, %v7265_v32  ;;  %v7262_v54 = vsel %vm7146_vm1, %v7041_v16, 0  ;;  %v18118_v30 = vadd.f32 %v22184_v14, %v6477_v57  ;;  %16742 = vmatmul.mubr.f32.gmra.mrb[30].mxu1 %v7938_v63  ;;  %v7957_v13 = vsub.f32 %v22609_v56, %v25590_v42 }
 0x64a   : > { %27144 = vst [vmem:[#allocation138_spill] sm:$0xff] %v22635_v55  ;;  %v22649_v21 = vand.u32 4294901760, %v7262_v54  ;;  %v7044_v29 = vmax.f32 %v18117_v34, 0.0  ;;  %v7948_v45 = vand.u32 4294901760, %v7947_v3  ;;  %v25595_v52 = vand.u32 4294901760, %v22635_v55  ;;  %v16550_v43 = vpop.f32.mrb[42].mxu0 }
 0x64b   : > { %27145 = vst [vmem:[#allocation142_spill] sm:$0xff] %v22642_v4  ;;  %v22653_v51 = vsub.f32 %v7265_v32, %v22642_v4  ;;  %v7043_v35 = vmax.f32 %v18118_v30, 0.0  ;;  %v7958_v7 = vand.u32 4294901760, %v7957_v13  ;;  %v25600_v16 = vand.u32 4294901760, %v22631_v53  ;;  %v6489_v56 = vpop.f32.mrb[43].mxu0 }
 0x64c   : > { %27146 = vst [vmem:[#allocation143_spill] sm:$0xff] %v22649_v21  ;;  %v22657_v57 = vsub.f32 %v7262_v54, %v22649_v21  ;;  %v7271_v63 = vsel %vm7146_vm1, %v7044_v29, 0  ;;  %v18119_v42 = vadd.f32 %v16550_v43, %v22184_v14  ;;  %16744 = vmatprep.mubr.f32.mxu1 %v7948_v45  ;;  %v7967_v34 = vsub.f32 %v22635_v55, %v25595_v52 }
 0x64d   : > { %27147 = vst [vmem:[#allocation145_spill] sm:$0xff] %v22653_v51  ;;  %v22664_v32 = vand.u32 4294901760, %v7271_v63  ;;  %v7268_v3 = vsel %vm7146_vm1, %v7043_v35, 0  ;;  %v18120_v30 = vadd.f32 %v22184_v14, %v6489_v56  ;;  %16745 = vmatmul.mubr.f32.gmra.mrb[32].mxu1 %v7958_v7  ;;  %v7977_v54 = vsub.f32 %v22631_v53, %v25600_v16 }
 0x64e   : > { %27148 = vst [vmem:[#allocation148_spill] sm:$0xff] %v22657_v57  ;;  %v22671_v13 = vand.u32 4294901760, %v7268_v3  ;;  %v7046_v43 = vmax.f32 %v18119_v42, 0.0  ;;  %v7968_v29 = vand.u32 4294901760, %v7967_v34  ;;  %v25605_v45 = vand.u32 4294901760, %v22657_v57  ;;  %v16553_v55 = vpop.f32.mrb[44].mxu0 }
 0x64f   : > { %27149 = vst [vmem:[#allocation149_spill] sm:$0xff] %v22664_v32  ;;  %v22675_v4 = vsub.f32 %v7271_v63, %v22664_v32  ;;  %v7045_v52 = vmax.f32 %v18120_v30, 0.0  ;;  %v7978_v21 = vand.u32 4294901760, %v7977_v54  ;;  %v25610_v35 = vand.u32 4294901760, %v22653_v51  ;;  %v6501_v53 = vpop.f32.mrb[45].mxu0 }
 0x650   : > { %27150 = vst [vmem:[#allocation150_spill] sm:$0xff] %v22671_v13  ;;  %v22679_v56 = vsub.f32 %v7268_v3, %v22671_v13  ;;  %v7277_v7 = vsel %vm7146_vm1, %v7046_v43, 0  ;;  %v18121_v16 = vadd.f32 %v16553_v55, %v22184_v14  ;;  %16747 = vmatprep.mubr.f32.mxu1 %v7968_v29  ;;  %v7987_v42 = vsub.f32 %v22657_v57, %v25605_v45 }
 0x651   : > { %27151 = vst [vmem:[#allocation154_spill] sm:$0xff] %v22675_v4  ;;  %v22686_v63 = vand.u32 4294901760, %v7277_v7  ;;  %v7274_v34 = vsel %vm7146_vm1, %v7045_v52, 0  ;;  %v18122_v30 = vadd.f32 %v22184_v14, %v6501_v53  ;;  %16748 = vmatmul.mubr.f32.gmra.mrb[34].mxu1 %v7978_v21  ;;  %v7997_v3 = vsub.f32 %v22653_v51, %v25610_v35 }
 0x652   : > { %27152 = vst [vmem:[#allocation155_spill] sm:$0xff] %v22679_v56  ;;  %v22693_v54 = vand.u32 4294901760, %v7274_v34  ;;  %v7048_v55 = vmax.f32 %v18121_v16, 0.0  ;;  %v7988_v43 = vand.u32 4294901760, %v7987_v42  ;;  %v25615_v29 = vand.u32 4294901760, %v22679_v56  ;;  %v16556_v57 = vpop.f32.mrb[46].mxu0 }
 0x653   : > { %27153 = vst [vmem:[#allocation157_spill] sm:$0xff] %v22686_v63  ;;  %v22697_v32 = vsub.f32 %v7277_v7, %v22686_v63  ;;  %v7047_v45 = vmax.f32 %v18122_v30, 0.0  ;;  %v7998_v13 = vand.u32 4294901760, %v7997_v3  ;;  %v25620_v52 = vand.u32 4294901760, %v22675_v4  ;;  %v6513_v51 = vpop.f32.mrb[47].mxu0 }
 0x654   : > { %27154 = vst [vmem:[#allocation159_spill] sm:$0xff] %v22693_v54  ;;  %v22701_v53 = vsub.f32 %v7274_v34, %v22693_v54  ;;  %v7283_v21 = vsel %vm7146_vm1, %v7048_v55, 0  ;;  %v18123_v35 = vadd.f32 %v16556_v57, %v22184_v14  ;;  %16750 = vmatprep.mubr.f32.mxu1 %v7988_v43  ;;  %v8007_v16 = vsub.f32 %v22679_v56, %v25615_v29 }
 0x655   : > { %27155 = vst [vmem:[#allocation162_spill] sm:$0xff] %v22697_v32  ;;  %v22708_v7 = vand.u32 4294901760, %v7283_v21  ;;  %v7280_v42 = vsel %vm7146_vm1, %v7047_v45, 0  ;;  %v18124_v30 = vadd.f32 %v22184_v14, %v6513_v51  ;;  %16751 = vmatmul.mubr.f32.gmra.mrb[36].mxu1 %v7998_v13  ;;  %v8017_v34 = vsub.f32 %v22675_v4, %v25620_v52 }
 0x656   : > { %27156 = vst [vmem:[#allocation163_spill] sm:$0xff] %v22701_v53  ;;  %v22715_v3 = vand.u32 4294901760, %v7280_v42  ;;  %v7050_v57 = vmax.f32 %v18123_v35, 0.0  ;;  %v8008_v55 = vand.u32 4294901760, %v8007_v16  ;;  %v25625_v43 = vand.u32 4294901760, %v22701_v53  ;;  %v16559_v56 = vpop.f32.mrb[48].mxu0 }
 0x657   : > { %27157 = vst [vmem:[#allocation165_spill] sm:$0xff] %v22708_v7  ;;  %v22719_v63 = vsub.f32 %v7283_v21, %v22708_v7  ;;  %v7049_v29 = vmax.f32 %v18124_v30, 0.0  ;;  %v8018_v54 = vand.u32 4294901760, %v8017_v34  ;;  %v25630_v45 = vand.u32 4294901760, %v22697_v32  ;;  %v6525_v4 = vpop.f32.mrb[49].mxu0 }
 0x658   : > { %27158 = vst [vmem:[#allocation168_spill] sm:$0xff] %v22715_v3  ;;  %v22723_v51 = vsub.f32 %v7280_v42, %v22715_v3  ;;  %v7289_v13 = vsel %vm7146_vm1, %v7050_v57, 0  ;;  %v18125_v52 = vadd.f32 %v16559_v56, %v22184_v14  ;;  %16753 = vmatprep.mubr.f32.mxu1 %v8008_v55  ;;  %v8027_v35 = vsub.f32 %v22701_v53, %v25625_v43 }
 0x659   : > { %27159 = vst [vmem:[#allocation169_spill] sm:$0xff] %v22719_v63  ;;  %v22730_v21 = vand.u32 4294901760, %v7289_v13  ;;  %v7286_v16 = vsel %vm7146_vm1, %v7049_v29, 0  ;;  %v18126_v30 = vadd.f32 %v22184_v14, %v6525_v4  ;;  %16754 = vmatmul.mubr.f32.gmra.mrb[38].mxu1 %v8018_v54  ;;  %v8037_v42 = vsub.f32 %v22697_v32, %v25630_v45 }
 0x65a   : > { %27160 = vst [vmem:[#allocation170_spill] sm:$0xff] %v22723_v51  ;;  %v22737_v34 = vand.u32 4294901760, %v7286_v16  ;;  %v7052_v56 = vmax.f32 %v18125_v52, 0.0  ;;  %v8028_v57 = vand.u32 4294901760, %v8027_v35  ;;  %v25633_v55 = vand.u32 4294901760, %v22723_v51  ;;  %v16562_v53 = vpop.f32.mrb[50].mxu0 }
 0x65b   : > { %27161 = vst [vmem:[#allocation174_spill] sm:$0xff] %v22730_v21  ;;  %v22741_v7 = vsub.f32 %v7289_v13, %v22730_v21  ;;  %v7051_v43 = vmax.f32 %v18126_v30, 0.0  ;;  %v8038_v3 = vand.u32 4294901760, %v8037_v42  ;;  %v25640_v29 = vand.u32 4294901760, %v22719_v63  ;;  %v6537_v32 = vpop.f32.mrb[51].mxu0 }
 0x65c   : > { %27162 = vst [vmem:[#allocation175_spill] sm:$0xff] %v22737_v34  ;;  %v22745_v4 = vsub.f32 %v7286_v16, %v22737_v34  ;;  %v7295_v54 = vsel %vm7146_vm1, %v7052_v56, 0  ;;  %v18127_v45 = vadd.f32 %v16562_v53, %v22184_v14  ;;  %16756 = vmatprep.mubr.f32.mxu1 %v8028_v57  ;;  %v8047_v52 = vsub.f32 %v22723_v51, %v25633_v55  ;;  %v22758_v30 = vld [vmem:[%s24910_s4] ss:$0 sm:$0xff] }
 0x65d   : > { %27163 = vst [vmem:[#allocation177_spill] sm:$0xff] %v22741_v7  ;;  %v22752_v13 = vand.u32 4294901760, %v7295_v54  ;;  %v7292_v35 = vsel %vm7146_vm1, %v7051_v43, 0  ;;  %v18128_v16 = vadd.f32 %v22758_v30, %v6537_v32  ;;  %16757 = vmatmul.mubr.f32.gmra.mrb[40].mxu1 %v8038_v3  ;;  %v8057_v14 = vsub.f32 %v22719_v63, %v25640_v29 }
 0x65e   : > { %27164 = vst [vmem:[#allocation179_spill] sm:$0xff] %v22745_v4  ;;  %v22764_v53 = vand.u32 4294901760, %v7292_v35  ;;  %v7054_v42 = vmax.f32 %v18127_v45, 0.0  ;;  %v8048_v56 = vand.u32 4294901760, %v8047_v52  ;;  %v25645_v57 = vand.u32 4294901760, %v22745_v4  ;;  %v16565_v51 = vpop.f32.mrb[52].mxu0 }
 0x65f   : > { %27165 = vst [vmem:[#allocation182_spill] sm:$0xff] %v22752_v13  ;;  %v22768_v43 = vsub.f32 %v7295_v54, %v22752_v13  ;;  %v7053_v55 = vmax.f32 %v18128_v16, 0.0  ;;  %v8058_v21 = vand.u32 4294901760, %v8057_v14  ;;  %v25650_v34 = vand.u32 4294901760, %v22741_v7  ;;  %v6549_v63 = vpop.f32.mrb[53].mxu0 }
 0x660   : > { %27166 = vst [vmem:[#allocation184_spill] sm:$0xff] %v22764_v53  ;;  %v22772_v32 = vsub.f32 %v7292_v35, %v22764_v53  ;;  %v7301_v3 = vsel %vm7146_vm1, %v7054_v42, 0  ;;  %v18129_v29 = vadd.f32 %v22758_v30, %v16565_v51  ;;  %16759 = vmatprep.mubr.f32.mxu1 %v8048_v56  ;;  %v8067_v45 = vsub.f32 %v22745_v4, %v25645_v57 }
 0x661   : > { %27167 = vst [vmem:[#allocation185_spill] sm:$0xff] %v22768_v43  ;;  %v22779_v54 = vand.u32 4294901760, %v7301_v3  ;;  %v7298_v52 = vsel %vm7146_vm1, %v7053_v55, 0  ;;  %v18130_v16 = vadd.f32 %v22758_v30, %v6549_v63  ;;  %16760 = vmatmul.mubr.f32.gmra.mrb[42].mxu1 %v8058_v21  ;;  %v8077_v35 = vsub.f32 %v22741_v7, %v25650_v34 }
 0x662   : > { %27168 = vst [vmem:[#allocation187_spill] sm:$0xff] %v22772_v32  ;;  %v22786_v14 = vand.u32 4294901760, %v7298_v52  ;;  %v7056_v51 = vmax.f32 %v18129_v29, 0.0  ;;  %v8068_v42 = vand.u32 4294901760, %v8067_v45  ;;  %v25655_v56 = vand.u32 4294901760, %v22772_v32  ;;  %v16568_v4 = vpop.f32.mrb[54].mxu0 }
 0x663   : > { %27169 = vst [vmem:[#allocation189_spill] sm:$0xff] %v22779_v54  ;;  %v22790_v13 = vsub.f32 %v7301_v3, %v22779_v54  ;;  %v7055_v57 = vmax.f32 %v18130_v16, 0.0  ;;  %v8078_v53 = vand.u32 4294901760, %v8077_v35  ;;  %v25660_v55 = vand.u32 4294901760, %v22768_v43  ;;  %v6561_v7 = vpop.f32.mrb[55].mxu0 }
 0x664   : > { %27170 = vst [vmem:[#allocation191_spill] sm:$0xff] %v22786_v14  ;;  %v22794_v63 = vsub.f32 %v7298_v52, %v22786_v14  ;;  %v7307_v21 = vsel %vm7146_vm1, %v7056_v51, 0  ;;  %v18131_v34 = vadd.f32 %v22758_v30, %v16568_v4  ;;  %16762 = vmatprep.mubr.f32.mxu1 %v8068_v42  ;;  %v8087_v29 = vsub.f32 %v22772_v32, %v25655_v56 }
 0x665   : > { %27171 = vst [vmem:[#allocation193_spill] sm:$0xff] %v22790_v13  ;;  %v22801_v3 = vand.u32 4294901760, %v7307_v21  ;;  %v7304_v45 = vsel %vm7146_vm1, %v7055_v57, 0  ;;  %v18132_v16 = vadd.f32 %v22758_v30, %v6561_v7  ;;  %16763 = vmatmul.mubr.f32.gmra.mrb[44].mxu1 %v8078_v53  ;;  %v8097_v52 = vsub.f32 %v22768_v43, %v25660_v55 }
 0x666   : > { %27172 = vst [vmem:[#allocation195_spill] sm:$0xff] %v22794_v63  ;;  %v22808_v35 = vand.u32 4294901760, %v7304_v45  ;;  %v7058_v4 = vmax.f32 %v18131_v34, 0.0  ;;  %v8088_v51 = vand.u32 4294901760, %v8087_v29  ;;  %v25665_v42 = vand.u32 4294901760, %v22794_v63  ;;  %v16571_v32 = vpop.f32.mrb[56].mxu0 }
 0x667   : > { %27173 = vst [vmem:[#allocation197_spill] sm:$0xff] %v22801_v3  ;;  %v22812_v54 = vsub.f32 %v7307_v21, %v22801_v3  ;;  %v7057_v56 = vmax.f32 %v18132_v16, 0.0  ;;  %v8098_v14 = vand.u32 4294901760, %v8097_v52  ;;  %v25670_v57 = vand.u32 4294901760, %v22790_v13  ;;  %v6573_v43 = vpop.f32.mrb[57].mxu0 }
 0x668   : > { %27174 = vst [vmem:[#allocation199_spill] sm:$0xff] %v22808_v35  ;;  %v22816_v7 = vsub.f32 %v7304_v45, %v22808_v35  ;;  %v7313_v53 = vsel %vm7146_vm1, %v7058_v4, 0  ;;  %v18133_v55 = vadd.f32 %v22758_v30, %v16571_v32  ;;  %16765 = vmatprep.mubr.f32.mxu1 %v8088_v51  ;;  %v8107_v34 = vsub.f32 %v22794_v63, %v25665_v42 }
 0x669   : > { %27175 = vst [vmem:[#allocation202_spill] sm:$0xff] %v22812_v54  ;;  %v22823_v21 = vand.u32 4294901760, %v7313_v53  ;;  %v7310_v29 = vsel %vm7146_vm1, %v7057_v56, 0  ;;  %v18134_v16 = vadd.f32 %v22758_v30, %v6573_v43  ;;  %16766 = vmatmul.mubr.f32.gmra.mrb[46].mxu1 %v8098_v14  ;;  %v8117_v45 = vsub.f32 %v22790_v13, %v25670_v57 }
 0x66a   : > { %27176 = vst [vmem:[#allocation204_spill] sm:$0xff] %v22816_v7  ;;  %v22830_v52 = vand.u32 4294901760, %v7310_v29  ;;  %v7060_v32 = vmax.f32 %v18133_v55, 0.0  ;;  %v8108_v4 = vand.u32 4294901760, %v8107_v34  ;;  %v25675_v51 = vand.u32 4294901760, %v22816_v7  ;;  %v16574_v63 = vpop.f32.mrb[58].mxu0 }
 0x66b   : > { %27177 = vst [vmem:[#allocation205_spill] sm:$0xff] %v22823_v21  ;;  %v22834_v3 = vsub.f32 %v7313_v53, %v22823_v21  ;;  %v7059_v42 = vmax.f32 %v18134_v16, 0.0  ;;  %v8118_v35 = vand.u32 4294901760, %v8117_v45  ;;  %v25680_v56 = vand.u32 4294901760, %v22812_v54  ;;  %v6585_v13 = vpop.f32.mrb[59].mxu0 }
 0x66c   : > { %27178 = vst [vmem:[#allocation207_spill] sm:$0xff] %v22830_v52  ;;  %v22838_v43 = vsub.f32 %v7310_v29, %v22830_v52  ;;  %v7319_v14 = vsel %vm7146_vm1, %v7060_v32, 0  ;;  %v18135_v57 = vadd.f32 %v22758_v30, %v16574_v63  ;;  %16768 = vmatprep.mubr.f32.mxu1 %v8108_v4  ;;  %v8127_v55 = vsub.f32 %v22816_v7, %v25675_v51 }
 0x66d   : > { %27179 = vst [vmem:[#allocation209_spill] sm:$0xff] %v22834_v3  ;;  %v22845_v53 = vand.u32 4294901760, %v7319_v14  ;;  %v7316_v34 = vsel %vm7146_vm1, %v7059_v42, 0  ;;  %v18136_v16 = vadd.f32 %v22758_v30, %v6585_v13  ;;  %16769 = vmatmul.mubr.f32.gmra.mrb[48].mxu1 %v8118_v35  ;;  %v8137_v29 = vsub.f32 %v22812_v54, %v25680_v56 }
 0x66e   : > { %27180 = vst [vmem:[#allocation210_spill] sm:$0xff] %v22838_v43  ;;  %v22852_v45 = vand.u32 4294901760, %v7316_v34  ;;  %v7062_v63 = vmax.f32 %v18135_v57, 0.0  ;;  %v8128_v32 = vand.u32 4294901760, %v8127_v55  ;;  %v25685_v4 = vand.u32 4294901760, %v22838_v43  ;;  %v16577_v7 = vpop.f32.mrb[60].mxu0 }
 0x66f   : > { %27181 = vst [vmem:[#allocation214_spill] sm:$0xff] %v22845_v53  ;;  %v22856_v21 = vsub.f32 %v7319_v14, %v22845_v53  ;;  %v7061_v51 = vmax.f32 %v18136_v16, 0.0  ;;  %v8138_v52 = vand.u32 4294901760, %v8137_v29  ;;  %v25690_v42 = vand.u32 4294901760, %v22834_v3  ;;  %v6597_v54 = vpop.f32.mrb[61].mxu0 }
 0x670   : > { %27182 = vst [vmem:[#allocation215_spill] sm:$0xff] %v22852_v45  ;;  %v22860_v13 = vsub.f32 %v7316_v34, %v22852_v45  ;;  %v7325_v35 = vsel %vm7146_vm1, %v7062_v63, 0  ;;  %v18137_v56 = vadd.f32 %v22758_v30, %v16577_v7  ;;  %16771 = vmatprep.mubr.f32.mxu1 %v8128_v32  ;;  %v8147_v57 = vsub.f32 %v22838_v43, %v25685_v4 }
 0x671   : > { %27183 = vst [vmem:[#allocation218_spill] sm:$0xff] %v22856_v21  ;;  %v22867_v14 = vand.u32 4294901760, %v7325_v35  ;;  %v7322_v55 = vsel %vm7146_vm1, %v7061_v51, 0  ;;  %v18138_v16 = vadd.f32 %v22758_v30, %v6597_v54  ;;  %16772 = vmatmul.mubr.f32.gmra.mrb[50].mxu1 %v8138_v52  ;;  %v8157_v34 = vsub.f32 %v22834_v3, %v25690_v42 }
 0x672   : > { %27184 = vst [vmem:[#allocation231_spill] sm:$0xff] %v22860_v13  ;;  %v22874_v29 = vand.u32 4294901760, %v7322_v55  ;;  %v7064_v7 = vmax.f32 %v18137_v56, 0.0  ;;  %v8148_v63 = vand.u32 4294901760, %v8147_v57  ;;  %v25695_v32 = vand.u32 4294901760, %v22860_v13  ;;  %v16580_v43 = vpop.f32.mrb[62].mxu0 }
 0x673   : > { %27185 = vst [vmem:[#allocation241_spill] sm:$0xff] %v22867_v14  ;;  %v22878_v53 = vsub.f32 %v7325_v35, %v22867_v14  ;;  %v7063_v4 = vmax.f32 %v18138_v16, 0.0  ;;  %v8158_v45 = vand.u32 4294901760, %v8157_v34  ;;  %v25700_v51 = vand.u32 4294901760, %v22856_v21  ;;  %v6609_v3 = vpop.f32.mrb[63].mxu0 }
 0x674   : > { %27186 = vst [vmem:[#allocation244_spill] sm:$0xff] %v22874_v29  ;;  %v22882_v54 = vsub.f32 %v7322_v55, %v22874_v29  ;;  %v7331_v52 = vsel %vm7146_vm1, %v7064_v7, 0  ;;  %v18139_v42 = vadd.f32 %v22758_v30, %v16580_v43  ;;  %16774 = vmatprep.mubr.f32.mxu1 %v8148_v63  ;;  %v8167_v56 = vsub.f32 %v22860_v13, %v25695_v32 }
 0x675   : > { %27187 = vst [vmem:[#allocation245_spill] sm:$0xff] %v22878_v53  ;;  %v22889_v35 = vand.u32 4294901760, %v7331_v52  ;;  %v7328_v57 = vsel %vm7146_vm1, %v7063_v4, 0  ;;  %v18140_v16 = vadd.f32 %v22758_v30, %v6609_v3  ;;  %16775 = vmatmul.mubr.f32.gmra.mrb[52].mxu1 %v8158_v45  ;;  %v8177_v55 = vsub.f32 %v22856_v21, %v25700_v51 }
 0x676   : > { %27188 = vst [vmem:[#allocation248_spill] sm:$0xff] %v22882_v54  ;;  %v22896_v34 = vand.u32 4294901760, %v7328_v57  ;;  %v7066_v43 = vmax.f32 %v18139_v42, 0.0  ;;  %v8168_v7 = vand.u32 4294901760, %v8167_v56  ;;  %v25705_v63 = vand.u32 4294901760, %v22882_v54  ;;  %v16583_v13 = vpop.f32.mrb[64].mxu0 }
 0x677   : > { %27189 = vst [vmem:[#allocation250_spill] sm:$0xff] %v22889_v35  ;;  %v22900_v14 = vsub.f32 %v7331_v52, %v22889_v35  ;;  %v7065_v32 = vmax.f32 %v18140_v16, 0.0  ;;  %v8178_v29 = vand.u32 4294901760, %v8177_v55  ;;  %v25710_v4 = vand.u32 4294901760, %v22878_v53  ;;  %v6621_v21 = vpop.f32.mrb[65].mxu0 }
 0x678   : > { %27190 = vst [vmem:[#allocation254_spill] sm:$0xff] %v22896_v34  ;;  %v22904_v3 = vsub.f32 %v7328_v57, %v22896_v34  ;;  %v7337_v45 = vsel %vm7146_vm1, %v7066_v43, 0  ;;  %v18141_v51 = vadd.f32 %v22758_v30, %v16583_v13  ;;  %16777 = vmatprep.mubr.f32.mxu1 %v8168_v7  ;;  %v8187_v42 = vsub.f32 %v22882_v54, %v25705_v63 }
 0x679   : > { %27191 = vst [vmem:[#allocation257_spill] sm:$0xff] %v22900_v14  ;;  %v22911_v52 = vand.u32 4294901760, %v7337_v45  ;;  %v7334_v56 = vsel %vm7146_vm1, %v7065_v32, 0  ;;  %v18142_v16 = vadd.f32 %v22758_v30, %v6621_v21  ;;  %16778 = vmatmul.mubr.f32.gmra.mrb[54].mxu1 %v8178_v29  ;;  %v8197_v57 = vsub.f32 %v22878_v53, %v25710_v4 }
 0x67a   : > { %27192 = vst [vmem:[#allocation5_spill] sm:$0xff] %v22904_v3  ;;  %v22918_v55 = vand.u32 4294901760, %v7334_v56  ;;  %v7068_v13 = vmax.f32 %v18141_v51, 0.0  ;;  %v8188_v43 = vand.u32 4294901760, %v8187_v42  ;;  %v25715_v7 = vand.u32 4294901760, %v22904_v3  ;;  %v16586_v54 = vpop.f32.mrb[66].mxu0 }
 0x67b   : > { %27193 = vst [vmem:[#allocation6_spill] sm:$0xff] %v22911_v52  ;;  %v22922_v35 = vsub.f32 %v7337_v45, %v22911_v52  ;;  %v7067_v63 = vmax.f32 %v18142_v16, 0.0  ;;  %v8198_v34 = vand.u32 4294901760, %v8197_v57  ;;  %v25720_v32 = vand.u32 4294901760, %v22900_v14  ;;  %v6633_v53 = vpop.f32.mrb[67].mxu0 }
 0x67c   : > { %27194 = vst [vmem:[#allocation7_spill] sm:$0xff] %v22918_v55  ;;  %v22926_v21 = vsub.f32 %v7334_v56, %v22918_v55  ;;  %v7343_v29 = vsel %vm7146_vm1, %v7068_v13, 0  ;;  %v18143_v4 = vadd.f32 %v22758_v30, %v16586_v54  ;;  %16780 = vmatprep.mubr.f32.mxu1 %v8188_v43  ;;  %v8207_v51 = vsub.f32 %v22904_v3, %v25715_v7 }
 0x67d   : > { %27195 = vst [vmem:[#allocation4_spill] sm:$0xff] %v22922_v35  ;;  %v22933_v45 = vand.u32 4294901760, %v7343_v29  ;;  %v7340_v42 = vsel %vm7146_vm1, %v7067_v63, 0  ;;  %v18144_v16 = vadd.f32 %v22758_v30, %v6633_v53  ;;  %16781 = vmatmul.mubr.f32.gmra.mrb[56].mxu1 %v8198_v34  ;;  %v8217_v56 = vsub.f32 %v22900_v14, %v25720_v32 }
 0x67e   : > { %27196 = vst [vmem:[#allocation9_spill] sm:$0xff] %v22926_v21  ;;  %v22940_v57 = vand.u32 4294901760, %v7340_v42  ;;  %v7070_v54 = vmax.f32 %v18143_v4, 0.0  ;;  %v8208_v13 = vand.u32 4294901760, %v8207_v51  ;;  %v25725_v43 = vand.u32 4294901760, %v22926_v21  ;;  %v16589_v3 = vpop.f32.mrb[68].mxu0 }
 0x67f   : > { %27197 = vst [vmem:[#allocation13_spill] sm:$0xff] %v22933_v45  ;;  %v22944_v52 = vsub.f32 %v7343_v29, %v22933_v45  ;;  %v7069_v7 = vmax.f32 %v18144_v16, 0.0  ;;  %v8218_v55 = vand.u32 4294901760, %v8217_v56  ;;  %v25730_v63 = vand.u32 4294901760, %v22922_v35  ;;  %v6645_v14 = vpop.f32.mrb[69].mxu0 }
 0x680   : > { %27198 = vst [vmem:[#allocation14_spill] sm:$0xff] %v22940_v57  ;;  %v22948_v53 = vsub.f32 %v7340_v42, %v22940_v57  ;;  %v7349_v34 = vsel %vm7146_vm1, %v7070_v54, 0  ;;  %v18145_v32 = vadd.f32 %v22758_v30, %v16589_v3  ;;  %16783 = vmatprep.mubr.f32.mxu1 %v8208_v13  ;;  %v8227_v4 = vsub.f32 %v22926_v21, %v25725_v43 }
 0x681   : > { %27199 = vst [vmem:[#allocation16_spill] sm:$0xff] %v22944_v52  ;;  %v22955_v29 = vand.u32 4294901760, %v7349_v34  ;;  %v7346_v51 = vsel %vm7146_vm1, %v7069_v7, 0  ;;  %v18146_v16 = vadd.f32 %v22758_v30, %v6645_v14  ;;  %16784 = vmatmul.mubr.f32.gmra.mrb[58].mxu1 %v8218_v55  ;;  %v8237_v42 = vsub.f32 %v22922_v35, %v25730_v63 }
 0x682   : > { %27200 = vst [vmem:[#allocation19_spill] sm:$0xff] %v22948_v53  ;;  %v22962_v56 = vand.u32 4294901760, %v7346_v51  ;;  %v7072_v3 = vmax.f32 %v18145_v32, 0.0  ;;  %v8228_v54 = vand.u32 4294901760, %v8227_v4  ;;  %v25733_v13 = vand.u32 4294901760, %v22948_v53  ;;  %v16592_v21 = vpop.f32.mrb[70].mxu0 }
 0x683   : > { %27201 = vst [vmem:[#allocation21_spill] sm:$0xff] %v22955_v29  ;;  %v22966_v45 = vsub.f32 %v7349_v34, %v22955_v29  ;;  %v7071_v43 = vmax.f32 %v18146_v16, 0.0  ;;  %v8238_v57 = vand.u32 4294901760, %v8237_v42  ;;  %v25738_v7 = vand.u32 4294901760, %v22944_v52  ;;  %v6657_v35 = vpop.f32.mrb[71].mxu0 }
 0x684   : > { %27202 = vst [vmem:[#allocation22_spill] sm:$0xff] %v22962_v56  ;;  %v22970_v14 = vsub.f32 %v7346_v51, %v22962_v56  ;;  %v7355_v55 = vsel %vm7146_vm1, %v7072_v3, 0  ;;  %v18147_v63 = vadd.f32 %v22758_v30, %v16592_v21  ;;  %16786 = vmatprep.mubr.f32.mxu1 %v8228_v54  ;;  %v8247_v32 = vsub.f32 %v22948_v53, %v25733_v13  ;;  %v19624_v54 = vld [vmem:[%s24909_s3 + $0x20] sm:$0xff] }
 0x685   : > { %27203 = vst [vmem:[#allocation24_spill] sm:$0xff] %v22966_v45  ;;  %v22977_v34 = vand.u32 4294901760, %v7355_v55  ;;  %v7352_v4 = vsel %vm7146_vm1, %v7071_v43, 0  ;;  %v18148_v16 = vadd.f32 %v22758_v30, %v6657_v35  ;;  %16787 = vmatmul.mubr.f32.gmra.mrb[60].mxu1 %v8238_v57  ;;  %v8257_v51 = vsub.f32 %v22944_v52, %v25738_v7  ;;  %v19625_v7 = vld [vmem:[%s24909_s3 + $0x28] sm:$0xff] }
 0x686   : > { %27204 = vst [vmem:[#allocation25_spill] sm:$0xff] %v22970_v14  ;;  %v22984_v42 = vand.u32 4294901760, %v7352_v4  ;;  %v7074_v21 = vmax.f32 %v18147_v63, 0.0  ;;  %v8248_v3 = vand.u32 4294901760, %v8247_v32  ;;  %v27207_v13 = vand.u32 4294901760, %v22053_v8  ;;  %v16595_v57 = vpop.f32.mrb[72].mxu0 }
 0x687   : > { %27205 = vst [vmem:[#allocation29_spill] sm:$0xff] %v22977_v34  ;;  %v22994_v43 = vsub.f32 %v7355_v55, %v22977_v34  ;;  %v7073_v35 = vmax.f32 %v18148_v16, 0.0  ;;  %v8258_v29 = vand.u32 4294901760, %v8257_v51  ;;  %v27209_v63 = vand.u32 4294901760, %v22058_v49  ;;  %v6669_v55 = vpop.f32.mrb[73].mxu0 }
 0x688   : > { %27206 = vst [vmem:[#allocation30_spill] sm:$0xff] %v22984_v42  ;;  %v22991_v53 = vsub.f32 %v19624_v54, %v27207_v13  ;;  %v23004_v52 = vsub.f32 %v7352_v4, %v22984_v42  ;;  %v7361_v8 = vsel %vm7146_vm1, %v7074_v21, 0  ;;  %v18149_v13 = vadd.f32 %v22758_v30, %v16595_v57  ;;  %16789 = vmatprep.mubr.f32.mxu1 %v8248_v3 }
 0x689   : > { %27208 = vst [vmem:[#allocation31_spill] sm:$0xff] %v22994_v43  ;;  %v23001_v32 = vsub.f32 %v19625_v7, %v27209_v63  ;;  %v23009_v51 = vand.u32 4294901760, %v7361_v8  ;;  %v7358_v54 = vsel %vm7146_vm1, %v7073_v35, 0  ;;  %v18150_v34 = vadd.f32 %v22758_v30, %v6669_v55  ;;  %16790 = vmatmul.mubr.f32.gmra.mrb[62].mxu1 %v8258_v29 }
 0x68a   : > { %27210 = vst [vmem:[#allocation35_spill] sm:$0xff] %v23004_v52  ;;  %v25747_v16 = vand.u32 4294901760, %v22991_v53  ;;  %v23014_v7 = vand.u32 4294901760, %v7358_v54  ;;  %v7076_v4 = vmax.f32 %v18149_v13, 0.0  ;;  %v16598_v29 = vpop.f32.mrb[74].mxu0  ;;  %v27217_v55 = vand.u32 4294901760, %v22970_v14 }
 0x68b   : > { %27211 = vst [vmem:[#allocation37_spill] sm:$0xff] %v23009_v51  ;;  %v25752_v49 = vand.u32 4294901760, %v23001_v32  ;;  %v23021_v57 = vsub.f32 %v7361_v8, %v23009_v51  ;;  %v7075_v63 = vmax.f32 %v18150_v34, 0.0  ;;  %v6681_v3 = vpop.f32.mrb[75].mxu0 }
 0x68c   : > { %27212 = vst [vmem:[#allocation38_spill] sm:$0xff] %v23014_v7  ;;  %v8916_v21 = vsub.f32 %v22991_v53, %v25747_v16  ;;  %v23028_v42 = vsub.f32 %v7358_v54, %v23014_v7  ;;  %v7367_v13 = vsel %vm7146_vm1, %v7076_v4, 0  ;;  %v18151_v16 = vadd.f32 %v22758_v30, %v16598_v29 }
 0x68d   : > { %27213 = vst [vmem:[#allocation41_spill] sm:$0xff] %v23021_v57  ;;  %v8923_v35 = vsub.f32 %v23001_v32, %v25752_v49  ;;  %v23032_v61 = vand.u32 4294901760, %v7367_v13  ;;  %v7364_v34 = vsel %vm7146_vm1, %v7075_v63, 0  ;;  %v18152_v51 = vadd.f32 %v22758_v30, %v6681_v3 }
 0x68e   : > { %27214 = vst [vmem:[#allocation42_spill] sm:$0xff] %v23028_v42  ;;  %v8917_v56 = vand.u32 4294901760, %v8916_v21  ;;  %v23036_v49 = vand.u32 4294901760, %v7364_v34  ;;  %v7078_v40 = vmax.f32 %v18151_v16, 0.0  ;;  %v8267_v54 = vsub.f32 %v22970_v14, %v27217_v55  ;;  %v16601_v63 = vpop.f32.mrb[76].mxu0 }
 0x68f   : > { %27215 = vst [vmem:[#allocation45_spill] sm:$0xff] %v23032_v61  ;;  %v8924_v8 = vand.u32 4294901760, %v8923_v35  ;;  %v27218_v4 = vand.u32 4294901760, %v22966_v45  ;;  %v23045_v29 = vsub.f32 %v7367_v13, %v23032_v61  ;;  %v7077_v28 = vmax.f32 %v18152_v51, 0.0  ;;  %v6693_v55 = vpop.f32.mrb[77].mxu0 }
 0x690   : > { %27216 = vst [vmem:[#allocation46_spill] sm:$0xff] %v23036_v49  ;;  %v25765_v35 = vand.u32 4294901760, %v23004_v52  ;;  %v23049_v3 = vsub.f32 %v7364_v34, %v23036_v49  ;;  %v7373_v16 = vsel %vm7146_vm1, %v7078_v40, 0  ;;  %v8268_v50 = vand.u32 4294901760, %v8267_v54 }
 0x691   : > { %v8277_v21 = vsub.f32 %v22966_v45, %v27218_v4  ;;  %27219 = vst [vmem:[#allocation47_spill] sm:$0xff] %v23045_v29  ;;  %v17997_v7 = vpack.c.bf16 %v8924_v8, %v8917_v56  ;;  %v23052_v14 = vand.u32 4294901760, %v7373_v16  ;;  %v7370_v4 = vsel %vm7146_vm1, %v7077_v28, 0 }
 0x692   : > { %27220 = vst [vmem:[#allocation51_spill] sm:$0xff] %v23049_v3  ;;  %v18153_v13 = vadd.f32 %v22758_v30, %v16601_v63  ;;  %v18154_v56 = vadd.f32 %v22758_v30, %v6693_v55  ;;  %v23057_v51 = vand.u32 4294901760, %v7370_v4  ;;  %16792 = vmatprep.mubr.f32.mxu1 %v8268_v50  ;;  %v8287_v40 = vsub.f32 %v23004_v52, %v25765_v35  ;;  %v16604_v63 = vpop.f32.mrb[78].mxu0 }
 0x693   : > { %v8278_v27 = vand.u32 4294901760, %v8277_v21  ;;  %17998 = vmatprep.subr.bf16.mxu1 %v17997_v7  ;;  %27221 = vst [vmem:[#allocation53_spill] sm:$0xff] %v23052_v14  ;;  %v25770_v34 = vand.u32 4294901760, %v22994_v43  ;;  %v23065_v54 = vsub.f32 %v7373_v16, %v23052_v14  ;;  %v18155_v52 = vadd.f32 %v22758_v30, %v16604_v63  ;;  %v6705_v8 = vpop.f32.mrb[79].mxu0 }
 0x694   : > { %18000 = vmatpush3.bf16.msra.mxu1 %v17997_v7  ;;  %27222 = vst [vmem:[#allocation54_spill] sm:$0xff] %v23057_v51  ;;  %v7080_v28 = vmax.f32 %v18153_v13, 0.0  ;;  %v7079_v21 = vmax.f32 %v18154_v56, 0.0  ;;  %v23069_v55 = vsub.f32 %v7370_v4, %v23057_v51  ;;  %v8288_v50 = vand.u32 4294901760, %v8287_v40 }
 0x695   : > { %27223 = vst [vmem:[#allocation56_spill] sm:$0xff] %v23065_v54  ;;  %16793 = vmatmul.mubr.f32.gmra.mrb[64].mxu1 %v8278_v27  ;;  %v8297_v35 = vsub.f32 %v22994_v43, %v25770_v34  ;;  %v18156_v13 = vadd.f32 %v22758_v30, %v6705_v8  ;;  %v27225_v56 = vand.u32 4294901760, %v23028_v42  ;;  %v7082_v34 = vmax.f32 %v18155_v52, 0.0 }
 0x696   : > { %27224 = vst [vmem:[#allocation59_spill] sm:$0xff] %v23069_v55  ;;  %v7379_v16 = vsel %vm7146_vm1, %v7080_v28, 0  ;;  %v7376_v27 = vsel %vm7146_vm1, %v7079_v21, 0  ;;  %16795 = vmatprep.mubr.f32.mxu1 %v8288_v50  ;;  %v27228_v14 = vand.u32 4294901760, %v23021_v57  ;;  %v16607_v21 = vpop.f32.mrb[80].mxu0 }
 0x697   : > { %v8307_v7 = vsub.f32 %v23028_v42, %v27225_v56  ;;  %v23081_v4 = vand.u32 4294901760, %v7379_v16  ;;  %v23083_v40 = vand.u32 4294901760, %v7376_v27  ;;  %v8298_v45 = vand.u32 4294901760, %v8297_v35  ;;  %v6717_v50 = vpop.f32.mrb[81].mxu0 }
 0x698   : > { %v7081_v43 = vmax.f32 %v18156_v13, 0.0  ;;  %v8317_v28 = vsub.f32 %v23021_v57, %v27228_v14  ;;  %v7385_v56 = vsel %vm7146_vm1, %v7082_v34, 0  ;;  %v18157_v42 = vadd.f32 %v22758_v30, %v16607_v21 }
 0x699   : > { %27226 = vst [vmem:[#allocation60_spill] sm:$0xff] %v23081_v4  ;;  %27227 = vst [vmem:[#allocation63_spill] sm:$0xff] %v23083_v40  ;;  %v8308_v63 = vand.u32 4294901760, %v8307_v7  ;;  %v23090_v51 = vsub.f32 %v7379_v16, %v23081_v4  ;;  %16796 = vmatmul.mubr.f32.gmra.mrb[66].mxu1 %v8298_v45  ;;  %v23094_v35 = vand.u32 4294901760, %v7385_v56  ;;  %v18158_v14 = vadd.f32 %v22758_v30, %v6717_v50 }
 0x69a   : > { %v7382_v52 = vsel %vm7146_vm1, %v7081_v43, 0  ;;  %v8318_v7 = vand.u32 4294901760, %v8317_v28  ;;  %v7084_v8 = vmax.f32 %v18157_v42, 0.0  ;;  %v27232_v16 = vand.u32 4294901760, %v23049_v3  ;;  %v16610_v4 = vpop.f32.mrb[82].mxu0 }
 0x69b   : > { %27229 = vst [vmem:[#allocation64_spill] sm:$0xff] %v23090_v51  ;;  %27230 = vst [vmem:[#allocation65_spill] sm:$0xff] %v23094_v35  ;;  %16798 = vmatprep.mubr.f32.mxu1 %v8308_v63  ;;  %v23098_v13 = vand.u32 4294901760, %v7382_v52  ;;  %v25785_v34 = vand.u32 4294901760, %v23045_v29  ;;  %v23105_v21 = vsub.f32 %v7376_v27, %v23083_v40  ;;  %v7083_v57 = vmax.f32 %v18158_v14, 0.0 }
 0x69c   : > { %v8327_v45 = vsub.f32 %v23049_v3, %v27232_v16  ;;  %v23110_v28 = vsub.f32 %v7385_v56, %v23094_v35  ;;  %v7391_v42 = vsel %vm7146_vm1, %v7084_v8, 0  ;;  %v6729_v3 = vpop.f32.mrb[83].mxu0  ;;  %v18159_v43 = vadd.f32 %v22758_v30, %v16610_v4 }
 0x69d   : > { %27231 = vst [vmem:[#allocation69_spill] sm:$0xff] %v23098_v13  ;;  %27233 = vst [vmem:[#allocation70_spill] sm:$0xff] %v23105_v21  ;;  %16799 = vmatmul.mubr.f32.gmra.mrb[68].mxu1 %v8318_v7  ;;  %v8337_v16 = vsub.f32 %v23045_v29, %v25785_v34  ;;  %v23117_v27 = vsub.f32 %v7382_v52, %v23098_v13  ;;  %v7388_v14 = vsel %vm7146_vm1, %v7083_v57, 0  ;;  %v27237_v8 = vand.u32 4294901760, %v23069_v55 }
 0x69e   : > { %27234 = vst [vmem:[#allocation72_spill] sm:$0xff] %v23110_v28  ;;  %v8328_v50 = vand.u32 4294901760, %v8327_v45  ;;  %v18160_v63 = vadd.f32 %v22758_v30, %v6729_v3  ;;  %v23122_v56 = vand.u32 4294901760, %v7388_v14  ;;  %v27238_v34 = vand.u32 4294901760, %v23065_v54  ;;  %v16613_v13 = vpop.f32.mrb[84].mxu0 }
 0x69f   : > { %27235 = vst [vmem:[#allocation74_spill] sm:$0xff] %v23117_v27  ;;  %v8338_v7 = vand.u32 4294901760, %v8337_v16  ;;  %v8347_v45 = vsub.f32 %v23069_v55, %v27237_v8  ;;  %v23130_v52 = vand.u32 4294901760, %v7391_v42  ;;  %v7086_v35 = vmax.f32 %v18159_v43, 0.0  ;;  %v6741_v8 = vpop.f32.mrb[85].mxu0 }
 0x6a0   : > { %27236 = vst [vmem:[#allocation76_spill] sm:$0xff] %v23122_v56  ;;  %16801 = vmatprep.mubr.f32.mxu1 %v8328_v50  ;;  %v8357_v29 = vsub.f32 %v23065_v54, %v27238_v34  ;;  %v7085_v57 = vmax.f32 %v18160_v63, 0.0  ;;  %v25800_v4 = vand.u32 4294901760, %v23105_v21  ;;  %v23134_v3 = vsub.f32 %v7388_v14, %v23122_v56 }
 0x6a1   : > { %27239 = vst [vmem:[#allocation79_spill] sm:$0xff] %v23130_v52  ;;  %16802 = vmatmul.mubr.f32.gmra.mrb[70].mxu1 %v8338_v7  ;;  %v8348_v50 = vand.u32 4294901760, %v8347_v45  ;;  %v18161_v40 = vadd.f32 %v22758_v30, %v16613_v13  ;;  %v7397_v55 = vsel %vm7146_vm1, %v7086_v35, 0  ;;  %v18162_v54 = vadd.f32 %v22758_v30, %v6741_v8 }
 0x6a2   : > { %27240 = vst [vmem:[#allocation80_spill] sm:$0xff] %v23134_v3  ;;  %v8358_v16 = vand.u32 4294901760, %v8357_v29  ;;  %v7394_v34 = vsel %vm7146_vm1, %v7085_v57, 0  ;;  %v8367_v43 = vsub.f32 %v23105_v21, %v25800_v4  ;;  %v23143_v63 = vand.u32 4294901760, %v7397_v55  ;;  %v16616_v56 = vpop.f32.mrb[86].mxu0 }
 0x6a3   : > { %v23145_v14 = vand.u32 4294901760, %v7394_v34  ;;  %16804 = vmatprep.mubr.f32.mxu1 %v8348_v50  ;;  %v7088_v7 = vmax.f32 %v18161_v40, 0.0  ;;  %v25803_v29 = vand.u32 4294901760, %v23090_v51  ;;  %v7087_v13 = vmax.f32 %v18162_v54, 0.0  ;;  %v6753_v54 = vpop.f32.mrb[87].mxu0 }
 0x6a4   : > { %27241 = vst [vmem:[#allocation82_spill] sm:$0xff] %v23143_v63  ;;  %v8368_v45 = vand.u32 4294901760, %v8367_v43  ;;  %v25812_v35 = vand.u32 4294901760, %v23117_v27  ;;  %v23151_v8 = vsub.f32 %v7391_v42, %v23130_v52  ;;  %v23154_v4 = vsub.f32 %v7397_v55, %v23143_v63 }
 0x6a5   : > { %27242 = vst [vmem:[#allocation84_spill] sm:$0xff] %v23145_v14  ;;  %16805 = vmatmul.mubr.f32.gmra.mrb[72].mxu1 %v8358_v16  ;;  %v7403_v21 = vsel %vm7146_vm1, %v7088_v7, 0  ;;  %v8377_v40 = vsub.f32 %v23090_v51, %v25803_v29  ;;  %v23161_v50 = vsub.f32 %v7394_v34, %v23145_v14  ;;  %v7400_v43 = vsel %vm7146_vm1, %v7087_v13, 0 }
 0x6a6   : > { %27243 = vst [vmem:[#allocation86_spill] sm:$0xff] %v23151_v8  ;;  %27244 = vst [vmem:[#allocation87_spill] sm:$0xff] %v23154_v4  ;;  %16807 = vmatprep.mubr.f32.mxu1 %v8368_v45  ;;  %v18163_v42 = vadd.f32 %v22758_v30, %v16616_v56  ;;  %v18164_v57 = vadd.f32 %v22758_v30, %v6753_v54  ;;  %v23166_v55 = vand.u32 4294901760, %v7400_v43  ;;  %v27247_v29 = vand.u32 4294901760, %v23110_v28  ;;  %v16619_v45 = vpop.f32.mrb[88].mxu0 }
 0x6a7   : > { %27245 = vst [vmem:[#allocation89_spill] sm:$0xff] %v23161_v50  ;;  %v8378_v16 = vand.u32 4294901760, %v8377_v40  ;;  %v8387_v7 = vsub.f32 %v23117_v27, %v25812_v35  ;;  %v23174_v34 = vand.u32 4294901760, %v7403_v21  ;;  %v25819_v56 = vand.u32 4294901760, %v23134_v3  ;;  %v6765_v35 = vpop.f32.mrb[89].mxu0 }
 0x6a8   : > { %27246 = vst [vmem:[#allocation93_spill] sm:$0xff] %v23166_v55  ;;  %v8397_v51 = vsub.f32 %v23110_v28, %v27247_v29  ;;  %v7090_v63 = vmax.f32 %v18163_v42, 0.0  ;;  %v7089_v13 = vmax.f32 %v18164_v57, 0.0  ;;  %v23178_v54 = vsub.f32 %v7400_v43, %v23166_v55 }
 0x6a9   : > { %27248 = vst [vmem:[#allocation94_spill] sm:$0xff] %v23174_v34  ;;  %16808 = vmatmul.mubr.f32.gmra.mrb[74].mxu1 %v8378_v16  ;;  %v8388_v40 = vand.u32 4294901760, %v8387_v7  ;;  %v18165_v52 = vadd.f32 %v22758_v30, %v16619_v45  ;;  %v18166_v28 = vadd.f32 %v22758_v30, %v6765_v35  ;;  %v8407_v57 = vsub.f32 %v23134_v3, %v25819_v56 }
 0x6aa   : > { %27249 = vst [vmem:[#allocation95_spill] sm:$0xff] %v23178_v54  ;;  %v8398_v14 = vand.u32 4294901760, %v8397_v51  ;;  %v7409_v27 = vsel %vm7146_vm1, %v7090_v63, 0  ;;  %v7406_v29 = vsel %vm7146_vm1, %v7089_v13, 0  ;;  %v25822_v51 = vand.u32 4294901760, %v23151_v8  ;;  %v16622_v55 = vpop.f32.mrb[90].mxu0 }
 0x6ab   : > { %v23187_v42 = vand.u32 4294901760, %v7409_v27  ;;  %v23189_v43 = vand.u32 4294901760, %v7406_v29  ;;  %16810 = vmatprep.mubr.f32.mxu1 %v8388_v40  ;;  %v7092_v16 = vmax.f32 %v18165_v52, 0.0  ;;  %v7091_v7 = vmax.f32 %v18166_v28, 0.0  ;;  %v6777_v28 = vpop.f32.mrb[91].mxu0 }
 0x6ac   : > { %v8408_v45 = vand.u32 4294901760, %v8407_v57  ;;  %v25831_v63 = vand.u32 4294901760, %v23161_v50  ;;  %v23195_v35 = vsub.f32 %v7403_v21, %v23174_v34  ;;  %v8417_v52 = vsub.f32 %v23151_v8, %v25822_v51 }
 0x6ad   : > { %27250 = vst [vmem:[#allocation99_spill] sm:$0xff] %v23187_v42  ;;  %27251 = vst [vmem:[#allocation100_spill] sm:$0xff] %v23189_v43  ;;  %v23198_v56 = vsub.f32 %v7409_v27, %v23187_v42  ;;  %16811 = vmatmul.mubr.f32.gmra.mrb[76].mxu1 %v8398_v14  ;;  %v7415_v3 = vsel %vm7146_vm1, %v7092_v16, 0  ;;  %v23205_v40 = vsub.f32 %v7406_v29, %v23189_v43  ;;  %v7412_v57 = vsel %vm7146_vm1, %v7091_v7, 0 }
 0x6ae   : > { %27252 = vst [vmem:[#allocation102_spill] sm:$0xff] %v23195_v35  ;;  %16813 = vmatprep.mubr.f32.mxu1 %v8408_v45  ;;  %v18167_v21 = vadd.f32 %v22758_v30, %v16622_v55  ;;  %v18168_v13 = vadd.f32 %v22758_v30, %v6777_v28  ;;  %v23210_v27 = vand.u32 4294901760, %v7412_v57  ;;  %v8418_v14 = vand.u32 4294901760, %v8417_v52  ;;  %v16625_v45 = vpop.f32.mrb[92].mxu0 }
 0x6af   : > { %27253 = vst [vmem:[#allocation104_spill] sm:$0xff] %v23198_v56  ;;  %27254 = vst [vmem:[#allocation105_spill] sm:$0xff] %v23205_v40  ;;  %v8427_v16 = vsub.f32 %v23161_v50, %v25831_v63  ;;  %v27256_v51 = vand.u32 4294901760, %v23154_v4  ;;  %v23218_v29 = vand.u32 4294901760, %v7415_v3  ;;  %v25838_v55 = vand.u32 4294901760, %v23178_v54  ;;  %v6789_v63 = vpop.f32.mrb[93].mxu0 }
 0x6b0   : > { %27255 = vst [vmem:[#allocation107_spill] sm:$0xff] %v23210_v27  ;;  %v7094_v42 = vmax.f32 %v18167_v21, 0.0  ;;  %v7093_v7 = vmax.f32 %v18168_v13, 0.0  ;;  %v23222_v28 = vsub.f32 %v7412_v57, %v23210_v27  ;;  %v18169_v34 = vadd.f32 %v22758_v30, %v16625_v45 }
 0x6b1   : > { %v8437_v8 = vsub.f32 %v23154_v4, %v27256_v51  ;;  %27257 = vst [vmem:[#allocation238_spill] sm:$0xff] %v23218_v29  ;;  %16814 = vmatmul.mubr.f32.gmra.mrb[78].mxu1 %v8418_v14  ;;  %v8428_v52 = vand.u32 4294901760, %v8427_v16  ;;  %v18170_v4 = vadd.f32 %v22758_v30, %v6789_v63  ;;  %v8447_v13 = vsub.f32 %v23178_v54, %v25838_v55 }
 0x6b2   : > { %27258 = vst [vmem:[#allocation239_spill] sm:$0xff] %v23222_v28  ;;  %v7421_v50 = vsel %vm7146_vm1, %v7094_v42, 0  ;;  %v7418_v51 = vsel %vm7146_vm1, %v7093_v7, 0  ;;  %v7096_v14 = vmax.f32 %v18169_v34, 0.0  ;;  %v16628_v27 = vpop.f32.mrb[94].mxu0  ;;  %v25850_v42 = vand.u32 4294901760, %v23205_v40 }
 0x6b3   : > { %v8438_v43 = vand.u32 4294901760, %v8437_v8  ;;  %v23231_v21 = vand.u32 4294901760, %v7421_v50  ;;  %v23233_v57 = vand.u32 4294901760, %v7418_v51  ;;  %16816 = vmatprep.mubr.f32.mxu1 %v8428_v52  ;;  %v25841_v8 = vand.u32 4294901760, %v23195_v35 }
 0x6b4   : > { %v7095_v16 = vmax.f32 %v18170_v4, 0.0  ;;  %v8448_v45 = vand.u32 4294901760, %v8447_v13  ;;  %v23239_v63 = vsub.f32 %v7415_v3, %v23218_v29  ;;  %v7427_v54 = vsel %vm7146_vm1, %v7096_v14, 0  ;;  %v6801_v4 = vpop.f32.mrb[95].mxu0 }
 0x6b5   : > { %27259 = vst [vmem:[#allocation242_spill] sm:$0xff] %v23231_v21  ;;  %27260 = vst [vmem:[#allocation243_spill] sm:$0xff] %v23233_v57  ;;  %v23242_v55 = vsub.f32 %v7421_v50, %v23231_v21  ;;  %16817 = vmatmul.mubr.f32.gmra.mrb[80].mxu1 %v8438_v43  ;;  %v8457_v34 = vsub.f32 %v23195_v35, %v25841_v8  ;;  %v23249_v52 = vsub.f32 %v7418_v51, %v23233_v57 }
 0x6b6   : > { %27261 = vst [vmem:[#allocation246_spill] sm:$0xff] %v23239_v63  ;;  %v7424_v13 = vsel %vm7146_vm1, %v7095_v16, 0  ;;  %16819 = vmatprep.mubr.f32.mxu1 %v8448_v45  ;;  %v18171_v3 = vadd.f32 %v22758_v30, %v16628_v27  ;;  %v18172_v7 = vadd.f32 %v22758_v30, %v6801_v4  ;;  %v8467_v14 = vsub.f32 %v23205_v40, %v25850_v42  ;;  %v16631_v45 = vpop.f32.mrb[96].mxu0 }
 0x6b7   : > { %27262 = vst [vmem:[#allocation247_spill] sm:$0xff] %v23242_v55  ;;  %27263 = vst [vmem:[#allocation249_spill] sm:$0xff] %v23249_v52  ;;  %v23254_v50 = vand.u32 4294901760, %v7424_v13  ;;  %v8458_v43 = vand.u32 4294901760, %v8457_v34  ;;  %v27265_v8 = vand.u32 4294901760, %v23198_v56  ;;  %v23262_v51 = vand.u32 4294901760, %v7427_v54 }
 0x6b8   : > { %v7098_v21 = vmax.f32 %v18171_v3, 0.0  ;;  %v7097_v16 = vmax.f32 %v18172_v7, 0.0  ;;  %v25857_v27 = vand.u32 4294901760, %v23222_v28  ;;  %v8468_v34 = vand.u32 4294901760, %v8467_v14  ;;  %v6813_v42 = vpop.f32.mrb[97].mxu0 }
 0x6b9   : > { %27264 = vst [vmem:[#allocation251_spill] sm:$0xff] %v23254_v50  ;;  %v8477_v35 = vsub.f32 %v23198_v56, %v27265_v8  ;;  %27266 = vst [vmem:[#allocation253_spill] sm:$0xff] %v23262_v51  ;;  %v23266_v4 = vsub.f32 %v7424_v13, %v23254_v50  ;;  %16820 = vmatmul.mubr.f32.gmra.mrb[82].mxu1 %v8458_v43  ;;  %v18173_v29 = vadd.f32 %v22758_v30, %v16631_v45 }
 0x6ba   : > { %v7433_v40 = vsel %vm7146_vm1, %v7098_v21, 0  ;;  %v7430_v8 = vsel %vm7146_vm1, %v7097_v16, 0  ;;  %v18174_v56 = vadd.f32 %v22758_v30, %v6813_v42  ;;  %v8487_v7 = vsub.f32 %v23222_v28, %v25857_v27  ;;  %16822 = vmatprep.mubr.f32.mxu1 %v8468_v34  ;;  %v16634_v50 = vpop.f32.mrb[98].mxu0 }
 0x6bb   : > { %27267 = vst [vmem:[#allocation255_spill] sm:$0xff] %v23266_v4  ;;  %v8478_v57 = vand.u32 4294901760, %v8477_v35  ;;  %v23275_v3 = vand.u32 4294901760, %v7433_v40  ;;  %v23277_v13 = vand.u32 4294901760, %v7430_v8  ;;  %v7100_v43 = vmax.f32 %v18173_v29, 0.0 }
 0x6bc   : > { %v25860_v35 = vand.u32 4294901760, %v23239_v63  ;;  %v7099_v14 = vmax.f32 %v18174_v56, 0.0  ;;  %v8488_v45 = vand.u32 4294901760, %v8487_v7  ;;  %v25869_v21 = vand.u32 4294901760, %v23249_v52  ;;  %v6825_v56 = vpop.f32.mrb[99].mxu0 }
 0x6bd   : > { %27268 = vst [vmem:[#allocation256_spill] sm:$0xff] %v23275_v3  ;;  %27269 = vst [vmem:[#allocation108_spill] sm:$0xff] %v23277_v13  ;;  %v23283_v42 = vsub.f32 %v7427_v54, %v23262_v51  ;;  %v23286_v27 = vsub.f32 %v7433_v40, %v23275_v3  ;;  %16823 = vmatmul.mubr.f32.gmra.mrb[84].mxu1 %v8478_v57  ;;  %v7439_v28 = vsel %vm7146_vm1, %v7100_v43, 0 }
 0x6be   : > { %v8497_v29 = vsub.f32 %v23239_v63, %v25860_v35  ;;  %v23293_v34 = vsub.f32 %v7430_v8, %v23277_v13  ;;  %v7436_v7 = vsel %vm7146_vm1, %v7099_v14, 0  ;;  %16825 = vmatprep.mubr.f32.mxu1 %v8488_v45  ;;  %v18175_v54 = vadd.f32 %v22758_v30, %v16634_v50  ;;  %v16637_v45 = vpop.f32.mrb[100].mxu0 }
 0x6bf   : > { %27270 = vst [vmem:[#allocation111_spill] sm:$0xff] %v23283_v42  ;;  %27271 = vst [vmem:[#allocation112_spill] sm:$0xff] %v23286_v27  ;;  %v18176_v16 = vadd.f32 %v22758_v30, %v6825_v56  ;;  %v23298_v40 = vand.u32 4294901760, %v7436_v7  ;;  %v8507_v43 = vsub.f32 %v23249_v52, %v25869_v21  ;;  %v27274_v35 = vand.u32 4294901760, %v23242_v55  ;;  %v6837_v21 = vpop.f32.mrb[101].mxu0 }
 0x6c0   : > { %27272 = vst [vmem:[#allocation117_spill] sm:$0xff] %v23293_v34  ;;  %v8498_v57 = vand.u32 4294901760, %v8497_v29  ;;  %v23306_v8 = vand.u32 4294901760, %v7439_v28  ;;  %v7102_v3 = vmax.f32 %v18175_v54, 0.0  ;;  %v25876_v50 = vand.u32 4294901760, %v23266_v4 }
 0x6c1   : > { %27273 = vst [vmem:[#allocation118_spill] sm:$0xff] %v23298_v40  ;;  %v8517_v63 = vsub.f32 %v23242_v55, %v27274_v35  ;;  %v7101_v14 = vmax.f32 %v18176_v16, 0.0  ;;  %v23310_v56 = vsub.f32 %v7436_v7, %v23298_v40  ;;  %v8508_v29 = vand.u32 4294901760, %v8507_v43 }
 0x6c2   : > { %27275 = vst [vmem:[#allocation119_spill] sm:$0xff] %v23306_v8  ;;  %16826 = vmatmul.mubr.f32.gmra.mrb[86].mxu1 %v8498_v57  ;;  %v18177_v51 = vadd.f32 %v22758_v30, %v16637_v45  ;;  %v7445_v52 = vsel %vm7146_vm1, %v7102_v3, 0  ;;  %v18178_v55 = vadd.f32 %v22758_v30, %v6837_v21  ;;  %v8527_v16 = vsub.f32 %v23266_v4, %v25876_v50  ;;  %v16640_v40 = vpop.f32.mrb[102].mxu0 }
 0x6c3   : > { %27276 = vst [vmem:[#allocation123_spill] sm:$0xff] %v23310_v56  ;;  %v8518_v13 = vand.u32 4294901760, %v8517_v63  ;;  %v7442_v35 = vsel %vm7146_vm1, %v7101_v14, 0  ;;  %v23319_v54 = vand.u32 4294901760, %v7445_v52  ;;  %16828 = vmatprep.mubr.f32.mxu1 %v8508_v29  ;;  %v25877_v63 = vand.u32 4294901760, %v23283_v42 }
 0x6c4   : > { %v23321_v7 = vand.u32 4294901760, %v7442_v35  ;;  %v7104_v57 = vmax.f32 %v18177_v51, 0.0  ;;  %v7103_v43 = vmax.f32 %v18178_v55, 0.0  ;;  %v8528_v45 = vand.u32 4294901760, %v8527_v16  ;;  %v6849_v51 = vpop.f32.mrb[103].mxu0 }
 0x6c5   : > { %27277 = vst [vmem:[#allocation124_spill] sm:$0xff] %v23319_v54  ;;  %v25886_v3 = vand.u32 4294901760, %v23293_v34  ;;  %v23327_v30 = vsub.f32 %v7439_v28, %v23306_v8  ;;  %v8537_v29 = vsub.f32 %v23283_v42, %v25877_v63  ;;  %v23339_v16 = vld [vmem:[%s24910_s4] ss:$0 sm:$0xff] }
 0x6c6   : > { %27278 = vst [vmem:[#allocation126_spill] sm:$0xff] %v23321_v7  ;;  %16829 = vmatmul.mubr.f32.gmra.mrb[88].mxu1 %v8518_v13  ;;  %v7451_v21 = vsel %vm7146_vm1, %v7104_v57, 0  ;;  %v7448_v55 = vsel %vm7146_vm1, %v7103_v43, 0  ;;  %v18179_v28 = vadd.f32 %v23339_v16, %v16640_v40  ;;  %v18180_v13 = vadd.f32 %v23339_v16, %v6849_v51  ;;  %v16643_v40 = vpop.f32.mrb[104].mxu0 }
 0x6c7   : > { %27279 = vst [vmem:[#allocation128_spill] sm:$0xff] %v23327_v30  ;;  %v23333_v50 = vand.u32 4294901760, %v7451_v21  ;;  %16831 = vmatprep.mubr.f32.mxu1 %v8528_v45  ;;  %v23344_v57 = vsub.f32 %v7445_v52, %v23319_v54  ;;  %v8538_v14 = vand.u32 4294901760, %v8537_v29  ;;  %v8547_v63 = vsub.f32 %v23293_v34, %v25886_v3  ;;  %v6861_v34 = vpop.f32.mrb[105].mxu0 }
 0x6c8   : > { %v27282_v43 = vand.u32 4294901760, %v23286_v27  ;;  %v23353_v42 = vsub.f32 %v7442_v35, %v23321_v7  ;;  %v7106_v4 = vmax.f32 %v18179_v28, 0.0  ;;  %v7105_v8 = vmax.f32 %v18180_v13, 0.0 }
 0x6c9   : > { %27280 = vst [vmem:[#allocation129_spill] sm:$0xff] %v23333_v50  ;;  %27281 = vst [vmem:[#allocation131_spill] sm:$0xff] %v23344_v57  ;;  %v25893_v51 = vand.u32 4294901760, %v23310_v56  ;;  %v23357_v52 = vsub.f32 %v7451_v21, %v23333_v50  ;;  %v23359_v29 = vand.u32 4294901760, %v7448_v55  ;;  %v8548_v54 = vand.u32 4294901760, %v8547_v63 }
 0x6ca   : > { %v8557_v45 = vsub.f32 %v23286_v27, %v27282_v43  ;;  %27283 = vst [vmem:[#allocation134_spill] sm:$0xff] %v23353_v42  ;;  %16832 = vmatmul.mubr.f32.gmra.mrb[90].mxu1 %v8538_v14  ;;  %v18181_v3 = vadd.f32 %v23339_v16, %v16643_v40  ;;  %v7457_v43 = vsel %vm7146_vm1, %v7106_v4, 0  ;;  %v7454_v35 = vsel %vm7146_vm1, %v7105_v8, 0  ;;  %v19627_v4 = vld [vmem:[%s24909_s3 + $0x30] sm:$0xff] }
 0x6cb   : > { %27284 = vst [vmem:[#allocation135_spill] sm:$0xff] %v23357_v52  ;;  %27285 = vst [vmem:[#allocation139_spill] sm:$0xff] %v23359_v29  ;;  %v18182_v28 = vadd.f32 %v23339_v16, %v6861_v34  ;;  %v8567_v13 = vsub.f32 %v23310_v56, %v25893_v51  ;;  %v23368_v27 = vand.u32 4294901760, %v7457_v43  ;;  %16834 = vmatprep.mubr.f32.mxu1 %v8548_v54  ;;  %v27287_v8 = vand.u32 4294901760, %v22077_v10  ;;  %v19628_v51 = vld [vmem:[%s24909_s3 + $0x38] sm:$0xff] }
 0x6cc   : > { %v8558_v21 = vand.u32 4294901760, %v8557_v45  ;;  %v7108_v50 = vmax.f32 %v18181_v3, 0.0  ;;  %v27289_v54 = vand.u32 4294901760, %v22082_v0  ;;  %v16646_v3 = vpop.f32.mrb[106].mxu0  ;;  %v27293_v10 = vand.u32 4294901760, %v23327_v30 }
 0x6cd   : > { %27286 = vst [vmem:[#allocation140_spill] sm:$0xff] %v23368_v27  ;;  %v7107_v14 = vmax.f32 %v18182_v28, 0.0  ;;  %v8568_v40 = vand.u32 4294901760, %v8567_v13  ;;  %v23376_v34 = vsub.f32 %v19627_v4, %v27287_v8  ;;  %v23386_v28 = vsub.f32 %v7448_v55, %v23359_v29  ;;  %v6873_v8 = vpop.f32.mrb[107].mxu0 }
 0x6ce   : > { %v23383_v45 = vsub.f32 %v19628_v51, %v27289_v54  ;;  %v23388_v13 = vand.u32 4294901760, %v7454_v35  ;;  %16835 = vmatmul.mubr.f32.gmra.mrb[92].mxu1 %v8558_v21  ;;  %v7463_v63 = vsel %vm7146_vm1, %v7108_v50, 0  ;;  %v8577_v4 = vsub.f32 %v23327_v30, %v27293_v10  ;;  %v16649_v10 = vpop.f32.mrb[108].mxu0 }
 0x6cf   : > { %27288 = vst [vmem:[#allocation141_spill] sm:$0xff] %v23376_v34  ;;  %27291 = vst [vmem:[#allocation146_spill] sm:$0xff] %v23386_v28  ;;  %v23395_v56 = vsub.f32 %v7457_v43, %v23368_v27  ;;  %v7460_v0 = vsel %vm7146_vm1, %v7107_v14, 0  ;;  %16837 = vmatprep.mubr.f32.mxu1 %v8568_v40  ;;  %v25908_v51 = vand.u32 4294901760, %v23376_v34  ;;  %v23400_v54 = vand.u32 4294901760, %v7463_v63  ;;  %v6885_v27 = vpop.f32.mrb[109].mxu0 }
 0x6d0   : > { %27290 = vst [vmem:[#allocation144_spill] sm:$0xff] %v23383_v45  ;;  %27292 = vst [vmem:[#allocation147_spill] sm:$0xff] %v23388_v13  ;;  %v25909_v55 = vand.u32 4294901760, %v23383_v45  ;;  %v8578_v21 = vand.u32 4294901760, %v8577_v4  ;;  %v18183_v50 = vadd.f32 %v23339_v16, %v16646_v3  ;;  %v18184_v29 = vadd.f32 %v23339_v16, %v6873_v8 }
 0x6d1   : > { %27294 = vst [vmem:[#allocation151_spill] sm:$0xff] %v23395_v56  ;;  %27295 = vst [vmem:[#allocation152_spill] sm:$0xff] %v23400_v54  ;;  %v23404_v7 = vand.u32 4294901760, %v7460_v0  ;;  %v8930_v43 = vsub.f32 %v23376_v34, %v25908_v51  ;;  %v25914_v40 = vand.u32 4294901760, %v23353_v42  ;;  %v23414_v30 = vsub.f32 %v7454_v35, %v23388_v13 }
 0x6d2   : > { %v8937_v14 = vsub.f32 %v23383_v45, %v25909_v55  ;;  %16838 = vmatmul.mubr.f32.gmra.mrb[94].mxu1 %v8578_v21  ;;  %v7110_v3 = vmax.f32 %v18183_v50, 0.0  ;;  %v7109_v4 = vmax.f32 %v18184_v29, 0.0  ;;  %v25919_v8 = vand.u32 4294901760, %v23344_v57 }
 0x6d3   : > { %27296 = vst [vmem:[#allocation153_spill] sm:$0xff] %v23404_v7  ;;  %27297 = vst [vmem:[#allocation156_spill] sm:$0xff] %v23414_v30  ;;  %v8931_v61 = vand.u32 4294901760, %v8930_v43  ;;  %v8587_v51 = vsub.f32 %v23353_v42, %v25914_v40  ;;  %v18185_v55 = vadd.f32 %v23339_v16, %v16649_v10  ;;  %v18186_v29 = vadd.f32 %v23339_v16, %v6885_v27  ;;  %v16652_v40 = vpop.f32.mrb[110].mxu0 }
 0x6d4   : > { %v8938_v49 = vand.u32 4294901760, %v8937_v14  ;;  %v7469_v45 = vsel %vm7146_vm1, %v7110_v3, 0  ;;  %v7466_v34 = vsel %vm7146_vm1, %v7109_v4, 0  ;;  %v8597_v35 = vsub.f32 %v23344_v57, %v25919_v8  ;;  %v6897_v13 = vpop.f32.mrb[111].mxu0 }
 0x6d5   : > { %v23428_v21 = vsub.f32 %v7463_v63, %v23400_v54  ;;  %v23431_v50 = vsub.f32 %v7460_v0, %v23404_v7  ;;  %v8588_v14 = vand.u32 4294901760, %v8587_v51  ;;  %v23433_v10 = vand.u32 4294901760, %v7469_v45 }
 0x6d6   : > { %v18001_v43 = vpack.c.bf16 %v8938_v49, %v8931_v61  ;;  %v7112_v3 = vmax.f32 %v18185_v55, 0.0  ;;  %v7111_v42 = vmax.f32 %v18186_v29, 0.0  ;;  %v25924_v4 = vand.u32 4294901760, %v23386_v28 }
 0x6d7   : > { %27298 = vst [vmem:[#allocation158_spill] sm:$0xff] %v23428_v21  ;;  %27299 = vst [vmem:[#allocation160_spill] sm:$0xff] %v23431_v50  ;;  %v23436_v8 = vand.u32 4294901760, %v7466_v34  ;;  %16840 = vmatprep.mubr.f32.mxu1 %v8588_v14  ;;  %v8598_v27 = vand.u32 4294901760, %v8597_v35  ;;  %v25929_v63 = vand.u32 4294901760, %v23357_v52  ;;  %v18187_v0 = vadd.f32 %v23339_v16, %v16652_v40 }
 0x6d8   : > { %27300 = vst [vmem:[#allocation161_spill] sm:$0xff] %v23433_v10  ;;  %18002 = vmatprep.subr.bf16.mxu1 %v18001_v43  ;;  %v7475_v61 = vsel %vm7146_vm1, %v7112_v3, 0  ;;  %v7472_v49 = vsel %vm7146_vm1, %v7111_v42, 0  ;;  %v8607_v51 = vsub.f32 %v23386_v28, %v25924_v4  ;;  %v18188_v55 = vadd.f32 %v23339_v16, %v6897_v13 }
 0x6d9   : > { %27301 = vst [vmem:[#allocation164_spill] sm:$0xff] %v23436_v8  ;;  %18004 = vmatpush3.bf16.msra.mxu1 %v18001_v43  ;;  %v23446_v29 = vand.u32 4294901760, %v7475_v61  ;;  %v23448_v14 = vand.u32 4294901760, %v7472_v49  ;;  %v8617_v40 = vsub.f32 %v23357_v52, %v25929_v63  ;;  %v7114_v35 = vmax.f32 %v18187_v0, 0.0  ;;  %v16655_v43 = vpop.f32.mrb[112].mxu0 }
 0x6da   : > { %16841 = vmatmul.mubr.f32.gmra.mrb[96].mxu1 %v8598_v27  ;;  %v8608_v3 = vand.u32 4294901760, %v8607_v51  ;;  %v7113_v57 = vmax.f32 %v18188_v55, 0.0  ;;  %v25930_v42 = vand.u32 4294901760, %v23414_v30  ;;  %v25935_v54 = vand.u32 4294901760, %v23395_v56  ;;  %v6909_v4 = vpop.f32.mrb[113].mxu0 }
 0x6db   : > { %27302 = vst [vmem:[#allocation166_spill] sm:$0xff] %v23446_v29  ;;  %27303 = vst [vmem:[#allocation167_spill] sm:$0xff] %v23448_v14  ;;  %v23456_v13 = vsub.f32 %v7469_v45, %v23433_v10  ;;  %v23459_v27 = vsub.f32 %v7466_v34, %v23436_v8  ;;  %v8618_v28 = vand.u32 4294901760, %v8617_v40  ;;  %v7481_v7 = vsel %vm7146_vm1, %v7114_v35, 0  ;;  %v16658_v35 = vpop.f32.mrb[114].mxu0 }
 0x6dc   : > { %v23463_v63 = vsub.f32 %v7475_v61, %v23446_v29  ;;  %16843 = vmatprep.mubr.f32.mxu1 %v8608_v3  ;;  %v7478_v0 = vsel %vm7146_vm1, %v7113_v57, 0  ;;  %v8627_v51 = vsub.f32 %v23414_v30, %v25930_v42  ;;  %v8637_v45 = vsub.f32 %v23395_v56, %v25935_v54  ;;  %v6921_v52 = vpop.f32.mrb[115].mxu0 }
 0x6dd   : > { %27304 = vst [vmem:[#allocation171_spill] sm:$0xff] %v23456_v13  ;;  %27305 = vst [vmem:[#allocation172_spill] sm:$0xff] %v23459_v27  ;;  %v23473_v34 = vsub.f32 %v7472_v49, %v23448_v14  ;;  %v18189_v55 = vadd.f32 %v23339_v16, %v16655_v43  ;;  %v18190_v61 = vadd.f32 %v23339_v16, %v6909_v4  ;;  %v25942_v40 = vand.u32 4294901760, %v23431_v50 }
 0x6de   : > { %27306 = vst [vmem:[#allocation173_spill] sm:$0xff] %v23463_v63  ;;  %16844 = vmatmul.mubr.f32.gmra.mrb[98].mxu1 %v8618_v28  ;;  %v23478_v57 = vand.u32 4294901760, %v7481_v7  ;;  %v23480_v3 = vand.u32 4294901760, %v7478_v0  ;;  %v8628_v42 = vand.u32 4294901760, %v8627_v51  ;;  %v25945_v30 = vand.u32 4294901760, %v23428_v21 }
 0x6df   : > { %27307 = vst [vmem:[#allocation176_spill] sm:$0xff] %v23473_v34  ;;  %v8638_v54 = vand.u32 4294901760, %v8637_v45  ;;  %v7116_v56 = vmax.f32 %v18189_v55, 0.0  ;;  %v7115_v49 = vmax.f32 %v18190_v61, 0.0  ;;  %v8647_v28 = vsub.f32 %v23431_v50, %v25942_v40  ;;  %v16661_v40 = vpop.f32.mrb[116].mxu0 }
 0x6e0   : > { %27308 = vst [vmem:[#allocation178_spill] sm:$0xff] %v23478_v57  ;;  %27309 = vst [vmem:[#allocation180_spill] sm:$0xff] %v23480_v3  ;;  %16846 = vmatprep.mubr.f32.mxu1 %v8628_v42  ;;  %v8657_v4 = vsub.f32 %v23428_v21, %v25945_v30  ;;  %v18191_v43 = vadd.f32 %v23339_v16, %v16658_v35  ;;  %v18192_v29 = vadd.f32 %v23339_v16, %v6921_v52  ;;  %v6933_v21 = vpop.f32.mrb[117].mxu0 }
 0x6e1   : > { %v25948_v51 = vand.u32 4294901760, %v23459_v27  ;;  %v7487_v45 = vsel %vm7146_vm1, %v7116_v56, 0  ;;  %v7484_v55 = vsel %vm7146_vm1, %v7115_v49, 0  ;;  %v8648_v61 = vand.u32 4294901760, %v8647_v28 }
 0x6e2   : > { %16847 = vmatmul.mubr.f32.gmra.mrb[100].mxu1 %v8638_v54  ;;  %v25949_v14 = vand.u32 4294901760, %v23456_v13  ;;  %v23496_v42 = vsub.f32 %v7481_v7, %v23478_v57  ;;  %v23498_v50 = vand.u32 4294901760, %v7487_v45  ;;  %v8658_v30 = vand.u32 4294901760, %v8657_v4 }
 0x6e3   : > { %v7118_v35 = vmax.f32 %v18191_v43, 0.0  ;;  %16849 = vmatprep.mubr.f32.mxu1 %v8648_v61  ;;  %v7117_v52 = vmax.f32 %v18192_v29, 0.0  ;;  %v8667_v56 = vsub.f32 %v23459_v27, %v25948_v51  ;;  %v18193_v49 = vadd.f32 %v23339_v16, %v16661_v40 }
 0x6e4   : > { %27310 = vst [vmem:[#allocation181_spill] sm:$0xff] %v23496_v42  ;;  %27311 = vst [vmem:[#allocation183_spill] sm:$0xff] %v23498_v50  ;;  %v8677_v54 = vsub.f32 %v23456_v13, %v25949_v14  ;;  %v23508_v7 = vsub.f32 %v7478_v0, %v23480_v3  ;;  %v23510_v28 = vand.u32 4294901760, %v7484_v55  ;;  %v18194_v43 = vadd.f32 %v23339_v16, %v6933_v21  ;;  %v16664_v13 = vpop.f32.mrb[118].mxu0 }
 0x6e5   : > { %v7493_v4 = vsel %vm7146_vm1, %v7118_v35, 0  ;;  %v23515_v29 = vsub.f32 %v7487_v45, %v23498_v50  ;;  %v7490_v51 = vsel %vm7146_vm1, %v7117_v52, 0  ;;  %v8668_v14 = vand.u32 4294901760, %v8667_v56  ;;  %v6945_v3 = vpop.f32.mrb[119].mxu0 }
 0x6e6   : > { %27312 = vst [vmem:[#allocation186_spill] sm:$0xff] %v23508_v7  ;;  %27313 = vst [vmem:[#allocation188_spill] sm:$0xff] %v23510_v28  ;;  %16850 = vmatmul.mubr.f32.gmra.mrb[102].mxu1 %v8658_v30  ;;  %v23517_v61 = vand.u32 4294901760, %v7493_v4  ;;  %v8678_v40 = vand.u32 4294901760, %v8677_v54  ;;  %v7120_v27 = vmax.f32 %v18193_v49, 0.0  ;;  %v7119_v0 = vmax.f32 %v18194_v43, 0.0 }
 0x6e7   : > { %27314 = vst [vmem:[#allocation190_spill] sm:$0xff] %v23515_v29  ;;  %v25964_v57 = vand.u32 4294901760, %v23473_v34  ;;  %v23521_v10 = vand.u32 4294901760, %v7490_v51  ;;  %16852 = vmatprep.mubr.f32.mxu1 %v8668_v14  ;;  %v25969_v21 = vand.u32 4294901760, %v23463_v63  ;;  %v18195_v45 = vadd.f32 %v23339_v16, %v16664_v13 }
 0x6e8   : > { %27315 = vst [vmem:[#allocation192_spill] sm:$0xff] %v23517_v61  ;;  %v18196_v30 = vadd.f32 %v23339_v16, %v6945_v3  ;;  %v23527_v35 = vsub.f32 %v7484_v55, %v23510_v28  ;;  %v7499_v52 = vsel %vm7146_vm1, %v7120_v27, 0  ;;  %v7496_v56 = vsel %vm7146_vm1, %v7119_v0, 0  ;;  %v16667_v55 = vpop.f32.mrb[120].mxu0 }
 0x6e9   : > { %27316 = vst [vmem:[#allocation194_spill] sm:$0xff] %v23521_v10  ;;  %v8687_v54 = vsub.f32 %v23473_v34, %v25964_v57  ;;  %v23534_v49 = vand.u32 4294901760, %v7499_v52  ;;  %v23536_v14 = vand.u32 4294901760, %v7496_v56  ;;  %v8697_v13 = vsub.f32 %v23463_v63, %v25969_v21  ;;  %v6957_v28 = vpop.f32.mrb[121].mxu0 }
 0x6ea   : > { %27317 = vst [vmem:[#allocation196_spill] sm:$0xff] %v23527_v35  ;;  %16853 = vmatmul.mubr.f32.gmra.mrb[104].mxu1 %v8678_v40  ;;  %v7122_v3 = vmax.f32 %v18195_v45, 0.0  ;;  %v7121_v50 = vmax.f32 %v18196_v30, 0.0  ;;  %v25970_v27 = vand.u32 4294901760, %v23508_v7  ;;  %v25975_v0 = vand.u32 4294901760, %v23496_v42 }
 0x6eb   : > { %27318 = vst [vmem:[#allocation198_spill] sm:$0xff] %v23534_v49  ;;  %27319 = vst [vmem:[#allocation200_spill] sm:$0xff] %v23536_v14  ;;  %v8688_v43 = vand.u32 4294901760, %v8687_v54  ;;  %v23544_v57 = vsub.f32 %v7493_v4, %v23517_v61  ;;  %v23547_v40 = vsub.f32 %v7490_v51, %v23521_v10  ;;  %v8698_v34 = vand.u32 4294901760, %v8697_v13 }
 0x6ec   : > { %v7505_v8 = vsel %vm7146_vm1, %v7122_v3, 0  ;;  %v23551_v21 = vsub.f32 %v7499_v52, %v23534_v49  ;;  %v7502_v45 = vsel %vm7146_vm1, %v7121_v50, 0  ;;  %v8707_v30 = vsub.f32 %v23508_v7, %v25970_v27  ;;  %v16670_v3 = vpop.f32.mrb[122].mxu0 }
 0x6ed   : > { %27320 = vst [vmem:[#allocation201_spill] sm:$0xff] %v23544_v57  ;;  %27321 = vst [vmem:[#allocation203_spill] sm:$0xff] %v23547_v40  ;;  %16855 = vmatprep.mubr.f32.mxu1 %v8688_v43  ;;  %v8717_v4 = vsub.f32 %v23496_v42, %v25975_v0  ;;  %v23561_v51 = vsub.f32 %v7496_v56, %v23536_v14  ;;  %v18197_v54 = vadd.f32 %v23339_v16, %v16667_v55  ;;  %v6969_v63 = vpop.f32.mrb[123].mxu0 }
 0x6ee   : > { %16856 = vmatmul.mubr.f32.gmra.mrb[106].mxu1 %v8698_v34  ;;  %v18198_v52 = vadd.f32 %v23339_v16, %v6957_v28  ;;  %v25982_v13 = vand.u32 4294901760, %v23527_v35  ;;  %v23566_v50 = vand.u32 4294901760, %v7505_v8  ;;  %v23568_v43 = vand.u32 4294901760, %v7502_v45 }
 0x6ef   : > { %27322 = vst [vmem:[#allocation206_spill] sm:$0xff] %v23561_v51  ;;  %v8708_v27 = vand.u32 4294901760, %v8707_v30  ;;  %v25985_v7 = vand.u32 4294901760, %v23515_v29  ;;  %v8718_v0 = vand.u32 4294901760, %v8717_v4  ;;  %v7124_v42 = vmax.f32 %v18197_v54, 0.0 }
 0x6f0   : > { %27323 = vst [vmem:[#allocation208_spill] sm:$0xff] %v23566_v50  ;;  %27324 = vst [vmem:[#allocation211_spill] sm:$0xff] %v23568_v43  ;;  %v7123_v56 = vmax.f32 %v18198_v52, 0.0  ;;  %v8727_v34 = vsub.f32 %v23527_v35, %v25982_v13  ;;  %v18199_v55 = vadd.f32 %v23339_v16, %v16670_v3  ;;  %v18200_v49 = vadd.f32 %v23339_v16, %v6969_v63  ;;  %v16673_v13 = vpop.f32.mrb[124].mxu0 }
 0x6f1   : > { %16858 = vmatprep.mubr.f32.mxu1 %v8708_v27  ;;  %v8737_v28 = vsub.f32 %v23515_v29, %v25985_v7  ;;  %v25988_v30 = vand.u32 4294901760, %v23547_v40  ;;  %v7511_v4 = vsel %vm7146_vm1, %v7124_v42, 0  ;;  %v25989_v14 = vand.u32 4294901760, %v23544_v57  ;;  %v6981_v29 = vpop.f32.mrb[125].mxu0 }
 0x6f2   : > { %16859 = vmatmul.mubr.f32.gmra.mrb[108].mxu1 %v8718_v0  ;;  %v7508_v54 = vsel %vm7146_vm1, %v7123_v56, 0  ;;  %v8728_v52 = vand.u32 4294901760, %v8727_v34  ;;  %v23584_v27 = vsub.f32 %v7505_v8, %v23566_v50  ;;  %v23586_v35 = vand.u32 4294901760, %v7511_v4 }
 0x6f3   : > { %v8738_v7 = vand.u32 4294901760, %v8737_v28  ;;  %v7126_v3 = vmax.f32 %v18199_v55, 0.0  ;;  %v7125_v63 = vmax.f32 %v18200_v49, 0.0  ;;  %v8747_v42 = vsub.f32 %v23547_v40, %v25988_v30 }
 0x6f4   : > { %27325 = vst [vmem:[#allocation212_spill] sm:$0xff] %v23584_v27  ;;  %27326 = vst [vmem:[#allocation213_spill] sm:$0xff] %v23586_v35  ;;  %16861 = vmatprep.mubr.f32.mxu1 %v8728_v52  ;;  %v8757_v0 = vsub.f32 %v23544_v57, %v25989_v14  ;;  %v18201_v56 = vadd.f32 %v23339_v16, %v16673_v13  ;;  %v23596_v8 = vsub.f32 %v7502_v45, %v23568_v43  ;;  %v16676_v57 = vpop.f32.mrb[126].mxu0 }
 0x6f5   : > { %v23598_v34 = vand.u32 4294901760, %v7508_v54  ;;  %v7517_v28 = vsel %vm7146_vm1, %v7126_v3, 0  ;;  %v18202_v55 = vadd.f32 %v23339_v16, %v6981_v29  ;;  %v23603_v49 = vsub.f32 %v7511_v4, %v23586_v35  ;;  %v6993_v43 = vpop.f32.mrb[127].mxu0 }
 0x6f6   : > { %27327 = vst [vmem:[#allocation216_spill] sm:$0xff] %v23596_v8  ;;  %16862 = vmatmul.mubr.f32.gmra.mrb[110].mxu1 %v8738_v7  ;;  %v23605_v52 = vand.u32 4294901760, %v7517_v28  ;;  %v7514_v30 = vsel %vm7146_vm1, %v7125_v63, 0  ;;  %v8748_v14 = vand.u32 4294901760, %v8747_v42  ;;  %v8758_v13 = vand.u32 4294901760, %v8757_v0 }
 0x6f7   : > { %27328 = vst [vmem:[#allocation217_spill] sm:$0xff] %v23598_v34  ;;  %27329 = vst [vmem:[#allocation221_spill] sm:$0xff] %v23603_v49  ;;  %v7128_v40 = vmax.f32 %v18201_v56, 0.0  ;;  %v7127_v45 = vmax.f32 %v18202_v55, 0.0  ;;  %v26002_v50 = vand.u32 4294901760, %v23561_v51  ;;  %v23609_v61 = vand.u32 4294901760, %v7514_v30 }
 0x6f8   : > { %27330 = vst [vmem:[#allocation222_spill] sm:$0xff] %v23605_v52  ;;  %16864 = vmatprep.mubr.f32.mxu1 %v8748_v14  ;;  %v26005_v29 = vand.u32 4294901760, %v23551_v21  ;;  %v18203_v4 = vadd.f32 %v23339_v16, %v16676_v57  ;;  %v18204_v7 = vadd.f32 %v23339_v16, %v6993_v43  ;;  %v23615_v3 = vsub.f32 %v7508_v54, %v23598_v34 }
 0x6f9   : > { %27331 = vst [vmem:[#allocation223_spill] sm:$0xff] %v23609_v61  ;;  %v7523_v63 = vsel %vm7146_vm1, %v7128_v40, 0  ;;  %v7520_v42 = vsel %vm7146_vm1, %v7127_v45, 0  ;;  %v8767_v0 = vsub.f32 %v23561_v51, %v26002_v50  ;;  %v23629_v43 = vpop.f32.mrb[128].mxu0  ;;  %v26006_v55 = vand.u32 4294901760, %v23596_v8 }
 0x6fa   : > { %27332 = vst [vmem:[#allocation227_spill] sm:$0xff] %v23615_v3  ;;  %16865 = vmatmul.mubr.f32.gmra.mrb[112].mxu1 %v8758_v13  ;;  %v23622_v56 = vand.u32 4294901760, %v7523_v63  ;;  %v23624_v14 = vand.u32 4294901760, %v7520_v42  ;;  %v8777_v16 = vsub.f32 %v23551_v21, %v26005_v29  ;;  %v7130_v57 = vmax.f32 %v18203_v4, 0.0  ;;  %27335 = vst [vmem:[#allocation232_spill] sm:$0xff] %v23629_v43  ;;  %v23633_v35 = vpop.f32.mrb[129].mxu0 }
 0x6fb   : > { %v8768_v54 = vand.u32 4294901760, %v8767_v0  ;;  %v7129_v40 = vmax.f32 %v18204_v7, 0.0  ;;  %v26007_v45 = vand.u32 4294901760, %v23584_v27  ;;  %27336 = vst [vmem:[#allocation234_spill] sm:$0xff] %v23633_v35  ;;  %v23636_v13 = vsub.f32 %v7517_v28, %v23605_v52 }
 0x6fc   : > { %27333 = vst [vmem:[#allocation228_spill] sm:$0xff] %v23622_v56  ;;  %27334 = vst [vmem:[#allocation230_spill] sm:$0xff] %v23624_v14  ;;  %v23639_v50 = vsub.f32 %v7514_v30, %v23609_v61  ;;  %v8778_v51 = vand.u32 4294901760, %v8777_v16  ;;  %v7529_v29 = vsel %vm7146_vm1, %v7130_v57, 0  ;;  %v23643_v4 = vsub.f32 %v7520_v42, %v23624_v14 }
 0x6fd   : > { %16867 = vmatprep.mubr.f32.mxu1 %v8768_v54  ;;  %v7526_v7 = vsel %vm7146_vm1, %v7129_v40, 0  ;;  %v8787_v0 = vsub.f32 %v23596_v8, %v26006_v55  ;;  %v8797_v28 = vsub.f32 %v23584_v27, %v26007_v45  ;;  %v23653_v30 = vsub.f32 %v7523_v63, %v23622_v56 }
 0x6fe   : > { %27337 = vst [vmem:[#allocation235_spill] sm:$0xff] %v23639_v50  ;;  %27338 = vst [vmem:[#allocation258_spill] sm:$0xff] %v23643_v4  ;;  %16868 = vmatmul.mubr.f32.gmra.mrb[114].mxu1 %v8778_v51  ;;  %v23655_v16 = vand.u32 4294901760, %v7526_v7  ;;  %v26010_v42 = vand.u32 4294901760, %v23615_v3  ;;  %v23658_v57 = vand.u32 4294901760, %v7529_v29  ;;  %v26011_v35 = vand.u32 4294901760, %v23603_v49 }
 0x6ff   : > { %v8788_v54 = vand.u32 4294901760, %v8787_v0  ;;  %v8798_v40 = vand.u32 4294901760, %v8797_v28  ;;  %v26014_v63 = vand.u32 4294901760, %v23639_v50  ;;  %v26015_v0 = vand.u32 4294901760, %v23643_v4 }
 0x700   : > { %27339 = vst [vmem:[#allocation259_spill] sm:$0xff] %v23655_v16  ;;  %27340 = vst [vmem:[#allocation260_spill] sm:$0xff] %v23658_v57  ;;  %v23662_v55 = vsub.f32 %v7526_v7, %v23655_v16  ;;  %v8807_v45 = vsub.f32 %v23615_v3, %v26010_v42  ;;  %v8817_v43 = vsub.f32 %v23603_v49, %v26011_v35 }
 0x701   : > { %16870 = vmatprep.mubr.f32.mxu1 %v8788_v54  ;;  %v8827_v7 = vsub.f32 %v23639_v50, %v26014_v63  ;;  %v23677_v27 = vsub.f32 %v7529_v29, %v23658_v57  ;;  %v8847_v42 = vsub.f32 %v23643_v4, %v26015_v0  ;;  %v18005_v63 = vpack.c.bf16 %v22110_v46, %v22108_v41 }
 0x702   : > { %27341 = vst [vmem:[#allocation261_spill] sm:$0xff] %v23662_v55  ;;  %16871 = vmatmul.mubr.f32.gmra.mrb[116].mxu1 %v8798_v40  ;;  %v8808_v28 = vand.u32 4294901760, %v8807_v45  ;;  %v26019_v51 = vand.u32 4294901760, %v23662_v55  ;;  %v8818_v35 = vand.u32 4294901760, %v8817_v43  ;;  %v27343_v45 = vand.u32 4294901760, %v23636_v13 }
 0x703   : > { %27342 = vst [vmem:[#allocation262_spill] sm:$0xff] %v23677_v27  ;;  %v8828_v49 = vand.u32 4294901760, %v8827_v7  ;;  %18006 = vmatprep.subr.bf16.mxu1 %v18005_v63  ;;  %v8848_v29 = vand.u32 4294901760, %v8847_v42  ;;  %v26018_v7 = vand.u32 4294901760, %v23677_v27  ;;  %v18009_v42 = vpack.c.bf16 %v22179_v6, %v22173_v58 }
 0x704   : > { %16873 = vmatprep.mubr.f32.mxu1 %v8808_v28  ;;  %v8837_v40 = vsub.f32 %v23636_v13, %v27343_v45  ;;  %v8867_v0 = vsub.f32 %v23662_v55, %v26019_v51  ;;  %v27344_v28 = vand.u32 4294901760, %v23653_v30  ;;  %v27357_v51 = vld [vmem:[#allocation133_spill] sm:$0xff] }
 0x706   : > { %16874 = vmatmul.mubr.f32.gmra.mrb[118].mxu1 %v8818_v35  ;;  %v8838_v54 = vand.u32 4294901760, %v8837_v40  ;;  %v8857_v43 = vsub.f32 %v23653_v30, %v27344_v28  ;;  %v8868_v45 = vand.u32 4294901760, %v8867_v0  ;;  %v8877_v35 = vsub.f32 %v23677_v27, %v26018_v7  ;;  %v27348_v40 = vld [vmem:[#allocation109_spill] sm:$0xff]  ;;  %v27356_v7 = vld [vmem:[#allocation136_spill] sm:$0xff] }
 0x707   : > { %16876 = vmatprep.mubr.f32.mxu1 %v8828_v49  ;;  %v18013_v0 = vpack.c.bf16 %v23001_v32, %v22991_v53  ;;  %v27350_v28 = vld [vmem:[#allocation141_spill] sm:$0xff] }
 0x708   : > { %v8858_v4 = vand.u32 4294901760, %v8857_v43  ;;  %v8878_v49 = vand.u32 4294901760, %v8877_v35  ;;  %v27351_v43 = vld [vmem:[#allocation144_spill] sm:$0xff]  ;;  %v27352_v35 = vld [vmem:[#allocation115_spill] sm:$0xff] }
 0x70a   : > { %16877 = vmatmul.mubr.f32.gmra.mrb[120].mxu1 %v8838_v54  ;;  %v27347_v54 = vld [vmem:[#allocation110_spill] sm:$0xff] }
 0x70b   : > { %16879 = vmatprep.mubr.f32.mxu1 %v8848_v29  ;;  %v27349_v29 = vld [vmem:[#allocation116_spill] sm:$0xff] }
 0x70e   : > { %16880 = vmatmul.mubr.f32.gmra.mrb[122].mxu1 %v8858_v4  ;;  %v27345_v4 = vld [vmem:[#allocation101_spill] sm:$0xff] }
 0x70f   : > { %16882 = vmatprep.mubr.f32.mxu1 %v8868_v45  ;;  %v18017_v45 = vpack.c.bf16 %v27351_v43, %v27350_v28 }
 0x712   : > { %16883 = vmatmul.mubr.f32.gmra.mrb[124].mxu1 %v8878_v49  ;;  %v27353_v49 = vld [vmem:[#allocation127_spill] sm:$0xff] }
 0x713   : > { %16901 = vmatprep.mubr.f32.mxu1 %v22207_v20  ;;  %v27489_v20 = vld [vmem:[#allocation179_spill] sm:$0xff] }
 0x716   : > { %16902 = vmatmul.mubr.f32.vlgmr.msra.gmra.mrb[126].mxu1 %v22202_v9  ;;  %v27488_v9 = vld [vmem:[#allocation169_spill] sm:$0xff] }
 0x717   : > { %18008 = vmatpush3.bf16.msra.mxu1 %v18005_v63  ;;  %16904 = vmatprep.mubr.f32.mxu1 %v22224_v47  ;;  %v27346_v63 = vld [vmem:[#allocation98_spill] sm:$0xff] }
 0x718   : > { %18010 = vmatprep.subr.bf16.mxu1 %v18009_v42  ;;  %v27487_v47 = vld [vmem:[#allocation170_spill] sm:$0xff] }
 0x71a   : > { %16905 = vmatmul.mubr.f32.gmra.mrb[0].mxu1 %v22219_v24  ;;  %v27485_v24 = vld [vmem:[#allocation163_spill] sm:$0xff] }
 0x71b   : > { %16907 = vmatprep.mubr.f32.mxu1 %v22253_v33  ;;  %18012 = vmatpush3.bf16.msra.mxu1 %v18009_v42  ;;  %v27354_v42 = vld [vmem:[#allocation8_spill] sm:$0xff]  ;;  %v27484_v33 = vld [vmem:[#allocation154_spill] sm:$0xff] }
 0x71c   : > { %18014 = vmatprep.subr.bf16.mxu1 %v18013_v0 }
 0x71e   : > { %16908 = vmatmul.mubr.f32.gmra.mrb[2].mxu1 %v22246_v22  ;;  %v27482_v22 = vld [vmem:[#allocation145_spill] sm:$0xff] }
 0x71f   : > { %16910 = vmatprep.mubr.f32.mxu1 %v22279_v19  ;;  %18016 = vmatpush3.bf16.msra.mxu1 %v18013_v0  ;;  %v27355_v0 = vld [vmem:[#allocation125_spill] sm:$0xff]  ;;  %v27481_v19 = vld [vmem:[#allocation148_spill] sm:$0xff] }
 0x720   : > { %18018 = vmatprep.subr.bf16.mxu1 %v18017_v45 }
 0x722   : > { %16911 = vmatmul.mubr.f32.gmra.mrb[4].mxu1 %v22271_v2  ;;  %v27479_v2 = vld [vmem:[#allocation138_spill] sm:$0xff] }
 0x723   : > { %16913 = vmatprep.mubr.f32.mxu1 %v22303_v26  ;;  %18020 = vmatpush3.bf16.msra.mxu1 %v18017_v45  ;;  %v27364_v45 = vld [vmem:[#allocation168_spill] sm:$0xff]  ;;  %v27478_v26 = vld [vmem:[#allocation130_spill] sm:$0xff] }
 0x724   : > { %18022 = vmatprep.subr.bf16.mxu1 %v27354_v42 }
 0x726   : > { %16914 = vmatmul.mubr.f32.gmra.mrb[6].mxu1 %v22295_v25  ;;  %v27477_v25 = vld [vmem:[#allocation132_spill] sm:$0xff] }
 0x727   : > { %16916 = vmatprep.mubr.f32.mxu1 %v22329_v60  ;;  %v27476_v60 = vld [vmem:[#allocation120_spill] sm:$0xff] }
 0x72a   : > { %16917 = vmatmul.mubr.f32.gmra.mrb[8].mxu1 %v22321_v15  ;;  %v27475_v15 = vld [vmem:[#allocation122_spill] sm:$0xff] }
 0x72b   : > { %16919 = vmatprep.mubr.f32.mxu1 %v22354_v37  ;;  %v27474_v37 = vld [vmem:[#allocation113_spill] sm:$0xff] }
 0x72e   : > { %16920 = vmatmul.mubr.f32.gmra.mrb[10].mxu1 %v22346_v5  ;;  %v27473_v5 = vld [vmem:[#allocation114_spill] sm:$0xff] }
 0x72f   : > { %16922 = vmatprep.mubr.f32.mxu1 %v22378_v31  ;;  %v27472_v31 = vld [vmem:[#allocation103_spill] sm:$0xff] }
 0x732   : > { %16923 = vmatmul.mubr.f32.gmra.mrb[12].mxu1 %v22370_v23  ;;  %v27471_v23 = vld [vmem:[#allocation106_spill] sm:$0xff] }
 0x733   : > { %16925 = vmatprep.mubr.f32.mxu1 %v22402_v17  ;;  %v27470_v17 = vld [vmem:[#allocation96_spill] sm:$0xff] }
 0x736   : > { %16926 = vmatmul.mubr.f32.gmra.mrb[14].mxu1 %v22394_v36  ;;  %v27469_v36 = vld [vmem:[#allocation97_spill] sm:$0xff] }
 0x737   : > { %16928 = vmatprep.mubr.f32.mxu1 %v22427_v44  ;;  %v27468_v44 = vld [vmem:[#allocation88_spill] sm:$0xff] }
 0x73a   : > { %16929 = vmatmul.mubr.f32.gmra.mrb[16].mxu1 %v22418_v39  ;;  %v27467_v39 = vld [vmem:[#allocation90_spill] sm:$0xff] }
 0x73b   : > { %16931 = vmatprep.mubr.f32.mxu1 %v22451_v62  ;;  %v27466_v62 = vld [vmem:[#allocation240_spill] sm:$0xff] }
 0x73e   : > { %16932 = vmatmul.mubr.f32.gmra.mrb[18].mxu1 %v22444_v11  ;;  %v27465_v11 = vld [vmem:[#allocation252_spill] sm:$0xff] }
 0x73f   : > { %16934 = vmatprep.mubr.f32.mxu1 %v22473_v48  ;;  %v27464_v48 = vld [vmem:[#allocation229_spill] sm:$0xff] }
 0x742   : > { %16935 = vmatmul.mubr.f32.gmra.mrb[20].mxu1 %v22466_v18  ;;  %v27463_v18 = vld [vmem:[#allocation233_spill] sm:$0xff] }
 0x743   : > { %16937 = vmatprep.mubr.f32.mxu1 %v22495_v38  ;;  %v27462_v38 = vld [vmem:[#allocation220_spill] sm:$0xff] }
 0x746   : > { %16938 = vmatmul.mubr.f32.gmra.mrb[22].mxu1 %v22488_v1  ;;  %v27461_v1 = vld [vmem:[#allocation224_spill] sm:$0xff] }
 0x747   : > { %16940 = vmatprep.mubr.f32.mxu1 %v22517_v12  ;;  %v27460_v12 = vld [vmem:[#allocation121_spill] sm:$0xff] }
 0x74a   : > { %16941 = vmatmul.mubr.f32.gmra.mrb[24].mxu1 %v22510_v59  ;;  %v27459_v59 = vld [vmem:[#allocation2_spill] sm:$0xff] }
 0x74b   : > { %16943 = vmatprep.mubr.f32.mxu1 %v27345_v4  ;;  %v27365_v4 = vld [vmem:[#allocation165_spill] sm:$0xff] }
 0x74e   : > { %16944 = vmatmul.mubr.f32.gmra.mrb[26].mxu1 %v27346_v63  ;;  %v27361_v63 = vld [vmem:[#allocation149_spill] sm:$0xff] }
 0x74f   : > { %16946 = vmatprep.mubr.f32.mxu1 %v27347_v54  ;;  %v27360_v54 = vld [vmem:[#allocation150_spill] sm:$0xff] }
 0x752   : > { %16947 = vmatmul.mubr.f32.gmra.mrb[28].mxu1 %v27348_v40  ;;  %v27358_v40 = vld [vmem:[#allocation143_spill] sm:$0xff] }
 0x753   : > { %16949 = vmatprep.mubr.f32.mxu1 %v27349_v29  ;;  %v27359_v29 = vld [vmem:[#allocation142_spill] sm:$0xff] }
 0x756   : > { %16950 = vmatmul.mubr.f32.gmra.mrb[30].mxu1 %v27352_v35  ;;  %v27362_v35 = vld [vmem:[#allocation159_spill] sm:$0xff] }
 0x757   : > { %16952 = vmatprep.mubr.f32.mxu1 %v27353_v49  ;;  %v27363_v49 = vld [vmem:[#allocation157_spill] sm:$0xff] }
 0x75a   : > { %16953 = vmatmul.mubr.f32.gmra.mrb[32].mxu1 %v27355_v0  ;;  %v27366_v0 = vld [vmem:[#allocation175_spill] sm:$0xff] }
 0x75b   : > { %16955 = vmatprep.mubr.f32.mxu1 %v27356_v7  ;;  %v27367_v7 = vld [vmem:[#allocation174_spill] sm:$0xff] }
 0x75e   : > { %16956 = vmatmul.mubr.f32.gmra.mrb[34].mxu1 %v27357_v51  ;;  %v27368_v51 = vld [vmem:[#allocation184_spill] sm:$0xff] }
 0x75f   : > { %16958 = vmatprep.mubr.f32.mxu1 %v27358_v40  ;;  %v27369_v40 = vld [vmem:[#allocation182_spill] sm:$0xff] }
 0x762   : > { %16959 = vmatmul.mubr.f32.gmra.mrb[36].mxu1 %v27359_v29  ;;  %v27370_v29 = vld [vmem:[#allocation191_spill] sm:$0xff] }
 0x763   : > { %16961 = vmatprep.mubr.f32.mxu1 %v27360_v54  ;;  %v27371_v54 = vld [vmem:[#allocation189_spill] sm:$0xff] }
 0x766   : > { %16962 = vmatmul.mubr.f32.gmra.mrb[38].mxu1 %v27361_v63  ;;  %v27372_v63 = vld [vmem:[#allocation199_spill] sm:$0xff] }
 0x767   : > { %16964 = vmatprep.mubr.f32.mxu1 %v27362_v35  ;;  %v27373_v35 = vld [vmem:[#allocation197_spill] sm:$0xff] }
 0x76a   : > { %16965 = vmatmul.mubr.f32.gmra.mrb[40].mxu1 %v27363_v49  ;;  %v27374_v49 = vld [vmem:[#allocation207_spill] sm:$0xff] }
 0x76b   : > { %16967 = vmatprep.mubr.f32.mxu1 %v27364_v45  ;;  %v27375_v45 = vld [vmem:[#allocation205_spill] sm:$0xff] }
 0x76e   : > { %16968 = vmatmul.mubr.f32.gmra.mrb[42].mxu1 %v27365_v4  ;;  %v27376_v4 = vld [vmem:[#allocation215_spill] sm:$0xff] }
 0x76f   : > { %16970 = vmatprep.mubr.f32.mxu1 %v27366_v0  ;;  %v27377_v0 = vld [vmem:[#allocation214_spill] sm:$0xff] }
 0x772   : > { %16971 = vmatmul.mubr.f32.gmra.mrb[44].mxu1 %v27367_v7  ;;  %v27378_v7 = vld [vmem:[#allocation244_spill] sm:$0xff] }
 0x773   : > { %16973 = vmatprep.mubr.f32.mxu1 %v27368_v51  ;;  %v27379_v51 = vld [vmem:[#allocation241_spill] sm:$0xff] }
 0x776   : > { %16974 = vmatmul.mubr.f32.gmra.mrb[46].mxu1 %v27369_v40  ;;  %v27380_v40 = vld [vmem:[#allocation254_spill] sm:$0xff] }
 0x777   : > { %16976 = vmatprep.mubr.f32.mxu1 %v27370_v29  ;;  %v27381_v29 = vld [vmem:[#allocation250_spill] sm:$0xff] }
 0x77a   : > { %16977 = vmatmul.mubr.f32.gmra.mrb[48].mxu1 %v27371_v54  ;;  %v27382_v54 = vld [vmem:[#allocation7_spill] sm:$0xff] }
 0x77b   : > { %16979 = vmatprep.mubr.f32.mxu1 %v27372_v63  ;;  %v27383_v63 = vld [vmem:[#allocation6_spill] sm:$0xff] }
 0x77e   : > { %16980 = vmatmul.mubr.f32.gmra.mrb[50].mxu1 %v27373_v35  ;;  %v27384_v35 = vld [vmem:[#allocation14_spill] sm:$0xff] }
 0x77f   : > { %16982 = vmatprep.mubr.f32.mxu1 %v27374_v49  ;;  %v27385_v49 = vld [vmem:[#allocation13_spill] sm:$0xff] }
 0x782   : > { %16983 = vmatmul.mubr.f32.gmra.mrb[52].mxu1 %v27375_v45  ;;  %v27386_v45 = vld [vmem:[#allocation22_spill] sm:$0xff] }
 0x783   : > { %16985 = vmatprep.mubr.f32.mxu1 %v27376_v4  ;;  %v27387_v4 = vld [vmem:[#allocation21_spill] sm:$0xff] }
 0x786   : > { %16986 = vmatmul.mubr.f32.gmra.mrb[54].mxu1 %v27377_v0  ;;  %v27388_v0 = vld [vmem:[#allocation30_spill] sm:$0xff] }
 0x787   : > { %16988 = vmatprep.mubr.f32.mxu1 %v27378_v7  ;;  %v27389_v7 = vld [vmem:[#allocation29_spill] sm:$0xff] }
 0x78a   : > { %16989 = vmatmul.mubr.f32.gmra.mrb[56].mxu1 %v27379_v51  ;;  %v27390_v51 = vld [vmem:[#allocation38_spill] sm:$0xff] }
 0x78b   : > { %16991 = vmatprep.mubr.f32.mxu1 %v27380_v40  ;;  %v27391_v40 = vld [vmem:[#allocation37_spill] sm:$0xff] }
 0x78e   : > { %16992 = vmatmul.mubr.f32.gmra.mrb[58].mxu1 %v27381_v29  ;;  %v27392_v29 = vld [vmem:[#allocation46_spill] sm:$0xff] }
 0x78f   : > { %16994 = vmatprep.mubr.f32.mxu1 %v27382_v54  ;;  %v27393_v54 = vld [vmem:[#allocation45_spill] sm:$0xff] }
 0x792   : > { %16995 = vmatmul.mubr.f32.gmra.mrb[60].mxu1 %v27383_v63  ;;  %v27394_v63 = vld [vmem:[#allocation54_spill] sm:$0xff] }
 0x793   : > { %16997 = vmatprep.mubr.f32.mxu1 %v27384_v35  ;;  %v27395_v35 = vld [vmem:[#allocation53_spill] sm:$0xff] }
 0x796   : > { %16998 = vmatmul.mubr.f32.gmra.mrb[62].mxu1 %v27385_v49  ;;  %v27396_v49 = vld [vmem:[#allocation63_spill] sm:$0xff] }
 0x797   : > { %17000 = vmatprep.mubr.f32.mxu1 %v27386_v45  ;;  %v27397_v45 = vld [vmem:[#allocation60_spill] sm:$0xff] }
 0x79a   : > { %17001 = vmatmul.mubr.f32.gmra.mrb[64].mxu1 %v27387_v4  ;;  %v27398_v4 = vld [vmem:[#allocation69_spill] sm:$0xff] }
 0x79b   : > { %17003 = vmatprep.mubr.f32.mxu1 %v27388_v0  ;;  %v27399_v0 = vld [vmem:[#allocation65_spill] sm:$0xff] }
 0x79e   : > { %17004 = vmatmul.mubr.f32.gmra.mrb[66].mxu1 %v27389_v7  ;;  %v27400_v7 = vld [vmem:[#allocation76_spill] sm:$0xff] }
 0x79f   : > { %17006 = vmatprep.mubr.f32.mxu1 %v27390_v51  ;;  %v27401_v51 = vld [vmem:[#allocation79_spill] sm:$0xff] }
 0x7a2   : > { %17007 = vmatmul.mubr.f32.gmra.mrb[68].mxu1 %v27391_v40  ;;  %v27402_v40 = vld [vmem:[#allocation84_spill] sm:$0xff] }
 0x7a3   : > { %17009 = vmatprep.mubr.f32.mxu1 %v27392_v29  ;;  %v27403_v29 = vld [vmem:[#allocation82_spill] sm:$0xff] }
 0x7a6   : > { %17010 = vmatmul.mubr.f32.gmra.mrb[70].mxu1 %v27393_v54  ;;  %v27404_v54 = vld [vmem:[#allocation93_spill] sm:$0xff] }
 0x7a7   : > { %17012 = vmatprep.mubr.f32.mxu1 %v27394_v63  ;;  %v27405_v63 = vld [vmem:[#allocation94_spill] sm:$0xff] }
 0x7aa   : > { %17013 = vmatmul.mubr.f32.gmra.mrb[72].mxu1 %v27395_v35  ;;  %v27406_v35 = vld [vmem:[#allocation100_spill] sm:$0xff] }
 0x7ab   : > { %17015 = vmatprep.mubr.f32.mxu1 %v27396_v49  ;;  %v27407_v49 = vld [vmem:[#allocation99_spill] sm:$0xff] }
 0x7ae   : > { %17016 = vmatmul.mubr.f32.gmra.mrb[74].mxu1 %v27397_v45  ;;  %v27408_v45 = vld [vmem:[#allocation107_spill] sm:$0xff] }
 0x7af   : > { %17018 = vmatprep.mubr.f32.mxu1 %v27398_v4  ;;  %v27409_v4 = vld [vmem:[#allocation238_spill] sm:$0xff] }
 0x7b2   : > { %17019 = vmatmul.mubr.f32.gmra.mrb[76].mxu1 %v27399_v0  ;;  %v27410_v0 = vld [vmem:[#allocation243_spill] sm:$0xff] }
 0x7b3   : > { %17021 = vmatprep.mubr.f32.mxu1 %v27400_v7  ;;  %v27411_v7 = vld [vmem:[#allocation242_spill] sm:$0xff] }
 0x7b6   : > { %17022 = vmatmul.mubr.f32.gmra.mrb[78].mxu1 %v27401_v51  ;;  %v27412_v51 = vld [vmem:[#allocation251_spill] sm:$0xff] }
 0x7b7   : > { %17024 = vmatprep.mubr.f32.mxu1 %v27402_v40  ;;  %v27413_v40 = vld [vmem:[#allocation253_spill] sm:$0xff] }
 0x7ba   : > { %17025 = vmatmul.mubr.f32.gmra.mrb[80].mxu1 %v27403_v29  ;;  %v27414_v29 = vld [vmem:[#allocation108_spill] sm:$0xff] }
 0x7bb   : > { %17027 = vmatprep.mubr.f32.mxu1 %v27404_v54  ;;  %v27415_v54 = vld [vmem:[#allocation256_spill] sm:$0xff] }
 0x7be   : > { %17028 = vmatmul.mubr.f32.gmra.mrb[82].mxu1 %v27405_v63  ;;  %v27416_v63 = vld [vmem:[#allocation118_spill] sm:$0xff] }
 0x7bf   : > { %17030 = vmatprep.mubr.f32.mxu1 %v27406_v35  ;;  %v27417_v35 = vld [vmem:[#allocation119_spill] sm:$0xff] }
 0x7c2   : > { %17031 = vmatmul.mubr.f32.gmra.mrb[84].mxu1 %v27407_v49  ;;  %v27418_v49 = vld [vmem:[#allocation126_spill] sm:$0xff] }
 0x7c3   : > { %17033 = vmatprep.mubr.f32.mxu1 %v27408_v45  ;;  %v27419_v45 = vld [vmem:[#allocation124_spill] sm:$0xff] }
 0x7c6   : > { %17034 = vmatmul.mubr.f32.gmra.mrb[86].mxu1 %v27409_v4  ;;  %v27420_v4 = vld [vmem:[#allocation139_spill] sm:$0xff] }
 0x7c7   : > { %17036 = vmatprep.mubr.f32.mxu1 %v27410_v0  ;;  %v27421_v0 = vld [vmem:[#allocation129_spill] sm:$0xff] }
 0x7ca   : > { %17037 = vmatmul.mubr.f32.gmra.mrb[88].mxu1 %v27411_v7  ;;  %v27422_v7 = vld [vmem:[#allocation147_spill] sm:$0xff] }
 0x7cb   : > { %17039 = vmatprep.mubr.f32.mxu1 %v27412_v51  ;;  %v27423_v51 = vld [vmem:[#allocation140_spill] sm:$0xff] }
 0x7ce   : > { %17040 = vmatmul.mubr.f32.gmra.mrb[90].mxu1 %v27413_v40  ;;  %v27424_v40 = vld [vmem:[#allocation153_spill] sm:$0xff] }
 0x7cf   : > { %17042 = vmatprep.mubr.f32.mxu1 %v27414_v29  ;;  %v27425_v29 = vld [vmem:[#allocation152_spill] sm:$0xff] }
 0x7d2   : > { %17043 = vmatmul.mubr.f32.gmra.mrb[92].mxu1 %v27415_v54  ;;  %v27426_v54 = vld [vmem:[#allocation164_spill] sm:$0xff] }
 0x7d3   : > { %17045 = vmatprep.mubr.f32.mxu1 %v27416_v63  ;;  %v27427_v63 = vld [vmem:[#allocation161_spill] sm:$0xff] }
 0x7d6   : > { %17046 = vmatmul.mubr.f32.gmra.mrb[94].mxu1 %v27417_v35  ;;  %v27428_v35 = vld [vmem:[#allocation167_spill] sm:$0xff] }
 0x7d7   : > { %17048 = vmatprep.mubr.f32.mxu1 %v27418_v49  ;;  %v27429_v49 = vld [vmem:[#allocation166_spill] sm:$0xff] }
 0x7da   : > { %17049 = vmatmul.mubr.f32.gmra.mrb[96].mxu1 %v27419_v45  ;;  %v27430_v45 = vld [vmem:[#allocation180_spill] sm:$0xff] }
 0x7db   : > { %17051 = vmatprep.mubr.f32.mxu1 %v27420_v4  ;;  %v27431_v4 = vld [vmem:[#allocation178_spill] sm:$0xff] }
 0x7de   : > { %17052 = vmatmul.mubr.f32.gmra.mrb[98].mxu1 %v27421_v0  ;;  %v27432_v0 = vld [vmem:[#allocation188_spill] sm:$0xff] }
 0x7df   : > { %17054 = vmatprep.mubr.f32.mxu1 %v27422_v7  ;;  %v27433_v7 = vld [vmem:[#allocation183_spill] sm:$0xff] }
 0x7e2   : > { %17055 = vmatmul.mubr.f32.gmra.mrb[100].mxu1 %v27423_v51  ;;  %v27458_v51 = vld [vmem:[#allocation75_spill] sm:$0xff] }
 0x7e3   : > { %17057 = vmatprep.mubr.f32.mxu1 %v27424_v40  ;;  %v27434_v40 = vld [vmem:[#allocation192_spill] sm:$0xff] }
 0x7e6   : > { %17058 = vmatmul.mubr.f32.gmra.mrb[102].mxu1 %v27425_v29  ;;  %v27435_v29 = vld [vmem:[#allocation200_spill] sm:$0xff] }
 0x7e7   : > { %17060 = vmatprep.mubr.f32.mxu1 %v27426_v54  ;;  %v27436_v54 = vld [vmem:[#allocation198_spill] sm:$0xff] }
 0x7ea   : > { %17061 = vmatmul.mubr.f32.gmra.mrb[104].mxu1 %v27427_v63  ;;  %v27437_v63 = vld [vmem:[#allocation211_spill] sm:$0xff] }
 0x7eb   : > { %17063 = vmatprep.mubr.f32.mxu1 %v27428_v35  ;;  %v27438_v35 = vld [vmem:[#allocation208_spill] sm:$0xff] }
 0x7ee   : > { %17064 = vmatmul.mubr.f32.gmra.mrb[106].mxu1 %v27429_v49  ;;  %v27457_v49 = vld [vmem:[#allocation77_spill] sm:$0xff] }
 0x7ef   : > { %17066 = vmatprep.mubr.f32.mxu1 %v27430_v45  ;;  %v27439_v45 = vld [vmem:[#allocation213_spill] sm:$0xff] }
 0x7f2   : > { %17067 = vmatmul.mubr.f32.gmra.mrb[108].mxu1 %v27431_v4  ;;  %v27456_v4 = vld [vmem:[#allocation67_spill] sm:$0xff] }
 0x7f3   : > { %17069 = vmatprep.mubr.f32.mxu1 %v27432_v0  ;;  %v27455_v0 = vld [vmem:[#allocation68_spill] sm:$0xff] }
 0x7f6   : > { %17070 = vmatmul.mubr.f32.gmra.mrb[110].mxu1 %v27433_v7  ;;  %v27454_v7 = vld [vmem:[#allocation58_spill] sm:$0xff] }
 0x7f7   : > { %17072 = vmatprep.mubr.f32.mxu1 %v23521_v10  ;;  %v27453_v10 = vld [vmem:[#allocation61_spill] sm:$0xff] }
 0x7fa   : > { %17073 = vmatmul.mubr.f32.gmra.mrb[112].mxu1 %v27434_v40  ;;  %v27452_v40 = vld [vmem:[#allocation50_spill] sm:$0xff] }
 0x7fb   : > { %17075 = vmatprep.mubr.f32.mxu1 %v27435_v29  ;;  %v27451_v29 = vld [vmem:[#allocation52_spill] sm:$0xff] }
 0x7fe   : > { %17076 = vmatmul.mubr.f32.gmra.mrb[114].mxu1 %v27436_v54  ;;  %v27440_v54 = vld [vmem:[#allocation20_spill] sm:$0xff] }
 0x7ff   : > { %17078 = vmatprep.mubr.f32.mxu1 %v27437_v63  ;;  %v27441_v63 = vld [vmem:[#allocation18_spill] sm:$0xff] }
 0x802   : > { %17079 = vmatmul.mubr.f32.gmra.mrb[116].mxu1 %v27438_v35  ;;  %v27450_v35 = vld [vmem:[#allocation43_spill] sm:$0xff] }
 0x803   : > { %17081 = vmatprep.mubr.f32.mxu1 %v23598_v34  ;;  %v27442_v34 = vld [vmem:[#allocation28_spill] sm:$0xff] }
 0x806   : > { %17082 = vmatmul.mubr.f32.gmra.mrb[118].mxu1 %v27439_v45  ;;  %v27443_v45 = vld [vmem:[#allocation10_spill] sm:$0xff] }
 0x807   : > { %17084 = vmatprep.mubr.f32.mxu1 %v23609_v61  ;;  %v27444_v61 = vld [vmem:[#allocation27_spill] sm:$0xff] }
 0x80a   : > { %17085 = vmatmul.mubr.f32.gmra.mrb[120].mxu1 %v23605_v52  ;;  %v27445_v52 = vld [vmem:[#allocation36_spill] sm:$0xff] }
 0x80b   : > { %17087 = vmatprep.mubr.f32.mxu1 %v23624_v14  ;;  %v27449_v14 = vld [vmem:[#allocation12_spill] sm:$0xff] }
 0x80e   : > { %17088 = vmatmul.mubr.f32.gmra.mrb[122].mxu1 %v23622_v56  ;;  %v27446_v56 = vld [vmem:[#allocation11_spill] sm:$0xff] }
 0x80f   : > { %17090 = vmatprep.mubr.f32.mxu1 %v23655_v16  ;;  %v27447_v16 = vld [vmem:[#allocation34_spill] sm:$0xff] }
 0x812   : > { %17091 = vmatmul.mubr.f32.gmra.mrb[124].mxu1 %v23658_v57  ;;  %v27448_v57 = vld [vmem:[#allocation44_spill] sm:$0xff] }
 0x813   : > { %17109 = vmatprep.mubr.f32.mxu1 %v27440_v54 }
 0x816   : > { %17110 = vmatmul.mubr.f32.vlgmr.msra.gmra.mrb[126].mxu1 %v27441_v63 }
 0x817   : > { %18024 = vmatpush3.bf16.msra.mxu1 %v27354_v42  ;;  %17112 = vmatprep.mubr.f32.mxu1 %v27442_v34 }
 0x818   : > { %18026 = vmatprep.subr.bf16.mxu1 %v27443_v45 }
 0x81a   : > { %17113 = vmatmul.mubr.f32.gmra.mrb[0].mxu1 %v27444_v61 }
 0x81b   : > { %17115 = vmatprep.mubr.f32.mxu1 %v27445_v52  ;;  %18028 = vmatpush3.bf16.msra.mxu1 %v27443_v45  ;;  %v27486_v45 = vld [vmem:[#allocation162_spill] sm:$0xff] }
 0x81c   : > { %18030 = vmatprep.subr.bf16.mxu1 %v27446_v56 }
 0x81e   : > { %17116 = vmatmul.mubr.f32.gmra.mrb[2].mxu1 %v27447_v16 }
 0x81f   : > { %17118 = vmatprep.mubr.f32.mxu1 %v27448_v57  ;;  %18032 = vmatpush3.bf16.msra.mxu1 %v27446_v56  ;;  %v27483_v56 = vld [vmem:[#allocation155_spill] sm:$0xff] }
 0x820   : > { %18034 = vmatprep.subr.bf16.mxu1 %v27449_v14 }
 0x822   : > { %17119 = vmatmul.mubr.f32.gmra.mrb[4].mxu1 %v27450_v35 }
 0x823   : > { %17121 = vmatprep.mubr.f32.mxu1 %v27451_v29  ;;  %18036 = vmatpush3.bf16.msra.mxu1 %v27449_v14  ;;  %v27480_v14 = vld [vmem:[#allocation137_spill] sm:$0xff] }
 0x826   : > { %17122 = vmatmul.mubr.f32.gmra.mrb[6].mxu1 %v27452_v40 }
 0x827   : > { %17124 = vmatprep.mubr.f32.mxu1 %v27453_v10 }
 0x82a   : > { %17125 = vmatmul.mubr.f32.gmra.mrb[8].mxu1 %v27454_v7 }
 0x82b   : > { %17127 = vmatprep.mubr.f32.mxu1 %v27455_v0 }
 0x82e   : > { %17128 = vmatmul.mubr.f32.gmra.mrb[10].mxu1 %v27456_v4 }
 0x82f   : > { %17130 = vmatprep.mubr.f32.mxu1 %v27457_v49 }
 0x832   : > { %17131 = vmatmul.mubr.f32.gmra.mrb[12].mxu1 %v27458_v51 }
 0x833   : > { %17133 = vmatprep.mubr.f32.mxu1 %v27459_v59 }
 0x836   : > { %17134 = vmatmul.mubr.f32.gmra.mrb[14].mxu1 %v27460_v12 }
 0x837   : > { %17136 = vmatprep.mubr.f32.mxu1 %v27461_v1 }
 0x83a   : > { %17137 = vmatmul.mubr.f32.gmra.mrb[16].mxu1 %v27462_v38 }
 0x83b   : > { %17139 = vmatprep.mubr.f32.mxu1 %v27463_v18 }
 0x83e   : > { %17140 = vmatmul.mubr.f32.gmra.mrb[18].mxu1 %v27464_v48 }
 0x83f   : > { %17142 = vmatprep.mubr.f32.mxu1 %v27465_v11 }
 0x842   : > { %17143 = vmatmul.mubr.f32.gmra.mrb[20].mxu1 %v27466_v62 }
 0x843   : > { %17145 = vmatprep.mubr.f32.mxu1 %v27467_v39 }
 0x846   : > { %17146 = vmatmul.mubr.f32.gmra.mrb[22].mxu1 %v27468_v44 }
 0x847   : > { %17148 = vmatprep.mubr.f32.mxu1 %v27469_v36 }
 0x84a   : > { %17149 = vmatmul.mubr.f32.gmra.mrb[24].mxu1 %v27470_v17 }
 0x84b   : > { %17151 = vmatprep.mubr.f32.mxu1 %v27471_v23 }
 0x84e   : > { %17152 = vmatmul.mubr.f32.gmra.mrb[26].mxu1 %v27472_v31 }
 0x84f   : > { %17154 = vmatprep.mubr.f32.mxu1 %v27473_v5 }
 0x852   : > { %17155 = vmatmul.mubr.f32.gmra.mrb[28].mxu1 %v27474_v37 }
 0x853   : > { %17157 = vmatprep.mubr.f32.mxu1 %v27475_v15 }
 0x856   : > { %17158 = vmatmul.mubr.f32.gmra.mrb[30].mxu1 %v27476_v60 }
 0x857   : > { %17160 = vmatprep.mubr.f32.mxu1 %v27477_v25 }
 0x85a   : > { %17161 = vmatmul.mubr.f32.gmra.mrb[32].mxu1 %v27478_v26 }
 0x85b   : > { %17163 = vmatprep.mubr.f32.mxu1 %v27479_v2  ;;  %v27490_v2 = vld [vmem:[#allocation177_spill] sm:$0xff] }
 0x85e   : > { %17164 = vmatmul.mubr.f32.gmra.mrb[34].mxu1 %v27480_v14  ;;  %v27491_v14 = vld [vmem:[#allocation187_spill] sm:$0xff] }
 0x85f   : > { %17166 = vmatprep.mubr.f32.mxu1 %v27481_v19  ;;  %v27492_v19 = vld [vmem:[#allocation185_spill] sm:$0xff] }
 0x862   : > { %17167 = vmatmul.mubr.f32.gmra.mrb[36].mxu1 %v27482_v22  ;;  %v27493_v22 = vld [vmem:[#allocation195_spill] sm:$0xff] }
 0x863   : > { %17169 = vmatprep.mubr.f32.mxu1 %v27483_v56  ;;  %v27494_v56 = vld [vmem:[#allocation193_spill] sm:$0xff] }
 0x866   : > { %17170 = vmatmul.mubr.f32.gmra.mrb[38].mxu1 %v27484_v33  ;;  %v27495_v33 = vld [vmem:[#allocation204_spill] sm:$0xff] }
 0x867   : > { %17172 = vmatprep.mubr.f32.mxu1 %v27485_v24  ;;  %v27496_v24 = vld [vmem:[#allocation202_spill] sm:$0xff] }
 0x86a   : > { %17173 = vmatmul.mubr.f32.gmra.mrb[40].mxu1 %v27486_v45  ;;  %v27497_v45 = vld [vmem:[#allocation210_spill] sm:$0xff] }
 0x86b   : > { %17175 = vmatprep.mubr.f32.mxu1 %v27487_v47  ;;  %v27498_v47 = vld [vmem:[#allocation209_spill] sm:$0xff] }
 0x86e   : > { %17176 = vmatmul.mubr.f32.gmra.mrb[42].mxu1 %v27488_v9  ;;  %v27499_v9 = vld [vmem:[#allocation231_spill] sm:$0xff] }
 0x86f   : > { %17178 = vmatprep.mubr.f32.mxu1 %v27489_v20  ;;  %v27500_v20 = vld [vmem:[#allocation218_spill] sm:$0xff] }
 0x872   : > { %17179 = vmatmul.mubr.f32.gmra.mrb[44].mxu1 %v27490_v2  ;;  %v27501_v2 = vld [vmem:[#allocation248_spill] sm:$0xff] }
 0x873   : > { %17181 = vmatprep.mubr.f32.mxu1 %v27491_v14  ;;  %v27502_v14 = vld [vmem:[#allocation245_spill] sm:$0xff] }
 0x876   : > { %17182 = vmatmul.mubr.f32.gmra.mrb[46].mxu1 %v27492_v19  ;;  %v27503_v19 = vld [vmem:[#allocation5_spill] sm:$0xff] }
 0x877   : > { %17184 = vmatprep.mubr.f32.mxu1 %v27493_v22  ;;  %v27504_v22 = vld [vmem:[#allocation257_spill] sm:$0xff] }
 0x87a   : > { %17185 = vmatmul.mubr.f32.gmra.mrb[48].mxu1 %v27494_v56  ;;  %v27505_v56 = vld [vmem:[#allocation9_spill] sm:$0xff] }
 0x87b   : > { %17187 = vmatprep.mubr.f32.mxu1 %v27495_v33  ;;  %v27506_v33 = vld [vmem:[#allocation4_spill] sm:$0xff] }
 0x87e   : > { %17188 = vmatmul.mubr.f32.gmra.mrb[50].mxu1 %v27496_v24  ;;  %v27507_v24 = vld [vmem:[#allocation19_spill] sm:$0xff] }
 0x87f   : > { %17190 = vmatprep.mubr.f32.mxu1 %v27497_v45 }
 0x882   : > { %17191 = vmatmul.mubr.f32.gmra.mrb[52].mxu1 %v27498_v47  ;;  %v27508_v47 = vand.u32 4294901760, %v22108_v41  ;;  %v27517_v41 = vld [vmem:[#allocation51_spill] sm:$0xff] }
 0x883   : > { %17193 = vmatprep.mubr.f32.mxu1 %v27499_v9  ;;  %v27509_v9 = vand.u32 4294901760, %v22110_v46  ;;  %v27518_v46 = vld [vmem:[#allocation47_spill] sm:$0xff] }
 0x885   : > { %v23910_v45 = vpack.c.bf16 %v27509_v9, %v27508_v47  ;;  %v27519_v9 = vld [vmem:[#allocation59_spill] sm:$0xff]  ;;  %v27520_v47 = vld [vmem:[#allocation56_spill] sm:$0xff] }
 0x886   : > { %17194 = vmatmul.mubr.f32.gmra.mrb[54].mxu1 %v27500_v20 }
 0x887   : > { %17196 = vmatprep.mubr.f32.mxu1 %v27501_v2  ;;  %18038 = vmatprep.subr.bf16.mxu1 %v23910_v45  ;;  %v27510_v2 = vld [vmem:[#allocation16_spill] sm:$0xff] }
 0x88a   : > { %17197 = vmatmul.mubr.f32.gmra.mrb[56].mxu1 %v27502_v14  ;;  %v27511_v14 = vld [vmem:[#allocation25_spill] sm:$0xff] }
 0x88b   : > { %17199 = vmatprep.mubr.f32.mxu1 %v27503_v19  ;;  %v27512_v19 = vld [vmem:[#allocation24_spill] sm:$0xff] }
 0x88e   : > { %17200 = vmatmul.mubr.f32.gmra.mrb[58].mxu1 %v27504_v22  ;;  %v27513_v22 = vld [vmem:[#allocation35_spill] sm:$0xff] }
 0x88f   : > { %17202 = vmatprep.mubr.f32.mxu1 %v27505_v56  ;;  %v27514_v56 = vld [vmem:[#allocation31_spill] sm:$0xff] }
 0x892   : > { %17203 = vmatmul.mubr.f32.gmra.mrb[60].mxu1 %v27506_v33  ;;  %v27515_v33 = vld [vmem:[#allocation42_spill] sm:$0xff] }
 0x893   : > { %17205 = vmatprep.mubr.f32.mxu1 %v27507_v24  ;;  %v27516_v24 = vld [vmem:[#allocation41_spill] sm:$0xff] }
 0x896   : > { %17206 = vmatmul.mubr.f32.gmra.mrb[62].mxu1 %v27510_v2  ;;  %v27521_v2 = vld [vmem:[#allocation70_spill] sm:$0xff] }
 0x897   : > { %17208 = vmatprep.mubr.f32.mxu1 %v27511_v14  ;;  %v27522_v14 = vld [vmem:[#allocation64_spill] sm:$0xff] }
 0x89a   : > { %17209 = vmatmul.mubr.f32.gmra.mrb[64].mxu1 %v27512_v19  ;;  %v27523_v19 = vld [vmem:[#allocation74_spill] sm:$0xff] }
 0x89b   : > { %17211 = vmatprep.mubr.f32.mxu1 %v27513_v22  ;;  %v27524_v22 = vld [vmem:[#allocation72_spill] sm:$0xff] }
 0x89e   : > { %17212 = vmatmul.mubr.f32.gmra.mrb[66].mxu1 %v27514_v56  ;;  %v27525_v56 = vld [vmem:[#allocation80_spill] sm:$0xff] }
 0x89f   : > { %17214 = vmatprep.mubr.f32.mxu1 %v27515_v33  ;;  %v27526_v33 = vld [vmem:[#allocation86_spill] sm:$0xff] }
 0x8a2   : > { %17215 = vmatmul.mubr.f32.gmra.mrb[68].mxu1 %v27516_v24  ;;  %v27527_v24 = vld [vmem:[#allocation89_spill] sm:$0xff] }
 0x8a3   : > { %17217 = vmatprep.mubr.f32.mxu1 %v27517_v41  ;;  %v27528_v41 = vld [vmem:[#allocation87_spill] sm:$0xff] }
 0x8a6   : > { %17218 = vmatmul.mubr.f32.gmra.mrb[70].mxu1 %v27518_v46  ;;  %v27529_v46 = vld [vmem:[#allocation95_spill] sm:$0xff] }
 0x8a7   : > { %17220 = vmatprep.mubr.f32.mxu1 %v27519_v9  ;;  %v27530_v9 = vld [vmem:[#allocation102_spill] sm:$0xff] }
 0x8aa   : > { %17221 = vmatmul.mubr.f32.gmra.mrb[72].mxu1 %v27520_v47  ;;  %v27531_v47 = vld [vmem:[#allocation105_spill] sm:$0xff] }
 0x8ab   : > { %17223 = vmatprep.mubr.f32.mxu1 %v27521_v2  ;;  %v27532_v2 = vld [vmem:[#allocation104_spill] sm:$0xff] }
 0x8ae   : > { %17224 = vmatmul.mubr.f32.gmra.mrb[74].mxu1 %v27522_v14  ;;  %v27533_v14 = vld [vmem:[#allocation239_spill] sm:$0xff] }
 0x8af   : > { %17226 = vmatprep.mubr.f32.mxu1 %v27523_v19  ;;  %v27534_v19 = vld [vmem:[#allocation246_spill] sm:$0xff] }
 0x8b2   : > { %17227 = vmatmul.mubr.f32.gmra.mrb[76].mxu1 %v27524_v22  ;;  %v27535_v22 = vld [vmem:[#allocation249_spill] sm:$0xff] }
 0x8b3   : > { %17229 = vmatprep.mubr.f32.mxu1 %v27525_v56  ;;  %v27536_v56 = vld [vmem:[#allocation247_spill] sm:$0xff] }
 0x8b6   : > { %17230 = vmatmul.mubr.f32.gmra.mrb[78].mxu1 %v27526_v33  ;;  %v27537_v33 = vld [vmem:[#allocation255_spill] sm:$0xff] }
 0x8b7   : > { %17232 = vmatprep.mubr.f32.mxu1 %v27527_v24  ;;  %v27538_v24 = vld [vmem:[#allocation111_spill] sm:$0xff] }
 0x8ba   : > { %17233 = vmatmul.mubr.f32.gmra.mrb[80].mxu1 %v27528_v41  ;;  %v27539_v41 = vld [vmem:[#allocation117_spill] sm:$0xff] }
 0x8bb   : > { %17235 = vmatprep.mubr.f32.mxu1 %v27529_v46  ;;  %v27540_v46 = vld [vmem:[#allocation112_spill] sm:$0xff] }
 0x8be   : > { %17236 = vmatmul.mubr.f32.gmra.mrb[82].mxu1 %v27530_v9  ;;  %v27541_v9 = vld [vmem:[#allocation123_spill] sm:$0xff] }
 0x8bf   : > { %17238 = vmatprep.mubr.f32.mxu1 %v27531_v47  ;;  %v27542_v47 = vld [vmem:[#allocation128_spill] sm:$0xff] }
 0x8c2   : > { %17239 = vmatmul.mubr.f32.gmra.mrb[84].mxu1 %v27532_v2  ;;  %v27543_v2 = vld [vmem:[#allocation134_spill] sm:$0xff] }
 0x8c3   : > { %17241 = vmatprep.mubr.f32.mxu1 %v27533_v14  ;;  %v27544_v14 = vld [vmem:[#allocation131_spill] sm:$0xff] }
 0x8c6   : > { %17242 = vmatmul.mubr.f32.gmra.mrb[86].mxu1 %v27534_v19  ;;  %v27545_v19 = vld [vmem:[#allocation146_spill] sm:$0xff] }
 0x8c7   : > { %17244 = vmatprep.mubr.f32.mxu1 %v27535_v22  ;;  %v27546_v22 = vld [vmem:[#allocation135_spill] sm:$0xff] }
 0x8ca   : > { %17245 = vmatmul.mubr.f32.gmra.mrb[88].mxu1 %v27536_v56  ;;  %v27547_v56 = vld [vmem:[#allocation156_spill] sm:$0xff] }
 0x8cb   : > { %17247 = vmatprep.mubr.f32.mxu1 %v27537_v33  ;;  %v27548_v33 = vld [vmem:[#allocation151_spill] sm:$0xff] }
 0x8ce   : > { %17248 = vmatmul.mubr.f32.gmra.mrb[90].mxu1 %v27538_v24  ;;  %v27549_v24 = vld [vmem:[#allocation160_spill] sm:$0xff] }
 0x8cf   : > { %17250 = vmatprep.mubr.f32.mxu1 %v27539_v41  ;;  %v27550_v41 = vld [vmem:[#allocation158_spill] sm:$0xff] }
 0x8d2   : > { %17251 = vmatmul.mubr.f32.gmra.mrb[92].mxu1 %v27540_v46  ;;  %v27551_v46 = vld [vmem:[#allocation172_spill] sm:$0xff] }
 0x8d3   : > { %17253 = vmatprep.mubr.f32.mxu1 %v27541_v9  ;;  %v27552_v9 = vld [vmem:[#allocation171_spill] sm:$0xff] }
 0x8d6   : > { %17254 = vmatmul.mubr.f32.gmra.mrb[94].mxu1 %v27542_v47  ;;  %v27553_v47 = vld [vmem:[#allocation176_spill] sm:$0xff] }
 0x8d7   : > { %17256 = vmatprep.mubr.f32.mxu1 %v27543_v2  ;;  %v27554_v2 = vld [vmem:[#allocation173_spill] sm:$0xff] }
 0x8da   : > { %17257 = vmatmul.mubr.f32.gmra.mrb[96].mxu1 %v27544_v14  ;;  %v27555_v14 = vld [vmem:[#allocation186_spill] sm:$0xff] }
 0x8db   : > { %17259 = vmatprep.mubr.f32.mxu1 %v27545_v19  ;;  %v27556_v19 = vld [vmem:[#allocation181_spill] sm:$0xff] }
 0x8de   : > { %17260 = vmatmul.mubr.f32.gmra.mrb[98].mxu1 %v27546_v22  ;;  %v27557_v22 = vld [vmem:[#allocation196_spill] sm:$0xff] }
 0x8df   : > { %17262 = vmatprep.mubr.f32.mxu1 %v27547_v56  ;;  %v27558_v56 = vld [vmem:[#allocation190_spill] sm:$0xff] }
 0x8e2   : > { %17263 = vmatmul.mubr.f32.gmra.mrb[100].mxu1 %v27548_v33  ;;  %v27559_v33 = vld [vmem:[#allocation203_spill] sm:$0xff] }
 0x8e3   : > { %17265 = vmatprep.mubr.f32.mxu1 %v27549_v24  ;;  %v27560_v24 = vld [vmem:[#allocation201_spill] sm:$0xff] }
 0x8e6   : > { %17266 = vmatmul.mubr.f32.gmra.mrb[102].mxu1 %v27550_v41  ;;  %v27561_v41 = vld [vmem:[#allocation206_spill] sm:$0xff] }
 0x8e7   : > { %17268 = vmatprep.mubr.f32.mxu1 %v27551_v46 }
 0x8ea   : > { %17269 = vmatmul.mubr.f32.gmra.mrb[104].mxu1 %v27552_v9 }
 0x8eb   : > { %17271 = vmatprep.mubr.f32.mxu1 %v27553_v47  ;;  %v27562_v47 = vld [vmem:[#allocation212_spill] sm:$0xff] }
 0x8ee   : > { %17272 = vmatmul.mubr.f32.gmra.mrb[106].mxu1 %v27554_v2 }
 0x8ef   : > { %17274 = vmatprep.mubr.f32.mxu1 %v27555_v14  ;;  %v27563_v14 = vld [vmem:[#allocation221_spill] sm:$0xff] }
 0x8f2   : > { %17275 = vmatmul.mubr.f32.gmra.mrb[108].mxu1 %v27556_v19 }
 0x8f3   : > { %17277 = vmatprep.mubr.f32.mxu1 %v27557_v22 }
 0x8f6   : > { %17278 = vmatmul.mubr.f32.gmra.mrb[110].mxu1 %v27558_v56  ;;  %v27564_v56 = vld [vmem:[#allocation258_spill] sm:$0xff] }
 0x8f7   : > { %17280 = vmatprep.mubr.f32.mxu1 %v27559_v33 }
 0x8fa   : > { %17281 = vmatmul.mubr.f32.gmra.mrb[112].mxu1 %v27560_v24 }
 0x8fb   : > { %17283 = vmatprep.mubr.f32.mxu1 %v27561_v41 }
 0x8fe   : > { %17284 = vmatmul.mubr.f32.gmra.mrb[114].mxu1 %v23551_v21 }
 0x8ff   : > { %17286 = vmatprep.mubr.f32.mxu1 %v23596_v8  ;;  %v27565_v8 = vand.u32 4294901760, %v27440_v54 }
 0x902   : > { %17287 = vmatmul.mubr.f32.gmra.mrb[116].mxu1 %v27562_v47  ;;  %v27566_v47 = vand.u32 4294901760, %v22173_v58  ;;  %v27573_v58 = vand.u32 4294901760, %v27445_v52  ;;  %v27581_v52 = vand.u32 4294901760, %v27455_v0  ;;  %v27617_v0 = vld [vmem:[#allocation154_spill] sm:$0xff] }
 0x903   : > { %17289 = vmatprep.mubr.f32.mxu1 %v23615_v3  ;;  %v27567_v3 = vand.u32 4294901760, %v22179_v6  ;;  %v27574_v6 = vand.u32 4294901760, %v27447_v16  ;;  %v27587_v16 = vand.u32 4294901760, %v27461_v1  ;;  %v27594_v1 = vand.u32 4294901760, %v27468_v44 }
 0x904   : > { %v27601_v44 = vand.u32 4294901760, %v27475_v15  ;;  %v27607_v15 = vld [vmem:[#allocation138_spill] sm:$0xff] }
 0x906   : > { %17290 = vmatmul.mubr.f32.gmra.mrb[118].mxu1 %v27563_v14  ;;  %v18041_v14 = vpack.c.bf16 %v27567_v3, %v27566_v47  ;;  %v27582_v3 = vand.u32 4294901760, %v27456_v4  ;;  %v27590_v4 = vand.u32 4294901760, %v27464_v48  ;;  %v27597_v48 = vand.u32 4294901760, %v27471_v23 }
 0x907   : > { %17292 = vmatprep.mubr.f32.mxu1 %v23639_v50  ;;  %v27568_v50 = vand.u32 4294901760, %v27441_v63  ;;  %v27604_v23 = vand.u32 4294901760, %v27476_v60  ;;  %v27613_v60 = vld [vmem:[#allocation145_spill] sm:$0xff] }
 0x90a   : > { %17293 = vmatmul.mubr.f32.gmra.mrb[120].mxu1 %v23636_v13 }
 0x90b   : > { %17295 = vmatprep.mubr.f32.mxu1 %v27564_v56  ;;  %v27569_v56 = vand.u32 4294901760, %v27442_v34  ;;  %v27580_v34 = vand.u32 4294901760, %v27454_v7  ;;  %v27589_v7 = vand.u32 4294901760, %v27463_v18  ;;  %v27596_v18 = vand.u32 4294901760, %v27470_v17 }
 0x90c   : > { %v27603_v17 = vand.u32 4294901760, %v27351_v43 }
 0x90e   : > { %17296 = vmatmul.mubr.f32.gmra.mrb[122].mxu1 %v23653_v30 }
 0x90f   : > { %17298 = vmatprep.mubr.f32.mxu1 %v23662_v55  ;;  %v27570_v55 = vand.u32 4294901760, %v22991_v53  ;;  %v27576_v53 = vand.u32 4294901760, %v27450_v35  ;;  %v27614_v35 = vand.u32 4294901760, %v27613_v60 }
 0x912   : > { %17299 = vmatmul.mubr.f32.gmra.mrb[124].mxu1 %v23677_v27  ;;  %v27571_v27 = vand.u32 4294901760, %v23001_v32  ;;  %v27577_v32 = vand.u32 4294901760, %v27451_v29 }
 0x913   : > { %17317 = vmatprep.mubr.f32.mxu1 %v27565_v8  ;;  %v27572_v8 = vand.u32 4294901760, %v27444_v61  ;;  %v27578_v61 = vand.u32 4294901760, %v27452_v40  ;;  %v27609_v40 = vld [vmem:[#allocation137_spill] sm:$0xff] }
 0x914   : > { %v18045_v54 = vpack.c.bf16 %v27571_v27, %v27570_v55  ;;  %v27579_v27 = vand.u32 4294901760, %v27453_v10  ;;  %v27585_v55 = vand.u32 4294901760, %v27459_v59  ;;  %v27586_v10 = vand.u32 4294901760, %v27460_v12 }
 0x915   : > { %v27592_v59 = vand.u32 4294901760, %v27466_v62  ;;  %v27593_v12 = vand.u32 4294901760, %v27467_v39  ;;  %v27599_v62 = vand.u32 4294901760, %v27473_v5  ;;  %v27600_v39 = vand.u32 4294901760, %v27474_v37 }
 0x916   : > { %17318 = vmatmul.mubr.f32.vlgmr.msra.gmra.mrb[126].mxu1 %v27568_v50  ;;  %v27575_v50 = vand.u32 4294901760, %v27448_v57  ;;  %v27588_v57 = vand.u32 4294901760, %v27462_v38  ;;  %v27595_v38 = vand.u32 4294901760, %v27469_v36  ;;  %v27602_v36 = vand.u32 4294901760, %v27350_v28  ;;  %v27611_v28 = vld [vmem:[#allocation148_spill] sm:$0xff] }
 0x917   : > { %18040 = vmatpush3.bf16.msra.mxu1 %v23910_v45  ;;  %17320 = vmatprep.mubr.f32.mxu1 %v27569_v56  ;;  %v27583_v56 = vand.u32 4294901760, %v27457_v49  ;;  %v27606_v5 = vand.u32 4294901760, %v27478_v26  ;;  %v27608_v37 = vand.u32 4294901760, %v27607_v15  ;;  %v27610_v29 = vand.u32 4294901760, %v27609_v40  ;;  %v27619_v26 = vld [vmem:[#allocation163_spill] sm:$0xff]  ;;  %v27658_v15 = vld [vmem:[#allocation9_spill] sm:$0xff] }
 0x918   : > { %18042 = vmatprep.subr.bf16.mxu1 %v18041_v14  ;;  %v18049_v63 = vpack.c.bf16 %v27603_v17, %v27602_v36  ;;  %v27612_v43 = vand.u32 4294901760, %v27611_v28  ;;  %v27618_v45 = vand.u32 4294901760, %v27617_v0  ;;  %v27620_v47 = vand.u32 4294901760, %v27619_v26  ;;  %v27652_v36 = vld [vmem:[#allocation245_spill] sm:$0xff]  ;;  %v27660_v40 = vld [vmem:[#allocation4_spill] sm:$0xff] }
 0x919   : > { %v27653_v17 = vand.u32 4294901760, %v27652_v36  ;;  %v27704_v36 = vld [vmem:[#allocation102_spill] sm:$0xff] }
 0x91a   : > { %17321 = vmatmul.mubr.f32.gmra.mrb[0].mxu1 %v27572_v8 }
 0x91b   : > { %17323 = vmatprep.mubr.f32.mxu1 %v27573_v58  ;;  %18044 = vmatpush3.bf16.msra.mxu1 %v18041_v14  ;;  %v27584_v14 = vand.u32 4294901760, %v27458_v51  ;;  %v27591_v51 = vand.u32 4294901760, %v27465_v11  ;;  %v27598_v11 = vand.u32 4294901760, %v27472_v31  ;;  %v27605_v31 = vand.u32 4294901760, %v27477_v25  ;;  %v27615_v25 = vld [vmem:[#allocation155_spill] sm:$0xff]  ;;  %v27623_v58 = vld [vmem:[#allocation170_spill] sm:$0xff] }
 0x91c   : > { %18046 = vmatprep.subr.bf16.mxu1 %v18045_v54  ;;  %v27616_v49 = vand.u32 4294901760, %v27615_v25 }
 0x91e   : > { %17324 = vmatmul.mubr.f32.gmra.mrb[2].mxu1 %v27574_v6  ;;  %v27624_v6 = vand.u32 4294901760, %v27623_v58 }
 0x91f   : > { %17326 = vmatprep.mubr.f32.mxu1 %v27575_v50  ;;  %18048 = vmatpush3.bf16.msra.mxu1 %v18045_v54  ;;  %v27621_v54 = vld [vmem:[#allocation162_spill] sm:$0xff]  ;;  %v27625_v50 = vld [vmem:[#allocation169_spill] sm:$0xff] }
 0x920   : > { %18050 = vmatprep.subr.bf16.mxu1 %v18049_v63  ;;  %v27622_v8 = vand.u32 4294901760, %v27621_v54 }
 0x922   : > { %17327 = vmatmul.mubr.f32.gmra.mrb[4].mxu1 %v27576_v53  ;;  %v27626_v53 = vand.u32 4294901760, %v27625_v50 }
 0x923   : > { %17329 = vmatprep.mubr.f32.mxu1 %v27577_v32  ;;  %18052 = vmatpush3.bf16.msra.mxu1 %v18049_v63  ;;  %v27627_v32 = vld [vmem:[#allocation179_spill] sm:$0xff]  ;;  %v27654_v63 = vld [vmem:[#allocation5_spill] sm:$0xff] }
 0x924   : > { %18054 = vmatprep.subr.bf16.mxu1 %v27354_v42 }
 0x926   : > { %17330 = vmatmul.mubr.f32.gmra.mrb[6].mxu1 %v27578_v61  ;;  %v27628_v61 = vand.u32 4294901760, %v27627_v32 }
 0x927   : > { %17332 = vmatprep.mubr.f32.mxu1 %v27579_v27  ;;  %v27629_v27 = vld [vmem:[#allocation177_spill] sm:$0xff] }
 0x92a   : > { %17333 = vmatmul.mubr.f32.gmra.mrb[8].mxu1 %v27580_v34  ;;  %v27630_v34 = vand.u32 4294901760, %v27629_v27 }
 0x92b   : > { %17335 = vmatprep.mubr.f32.mxu1 %v27581_v52  ;;  %v27631_v52 = vld [vmem:[#allocation187_spill] sm:$0xff] }
 0x92e   : > { %17336 = vmatmul.mubr.f32.gmra.mrb[10].mxu1 %v27582_v3  ;;  %v27632_v3 = vand.u32 4294901760, %v27631_v52 }
 0x92f   : > { %17338 = vmatprep.mubr.f32.mxu1 %v27583_v56  ;;  %v27633_v56 = vld [vmem:[#allocation185_spill] sm:$0xff] }
 0x932   : > { %17339 = vmatmul.mubr.f32.gmra.mrb[12].mxu1 %v27584_v14  ;;  %v27634_v14 = vand.u32 4294901760, %v27633_v56 }
 0x933   : > { %17341 = vmatprep.mubr.f32.mxu1 %v27585_v55  ;;  %v27635_v55 = vld [vmem:[#allocation195_spill] sm:$0xff] }
 0x936   : > { %17342 = vmatmul.mubr.f32.gmra.mrb[14].mxu1 %v27586_v10  ;;  %v27636_v10 = vand.u32 4294901760, %v27635_v55 }
 0x937   : > { %17344 = vmatprep.mubr.f32.mxu1 %v27587_v16  ;;  %v27637_v16 = vld [vmem:[#allocation193_spill] sm:$0xff] }
 0x93a   : > { %17345 = vmatmul.mubr.f32.gmra.mrb[16].mxu1 %v27588_v57  ;;  %v27638_v57 = vand.u32 4294901760, %v27637_v16 }
 0x93b   : > { %17347 = vmatprep.mubr.f32.mxu1 %v27589_v7  ;;  %v27639_v7 = vld [vmem:[#allocation204_spill] sm:$0xff] }
 0x93e   : > { %17348 = vmatmul.mubr.f32.gmra.mrb[18].mxu1 %v27590_v4  ;;  %v27640_v4 = vand.u32 4294901760, %v27639_v7 }
 0x93f   : > { %17350 = vmatprep.mubr.f32.mxu1 %v27591_v51  ;;  %v27641_v51 = vld [vmem:[#allocation202_spill] sm:$0xff] }
 0x942   : > { %17351 = vmatmul.mubr.f32.gmra.mrb[20].mxu1 %v27592_v59  ;;  %v27642_v59 = vand.u32 4294901760, %v27641_v51 }
 0x943   : > { %17353 = vmatprep.mubr.f32.mxu1 %v27593_v12  ;;  %v27643_v12 = vld [vmem:[#allocation210_spill] sm:$0xff] }
 0x946   : > { %17354 = vmatmul.mubr.f32.gmra.mrb[22].mxu1 %v27594_v1  ;;  %v27644_v1 = vand.u32 4294901760, %v27643_v12 }
 0x947   : > { %17356 = vmatprep.mubr.f32.mxu1 %v27595_v38  ;;  %v27645_v38 = vld [vmem:[#allocation209_spill] sm:$0xff] }
 0x94a   : > { %17357 = vmatmul.mubr.f32.gmra.mrb[24].mxu1 %v27596_v18  ;;  %v27646_v18 = vand.u32 4294901760, %v27645_v38 }
 0x94b   : > { %17359 = vmatprep.mubr.f32.mxu1 %v27597_v48  ;;  %v27647_v48 = vld [vmem:[#allocation231_spill] sm:$0xff] }
 0x94e   : > { %17360 = vmatmul.mubr.f32.gmra.mrb[26].mxu1 %v27598_v11  ;;  %v27648_v11 = vand.u32 4294901760, %v27647_v48 }
 0x94f   : > { %17362 = vmatprep.mubr.f32.mxu1 %v27599_v62  ;;  %v27649_v62 = vand.u32 4294901760, %v27500_v20  ;;  %v27662_v20 = vld [vmem:[#allocation19_spill] sm:$0xff] }
 0x950   : > { %v27663_v28 = vand.u32 4294901760, %v27662_v20  ;;  %v27714_v20 = vld [vmem:[#allocation249_spill] sm:$0xff] }
 0x952   : > { %17363 = vmatmul.mubr.f32.gmra.mrb[28].mxu1 %v27600_v39  ;;  %v27650_v39 = vld [vmem:[#allocation248_spill] sm:$0xff] }
 0x953   : > { %17365 = vmatprep.mubr.f32.mxu1 %v27601_v44  ;;  %v27651_v44 = vand.u32 4294901760, %v27650_v39  ;;  %v27702_v39 = vld [vmem:[#allocation95_spill] sm:$0xff] }
 0x956   : > { %17366 = vmatmul.mubr.f32.gmra.mrb[30].mxu1 %v27604_v23  ;;  %v27655_v23 = vand.u32 4294901760, %v27654_v63  ;;  %v27706_v63 = vld [vmem:[#allocation105_spill] sm:$0xff] }
 0x957   : > { %17368 = vmatprep.mubr.f32.mxu1 %v27605_v31  ;;  %v27656_v31 = vld [vmem:[#allocation257_spill] sm:$0xff] }
 0x95a   : > { %17369 = vmatmul.mubr.f32.gmra.mrb[32].mxu1 %v27606_v5  ;;  %v27657_v5 = vand.u32 4294901760, %v27656_v31  ;;  %v27708_v31 = vld [vmem:[#allocation104_spill] sm:$0xff] }
 0x95b   : > { %17371 = vmatprep.mubr.f32.mxu1 %v27608_v37  ;;  %v27659_v37 = vand.u32 4294901760, %v27658_v15  ;;  %v27710_v15 = vld [vmem:[#allocation239_spill] sm:$0xff] }
 0x95e   : > { %17372 = vmatmul.mubr.f32.gmra.mrb[34].mxu1 %v27610_v29  ;;  %v27661_v29 = vand.u32 4294901760, %v27660_v40  ;;  %v27712_v40 = vld [vmem:[#allocation246_spill] sm:$0xff] }
 0x95f   : > { %17374 = vmatprep.mubr.f32.mxu1 %v27612_v43  ;;  %v27664_v43 = vld [vmem:[#allocation16_spill] sm:$0xff] }
 0x960   : > { %v27665_v60 = vand.u32 4294901760, %v27664_v43  ;;  %v27716_v43 = vld [vmem:[#allocation247_spill] sm:$0xff] }
 0x962   : > { %17375 = vmatmul.mubr.f32.gmra.mrb[36].mxu1 %v27614_v35  ;;  %v27666_v35 = vld [vmem:[#allocation25_spill] sm:$0xff] }
 0x963   : > { %17377 = vmatprep.mubr.f32.mxu1 %v27616_v49  ;;  %v27667_v25 = vand.u32 4294901760, %v27666_v35  ;;  %v27668_v49 = vld [vmem:[#allocation24_spill] sm:$0xff]  ;;  %v27718_v35 = vld [vmem:[#allocation255_spill] sm:$0xff] }
 0x964   : > { %v27669_v0 = vand.u32 4294901760, %v27668_v49  ;;  %v27720_v49 = vld [vmem:[#allocation111_spill] sm:$0xff] }
 0x966   : > { %17378 = vmatmul.mubr.f32.gmra.mrb[38].mxu1 %v27618_v45  ;;  %v27670_v45 = vld [vmem:[#allocation35_spill] sm:$0xff] }
 0x967   : > { %17380 = vmatprep.mubr.f32.mxu1 %v27620_v47  ;;  %v27671_v26 = vand.u32 4294901760, %v27670_v45  ;;  %v27672_v47 = vld [vmem:[#allocation31_spill] sm:$0xff]  ;;  %v27722_v45 = vld [vmem:[#allocation117_spill] sm:$0xff] }
 0x968   : > { %v27673_v54 = vand.u32 4294901760, %v27672_v47  ;;  %v27724_v47 = vld [vmem:[#allocation112_spill] sm:$0xff] }
 0x96a   : > { %17381 = vmatmul.mubr.f32.gmra.mrb[40].mxu1 %v27622_v8  ;;  %v27674_v8 = vld [vmem:[#allocation42_spill] sm:$0xff] }
 0x96b   : > { %17383 = vmatprep.mubr.f32.mxu1 %v27624_v6  ;;  %v27675_v58 = vand.u32 4294901760, %v27674_v8  ;;  %v27676_v6 = vld [vmem:[#allocation41_spill] sm:$0xff]  ;;  %v27726_v8 = vld [vmem:[#allocation123_spill] sm:$0xff] }
 0x96c   : > { %v27677_v50 = vand.u32 4294901760, %v27676_v6  ;;  %v27728_v6 = vld [vmem:[#allocation128_spill] sm:$0xff] }
 0x96e   : > { %17384 = vmatmul.mubr.f32.gmra.mrb[42].mxu1 %v27626_v53  ;;  %v27678_v53 = vld [vmem:[#allocation51_spill] sm:$0xff] }
 0x96f   : > { %17386 = vmatprep.mubr.f32.mxu1 %v27628_v61  ;;  %v27679_v32 = vand.u32 4294901760, %v27678_v53  ;;  %v27680_v61 = vld [vmem:[#allocation47_spill] sm:$0xff]  ;;  %v27730_v53 = vld [vmem:[#allocation134_spill] sm:$0xff] }
 0x970   : > { %v27681_v27 = vand.u32 4294901760, %v27680_v61  ;;  %v27732_v61 = vld [vmem:[#allocation131_spill] sm:$0xff] }
 0x972   : > { %17387 = vmatmul.mubr.f32.gmra.mrb[44].mxu1 %v27630_v34  ;;  %v27682_v34 = vld [vmem:[#allocation59_spill] sm:$0xff] }
 0x973   : > { %17389 = vmatprep.mubr.f32.mxu1 %v27632_v3  ;;  %v27683_v52 = vand.u32 4294901760, %v27682_v34  ;;  %v27684_v3 = vld [vmem:[#allocation56_spill] sm:$0xff]  ;;  %v27734_v34 = vld [vmem:[#allocation146_spill] sm:$0xff] }
 0x974   : > { %v27685_v56 = vand.u32 4294901760, %v27684_v3  ;;  %v27736_v3 = vld [vmem:[#allocation135_spill] sm:$0xff] }
 0x976   : > { %17390 = vmatmul.mubr.f32.gmra.mrb[46].mxu1 %v27634_v14  ;;  %v27686_v14 = vld [vmem:[#allocation70_spill] sm:$0xff] }
 0x977   : > { %17392 = vmatprep.mubr.f32.mxu1 %v27636_v10  ;;  %v27687_v55 = vand.u32 4294901760, %v27686_v14  ;;  %v27688_v10 = vld [vmem:[#allocation64_spill] sm:$0xff] }
 0x978   : > { %v27689_v16 = vand.u32 4294901760, %v27688_v10  ;;  %v27738_v14 = vld [vmem:[#allocation156_spill] sm:$0xff]  ;;  %v27740_v10 = vld [vmem:[#allocation151_spill] sm:$0xff] }
 0x97a   : > { %17393 = vmatmul.mubr.f32.gmra.mrb[48].mxu1 %v27638_v57  ;;  %v27690_v57 = vld [vmem:[#allocation74_spill] sm:$0xff] }
 0x97b   : > { %17395 = vmatprep.mubr.f32.mxu1 %v27640_v4  ;;  %v27691_v7 = vand.u32 4294901760, %v27690_v57  ;;  %v27692_v4 = vld [vmem:[#allocation72_spill] sm:$0xff] }
 0x97c   : > { %v27693_v51 = vand.u32 4294901760, %v27692_v4  ;;  %v27742_v57 = vld [vmem:[#allocation160_spill] sm:$0xff]  ;;  %v27744_v4 = vld [vmem:[#allocation158_spill] sm:$0xff] }
 0x97e   : > { %17396 = vmatmul.mubr.f32.gmra.mrb[50].mxu1 %v27642_v59  ;;  %v27694_v59 = vld [vmem:[#allocation80_spill] sm:$0xff] }
 0x97f   : > { %17398 = vmatprep.mubr.f32.mxu1 %v27644_v1  ;;  %v27695_v12 = vand.u32 4294901760, %v27694_v59  ;;  %v27696_v1 = vld [vmem:[#allocation86_spill] sm:$0xff]  ;;  %v27746_v59 = vand.u32 4294901760, %v27551_v46 }
 0x980   : > { %v27697_v38 = vand.u32 4294901760, %v27696_v1  ;;  %v27748_v1 = vld [vmem:[#allocation176_spill] sm:$0xff]  ;;  %v27755_v46 = vld [vmem:[#allocation190_spill] sm:$0xff] }
 0x982   : > { %17399 = vmatmul.mubr.f32.gmra.mrb[52].mxu1 %v27646_v18  ;;  %v27698_v18 = vld [vmem:[#allocation89_spill] sm:$0xff] }
 0x983   : > { %17401 = vmatprep.mubr.f32.mxu1 %v27648_v11  ;;  %v27699_v48 = vand.u32 4294901760, %v27698_v18  ;;  %v27700_v11 = vld [vmem:[#allocation87_spill] sm:$0xff]  ;;  %v27750_v18 = vand.u32 4294901760, %v27554_v2  ;;  %v27759_v2 = vand.u32 4294901760, %v27561_v41  ;;  %v27771_v41 = vand.u32 4294901760, %v23636_v13  ;;  %v27781_v13 = vld [vmem:[#allocation26_spill] sm:$0xff] }
 0x986   : > { %17402 = vmatmul.mubr.f32.gmra.mrb[54].mxu1 %v27649_v62  ;;  %v27701_v62 = vand.u32 4294901760, %v27700_v11 }
 0x987   : > { %17404 = vmatprep.mubr.f32.mxu1 %v27651_v44  ;;  %v27703_v44 = vand.u32 4294901760, %v27702_v39  ;;  %v27754_v39 = vand.u32 4294901760, %v27557_v22  ;;  %v27763_v22 = vld [vmem:[#allocation212_spill] sm:$0xff] }
 0x98a   : > { %17405 = vmatmul.mubr.f32.gmra.mrb[56].mxu1 %v27653_v17  ;;  %v27705_v17 = vand.u32 4294901760, %v27704_v36  ;;  %v27758_v36 = vand.u32 4294901760, %v27560_v24  ;;  %v27769_v24 = vld [vmem:[#allocation235_spill] sm:$0xff] }
 0x98b   : > { %17407 = vmatprep.mubr.f32.mxu1 %v27655_v23  ;;  %v27707_v23 = vand.u32 4294901760, %v27706_v63 }
 0x98e   : > { %17408 = vmatmul.mubr.f32.gmra.mrb[58].mxu1 %v27657_v5  ;;  %v27709_v5 = vand.u32 4294901760, %v27708_v31  ;;  %v27765_v31 = vld [vmem:[#allocation227_spill] sm:$0xff] }
 0x98f   : > { %17410 = vmatprep.mubr.f32.mxu1 %v27659_v37  ;;  %v27711_v37 = vand.u32 4294901760, %v27710_v15 }
 0x992   : > { %17411 = vmatmul.mubr.f32.gmra.mrb[60].mxu1 %v27661_v29  ;;  %v27713_v29 = vand.u32 4294901760, %v27712_v40 }
 0x993   : > { %17413 = vmatprep.mubr.f32.mxu1 %v27663_v28  ;;  %v27715_v28 = vand.u32 4294901760, %v27714_v20  ;;  %v27775_v20 = vld [vmem:[#allocation261_spill] sm:$0xff] }
 0x996   : > { %17414 = vmatmul.mubr.f32.gmra.mrb[62].mxu1 %v27665_v60  ;;  %v27717_v60 = vand.u32 4294901760, %v27716_v43  ;;  %v27777_v43 = vld [vmem:[#allocation262_spill] sm:$0xff] }
 0x997   : > { %17416 = vmatprep.mubr.f32.mxu1 %v27667_v25  ;;  %v27719_v25 = vand.u32 4294901760, %v27718_v35  ;;  %v27779_v35 = vld [vmem:[#allocation17_spill] sm:$0xff] }
 0x99a   : > { %17417 = vmatmul.mubr.f32.gmra.mrb[64].mxu1 %v27669_v0  ;;  %v27721_v0 = vand.u32 4294901760, %v27720_v49  ;;  %v27782_v49 = vld [vmem:[#allocation10_spill] sm:$0xff] }
 0x99b   : > { %17419 = vmatprep.mubr.f32.mxu1 %v27671_v26  ;;  %v27723_v26 = vand.u32 4294901760, %v27722_v45  ;;  %v27785_v45 = vld [vmem:[#allocation11_spill] sm:$0xff] }
 0x99e   : > { %17420 = vmatmul.mubr.f32.gmra.mrb[66].mxu1 %v27673_v54  ;;  %v27725_v54 = vand.u32 4294901760, %v27724_v47  ;;  %v27787_v47 = vld [vmem:[#allocation40_spill] sm:$0xff] }
 0x99f   : > { %17422 = vmatprep.mubr.f32.mxu1 %v27675_v58  ;;  %v27727_v58 = vand.u32 4294901760, %v27726_v8  ;;  %v27790_v8 = vld [vmem:[#allocation49_spill] sm:$0xff] }
 0x9a2   : > { %17423 = vmatmul.mubr.f32.gmra.mrb[68].mxu1 %v27677_v50  ;;  %v27729_v50 = vand.u32 4294901760, %v27728_v6  ;;  %v27792_v6 = vld [vmem:[#allocation57_spill] sm:$0xff] }
 0x9a3   : > { %17425 = vmatprep.mubr.f32.mxu1 %v27679_v32  ;;  %v27731_v32 = vand.u32 4294901760, %v27730_v53  ;;  %v27794_v53 = vld [vmem:[#allocation66_spill] sm:$0xff] }
 0x9a6   : > { %17426 = vmatmul.mubr.f32.gmra.mrb[70].mxu1 %v27681_v27  ;;  %v27733_v27 = vand.u32 4294901760, %v27732_v61  ;;  %v27796_v61 = vld [vmem:[#allocation73_spill] sm:$0xff] }
 0x9a7   : > { %17428 = vmatprep.mubr.f32.mxu1 %v27683_v52  ;;  %v27735_v52 = vand.u32 4294901760, %v27734_v34  ;;  %v27798_v34 = vld [vmem:[#allocation81_spill] sm:$0xff] }
 0x9aa   : > { %17429 = vmatmul.mubr.f32.gmra.mrb[72].mxu1 %v27685_v56  ;;  %v27737_v56 = vand.u32 4294901760, %v27736_v3  ;;  %v27800_v3 = vld [vmem:[#allocation219_spill] sm:$0xff] }
 0x9ab   : > { %17431 = vmatprep.mubr.f32.mxu1 %v27687_v55  ;;  %v27739_v55 = vand.u32 4294901760, %v27738_v14  ;;  %v27802_v14 = vld [vmem:[#allocation226_spill] sm:$0xff] }
 0x9ae   : > { %17432 = vmatmul.mubr.f32.gmra.mrb[74].mxu1 %v27689_v16  ;;  %v27741_v16 = vand.u32 4294901760, %v27740_v10  ;;  %v27804_v10 = vld [vmem:[#allocation237_spill] sm:$0xff] }
 0x9af   : > { %17434 = vmatprep.mubr.f32.mxu1 %v27691_v7  ;;  %v27743_v7 = vand.u32 4294901760, %v27742_v57  ;;  %v27806_v57 = vld [vmem:[#allocation85_spill] sm:$0xff] }
 0x9b2   : > { %17435 = vmatmul.mubr.f32.gmra.mrb[76].mxu1 %v27693_v51  ;;  %v27745_v51 = vand.u32 4294901760, %v27744_v4  ;;  %v27808_v4 = vld [vmem:[#allocation92_spill] sm:$0xff] }
 0x9b3   : > { %17437 = vmatprep.mubr.f32.mxu1 %v27695_v12  ;;  %v27747_v12 = vand.u32 4294901760, %v27552_v9  ;;  %v27757_v9 = vand.u32 4294901760, %v27559_v33  ;;  %v27767_v33 = vld [vmem:[#allocation221_spill] sm:$0xff] }
 0x9b4   : > { %v27768_v15 = vand.u32 4294901760, %v27767_v33  ;;  %v27831_v33 = vld [vmem:[#allocation182_spill] sm:$0xff] }
 0x9b6   : > { %17438 = vmatmul.mubr.f32.gmra.mrb[78].mxu1 %v27697_v38  ;;  %v27749_v38 = vand.u32 4294901760, %v27748_v1  ;;  %v27812_v1 = vld [vmem:[#allocation110_spill] sm:$0xff] }
 0x9b7   : > { %17440 = vmatprep.mubr.f32.mxu1 %v27699_v48  ;;  %v27751_v48 = vld [vmem:[#allocation186_spill] sm:$0xff] }
 0x9b8   : > { %v27752_v11 = vand.u32 4294901760, %v27751_v48  ;;  %v27815_v48 = vld [vmem:[#allocation115_spill] sm:$0xff] }
 0x9ba   : > { %17441 = vmatmul.mubr.f32.gmra.mrb[80].mxu1 %v27701_v62  ;;  %v27753_v62 = vand.u32 4294901760, %v27556_v19  ;;  %v27761_v19 = vld [vmem:[#allocation216_spill] sm:$0xff] }
 0x9bb   : > { %17443 = vmatprep.mubr.f32.mxu1 %v27703_v44  ;;  %v27756_v44 = vand.u32 4294901760, %v27755_v46  ;;  %v27762_v63 = vand.u32 4294901760, %v27761_v19  ;;  %v27819_v46 = vld [vmem:[#allocation133_spill] sm:$0xff] }
 0x9bc   : > { %v27825_v19 = vld [vmem:[#allocation157_spill] sm:$0xff] }
 0x9be   : > { %17444 = vmatmul.mubr.f32.gmra.mrb[82].mxu1 %v27705_v17  ;;  %v27760_v17 = vand.u32 4294901760, %v23551_v21  ;;  %v27772_v21 = vld [vmem:[#allocation258_spill] sm:$0xff] }
 0x9bf   : > { %17446 = vmatprep.mubr.f32.mxu1 %v27707_v23  ;;  %v27764_v23 = vand.u32 4294901760, %v27763_v22  ;;  %v27773_v40 = vand.u32 4294901760, %v27772_v21  ;;  %v27827_v22 = vld [vmem:[#allocation165_spill] sm:$0xff]  ;;  %v27836_v21 = vld [vmem:[#allocation207_spill] sm:$0xff] }
 0x9c2   : > { %17447 = vmatmul.mubr.f32.gmra.mrb[84].mxu1 %v27709_v5  ;;  %v27766_v5 = vand.u32 4294901760, %v27765_v31  ;;  %v27829_v31 = vld [vmem:[#allocation174_spill] sm:$0xff] }
 0x9c3   : > { %17449 = vmatprep.mubr.f32.mxu1 %v27711_v37  ;;  %v27770_v37 = vand.u32 4294901760, %v27769_v24  ;;  %v27833_v24 = vld [vmem:[#allocation189_spill] sm:$0xff] }
 0x9c6   : > { %17450 = vmatmul.mubr.f32.gmra.mrb[86].mxu1 %v27713_v29  ;;  %v27774_v29 = vand.u32 4294901760, %v23653_v30  ;;  %v27784_v30 = vld [vmem:[#allocation33_spill] sm:$0xff] }
 0x9c7   : > { %17452 = vmatprep.mubr.f32.mxu1 %v27715_v28  ;;  %v27776_v28 = vand.u32 4294901760, %v27775_v20  ;;  %v27839_v20 = vld [vmem:[#allocation214_spill] sm:$0xff] }
 0x9ca   : > { %17453 = vmatmul.mubr.f32.gmra.mrb[88].mxu1 %v27717_v60  ;;  %v27778_v60 = vand.u32 4294901760, %v27777_v43  ;;  %v27841_v43 = vld [vmem:[#allocation241_spill] sm:$0xff] }
 0x9cb   : > { %17455 = vmatprep.mubr.f32.mxu1 %v27719_v25  ;;  %v27780_v25 = vld [vmem:[#allocation15_spill] sm:$0xff] }
 0x9ce   : > { %17456 = vmatmul.mubr.f32.gmra.mrb[90].mxu1 %v27721_v0  ;;  %v27783_v0 = vld [vmem:[#allocation23_spill] sm:$0xff] }
 0x9cf   : > { %17458 = vmatprep.mubr.f32.mxu1 %v27723_v26  ;;  %v27786_v26 = vld [vmem:[#allocation32_spill] sm:$0xff] }
 0x9d2   : > { %17459 = vmatmul.mubr.f32.gmra.mrb[92].mxu1 %v27725_v54  ;;  %v27788_v54 = vld [vmem:[#allocation12_spill] sm:$0xff] }
 0x9d3   : > { %17461 = vmatprep.mubr.f32.mxu1 %v27727_v58  ;;  %v27791_v58 = vld [vmem:[#allocation48_spill] sm:$0xff] }
 0x9d6   : > { %17462 = vmatmul.mubr.f32.gmra.mrb[94].mxu1 %v27729_v50  ;;  %v27793_v50 = vld [vmem:[#allocation55_spill] sm:$0xff] }
 0x9d7   : > { %17464 = vmatprep.mubr.f32.mxu1 %v27731_v32  ;;  %v27795_v32 = vld [vmem:[#allocation62_spill] sm:$0xff] }
 0x9da   : > { %17465 = vmatmul.mubr.f32.gmra.mrb[96].mxu1 %v27733_v27  ;;  %v27797_v27 = vld [vmem:[#allocation71_spill] sm:$0xff] }
 0x9db   : > { %17467 = vmatprep.mubr.f32.mxu1 %v27735_v52  ;;  %v27799_v52 = vld [vmem:[#allocation78_spill] sm:$0xff] }
 0x9de   : > { %17468 = vmatmul.mubr.f32.gmra.mrb[98].mxu1 %v27737_v56  ;;  %v27801_v56 = vld [vmem:[#allocation3_spill] sm:$0xff] }
 0x9df   : > { %17470 = vmatprep.mubr.f32.mxu1 %v27739_v55  ;;  %v27803_v55 = vld [vmem:[#allocation225_spill] sm:$0xff] }
 0x9e2   : > { %17471 = vmatmul.mubr.f32.gmra.mrb[100].mxu1 %v27741_v16  ;;  %v27805_v16 = vld [vmem:[#allocation236_spill] sm:$0xff] }
 0x9e3   : > { %17473 = vmatprep.mubr.f32.mxu1 %v27743_v7  ;;  %v27807_v7 = vld [vmem:[#allocation83_spill] sm:$0xff] }
 0x9e6   : > { %17474 = vmatmul.mubr.f32.gmra.mrb[102].mxu1 %v27745_v51  ;;  %v27809_v51 = vld [vmem:[#allocation91_spill] sm:$0xff] }
 0x9e7   : > { %17476 = vmatprep.mubr.f32.mxu1 %v27746_v59  ;;  %v27810_v59 = vld [vmem:[#allocation101_spill] sm:$0xff] }
 0x9ea   : > { %17477 = vmatmul.mubr.f32.gmra.mrb[104].mxu1 %v27747_v12  ;;  %v27811_v12 = vld [vmem:[#allocation98_spill] sm:$0xff] }
 0x9eb   : > { %17479 = vmatprep.mubr.f32.mxu1 %v27749_v38  ;;  %v27813_v38 = vld [vmem:[#allocation109_spill] sm:$0xff] }
 0x9ee   : > { %17480 = vmatmul.mubr.f32.gmra.mrb[106].mxu1 %v27750_v18  ;;  %v27814_v18 = vld [vmem:[#allocation116_spill] sm:$0xff] }
 0x9ef   : > { %17482 = vmatprep.mubr.f32.mxu1 %v27752_v11  ;;  %v27816_v11 = vld [vmem:[#allocation127_spill] sm:$0xff] }
 0x9f2   : > { %17483 = vmatmul.mubr.f32.gmra.mrb[108].mxu1 %v27753_v62  ;;  %v27817_v62 = vld [vmem:[#allocation125_spill] sm:$0xff] }
 0x9f3   : > { %17485 = vmatprep.mubr.f32.mxu1 %v27754_v39  ;;  %v27818_v39 = vld [vmem:[#allocation136_spill] sm:$0xff] }
 0x9f6   : > { %17486 = vmatmul.mubr.f32.gmra.mrb[110].mxu1 %v27756_v44  ;;  %v27820_v44 = vld [vmem:[#allocation143_spill] sm:$0xff] }
 0x9f7   : > { %17488 = vmatprep.mubr.f32.mxu1 %v27757_v9  ;;  %v27821_v9 = vld [vmem:[#allocation142_spill] sm:$0xff] }
 0x9fa   : > { %17489 = vmatmul.mubr.f32.gmra.mrb[112].mxu1 %v27758_v36  ;;  %v27822_v36 = vld [vmem:[#allocation150_spill] sm:$0xff] }
 0x9fb   : > { %17491 = vmatprep.mubr.f32.mxu1 %v27759_v2  ;;  %v27823_v2 = vld [vmem:[#allocation149_spill] sm:$0xff] }
 0x9fe   : > { %17492 = vmatmul.mubr.f32.gmra.mrb[114].mxu1 %v27760_v17  ;;  %v27824_v17 = vld [vmem:[#allocation159_spill] sm:$0xff] }
 0x9ff   : > { %17494 = vmatprep.mubr.f32.mxu1 %v27762_v63  ;;  %v27826_v63 = vld [vmem:[#allocation168_spill] sm:$0xff] }
 0xa02   : > { %17495 = vmatmul.mubr.f32.gmra.mrb[116].mxu1 %v27764_v23  ;;  %v27828_v23 = vld [vmem:[#allocation175_spill] sm:$0xff] }
 0xa03   : > { %17497 = vmatprep.mubr.f32.mxu1 %v27766_v5  ;;  %v27830_v5 = vld [vmem:[#allocation184_spill] sm:$0xff] }
 0xa06   : > { %17498 = vmatmul.mubr.f32.gmra.mrb[118].mxu1 %v27768_v15  ;;  %v27832_v15 = vld [vmem:[#allocation191_spill] sm:$0xff] }
 0xa07   : > { %17500 = vmatprep.mubr.f32.mxu1 %v27770_v37  ;;  %v27834_v37 = vld [vmem:[#allocation199_spill] sm:$0xff] }
 0xa0a   : > { %17501 = vmatmul.mubr.f32.gmra.mrb[120].mxu1 %v27771_v41  ;;  %v27835_v41 = vld [vmem:[#allocation197_spill] sm:$0xff] }
 0xa0b   : > { %17503 = vmatprep.mubr.f32.mxu1 %v27773_v40  ;;  %v27837_v40 = vld [vmem:[#allocation205_spill] sm:$0xff] }
 0xa0e   : > { %17504 = vmatmul.mubr.f32.gmra.mrb[122].mxu1 %v27774_v29  ;;  %v27838_v29 = vld [vmem:[#allocation215_spill] sm:$0xff] }
 0xa0f   : > { %17506 = vmatprep.mubr.f32.mxu1 %v27776_v28  ;;  %v27840_v28 = vld [vmem:[#allocation244_spill] sm:$0xff] }
 0xa12   : > { %17507 = vmatmul.mubr.f32.gmra.mrb[124].mxu1 %v27778_v60  ;;  %v27842_v60 = vld [vmem:[#allocation254_spill] sm:$0xff] }
 0xa13   : > { %17525 = vmatprep.mubr.f32.mxu1 %v27779_v35 }
 0xa16   : > { %17526 = vmatmul.mubr.f32.vlgmr.msra.gmra.mrb[126].mxu1 %v27780_v25 }
 0xa17   : > { %18056 = vmatpush3.bf16.msra.mxu1 %v27354_v42  ;;  %17528 = vmatprep.mubr.f32.mxu1 %v27781_v13  ;;  %v27789_v42 = vld [vmem:[#allocation39_spill] sm:$0xff] }
 0xa18   : > { %18058 = vmatprep.subr.bf16.mxu1 %v27782_v49 }
 0xa1a   : > { %17529 = vmatmul.mubr.f32.gmra.mrb[0].mxu1 %v27783_v0 }
 0xa1b   : > { %17531 = vmatprep.mubr.f32.mxu1 %v27784_v30  ;;  %18060 = vmatpush3.bf16.msra.mxu1 %v27782_v49  ;;  %v27843_v49 = vld [vmem:[#allocation250_spill] sm:$0xff] }
 0xa1c   : > { %18062 = vmatprep.subr.bf16.mxu1 %v27785_v45 }
 0xa1e   : > { %17532 = vmatmul.mubr.f32.gmra.mrb[2].mxu1 %v27786_v26 }
 0xa1f   : > { %17534 = vmatprep.mubr.f32.mxu1 %v27787_v47  ;;  %18064 = vmatpush3.bf16.msra.mxu1 %v27785_v45  ;;  %v27844_v45 = vld [vmem:[#allocation7_spill] sm:$0xff] }
 0xa20   : > { %18066 = vmatprep.subr.bf16.mxu1 %v27788_v54 }
 0xa22   : > { %17535 = vmatmul.mubr.f32.gmra.mrb[4].mxu1 %v27789_v42 }
 0xa23   : > { %17537 = vmatprep.mubr.f32.mxu1 %v27790_v8  ;;  %18068 = vmatpush3.bf16.msra.mxu1 %v27788_v54  ;;  %v27845_v54 = vld [vmem:[#allocation6_spill] sm:$0xff] }
 0xa26   : > { %17538 = vmatmul.mubr.f32.gmra.mrb[6].mxu1 %v27791_v58 }
 0xa27   : > { %17540 = vmatprep.mubr.f32.mxu1 %v27792_v6 }
 0xa2a   : > { %17541 = vmatmul.mubr.f32.gmra.mrb[8].mxu1 %v27793_v50 }
 0xa2b   : > { %17543 = vmatprep.mubr.f32.mxu1 %v27794_v53 }
 0xa2e   : > { %17544 = vmatmul.mubr.f32.gmra.mrb[10].mxu1 %v27795_v32 }
 0xa2f   : > { %17546 = vmatprep.mubr.f32.mxu1 %v27796_v61 }
 0xa32   : > { %17547 = vmatmul.mubr.f32.gmra.mrb[12].mxu1 %v27797_v27 }
 0xa33   : > { %17549 = vmatprep.mubr.f32.mxu1 %v27798_v34 }
 0xa36   : > { %17550 = vmatmul.mubr.f32.gmra.mrb[14].mxu1 %v27799_v52 }
 0xa37   : > { %17552 = vmatprep.mubr.f32.mxu1 %v27800_v3 }
 0xa3a   : > { %17553 = vmatmul.mubr.f32.gmra.mrb[16].mxu1 %v27801_v56 }
 0xa3b   : > { %17555 = vmatprep.mubr.f32.mxu1 %v27802_v14 }
 0xa3e   : > { %17556 = vmatmul.mubr.f32.gmra.mrb[18].mxu1 %v27803_v55 }
 0xa3f   : > { %17558 = vmatprep.mubr.f32.mxu1 %v27804_v10 }
 0xa42   : > { %17559 = vmatmul.mubr.f32.gmra.mrb[20].mxu1 %v27805_v16 }
 0xa43   : > { %17561 = vmatprep.mubr.f32.mxu1 %v27806_v57 }
 0xa46   : > { %17562 = vmatmul.mubr.f32.gmra.mrb[22].mxu1 %v27807_v7 }
 0xa47   : > { %17564 = vmatprep.mubr.f32.mxu1 %v27808_v4 }
 0xa4a   : > { %17565 = vmatmul.mubr.f32.gmra.mrb[24].mxu1 %v27809_v51 }
 0xa4b   : > { %17567 = vmatprep.mubr.f32.mxu1 %v27810_v59 }
 0xa4e   : > { %17568 = vmatmul.mubr.f32.gmra.mrb[26].mxu1 %v27811_v12 }
 0xa4f   : > { %17570 = vmatprep.mubr.f32.mxu1 %v27812_v1 }
 0xa52   : > { %17571 = vmatmul.mubr.f32.gmra.mrb[28].mxu1 %v27813_v38 }
 0xa53   : > { %17573 = vmatprep.mubr.f32.mxu1 %v27814_v18 }
 0xa56   : > { %17574 = vmatmul.mubr.f32.gmra.mrb[30].mxu1 %v27815_v48 }
 0xa57   : > { %17576 = vmatprep.mubr.f32.mxu1 %v27816_v11 }
 0xa5a   : > { %17577 = vmatmul.mubr.f32.gmra.mrb[32].mxu1 %v27817_v62 }
 0xa5b   : > { %17579 = vmatprep.mubr.f32.mxu1 %v27818_v39 }
 0xa5e   : > { %17580 = vmatmul.mubr.f32.gmra.mrb[34].mxu1 %v27819_v46 }
 0xa5f   : > { %17582 = vmatprep.mubr.f32.mxu1 %v27820_v44 }
 0xa62   : > { %17583 = vmatmul.mubr.f32.gmra.mrb[36].mxu1 %v27821_v9 }
 0xa63   : > { %17585 = vmatprep.mubr.f32.mxu1 %v27822_v36 }
 0xa66   : > { %17586 = vmatmul.mubr.f32.gmra.mrb[38].mxu1 %v27823_v2 }
 0xa67   : > { %17588 = vmatprep.mubr.f32.mxu1 %v27824_v17 }
 0xa6a   : > { %17589 = vmatmul.mubr.f32.gmra.mrb[40].mxu1 %v27825_v19 }
 0xa6b   : > { %17591 = vmatprep.mubr.f32.mxu1 %v27826_v63 }
 0xa6e   : > { %17592 = vmatmul.mubr.f32.gmra.mrb[42].mxu1 %v27827_v22 }
 0xa6f   : > { %17594 = vmatprep.mubr.f32.mxu1 %v27828_v23 }
 0xa72   : > { %17595 = vmatmul.mubr.f32.gmra.mrb[44].mxu1 %v27829_v31 }
 0xa73   : > { %17597 = vmatprep.mubr.f32.mxu1 %v27830_v5 }
 0xa76   : > { %17598 = vmatmul.mubr.f32.gmra.mrb[46].mxu1 %v27831_v33 }
 0xa77   : > { %17600 = vmatprep.mubr.f32.mxu1 %v27832_v15 }
 0xa7a   : > { %17601 = vmatmul.mubr.f32.gmra.mrb[48].mxu1 %v27833_v24 }
 0xa7b   : > { %17603 = vmatprep.mubr.f32.mxu1 %v27834_v37 }
 0xa7e   : > { %17604 = vmatmul.mubr.f32.gmra.mrb[50].mxu1 %v27835_v41  ;;  %v27846_v41 = vld [vmem:[#allocation14_spill] sm:$0xff] }
 0xa7f   : > { %17606 = vmatprep.mubr.f32.mxu1 %v27836_v21  ;;  %v27847_v21 = vld [vmem:[#allocation13_spill] sm:$0xff] }
 0xa82   : > { %17607 = vmatmul.mubr.f32.gmra.mrb[52].mxu1 %v27837_v40  ;;  %v27848_v40 = vld [vmem:[#allocation22_spill] sm:$0xff] }
 0xa83   : > { %17609 = vmatprep.mubr.f32.mxu1 %v27838_v29  ;;  %v27849_v29 = vld [vmem:[#allocation21_spill] sm:$0xff] }
 0xa86   : > { %17610 = vmatmul.mubr.f32.gmra.mrb[54].mxu1 %v27839_v20  ;;  %v27850_v20 = vld [vmem:[#allocation30_spill] sm:$0xff] }
 0xa87   : > { %17612 = vmatprep.mubr.f32.mxu1 %v27840_v28  ;;  %v27851_v28 = vld [vmem:[#allocation29_spill] sm:$0xff] }
 0xa8a   : > { %17613 = vmatmul.mubr.f32.gmra.mrb[56].mxu1 %v27841_v43  ;;  %v27852_v43 = vld [vmem:[#allocation38_spill] sm:$0xff] }
 0xa8b   : > { %17615 = vmatprep.mubr.f32.mxu1 %v27842_v60  ;;  %v27853_v60 = vld [vmem:[#allocation37_spill] sm:$0xff] }
 0xa8e   : > { %17616 = vmatmul.mubr.f32.gmra.mrb[58].mxu1 %v27843_v49  ;;  %v27854_v49 = vld [vmem:[#allocation46_spill] sm:$0xff] }
 0xa8f   : > { %17618 = vmatprep.mubr.f32.mxu1 %v27844_v45  ;;  %v27855_v45 = vld [vmem:[#allocation45_spill] sm:$0xff] }
 0xa92   : > { %17619 = vmatmul.mubr.f32.gmra.mrb[60].mxu1 %v27845_v54  ;;  %v27856_v54 = vld [vmem:[#allocation54_spill] sm:$0xff] }
 0xa93   : > { %17621 = vmatprep.mubr.f32.mxu1 %v27846_v41  ;;  %v27857_v41 = vld [vmem:[#allocation53_spill] sm:$0xff] }
 0xa96   : > { %17622 = vmatmul.mubr.f32.gmra.mrb[62].mxu1 %v27847_v21  ;;  %v27858_v21 = vld [vmem:[#allocation63_spill] sm:$0xff] }
 0xa97   : > { %17624 = vmatprep.mubr.f32.mxu1 %v27848_v40  ;;  %v27859_v40 = vld [vmem:[#allocation60_spill] sm:$0xff] }
 0xa9a   : > { %17625 = vmatmul.mubr.f32.gmra.mrb[64].mxu1 %v27849_v29  ;;  %v27860_v29 = vld [vmem:[#allocation69_spill] sm:$0xff] }
 0xa9b   : > { %17627 = vmatprep.mubr.f32.mxu1 %v27850_v20  ;;  %v27861_v20 = vld [vmem:[#allocation65_spill] sm:$0xff] }
 0xa9e   : > { %17628 = vmatmul.mubr.f32.gmra.mrb[66].mxu1 %v27851_v28  ;;  %v27862_v28 = vld [vmem:[#allocation76_spill] sm:$0xff] }
 0xa9f   : > { %17630 = vmatprep.mubr.f32.mxu1 %v27852_v43  ;;  %v27863_v43 = vld [vmem:[#allocation79_spill] sm:$0xff] }
 0xaa2   : > { %17631 = vmatmul.mubr.f32.gmra.mrb[68].mxu1 %v27853_v60  ;;  %v27864_v60 = vld [vmem:[#allocation84_spill] sm:$0xff] }
 0xaa3   : > { %17633 = vmatprep.mubr.f32.mxu1 %v27854_v49  ;;  %v27865_v49 = vld [vmem:[#allocation82_spill] sm:$0xff] }
 0xaa6   : > { %17634 = vmatmul.mubr.f32.gmra.mrb[70].mxu1 %v27855_v45  ;;  %v27866_v45 = vld [vmem:[#allocation93_spill] sm:$0xff] }
 0xaa7   : > { %17636 = vmatprep.mubr.f32.mxu1 %v27856_v54  ;;  %v27867_v54 = vld [vmem:[#allocation94_spill] sm:$0xff] }
 0xaaa   : > { %17637 = vmatmul.mubr.f32.gmra.mrb[72].mxu1 %v27857_v41  ;;  %v27868_v41 = vld [vmem:[#allocation100_spill] sm:$0xff] }
 0xaab   : > { %17639 = vmatprep.mubr.f32.mxu1 %v27858_v21  ;;  %v27869_v21 = vld [vmem:[#allocation99_spill] sm:$0xff] }
 0xaae   : > { %17640 = vmatmul.mubr.f32.gmra.mrb[74].mxu1 %v27859_v40  ;;  %v27870_v40 = vld [vmem:[#allocation107_spill] sm:$0xff] }
 0xaaf   : > { %17642 = vmatprep.mubr.f32.mxu1 %v27860_v29  ;;  %v27871_v29 = vld [vmem:[#allocation238_spill] sm:$0xff] }
 0xab2   : > { %17643 = vmatmul.mubr.f32.gmra.mrb[76].mxu1 %v27861_v20  ;;  %v27872_v20 = vld [vmem:[#allocation243_spill] sm:$0xff] }
 0xab3   : > { %17645 = vmatprep.mubr.f32.mxu1 %v27862_v28  ;;  %v27873_v28 = vld [vmem:[#allocation242_spill] sm:$0xff] }
 0xab6   : > { %17646 = vmatmul.mubr.f32.gmra.mrb[78].mxu1 %v27863_v43  ;;  %v27874_v43 = vld [vmem:[#allocation251_spill] sm:$0xff] }
 0xab7   : > { %17648 = vmatprep.mubr.f32.mxu1 %v27864_v60  ;;  %v27875_v60 = vld [vmem:[#allocation253_spill] sm:$0xff] }
 0xaba   : > { %17649 = vmatmul.mubr.f32.gmra.mrb[80].mxu1 %v27865_v49  ;;  %v27876_v49 = vld [vmem:[#allocation108_spill] sm:$0xff] }
 0xabb   : > { %17651 = vmatprep.mubr.f32.mxu1 %v27866_v45  ;;  %v27877_v45 = vld [vmem:[#allocation256_spill] sm:$0xff] }
 0xabe   : > { %17652 = vmatmul.mubr.f32.gmra.mrb[82].mxu1 %v27867_v54  ;;  %v27878_v54 = vld [vmem:[#allocation118_spill] sm:$0xff] }
 0xabf   : > { %17654 = vmatprep.mubr.f32.mxu1 %v27868_v41  ;;  %v27879_v41 = vld [vmem:[#allocation119_spill] sm:$0xff] }
 0xac2   : > { %17655 = vmatmul.mubr.f32.gmra.mrb[84].mxu1 %v27869_v21  ;;  %v27880_v21 = vld [vmem:[#allocation126_spill] sm:$0xff] }
 0xac3   : > { %17657 = vmatprep.mubr.f32.mxu1 %v27870_v40  ;;  %v27881_v40 = vld [vmem:[#allocation124_spill] sm:$0xff] }
 0xac6   : > { %17658 = vmatmul.mubr.f32.gmra.mrb[86].mxu1 %v27871_v29  ;;  %v27882_v29 = vld [vmem:[#allocation139_spill] sm:$0xff] }
 0xac7   : > { %17660 = vmatprep.mubr.f32.mxu1 %v27872_v20  ;;  %v27883_v20 = vld [vmem:[#allocation129_spill] sm:$0xff] }
 0xaca   : > { %17661 = vmatmul.mubr.f32.gmra.mrb[88].mxu1 %v27873_v28  ;;  %v27884_v28 = vld [vmem:[#allocation147_spill] sm:$0xff] }
 0xacb   : > { %17663 = vmatprep.mubr.f32.mxu1 %v27874_v43  ;;  %v27885_v43 = vld [vmem:[#allocation140_spill] sm:$0xff] }
 0xace   : > { %17664 = vmatmul.mubr.f32.gmra.mrb[90].mxu1 %v27875_v60  ;;  %v27886_v60 = vld [vmem:[#allocation153_spill] sm:$0xff] }
 0xacf   : > { %17666 = vmatprep.mubr.f32.mxu1 %v27876_v49  ;;  %v27887_v49 = vld [vmem:[#allocation152_spill] sm:$0xff] }
 0xad2   : > { %17667 = vmatmul.mubr.f32.gmra.mrb[92].mxu1 %v27877_v45  ;;  %v27888_v45 = vld [vmem:[#allocation164_spill] sm:$0xff] }
 0xad3   : > { %17669 = vmatprep.mubr.f32.mxu1 %v27878_v54  ;;  %v27889_v54 = vld [vmem:[#allocation161_spill] sm:$0xff] }
 0xad6   : > { %17670 = vmatmul.mubr.f32.gmra.mrb[94].mxu1 %v27879_v41  ;;  %v27890_v41 = vld [vmem:[#allocation167_spill] sm:$0xff] }
 0xad7   : > { %17672 = vmatprep.mubr.f32.mxu1 %v27880_v21  ;;  %v27891_v21 = vld [vmem:[#allocation166_spill] sm:$0xff] }
 0xada   : > { %17673 = vmatmul.mubr.f32.gmra.mrb[96].mxu1 %v27881_v40  ;;  %v27892_v40 = vld [vmem:[#allocation180_spill] sm:$0xff] }
 0xadb   : > { %17675 = vmatprep.mubr.f32.mxu1 %v27882_v29  ;;  %v27893_v29 = vld [vmem:[#allocation178_spill] sm:$0xff] }
 0xade   : > { %17676 = vmatmul.mubr.f32.gmra.mrb[98].mxu1 %v27883_v20  ;;  %v27894_v20 = vld [vmem:[#allocation188_spill] sm:$0xff] }
 0xadf   : > { %17678 = vmatprep.mubr.f32.mxu1 %v27884_v28  ;;  %v27895_v28 = vld [vmem:[#allocation183_spill] sm:$0xff] }
 0xae2   : > { %17679 = vmatmul.mubr.f32.gmra.mrb[100].mxu1 %v27885_v43  ;;  %v27896_v43 = vld [vmem:[#allocation194_spill] sm:$0xff] }
 0xae3   : > { %17681 = vmatprep.mubr.f32.mxu1 %v27886_v60  ;;  %v27897_v60 = vld [vmem:[#allocation192_spill] sm:$0xff] }
 0xae6   : > { %17682 = vmatmul.mubr.f32.gmra.mrb[102].mxu1 %v27887_v49  ;;  %v27898_v49 = vld [vmem:[#allocation200_spill] sm:$0xff] }
 0xae7   : > { %17684 = vmatprep.mubr.f32.mxu1 %v27888_v45  ;;  %v27899_v45 = vld [vmem:[#allocation198_spill] sm:$0xff] }
 0xaea   : > { %17685 = vmatmul.mubr.f32.gmra.mrb[104].mxu1 %v27889_v54  ;;  %v27900_v54 = vld [vmem:[#allocation211_spill] sm:$0xff] }
 0xaeb   : > { %17687 = vmatprep.mubr.f32.mxu1 %v27890_v41  ;;  %v27901_v41 = vld [vmem:[#allocation208_spill] sm:$0xff] }
 0xaee   : > { %17688 = vmatmul.mubr.f32.gmra.mrb[106].mxu1 %v27891_v21  ;;  %v27902_v21 = vld [vmem:[#allocation217_spill] sm:$0xff] }
 0xaef   : > { %17690 = vmatprep.mubr.f32.mxu1 %v27892_v40  ;;  %v27903_v40 = vld [vmem:[#allocation213_spill] sm:$0xff] }
 0xaf2   : > { %17691 = vmatmul.mubr.f32.gmra.mrb[108].mxu1 %v27893_v29  ;;  %v27904_v29 = vld [vmem:[#allocation223_spill] sm:$0xff] }
 0xaf3   : > { %17693 = vmatprep.mubr.f32.mxu1 %v27894_v20  ;;  %v27905_v20 = vld [vmem:[#allocation222_spill] sm:$0xff] }
 0xaf6   : > { %17694 = vmatmul.mubr.f32.gmra.mrb[110].mxu1 %v27895_v28  ;;  %v27906_v28 = vld [vmem:[#allocation230_spill] sm:$0xff] }
 0xaf7   : > { %17696 = vmatprep.mubr.f32.mxu1 %v27896_v43  ;;  %v27907_v43 = vld [vmem:[#allocation228_spill] sm:$0xff] }
 0xafa   : > { %17697 = vmatmul.mubr.f32.gmra.mrb[112].mxu1 %v27897_v60  ;;  %v27908_v60 = vld [vmem:[#allocation259_spill] sm:$0xff] }
 0xafb   : > { %17699 = vmatprep.mubr.f32.mxu1 %v27898_v49  ;;  %v27909_v49 = vld [vmem:[#allocation260_spill] sm:$0xff] }
 0xafe   : > { %17700 = vmatmul.mubr.f32.gmra.mrb[114].mxu1 %v27899_v45 }
 0xaff   : > { %17702 = vmatprep.mubr.f32.mxu1 %v27900_v54 }
 0xb02   : > { %17703 = vmatmul.mubr.f32.gmra.mrb[116].mxu1 %v27901_v41 }
 0xb03   : > { %17705 = vmatprep.mubr.f32.mxu1 %v27902_v21 }
 0xb06   : > { %17706 = vmatmul.mubr.f32.gmra.mrb[118].mxu1 %v27903_v40 }
 0xb07   : > { %17708 = vmatprep.mubr.f32.mxu1 %v27904_v29 }
 0xb0a   : > { %17709 = vmatmul.mubr.f32.gmra.mrb[120].mxu1 %v27905_v20 }
 0xb0b   : > { %17711 = vmatprep.mubr.f32.mxu1 %v27906_v28 }
 0xb0e   : > { %17712 = vmatmul.mubr.f32.gmra.mrb[122].mxu1 %v27907_v43 }
 0xb0f   : > { %17714 = vmatprep.mubr.f32.mxu1 %v27908_v60 }
 0xb12   : > { %17715 = vmatmul.mubr.f32.gmra.mrb[124].mxu1 %v27909_v49 }
 0xb13   : > { %17733 = vmatprep.mubr.f32.mxu1 %v27779_v35  ;;  %v27910_v35 = vld [vmem:[#allocation197_spill] sm:$0xff] }
 0xb16   : > { %17734 = vmatmul.mubr.f32.vlgmr.msra.gmra.mrb[126].mxu1 %v27780_v25  ;;  %v27911_v25 = vld [vmem:[#allocation207_spill] sm:$0xff] }
 0xb17   : > { %17736 = vmatprep.mubr.f32.mxu1 %v27781_v13  ;;  %v27912_v13 = vld [vmem:[#allocation205_spill] sm:$0xff] }
 0xb1a   : > { %17737 = vmatmul.mubr.f32.gmra.mrb[0].mxu1 %v27783_v0  ;;  %v27913_v0 = vld [vmem:[#allocation215_spill] sm:$0xff] }
 0xb1b   : > { %17739 = vmatprep.mubr.f32.mxu1 %v27784_v30  ;;  %v27914_v30 = vld [vmem:[#allocation214_spill] sm:$0xff] }
 0xb1e   : > { %17740 = vmatmul.mubr.f32.gmra.mrb[2].mxu1 %v27786_v26  ;;  %v27915_v26 = vld [vmem:[#allocation244_spill] sm:$0xff] }
 0xb1f   : > { %17742 = vmatprep.mubr.f32.mxu1 %v27787_v47  ;;  %v27916_v47 = vld [vmem:[#allocation241_spill] sm:$0xff] }
 0xb22   : > { %17743 = vmatmul.mubr.f32.gmra.mrb[4].mxu1 %v27789_v42  ;;  %v27917_v42 = vld [vmem:[#allocation254_spill] sm:$0xff] }
 0xb23   : > { %17745 = vmatprep.mubr.f32.mxu1 %v27790_v8  ;;  %v27918_v8 = vld [vmem:[#allocation250_spill] sm:$0xff] }
 0xb26   : > { %17746 = vmatmul.mubr.f32.gmra.mrb[6].mxu1 %v27791_v58  ;;  %v27919_v58 = vld [vmem:[#allocation7_spill] sm:$0xff] }
 0xb27   : > { %17748 = vmatprep.mubr.f32.mxu1 %v27792_v6  ;;  %v27920_v6 = vld [vmem:[#allocation6_spill] sm:$0xff] }
 0xb2a   : > { %17749 = vmatmul.mubr.f32.gmra.mrb[8].mxu1 %v27793_v50  ;;  %v27921_v50 = vld [vmem:[#allocation14_spill] sm:$0xff] }
 0xb2b   : > { %17751 = vmatprep.mubr.f32.mxu1 %v27794_v53  ;;  %v27922_v53 = vld [vmem:[#allocation13_spill] sm:$0xff] }
 0xb2e   : > { %17752 = vmatmul.mubr.f32.gmra.mrb[10].mxu1 %v27795_v32  ;;  %v27923_v32 = vld [vmem:[#allocation22_spill] sm:$0xff] }
 0xb2f   : > { %17754 = vmatprep.mubr.f32.mxu1 %v27796_v61  ;;  %v27924_v61 = vld [vmem:[#allocation21_spill] sm:$0xff] }
 0xb32   : > { %17755 = vmatmul.mubr.f32.gmra.mrb[12].mxu1 %v27797_v27  ;;  %v27925_v27 = vld [vmem:[#allocation30_spill] sm:$0xff] }
 0xb33   : > { %17757 = vmatprep.mubr.f32.mxu1 %v27798_v34  ;;  %v27926_v34 = vld [vmem:[#allocation29_spill] sm:$0xff] }
 0xb36   : > { %17758 = vmatmul.mubr.f32.gmra.mrb[14].mxu1 %v27799_v52  ;;  %v27927_v52 = vld [vmem:[#allocation38_spill] sm:$0xff] }
 0xb37   : > { %17760 = vmatprep.mubr.f32.mxu1 %v27800_v3  ;;  %v27928_v3 = vld [vmem:[#allocation37_spill] sm:$0xff] }
 0xb3a   : > { %17761 = vmatmul.mubr.f32.gmra.mrb[16].mxu1 %v27801_v56  ;;  %v27929_v56 = vld [vmem:[#allocation46_spill] sm:$0xff] }
 0xb3b   : > { %17763 = vmatprep.mubr.f32.mxu1 %v27802_v14  ;;  %v27930_v14 = vld [vmem:[#allocation45_spill] sm:$0xff] }
 0xb3e   : > { %17764 = vmatmul.mubr.f32.gmra.mrb[18].mxu1 %v27803_v55  ;;  %v27931_v55 = vld [vmem:[#allocation54_spill] sm:$0xff] }
 0xb3f   : > { %17766 = vmatprep.mubr.f32.mxu1 %v27804_v10  ;;  %v27932_v10 = vld [vmem:[#allocation53_spill] sm:$0xff] }
 0xb42   : > { %17767 = vmatmul.mubr.f32.gmra.mrb[20].mxu1 %v27805_v16  ;;  %v27933_v16 = vld [vmem:[#allocation63_spill] sm:$0xff] }
 0xb43   : > { %17769 = vmatprep.mubr.f32.mxu1 %v27806_v57  ;;  %v27934_v57 = vld [vmem:[#allocation60_spill] sm:$0xff] }
 0xb46   : > { %17770 = vmatmul.mubr.f32.gmra.mrb[22].mxu1 %v27807_v7  ;;  %v27935_v7 = vld [vmem:[#allocation69_spill] sm:$0xff] }
 0xb47   : > { %17772 = vmatprep.mubr.f32.mxu1 %v27808_v4  ;;  %v27936_v4 = vld [vmem:[#allocation65_spill] sm:$0xff] }
 0xb4a   : > { %17773 = vmatmul.mubr.f32.gmra.mrb[24].mxu1 %v27809_v51  ;;  %v27937_v51 = vld [vmem:[#allocation76_spill] sm:$0xff] }
 0xb4b   : > { %17775 = vmatprep.mubr.f32.mxu1 %v27810_v59  ;;  %v27938_v59 = vld [vmem:[#allocation79_spill] sm:$0xff] }
 0xb4e   : > { %17776 = vmatmul.mubr.f32.gmra.mrb[26].mxu1 %v27811_v12  ;;  %v27939_v12 = vld [vmem:[#allocation84_spill] sm:$0xff] }
 0xb4f   : > { %17778 = vmatprep.mubr.f32.mxu1 %v27812_v1  ;;  %v27940_v1 = vld [vmem:[#allocation82_spill] sm:$0xff] }
 0xb52   : > { %17779 = vmatmul.mubr.f32.gmra.mrb[28].mxu1 %v27813_v38  ;;  %v27941_v38 = vld [vmem:[#allocation93_spill] sm:$0xff] }
 0xb53   : > { %17781 = vmatprep.mubr.f32.mxu1 %v27814_v18  ;;  %v27942_v18 = vld [vmem:[#allocation94_spill] sm:$0xff] }
 0xb56   : > { %17782 = vmatmul.mubr.f32.gmra.mrb[30].mxu1 %v27815_v48  ;;  %v27943_v48 = vld [vmem:[#allocation100_spill] sm:$0xff] }
 0xb57   : > { %17784 = vmatprep.mubr.f32.mxu1 %v27816_v11  ;;  %v27944_v11 = vld [vmem:[#allocation99_spill] sm:$0xff] }
 0xb5a   : > { %17785 = vmatmul.mubr.f32.gmra.mrb[32].mxu1 %v27817_v62  ;;  %v27945_v62 = vld [vmem:[#allocation107_spill] sm:$0xff] }
 0xb5b   : > { %17787 = vmatprep.mubr.f32.mxu1 %v27818_v39  ;;  %v27946_v39 = vld [vmem:[#allocation238_spill] sm:$0xff] }
 0xb5e   : > { %17788 = vmatmul.mubr.f32.gmra.mrb[34].mxu1 %v27819_v46  ;;  %v27947_v46 = vld [vmem:[#allocation243_spill] sm:$0xff] }
 0xb5f   : > { %17790 = vmatprep.mubr.f32.mxu1 %v27820_v44  ;;  %v27948_v44 = vld [vmem:[#allocation242_spill] sm:$0xff] }
 0xb62   : > { %17791 = vmatmul.mubr.f32.gmra.mrb[36].mxu1 %v27821_v9  ;;  %v27949_v9 = vld [vmem:[#allocation251_spill] sm:$0xff] }
 0xb63   : > { %17793 = vmatprep.mubr.f32.mxu1 %v27822_v36  ;;  %v27950_v36 = vld [vmem:[#allocation253_spill] sm:$0xff] }
 0xb66   : > { %17794 = vmatmul.mubr.f32.gmra.mrb[38].mxu1 %v27823_v2  ;;  %v27951_v2 = vld [vmem:[#allocation108_spill] sm:$0xff] }
 0xb67   : > { %17796 = vmatprep.mubr.f32.mxu1 %v27824_v17  ;;  %v27952_v17 = vld [vmem:[#allocation256_spill] sm:$0xff] }
 0xb6a   : > { %17797 = vmatmul.mubr.f32.gmra.mrb[40].mxu1 %v27825_v19  ;;  %v27953_v19 = vld [vmem:[#allocation118_spill] sm:$0xff] }
 0xb6b   : > { %17799 = vmatprep.mubr.f32.mxu1 %v27826_v63  ;;  %v27954_v63 = vld [vmem:[#allocation119_spill] sm:$0xff] }
 0xb6e   : > { %17800 = vmatmul.mubr.f32.gmra.mrb[42].mxu1 %v27827_v22  ;;  %v27955_v22 = vld [vmem:[#allocation126_spill] sm:$0xff] }
 0xb6f   : > { %17802 = vmatprep.mubr.f32.mxu1 %v27828_v23  ;;  %v27956_v23 = vld [vmem:[#allocation124_spill] sm:$0xff] }
 0xb72   : > { %17803 = vmatmul.mubr.f32.gmra.mrb[44].mxu1 %v27829_v31  ;;  %v27957_v31 = vld [vmem:[#allocation139_spill] sm:$0xff] }
 0xb73   : > { %17805 = vmatprep.mubr.f32.mxu1 %v27830_v5  ;;  %v27958_v5 = vld [vmem:[#allocation129_spill] sm:$0xff] }
 0xb76   : > { %17806 = vmatmul.mubr.f32.gmra.mrb[46].mxu1 %v27831_v33  ;;  %v27959_v33 = vld [vmem:[#allocation147_spill] sm:$0xff] }
 0xb77   : > { %17808 = vmatprep.mubr.f32.mxu1 %v27832_v15  ;;  %v27960_v15 = vld [vmem:[#allocation140_spill] sm:$0xff] }
 0xb7a   : > { %17809 = vmatmul.mubr.f32.gmra.mrb[48].mxu1 %v27833_v24  ;;  %v27961_v24 = vld [vmem:[#allocation153_spill] sm:$0xff] }
 0xb7b   : > { %17811 = vmatprep.mubr.f32.mxu1 %v27834_v37  ;;  %v24489_v37 = vld [vmem:[%s24911_s5] ss:$0 sm:$0xff] }
 0xb7e   : > { %17812 = vmatmul.mubr.f32.gmra.mrb[50].mxu1 %v27910_v35  ;;  %v27962_v35 = vld [vmem:[#allocation152_spill] sm:$0xff] }
 0xb7f   : > { %17814 = vmatprep.mubr.f32.mxu1 %v27911_v25  ;;  %v27963_v25 = vld [vmem:[#allocation164_spill] sm:$0xff] }
 0xb82   : > { %17815 = vmatmul.mubr.f32.gmra.mrb[52].mxu1 %v27912_v13  ;;  %v27964_v13 = vld [vmem:[#allocation232_spill] sm:$0xff] }
 0xb83   : > { %17817 = vmatprep.mubr.f32.mxu1 %v27913_v0  ;;  %v7621_v0 = vadd.f32 %v27964_v13, %v24489_v37 }
 0xb86   : > { %17818 = vmatmul.mubr.f32.gmra.mrb[54].mxu1 %v27914_v30  ;;  %v27965_v30 = vld [vmem:[#allocation234_spill] sm:$0xff] }
 0xb87   : > { %17820 = vmatprep.mubr.f32.mxu1 %v27915_v26  ;;  %v7611_v26 = vadd.f32 %v24489_v37, %v27965_v30 }
 0xb8a   : > { %17821 = vmatmul.mubr.f32.gmra.mrb[56].mxu1 %v27916_v47 }
 0xb8b   : > { %17823 = vmatprep.mubr.f32.mxu1 %v27917_v42 }
 0xb8e   : > { %17824 = vmatmul.mubr.f32.gmra.mrb[58].mxu1 %v27918_v8 }
 0xb8f   : > { %17826 = vmatprep.mubr.f32.mxu1 %v27919_v58  ;;  %v27966_v58 = vld [vmem:[#allocation161_spill] sm:$0xff] }
 0xb92   : > { %17827 = vmatmul.mubr.f32.gmra.mrb[60].mxu1 %v27920_v6 }
 0xb93   : > { %17829 = vmatprep.mubr.f32.mxu1 %v27921_v50  ;;  %v27967_v50 = vld [vmem:[#allocation167_spill] sm:$0xff] }
 0xb96   : > { %17830 = vmatmul.mubr.f32.gmra.mrb[62].mxu1 %v27922_v53 }
 0xb97   : > { %17832 = vmatprep.mubr.f32.mxu1 %v27923_v32 }
 0xb9a   : > { %17833 = vmatmul.mubr.f32.gmra.mrb[64].mxu1 %v27924_v61 }
 0xb9b   : > { %17835 = vmatprep.mubr.f32.mxu1 %v27925_v27 }
 0xb9e   : > { %17836 = vmatmul.mubr.f32.gmra.mrb[66].mxu1 %v27926_v34 }
 0xb9f   : > { %17838 = vmatprep.mubr.f32.mxu1 %v27927_v52  ;;  %v27968_v52 = vld [vmem:[#allocation166_spill] sm:$0xff] }
 0xba2   : > { %17839 = vmatmul.mubr.f32.gmra.mrb[68].mxu1 %v27928_v3 }
 0xba3   : > { %17841 = vmatprep.mubr.f32.mxu1 %v27929_v56  ;;  %v27969_v56 = vld [vmem:[#allocation180_spill] sm:$0xff] }
 0xba6   : > { %17842 = vmatmul.mubr.f32.gmra.mrb[70].mxu1 %v27930_v14 }
 0xba7   : > { %17844 = vmatprep.mubr.f32.mxu1 %v27931_v55 }
 0xbaa   : > { %17845 = vmatmul.mubr.f32.gmra.mrb[72].mxu1 %v27932_v10 }
 0xbab   : > { %17847 = vmatprep.mubr.f32.mxu1 %v27933_v16 }
 0xbae   : > { %17848 = vmatmul.mubr.f32.gmra.mrb[74].mxu1 %v27934_v57 }
 0xbaf   : > { %17850 = vmatprep.mubr.f32.mxu1 %v27935_v7  ;;  %v27970_v7 = vld [vmem:[#allocation178_spill] sm:$0xff] }
 0xbb2   : > { %17851 = vmatmul.mubr.f32.gmra.mrb[76].mxu1 %v27936_v4 }
 0xbb3   : > { %17853 = vmatprep.mubr.f32.mxu1 %v27937_v51  ;;  %v27971_v51 = vld [vmem:[#allocation188_spill] sm:$0xff] }
 0xbb6   : > { %17854 = vmatmul.mubr.f32.gmra.mrb[78].mxu1 %v27938_v59 }
 0xbb7   : > { %17856 = vmatprep.mubr.f32.mxu1 %v27939_v12 }
 0xbba   : > { %17857 = vmatmul.mubr.f32.gmra.mrb[80].mxu1 %v27940_v1 }
 0xbbb   : > { %17859 = vmatprep.mubr.f32.mxu1 %v27941_v38 }
 0xbbe   : > { %17860 = vmatmul.mubr.f32.gmra.mrb[82].mxu1 %v27942_v18 }
 0xbbf   : > { %17862 = vmatprep.mubr.f32.mxu1 %v27943_v48  ;;  %v27972_v48 = vld [vmem:[#allocation183_spill] sm:$0xff] }
 0xbc2   : > { %17863 = vmatmul.mubr.f32.gmra.mrb[84].mxu1 %v27944_v11 }
 0xbc3   : > { %17865 = vmatprep.mubr.f32.mxu1 %v27945_v62  ;;  %v27973_v62 = vld [vmem:[#allocation194_spill] sm:$0xff] }
 0xbc6   : > { %17866 = vmatmul.mubr.f32.gmra.mrb[86].mxu1 %v27946_v39 }
 0xbc7   : > { %17868 = vmatprep.mubr.f32.mxu1 %v27947_v46 }
 0xbca   : > { %17869 = vmatmul.mubr.f32.gmra.mrb[88].mxu1 %v27948_v44 }
 0xbcb   : > { %17871 = vmatprep.mubr.f32.mxu1 %v27949_v9 }
 0xbce   : > { %17872 = vmatmul.mubr.f32.gmra.mrb[90].mxu1 %v27950_v36 }
 0xbcf   : > { %17874 = vmatprep.mubr.f32.mxu1 %v27951_v2  ;;  %v27974_v2 = vld [vmem:[#allocation192_spill] sm:$0xff] }
 0xbd2   : > { %17875 = vmatmul.mubr.f32.gmra.mrb[92].mxu1 %v27952_v17 }
 0xbd3   : > { %17877 = vmatprep.mubr.f32.mxu1 %v27953_v19  ;;  %v27975_v19 = vld [vmem:[#allocation200_spill] sm:$0xff] }
 0xbd6   : > { %17878 = vmatmul.mubr.f32.gmra.mrb[94].mxu1 %v27954_v63 }
 0xbd7   : > { %17880 = vmatprep.mubr.f32.mxu1 %v27955_v22 }
 0xbda   : > { %17881 = vmatmul.mubr.f32.gmra.mrb[96].mxu1 %v27956_v23 }
 0xbdb   : > { %17883 = vmatprep.mubr.f32.mxu1 %v27957_v31 }
 0xbde   : > { %17884 = vmatmul.mubr.f32.gmra.mrb[98].mxu1 %v27958_v5 }
 0xbdf   : > { %17886 = vmatprep.mubr.f32.mxu1 %v27959_v33 }
 0xbe2   : > { %17887 = vmatmul.mubr.f32.gmra.mrb[100].mxu1 %v27960_v15 }
 0xbe3   : > { %17889 = vmatprep.mubr.f32.mxu1 %v27961_v24 }
 0xbe6   : > { %17890 = vmatmul.mubr.f32.gmra.mrb[102].mxu1 %v27962_v35 }
 0xbe7   : > { %17892 = vmatprep.mubr.f32.mxu1 %v27963_v25 }
 0xbe9   : > { %v17735_v47 = vpop.f32.mrb[126].mxu1 }
 0xbea   : > { %v18206_v42 = vadd.f32 %v17735_v47, %v7621_v0  ;;  %v12763_v8 = vpop.f32.mrb[127].mxu1  ;;  %17893 = vmatmul.mubr.f32.gmra.mrb[104].mxu1 %v27966_v58 }
 0xbeb   : > { %v18208_v6 = vadd.f32 %v12763_v8, %v7611_v26  ;;  %17895 = vmatprep.mubr.f32.mxu1 %v27967_v50 }
 0xbec   : > { %v13530_v53 = vmax.f32 %v18206_v42, 0.0 }
 0xbed   : > { %v13529_v32 = vmax.f32 %v18208_v6, 0.0  ;;  %v17738_v61 = vpop.f32.mrb[0].mxu1 }
 0xbee   : > { %13659 = vst.msk [vmem:[%s24502_s9 + $0x8] sm:$0xff] %vm13657_vm2, %v13530_v53  ;;  %v18209_v27 = vadd.f32 %v17738_v61, %v24489_v37  ;;  %v12775_v34 = vpop.f32.mrb[1].mxu1  ;;  %17896 = vmatmul.mubr.f32.gmra.mrb[106].mxu1 %v27968_v52 }
 0xbef   : > { %13658 = vst.msk [vmem:[%s24502_s9] sm:$0xff] %vm13657_vm2, %v13529_v32  ;;  %v18210_v3 = vadd.f32 %v24489_v37, %v12775_v34  ;;  %17898 = vmatprep.mubr.f32.mxu1 %v27969_v56 }
 0xbf0   : > { %v13532_v14 = vmax.f32 %v18209_v27, 0.0 }
 0xbf1   : > { %v13531_v55 = vmax.f32 %v18210_v3, 0.0  ;;  %v17741_v10 = vpop.f32.mrb[2].mxu1 }
 0xbf2   : > { %13661 = vst.msk [vmem:[%s24502_s9 + $0x18] sm:$0xff] %vm13657_vm2, %v13532_v14  ;;  %v18211_v16 = vadd.f32 %v17741_v10, %v24489_v37  ;;  %v12787_v57 = vpop.f32.mrb[3].mxu1  ;;  %17899 = vmatmul.mubr.f32.gmra.mrb[108].mxu1 %v27970_v7 }
 0xbf3   : > { %13660 = vst.msk [vmem:[%s24502_s9 + $0x10] sm:$0xff] %vm13657_vm2, %v13531_v55  ;;  %v18212_v4 = vadd.f32 %v24489_v37, %v12787_v57  ;;  %17901 = vmatprep.mubr.f32.mxu1 %v27971_v51 }
 0xbf4   : > { %v13534_v59 = vmax.f32 %v18211_v16, 0.0 }
 0xbf5   : > { %v13533_v12 = vmax.f32 %v18212_v4, 0.0  ;;  %v17744_v1 = vpop.f32.mrb[4].mxu1 }
 0xbf6   : > { %13663 = vst.msk [vmem:[%s24502_s9 + $0x28] sm:$0xff] %vm13657_vm2, %v13534_v59  ;;  %v18213_v38 = vadd.f32 %v17744_v1, %v24489_v37  ;;  %v12799_v18 = vpop.f32.mrb[5].mxu1  ;;  %17902 = vmatmul.mubr.f32.gmra.mrb[110].mxu1 %v27972_v48 }
 0xbf7   : > { %13662 = vst.msk [vmem:[%s24502_s9 + $0x20] sm:$0xff] %vm13657_vm2, %v13533_v12  ;;  %v18214_v11 = vadd.f32 %v24489_v37, %v12799_v18  ;;  %17904 = vmatprep.mubr.f32.mxu1 %v27973_v62 }
 0xbf8   : > { %v13536_v39 = vmax.f32 %v18213_v38, 0.0 }
 0xbf9   : > { %v13535_v46 = vmax.f32 %v18214_v11, 0.0  ;;  %v17747_v44 = vpop.f32.mrb[6].mxu1 }
 0xbfa   : > { %13665 = vst.msk [vmem:[%s24502_s9 + $0x38] sm:$0xff] %vm13657_vm2, %v13536_v39  ;;  %v18215_v9 = vadd.f32 %v17747_v44, %v24489_v37  ;;  %v12811_v36 = vpop.f32.mrb[7].mxu1  ;;  %17905 = vmatmul.mubr.f32.gmra.mrb[112].mxu1 %v27974_v2 }
 0xbfb   : > { %13664 = vst.msk [vmem:[%s24502_s9 + $0x30] sm:$0xff] %vm13657_vm2, %v13535_v46  ;;  %v18216_v17 = vadd.f32 %v24489_v37, %v12811_v36  ;;  %17907 = vmatprep.mubr.f32.mxu1 %v27975_v19 }
 0xbfc   : > { %v13538_v63 = vmax.f32 %v18215_v9, 0.0 }
 0xbfd   : > { %v13537_v22 = vmax.f32 %v18216_v17, 0.0  ;;  %v17750_v23 = vpop.f32.mrb[8].mxu1 }
 0xbfe   : > { %13667 = vst.msk [vmem:[%s24502_s9 + $0x48] sm:$0xff] %vm13657_vm2, %v13538_v63  ;;  %v18217_v31 = vadd.f32 %v17750_v23, %v24489_v37  ;;  %v12823_v5 = vpop.f32.mrb[9].mxu1  ;;  %17908 = vmatmul.mubr.f32.gmra.mrb[114].mxu1 %v27899_v45 }
 0xbff   : > { %13666 = vst.msk [vmem:[%s24502_s9 + $0x40] sm:$0xff] %vm13657_vm2, %v13537_v22  ;;  %v18218_v33 = vadd.f32 %v24489_v37, %v12823_v5  ;;  %17910 = vmatprep.mubr.f32.mxu1 %v27900_v54 }
 0xc00   : > { %v13540_v15 = vmax.f32 %v18217_v31, 0.0 }
 0xc01   : > { %v13539_v24 = vmax.f32 %v18218_v33, 0.0  ;;  %v17753_v35 = vpop.f32.mrb[10].mxu1 }
 0xc02   : > { %13669 = vst.msk [vmem:[%s24502_s9 + $0x58] sm:$0xff] %vm13657_vm2, %v13540_v15  ;;  %v18219_v25 = vadd.f32 %v17753_v35, %v24489_v37  ;;  %v12835_v13 = vpop.f32.mrb[11].mxu1  ;;  %17911 = vmatmul.mubr.f32.gmra.mrb[116].mxu1 %v27901_v41 }
 0xc03   : > { %13668 = vst.msk [vmem:[%s24502_s9 + $0x50] sm:$0xff] %vm13657_vm2, %v13539_v24  ;;  %v18220_v45 = vadd.f32 %v24489_v37, %v12835_v13  ;;  %17913 = vmatprep.mubr.f32.mxu1 %v27902_v21 }
 0xc04   : > { %v13542_v0 = vmax.f32 %v18219_v25, 0.0 }
 0xc05   : > { %v13541_v54 = vmax.f32 %v18220_v45, 0.0  ;;  %v17756_v30 = vpop.f32.mrb[12].mxu1 }
 0xc06   : > { %13671 = vst.msk [vmem:[%s24502_s9 + $0x68] sm:$0xff] %vm13657_vm2, %v13542_v0  ;;  %v18221_v26 = vadd.f32 %v17756_v30, %v24489_v37  ;;  %v12847_v47 = vpop.f32.mrb[13].mxu1  ;;  %17914 = vmatmul.mubr.f32.gmra.mrb[118].mxu1 %v27903_v40 }
 0xc07   : > { %13670 = vst.msk [vmem:[%s24502_s9 + $0x60] sm:$0xff] %vm13657_vm2, %v13541_v54  ;;  %v18222_v41 = vadd.f32 %v24489_v37, %v12847_v47  ;;  %17916 = vmatprep.mubr.f32.mxu1 %v27904_v29 }
 0xc08   : > { %v13544_v42 = vmax.f32 %v18221_v26, 0.0 }
 0xc09   : > { %v13543_v21 = vmax.f32 %v18222_v41, 0.0  ;;  %v17759_v8 = vpop.f32.mrb[14].mxu1 }
 0xc0a   : > { %13673 = vst.msk [vmem:[%s24502_s9 + $0x78] sm:$0xff] %vm13657_vm2, %v13544_v42  ;;  %v18223_v58 = vadd.f32 %v17759_v8, %v24489_v37  ;;  %v12859_v6 = vpop.f32.mrb[15].mxu1  ;;  %17917 = vmatmul.mubr.f32.gmra.mrb[120].mxu1 %v27905_v20 }
 0xc0b   : > { %13672 = vst.msk [vmem:[%s24502_s9 + $0x70] sm:$0xff] %vm13657_vm2, %v13543_v21  ;;  %v18224_v40 = vadd.f32 %v24489_v37, %v12859_v6  ;;  %17919 = vmatprep.mubr.f32.mxu1 %v27906_v28 }
 0xc0c   : > { %v13546_v50 = vmax.f32 %v18223_v58, 0.0 }
 0xc0d   : > { %v13545_v29 = vmax.f32 %v18224_v40, 0.0  ;;  %v17762_v53 = vpop.f32.mrb[16].mxu1 }
 0xc0e   : > { %13675 = vst.msk [vmem:[%s24502_s9 + $0x88] sm:$0xff] %vm13657_vm2, %v13546_v50  ;;  %v18225_v32 = vadd.f32 %v17762_v53, %v24489_v37  ;;  %v12871_v61 = vpop.f32.mrb[17].mxu1  ;;  %17920 = vmatmul.mubr.f32.gmra.mrb[122].mxu1 %v27907_v43 }
 0xc0f   : > { %13674 = vst.msk [vmem:[%s24502_s9 + $0x80] sm:$0xff] %vm13657_vm2, %v13545_v29  ;;  %v18226_v20 = vadd.f32 %v24489_v37, %v12871_v61  ;;  %17922 = vmatprep.mubr.f32.mxu1 %v27908_v60 }
 0xc10   : > { %v13548_v28 = vmax.f32 %v18225_v32, 0.0 }
 0xc11   : > { %v13547_v27 = vmax.f32 %v18226_v20, 0.0  ;;  %v17765_v34 = vpop.f32.mrb[18].mxu1 }
 0xc12   : > { %13677 = vst.msk [vmem:[%s24502_s9 + $0x98] sm:$0xff] %vm13657_vm2, %v13548_v28  ;;  %v18227_v52 = vadd.f32 %v17765_v34, %v24489_v37  ;;  %v12883_v3 = vpop.f32.mrb[19].mxu1  ;;  %17923 = vmatmul.mubr.f32.gmra.mrb[124].mxu1 %v27909_v49 }
 0xc13   : > { %13676 = vst.msk [vmem:[%s24502_s9 + $0x90] sm:$0xff] %vm13657_vm2, %v13547_v27  ;;  %v18228_v43 = vadd.f32 %v24489_v37, %v12883_v3 }
 0xc14   : > { %v13550_v56 = vmax.f32 %v18227_v52, 0.0 }
 0xc15   : > { %v13549_v14 = vmax.f32 %v18228_v43, 0.0  ;;  %v17768_v60 = vpop.f32.mrb[20].mxu1 }
 0xc16   : > { %13679 = vst.msk [vmem:[%s24502_s9 + $0xa8] sm:$0xff] %vm13657_vm2, %v13550_v56  ;;  %v18229_v55 = vadd.f32 %v17768_v60, %v24489_v37  ;;  %v12895_v10 = vpop.f32.mrb[21].mxu1 }
 0xc17   : > { %13678 = vst.msk [vmem:[%s24502_s9 + $0xa0] sm:$0xff] %vm13657_vm2, %v13549_v14  ;;  %v18230_v16 = vadd.f32 %v24489_v37, %v12895_v10 }
 0xc18   : > { %v13552_v49 = vmax.f32 %v18229_v55, 0.0 }
 0xc19   : > { %v13551_v57 = vmax.f32 %v18230_v16, 0.0  ;;  %v17771_v7 = vpop.f32.mrb[22].mxu1 }
 0xc1a   : > { %13681 = vst.msk [vmem:[%s24502_s9 + $0xb8] sm:$0xff] %vm13657_vm2, %v13552_v49  ;;  %v18231_v4 = vadd.f32 %v17771_v7, %v24489_v37  ;;  %v12907_v51 = vpop.f32.mrb[23].mxu1 }
 0xc1b   : > { %13680 = vst.msk [vmem:[%s24502_s9 + $0xb0] sm:$0xff] %vm13657_vm2, %v13551_v57  ;;  %v18232_v59 = vadd.f32 %v24489_v37, %v12907_v51 }
 0xc1c   : > { %v13554_v12 = vmax.f32 %v18231_v4, 0.0 }
 0xc1d   : > { %v13553_v1 = vmax.f32 %v18232_v59, 0.0  ;;  %v17774_v38 = vpop.f32.mrb[24].mxu1 }
 0xc1e   : > { %13683 = vst.msk [vmem:[%s24502_s9 + $0xc8] sm:$0xff] %vm13657_vm2, %v13554_v12  ;;  %v18233_v18 = vadd.f32 %v17774_v38, %v24489_v37  ;;  %v12919_v48 = vpop.f32.mrb[25].mxu1 }
 0xc1f   : > { %13682 = vst.msk [vmem:[%s24502_s9 + $0xc0] sm:$0xff] %vm13657_vm2, %v13553_v1  ;;  %v18234_v11 = vadd.f32 %v24489_v37, %v12919_v48 }
 0xc20   : > { %v13556_v62 = vmax.f32 %v18233_v18, 0.0 }
 0xc21   : > { %v13555_v39 = vmax.f32 %v18234_v11, 0.0  ;;  %v17777_v46 = vpop.f32.mrb[26].mxu1 }
 0xc22   : > { %13685 = vst.msk [vmem:[%s24502_s9 + $0xd8] sm:$0xff] %vm13657_vm2, %v13556_v62  ;;  %v18235_v44 = vadd.f32 %v17777_v46, %v24489_v37  ;;  %v12931_v9 = vpop.f32.mrb[27].mxu1 }
 0xc23   : > { %13684 = vst.msk [vmem:[%s24502_s9 + $0xd0] sm:$0xff] %vm13657_vm2, %v13555_v39  ;;  %v18236_v36 = vadd.f32 %v24489_v37, %v12931_v9 }
 0xc24   : > { %v13558_v2 = vmax.f32 %v18235_v44, 0.0 }
 0xc25   : > { %v13557_v17 = vmax.f32 %v18236_v36, 0.0  ;;  %v17780_v19 = vpop.f32.mrb[28].mxu1 }
 0xc26   : > { %13687 = vst.msk [vmem:[%s24502_s9 + $0xe8] sm:$0xff] %vm13657_vm2, %v13558_v2  ;;  %v18237_v63 = vadd.f32 %v17780_v19, %v24489_v37  ;;  %v12943_v22 = vpop.f32.mrb[29].mxu1 }
 0xc27   : > { %13686 = vst.msk [vmem:[%s24502_s9 + $0xe0] sm:$0xff] %vm13657_vm2, %v13557_v17  ;;  %v18238_v23 = vadd.f32 %v24489_v37, %v12943_v22 }
 0xc28   : > { %v13560_v31 = vmax.f32 %v18237_v63, 0.0 }
 0xc29   : > { %v13559_v5 = vmax.f32 %v18238_v23, 0.0  ;;  %v17783_v33 = vpop.f32.mrb[30].mxu1 }
 0xc2a   : > { %13689 = vst.msk [vmem:[%s24502_s9 + $0xf8] sm:$0xff] %vm13657_vm2, %v13560_v31  ;;  %v18239_v15 = vadd.f32 %v17783_v33, %v24489_v37  ;;  %v12955_v24 = vpop.f32.mrb[31].mxu1 }
 0xc2b   : > { %13688 = vst.msk [vmem:[%s24502_s9 + $0xf0] sm:$0xff] %vm13657_vm2, %v13559_v5  ;;  %v18240_v35 = vadd.f32 %v24489_v37, %v12955_v24 }
 0xc2c   : > { %v13562_v25 = vmax.f32 %v18239_v15, 0.0 }
 0xc2d   : > { %v13561_v13 = vmax.f32 %v18240_v35, 0.0  ;;  %v17786_v45 = vpop.f32.mrb[32].mxu1 }
 0xc2e   : > { %13691 = vst.msk [vmem:[%s24502_s9 + $0x108] sm:$0xff] %vm13657_vm2, %v13562_v25  ;;  %v18241_v0 = vadd.f32 %v17786_v45, %v24489_v37  ;;  %v12967_v54 = vpop.f32.mrb[33].mxu1 }
 0xc2f   : > { %13690 = vst.msk [vmem:[%s24502_s9 + $0x100] sm:$0xff] %vm13657_vm2, %v13561_v13  ;;  %v18242_v30 = vadd.f32 %v24489_v37, %v12967_v54 }
 0xc30   : > { %v13564_v26 = vmax.f32 %v18241_v0, 0.0 }
 0xc31   : > { %v13563_v47 = vmax.f32 %v18242_v30, 0.0  ;;  %v17789_v41 = vpop.f32.mrb[34].mxu1 }
 0xc32   : > { %13693 = vst.msk [vmem:[%s24502_s9 + $0x118] sm:$0xff] %vm13657_vm2, %v13564_v26  ;;  %v18243_v42 = vadd.f32 %v17789_v41, %v24489_v37  ;;  %v12979_v21 = vpop.f32.mrb[35].mxu1 }
 0xc33   : > { %13692 = vst.msk [vmem:[%s24502_s9 + $0x110] sm:$0xff] %vm13657_vm2, %v13563_v47  ;;  %v18244_v8 = vadd.f32 %v24489_v37, %v12979_v21 }
 0xc34   : > { %v13566_v58 = vmax.f32 %v18243_v42, 0.0 }
 0xc35   : > { %v13565_v6 = vmax.f32 %v18244_v8, 0.0  ;;  %v17792_v40 = vpop.f32.mrb[36].mxu1 }
 0xc36   : > { %13695 = vst.msk [vmem:[%s24502_s9 + $0x128] sm:$0xff] %vm13657_vm2, %v13566_v58  ;;  %v18245_v50 = vadd.f32 %v17792_v40, %v24489_v37  ;;  %v12991_v29 = vpop.f32.mrb[37].mxu1 }
 0xc37   : > { %13694 = vst.msk [vmem:[%s24502_s9 + $0x120] sm:$0xff] %vm13657_vm2, %v13565_v6  ;;  %v18246_v53 = vadd.f32 %v24489_v37, %v12991_v29 }
 0xc38   : > { %v13568_v32 = vmax.f32 %v18245_v50, 0.0 }
 0xc39   : > { %v13567_v61 = vmax.f32 %v18246_v53, 0.0  ;;  %v17795_v20 = vpop.f32.mrb[38].mxu1 }
 0xc3a   : > { %13697 = vst.msk [vmem:[%s24502_s9 + $0x138] sm:$0xff] %vm13657_vm2, %v13568_v32  ;;  %v18247_v28 = vadd.f32 %v17795_v20, %v24489_v37  ;;  %v13003_v27 = vpop.f32.mrb[39].mxu1 }
 0xc3b   : > { %13696 = vst.msk [vmem:[%s24502_s9 + $0x130] sm:$0xff] %vm13657_vm2, %v13567_v61  ;;  %v18248_v34 = vadd.f32 %v24489_v37, %v13003_v27 }
 0xc3c   : > { %v13570_v52 = vmax.f32 %v18247_v28, 0.0 }
 0xc3d   : > { %v13569_v3 = vmax.f32 %v18248_v34, 0.0  ;;  %v17798_v43 = vpop.f32.mrb[40].mxu1 }
 0xc3e   : > { %13699 = vst.msk [vmem:[%s24502_s9 + $0x148] sm:$0xff] %vm13657_vm2, %v13570_v52  ;;  %v18249_v56 = vadd.f32 %v17798_v43, %v24489_v37  ;;  %v13015_v14 = vpop.f32.mrb[41].mxu1 }
 0xc3f   : > { %13698 = vst.msk [vmem:[%s24502_s9 + $0x140] sm:$0xff] %vm13657_vm2, %v13569_v3  ;;  %v18250_v60 = vadd.f32 %v24489_v37, %v13015_v14 }
 0xc40   : > { %v13572_v55 = vmax.f32 %v18249_v56, 0.0 }
 0xc41   : > { %v13571_v10 = vmax.f32 %v18250_v60, 0.0  ;;  %v17801_v16 = vpop.f32.mrb[42].mxu1 }
 0xc42   : > { %13701 = vst.msk [vmem:[%s24502_s9 + $0x158] sm:$0xff] %vm13657_vm2, %v13572_v55  ;;  %v18251_v49 = vadd.f32 %v17801_v16, %v24489_v37  ;;  %v13027_v57 = vpop.f32.mrb[43].mxu1 }
 0xc43   : > { %13700 = vst.msk [vmem:[%s24502_s9 + $0x150] sm:$0xff] %vm13657_vm2, %v13571_v10  ;;  %v18252_v7 = vadd.f32 %v24489_v37, %v13027_v57 }
 0xc44   : > { %v13574_v4 = vmax.f32 %v18251_v49, 0.0 }
 0xc45   : > { %v13573_v51 = vmax.f32 %v18252_v7, 0.0  ;;  %v17804_v59 = vpop.f32.mrb[44].mxu1 }
 0xc46   : > { %13703 = vst.msk [vmem:[%s24502_s9 + $0x168] sm:$0xff] %vm13657_vm2, %v13574_v4  ;;  %v18253_v12 = vadd.f32 %v17804_v59, %v24489_v37  ;;  %v13039_v1 = vpop.f32.mrb[45].mxu1 }
 0xc47   : > { %13702 = vst.msk [vmem:[%s24502_s9 + $0x160] sm:$0xff] %vm13657_vm2, %v13573_v51  ;;  %v18254_v38 = vadd.f32 %v24489_v37, %v13039_v1 }
 0xc48   : > { %v13576_v18 = vmax.f32 %v18253_v12, 0.0 }
 0xc49   : > { %v13575_v48 = vmax.f32 %v18254_v38, 0.0  ;;  %v17807_v11 = vpop.f32.mrb[46].mxu1 }
 0xc4a   : > { %13705 = vst.msk [vmem:[%s24502_s9 + $0x178] sm:$0xff] %vm13657_vm2, %v13576_v18  ;;  %v18255_v62 = vadd.f32 %v17807_v11, %v24489_v37  ;;  %v13051_v39 = vpop.f32.mrb[47].mxu1 }
 0xc4b   : > { %13704 = vst.msk [vmem:[%s24502_s9 + $0x170] sm:$0xff] %vm13657_vm2, %v13575_v48  ;;  %v18256_v46 = vadd.f32 %v24489_v37, %v13051_v39 }
 0xc4c   : > { %v13578_v44 = vmax.f32 %v18255_v62, 0.0 }
 0xc4d   : > { %v13577_v9 = vmax.f32 %v18256_v46, 0.0  ;;  %v17810_v36 = vpop.f32.mrb[48].mxu1 }
 0xc4e   : > { %13707 = vst.msk [vmem:[%s24502_s9 + $0x188] sm:$0xff] %vm13657_vm2, %v13578_v44  ;;  %v18257_v2 = vadd.f32 %v17810_v36, %v24489_v37  ;;  %v13063_v17 = vpop.f32.mrb[49].mxu1 }
 0xc4f   : > { %13706 = vst.msk [vmem:[%s24502_s9 + $0x180] sm:$0xff] %vm13657_vm2, %v13577_v9  ;;  %v18258_v19 = vadd.f32 %v24489_v37, %v13063_v17 }
 0xc50   : > { %v13580_v63 = vmax.f32 %v18257_v2, 0.0 }
 0xc51   : > { %v13579_v22 = vmax.f32 %v18258_v19, 0.0  ;;  %v17813_v23 = vpop.f32.mrb[50].mxu1 }
 0xc52   : > { %13709 = vst.msk [vmem:[%s24502_s9 + $0x198] sm:$0xff] %vm13657_vm2, %v13580_v63  ;;  %v18259_v31 = vadd.f32 %v17813_v23, %v24489_v37  ;;  %v13075_v5 = vpop.f32.mrb[51].mxu1 }
 0xc53   : > { %13708 = vst.msk [vmem:[%s24502_s9 + $0x190] sm:$0xff] %vm13657_vm2, %v13579_v22  ;;  %v18260_v33 = vadd.f32 %v24489_v37, %v13075_v5 }
 0xc54   : > { %v13582_v15 = vmax.f32 %v18259_v31, 0.0 }
 0xc55   : > { %v13581_v24 = vmax.f32 %v18260_v33, 0.0  ;;  %v17816_v35 = vpop.f32.mrb[52].mxu1 }
 0xc56   : > { %13711 = vst.msk [vmem:[%s24502_s9 + $0x1a8] sm:$0xff] %vm13657_vm2, %v13582_v15  ;;  %v18261_v25 = vadd.f32 %v17816_v35, %v24489_v37  ;;  %v13087_v13 = vpop.f32.mrb[53].mxu1 }
 0xc57   : > { %13710 = vst.msk [vmem:[%s24502_s9 + $0x1a0] sm:$0xff] %vm13657_vm2, %v13581_v24  ;;  %v18262_v45 = vadd.f32 %v24489_v37, %v13087_v13 }
 0xc58   : > { %v13584_v0 = vmax.f32 %v18261_v25, 0.0 }
 0xc59   : > { %v13583_v54 = vmax.f32 %v18262_v45, 0.0  ;;  %v17819_v30 = vpop.f32.mrb[54].mxu1 }
 0xc5a   : > { %13713 = vst.msk [vmem:[%s24502_s9 + $0x1b8] sm:$0xff] %vm13657_vm2, %v13584_v0  ;;  %v18263_v26 = vadd.f32 %v17819_v30, %v24489_v37  ;;  %v13099_v47 = vpop.f32.mrb[55].mxu1 }
 0xc5b   : > { %13712 = vst.msk [vmem:[%s24502_s9 + $0x1b0] sm:$0xff] %vm13657_vm2, %v13583_v54  ;;  %v18264_v41 = vadd.f32 %v24489_v37, %v13099_v47 }
 0xc5c   : > { %v13586_v42 = vmax.f32 %v18263_v26, 0.0 }
 0xc5d   : > { %v13585_v21 = vmax.f32 %v18264_v41, 0.0  ;;  %v17822_v8 = vpop.f32.mrb[56].mxu1 }
 0xc5e   : > { %13715 = vst.msk [vmem:[%s24502_s9 + $0x1c8] sm:$0xff] %vm13657_vm2, %v13586_v42  ;;  %v18265_v58 = vadd.f32 %v17822_v8, %v24489_v37  ;;  %v13111_v6 = vpop.f32.mrb[57].mxu1 }
 0xc5f   : > { %13714 = vst.msk [vmem:[%s24502_s9 + $0x1c0] sm:$0xff] %vm13657_vm2, %v13585_v21  ;;  %v18266_v40 = vadd.f32 %v24489_v37, %v13111_v6 }
 0xc60   : > { %v13588_v50 = vmax.f32 %v18265_v58, 0.0 }
 0xc61   : > { %v13587_v29 = vmax.f32 %v18266_v40, 0.0  ;;  %v17825_v53 = vpop.f32.mrb[58].mxu1 }
 0xc62   : > { %13717 = vst.msk [vmem:[%s24502_s9 + $0x1d8] sm:$0xff] %vm13657_vm2, %v13588_v50  ;;  %v18267_v32 = vadd.f32 %v17825_v53, %v24489_v37  ;;  %v13123_v61 = vpop.f32.mrb[59].mxu1 }
 0xc63   : > { %13716 = vst.msk [vmem:[%s24502_s9 + $0x1d0] sm:$0xff] %vm13657_vm2, %v13587_v29  ;;  %v18268_v20 = vadd.f32 %v24489_v37, %v13123_v61 }
 0xc64   : > { %v13590_v28 = vmax.f32 %v18267_v32, 0.0 }
 0xc65   : > { %v13589_v27 = vmax.f32 %v18268_v20, 0.0  ;;  %v17828_v34 = vpop.f32.mrb[60].mxu1 }
 0xc66   : > { %13719 = vst.msk [vmem:[%s24502_s9 + $0x1e8] sm:$0xff] %vm13657_vm2, %v13590_v28  ;;  %v18269_v52 = vadd.f32 %v17828_v34, %v24489_v37  ;;  %v13135_v3 = vpop.f32.mrb[61].mxu1 }
 0xc67   : > { %13718 = vst.msk [vmem:[%s24502_s9 + $0x1e0] sm:$0xff] %vm13657_vm2, %v13589_v27  ;;  %v18270_v43 = vadd.f32 %v24489_v37, %v13135_v3 }
 0xc68   : > { %v13592_v56 = vmax.f32 %v18269_v52, 0.0 }
 0xc69   : > { %v13591_v14 = vmax.f32 %v18270_v43, 0.0  ;;  %v17831_v60 = vpop.f32.mrb[62].mxu1 }
 0xc6a   : > { %13721 = vst.msk [vmem:[%s24502_s9 + $0x1f8] sm:$0xff] %vm13657_vm2, %v13592_v56  ;;  %v18271_v55 = vadd.f32 %v17831_v60, %v24489_v37  ;;  %v13147_v10 = vpop.f32.mrb[63].mxu1 }
 0xc6b   : > { %13720 = vst.msk [vmem:[%s24502_s9 + $0x1f0] sm:$0xff] %vm13657_vm2, %v13591_v14  ;;  %v18272_v16 = vadd.f32 %v24489_v37, %v13147_v10 }
 0xc6c   : > { %v13594_v49 = vmax.f32 %v18271_v55, 0.0 }
 0xc6d   : > { %v13593_v57 = vmax.f32 %v18272_v16, 0.0  ;;  %v17834_v7 = vpop.f32.mrb[64].mxu1 }
 0xc6e   : > { %13723 = vst.msk [vmem:[%s24502_s9 + $0x208] sm:$0xff] %vm13657_vm2, %v13594_v49  ;;  %v18273_v4 = vadd.f32 %v17834_v7, %v24489_v37  ;;  %v13159_v51 = vpop.f32.mrb[65].mxu1 }
 0xc6f   : > { %13722 = vst.msk [vmem:[%s24502_s9 + $0x200] sm:$0xff] %vm13657_vm2, %v13593_v57  ;;  %v18274_v59 = vadd.f32 %v24489_v37, %v13159_v51 }
 0xc70   : > { %v13596_v12 = vmax.f32 %v18273_v4, 0.0 }
 0xc71   : > { %v13595_v1 = vmax.f32 %v18274_v59, 0.0  ;;  %v17837_v38 = vpop.f32.mrb[66].mxu1 }
 0xc72   : > { %13725 = vst.msk [vmem:[%s24502_s9 + $0x218] sm:$0xff] %vm13657_vm2, %v13596_v12  ;;  %v18275_v18 = vadd.f32 %v17837_v38, %v24489_v37  ;;  %v13171_v48 = vpop.f32.mrb[67].mxu1 }
 0xc73   : > { %13724 = vst.msk [vmem:[%s24502_s9 + $0x210] sm:$0xff] %vm13657_vm2, %v13595_v1  ;;  %v18276_v11 = vadd.f32 %v24489_v37, %v13171_v48 }
 0xc74   : > { %v13598_v62 = vmax.f32 %v18275_v18, 0.0 }
 0xc75   : > { %v13597_v39 = vmax.f32 %v18276_v11, 0.0  ;;  %v17840_v46 = vpop.f32.mrb[68].mxu1 }
 0xc76   : > { %13727 = vst.msk [vmem:[%s24502_s9 + $0x228] sm:$0xff] %vm13657_vm2, %v13598_v62  ;;  %v18277_v44 = vadd.f32 %v17840_v46, %v24489_v37  ;;  %v13183_v9 = vpop.f32.mrb[69].mxu1 }
 0xc77   : > { %13726 = vst.msk [vmem:[%s24502_s9 + $0x220] sm:$0xff] %vm13657_vm2, %v13597_v39  ;;  %v18278_v36 = vadd.f32 %v24489_v37, %v13183_v9 }
 0xc78   : > { %v13600_v2 = vmax.f32 %v18277_v44, 0.0 }
 0xc79   : > { %v13599_v17 = vmax.f32 %v18278_v36, 0.0  ;;  %v17843_v19 = vpop.f32.mrb[70].mxu1 }
 0xc7a   : > { %13729 = vst.msk [vmem:[%s24502_s9 + $0x238] sm:$0xff] %vm13657_vm2, %v13600_v2  ;;  %v18279_v63 = vadd.f32 %v17843_v19, %v24489_v37  ;;  %v13195_v22 = vpop.f32.mrb[71].mxu1 }
 0xc7b   : > { %13728 = vst.msk [vmem:[%s24502_s9 + $0x230] sm:$0xff] %vm13657_vm2, %v13599_v17  ;;  %v18280_v23 = vadd.f32 %v24489_v37, %v13195_v22 }
 0xc7c   : > { %v13602_v31 = vmax.f32 %v18279_v63, 0.0 }
 0xc7d   : > { %v13601_v5 = vmax.f32 %v18280_v23, 0.0  ;;  %v17846_v33 = vpop.f32.mrb[72].mxu1 }
 0xc7e   : > { %13731 = vst.msk [vmem:[%s24502_s9 + $0x248] sm:$0xff] %vm13657_vm2, %v13602_v31  ;;  %v18281_v15 = vadd.f32 %v17846_v33, %v24489_v37  ;;  %v13207_v24 = vpop.f32.mrb[73].mxu1 }
 0xc7f   : > { %13730 = vst.msk [vmem:[%s24502_s9 + $0x240] sm:$0xff] %vm13657_vm2, %v13601_v5  ;;  %v18282_v35 = vadd.f32 %v24489_v37, %v13207_v24 }
 0xc80   : > { %v13604_v25 = vmax.f32 %v18281_v15, 0.0 }
 0xc81   : > { %v13603_v13 = vmax.f32 %v18282_v35, 0.0  ;;  %v17849_v45 = vpop.f32.mrb[74].mxu1 }
 0xc82   : > { %13733 = vst.msk [vmem:[%s24502_s9 + $0x258] sm:$0xff] %vm13657_vm2, %v13604_v25  ;;  %v18283_v0 = vadd.f32 %v17849_v45, %v24489_v37  ;;  %v13219_v54 = vpop.f32.mrb[75].mxu1 }
 0xc83   : > { %13732 = vst.msk [vmem:[%s24502_s9 + $0x250] sm:$0xff] %vm13657_vm2, %v13603_v13  ;;  %v18284_v30 = vadd.f32 %v24489_v37, %v13219_v54 }
 0xc84   : > { %v13606_v26 = vmax.f32 %v18283_v0, 0.0 }
 0xc85   : > { %v13605_v47 = vmax.f32 %v18284_v30, 0.0  ;;  %v17852_v41 = vpop.f32.mrb[76].mxu1 }
 0xc86   : > { %13735 = vst.msk [vmem:[%s24502_s9 + $0x268] sm:$0xff] %vm13657_vm2, %v13606_v26  ;;  %v18285_v42 = vadd.f32 %v17852_v41, %v24489_v37  ;;  %v13231_v21 = vpop.f32.mrb[77].mxu1 }
 0xc87   : > { %13734 = vst.msk [vmem:[%s24502_s9 + $0x260] sm:$0xff] %vm13657_vm2, %v13605_v47  ;;  %v18286_v8 = vadd.f32 %v24489_v37, %v13231_v21 }
 0xc88   : > { %v13608_v58 = vmax.f32 %v18285_v42, 0.0 }
 0xc89   : > { %v13607_v6 = vmax.f32 %v18286_v8, 0.0  ;;  %v17855_v40 = vpop.f32.mrb[78].mxu1 }
 0xc8a   : > { %13737 = vst.msk [vmem:[%s24502_s9 + $0x278] sm:$0xff] %vm13657_vm2, %v13608_v58  ;;  %v18287_v50 = vadd.f32 %v17855_v40, %v24489_v37  ;;  %v13243_v29 = vpop.f32.mrb[79].mxu1 }
 0xc8b   : > { %13736 = vst.msk [vmem:[%s24502_s9 + $0x270] sm:$0xff] %vm13657_vm2, %v13607_v6  ;;  %v18288_v53 = vadd.f32 %v24489_v37, %v13243_v29 }
 0xc8c   : > { %v13610_v32 = vmax.f32 %v18287_v50, 0.0 }
 0xc8d   : > { %v13609_v61 = vmax.f32 %v18288_v53, 0.0  ;;  %v17858_v20 = vpop.f32.mrb[80].mxu1 }
 0xc8e   : > { %13739 = vst.msk [vmem:[%s24502_s9 + $0x288] sm:$0xff] %vm13657_vm2, %v13610_v32  ;;  %v18289_v28 = vadd.f32 %v17858_v20, %v24489_v37  ;;  %v13255_v27 = vpop.f32.mrb[81].mxu1 }
 0xc8f   : > { %13738 = vst.msk [vmem:[%s24502_s9 + $0x280] sm:$0xff] %vm13657_vm2, %v13609_v61  ;;  %v18290_v34 = vadd.f32 %v24489_v37, %v13255_v27 }
 0xc90   : > { %v13612_v52 = vmax.f32 %v18289_v28, 0.0 }
 0xc91   : > { %v13611_v3 = vmax.f32 %v18290_v34, 0.0  ;;  %v17861_v43 = vpop.f32.mrb[82].mxu1 }
 0xc92   : > { %13741 = vst.msk [vmem:[%s24502_s9 + $0x298] sm:$0xff] %vm13657_vm2, %v13612_v52  ;;  %v18291_v56 = vadd.f32 %v17861_v43, %v24489_v37  ;;  %v13267_v14 = vpop.f32.mrb[83].mxu1 }
 0xc93   : > { %13740 = vst.msk [vmem:[%s24502_s9 + $0x290] sm:$0xff] %vm13657_vm2, %v13611_v3  ;;  %v18292_v60 = vadd.f32 %v24489_v37, %v13267_v14 }
 0xc94   : > { %v13614_v55 = vmax.f32 %v18291_v56, 0.0 }
 0xc95   : > { %v13613_v10 = vmax.f32 %v18292_v60, 0.0  ;;  %v17864_v16 = vpop.f32.mrb[84].mxu1 }
 0xc96   : > { %13743 = vst.msk [vmem:[%s24502_s9 + $0x2a8] sm:$0xff] %vm13657_vm2, %v13614_v55  ;;  %v18293_v49 = vadd.f32 %v17864_v16, %v24489_v37  ;;  %v13279_v57 = vpop.f32.mrb[85].mxu1 }
 0xc97   : > { %13742 = vst.msk [vmem:[%s24502_s9 + $0x2a0] sm:$0xff] %vm13657_vm2, %v13613_v10  ;;  %v18294_v7 = vadd.f32 %v24489_v37, %v13279_v57 }
 0xc98   : > { %v13616_v4 = vmax.f32 %v18293_v49, 0.0 }
 0xc99   : > { %v13615_v51 = vmax.f32 %v18294_v7, 0.0  ;;  %v17867_v59 = vpop.f32.mrb[86].mxu1 }
 0xc9a   : > { %13745 = vst.msk [vmem:[%s24502_s9 + $0x2b8] sm:$0xff] %vm13657_vm2, %v13616_v4  ;;  %v18295_v12 = vadd.f32 %v17867_v59, %v24489_v37  ;;  %v13291_v1 = vpop.f32.mrb[87].mxu1 }
 0xc9b   : > { %13744 = vst.msk [vmem:[%s24502_s9 + $0x2b0] sm:$0xff] %vm13657_vm2, %v13615_v51  ;;  %v18296_v38 = vadd.f32 %v24489_v37, %v13291_v1 }
 0xc9c   : > { %v13618_v18 = vmax.f32 %v18295_v12, 0.0 }
 0xc9d   : > { %v13617_v48 = vmax.f32 %v18296_v38, 0.0  ;;  %v17870_v11 = vpop.f32.mrb[88].mxu1 }
 0xc9e   : > { %13747 = vst.msk [vmem:[%s24502_s9 + $0x2c8] sm:$0xff] %vm13657_vm2, %v13618_v18  ;;  %v18297_v62 = vadd.f32 %v17870_v11, %v24489_v37  ;;  %v13303_v39 = vpop.f32.mrb[89].mxu1 }
 0xc9f   : > { %13746 = vst.msk [vmem:[%s24502_s9 + $0x2c0] sm:$0xff] %vm13657_vm2, %v13617_v48  ;;  %v18298_v46 = vadd.f32 %v24489_v37, %v13303_v39 }
 0xca0   : > { %v13620_v44 = vmax.f32 %v18297_v62, 0.0 }
 0xca1   : > { %v13619_v9 = vmax.f32 %v18298_v46, 0.0  ;;  %v17873_v36 = vpop.f32.mrb[90].mxu1 }
 0xca2   : > { %13749 = vst.msk [vmem:[%s24502_s9 + $0x2d8] sm:$0xff] %vm13657_vm2, %v13620_v44  ;;  %v18299_v2 = vadd.f32 %v17873_v36, %v24489_v37  ;;  %v13315_v17 = vpop.f32.mrb[91].mxu1 }
 0xca3   : > { %13748 = vst.msk [vmem:[%s24502_s9 + $0x2d0] sm:$0xff] %vm13657_vm2, %v13619_v9  ;;  %v18300_v19 = vadd.f32 %v24489_v37, %v13315_v17 }
 0xca4   : > { %v13622_v63 = vmax.f32 %v18299_v2, 0.0 }
 0xca5   : > { %v13621_v22 = vmax.f32 %v18300_v19, 0.0  ;;  %v17876_v23 = vpop.f32.mrb[92].mxu1 }
 0xca6   : > { %13751 = vst.msk [vmem:[%s24502_s9 + $0x2e8] sm:$0xff] %vm13657_vm2, %v13622_v63  ;;  %v18301_v31 = vadd.f32 %v17876_v23, %v24489_v37  ;;  %v13327_v5 = vpop.f32.mrb[93].mxu1 }
 0xca7   : > { %13750 = vst.msk [vmem:[%s24502_s9 + $0x2e0] sm:$0xff] %vm13657_vm2, %v13621_v22  ;;  %v18302_v33 = vadd.f32 %v24489_v37, %v13327_v5 }
 0xca8   : > { %v13624_v15 = vmax.f32 %v18301_v31, 0.0 }
 0xca9   : > { %v13623_v24 = vmax.f32 %v18302_v33, 0.0  ;;  %v17879_v35 = vpop.f32.mrb[94].mxu1 }
 0xcaa   : > { %13753 = vst.msk [vmem:[%s24502_s9 + $0x2f8] sm:$0xff] %vm13657_vm2, %v13624_v15  ;;  %v18303_v25 = vadd.f32 %v17879_v35, %v24489_v37  ;;  %v13339_v13 = vpop.f32.mrb[95].mxu1 }
 0xcab   : > { %13752 = vst.msk [vmem:[%s24502_s9 + $0x2f0] sm:$0xff] %vm13657_vm2, %v13623_v24  ;;  %v18304_v45 = vadd.f32 %v24489_v37, %v13339_v13 }
 0xcac   : > { %v13626_v0 = vmax.f32 %v18303_v25, 0.0 }
 0xcad   : > { %v13625_v54 = vmax.f32 %v18304_v45, 0.0  ;;  %v17882_v30 = vpop.f32.mrb[96].mxu1 }
 0xcae   : > { %13755 = vst.msk [vmem:[%s24502_s9 + $0x308] sm:$0xff] %vm13657_vm2, %v13626_v0  ;;  %v18305_v26 = vadd.f32 %v17882_v30, %v24489_v37  ;;  %v13351_v47 = vpop.f32.mrb[97].mxu1 }
 0xcaf   : > { %13754 = vst.msk [vmem:[%s24502_s9 + $0x300] sm:$0xff] %vm13657_vm2, %v13625_v54  ;;  %v18306_v41 = vadd.f32 %v24489_v37, %v13351_v47 }
 0xcb0   : > { %v13628_v42 = vmax.f32 %v18305_v26, 0.0 }
 0xcb1   : > { %v13627_v21 = vmax.f32 %v18306_v41, 0.0  ;;  %v17885_v8 = vpop.f32.mrb[98].mxu1 }
 0xcb2   : > { %13757 = vst.msk [vmem:[%s24502_s9 + $0x318] sm:$0xff] %vm13657_vm2, %v13628_v42  ;;  %v18307_v58 = vadd.f32 %v17885_v8, %v24489_v37  ;;  %v13363_v6 = vpop.f32.mrb[99].mxu1 }
 0xcb3   : > { %13756 = vst.msk [vmem:[%s24502_s9 + $0x310] sm:$0xff] %vm13657_vm2, %v13627_v21  ;;  %v18308_v40 = vadd.f32 %v24489_v37, %v13363_v6 }
 0xcb4   : > { %v13630_v50 = vmax.f32 %v18307_v58, 0.0 }
 0xcb5   : > { %v13629_v29 = vmax.f32 %v18308_v40, 0.0  ;;  %v17888_v53 = vpop.f32.mrb[100].mxu1 }
 0xcb6   : > { %13759 = vst.msk [vmem:[%s24502_s9 + $0x328] sm:$0xff] %vm13657_vm2, %v13630_v50  ;;  %v18309_v32 = vadd.f32 %v17888_v53, %v24489_v37  ;;  %v13375_v61 = vpop.f32.mrb[101].mxu1  ;;  %v19629_v50 = vld [vmem:[%s24911_s5] ss:$0 sm:$0xff] }
 0xcb7   : > { %13758 = vst.msk [vmem:[%s24502_s9 + $0x320] sm:$0xff] %vm13657_vm2, %v13629_v29  ;;  %v18310_v20 = vadd.f32 %v24489_v37, %v13375_v61 }
 0xcb8   : > { %v13632_v28 = vmax.f32 %v18309_v32, 0.0 }
 0xcb9   : > { %v13631_v27 = vmax.f32 %v18310_v20, 0.0  ;;  %v17891_v34 = vpop.f32.mrb[102].mxu1 }
 0xcba   : > { %13761 = vst.msk [vmem:[%s24502_s9 + $0x338] sm:$0xff] %vm13657_vm2, %v13632_v28  ;;  %v18311_v52 = vadd.f32 %v17891_v34, %v24489_v37  ;;  %v13387_v3 = vpop.f32.mrb[103].mxu1 }
 0xcbb   : > { %13760 = vst.msk [vmem:[%s24502_s9 + $0x330] sm:$0xff] %vm13657_vm2, %v13631_v27  ;;  %v18312_v43 = vadd.f32 %v24489_v37, %v13387_v3 }
 0xcbc   : > { %v13634_v56 = vmax.f32 %v18311_v52, 0.0 }
 0xcbd   : > { %v13633_v14 = vmax.f32 %v18312_v43, 0.0  ;;  %v17894_v60 = vpop.f32.mrb[104].mxu1 }
 0xcbe   : > { %13763 = vst.msk [vmem:[%s24502_s9 + $0x348] sm:$0xff] %vm13657_vm2, %v13634_v56  ;;  %v18313_v55 = vadd.f32 %v17894_v60, %v24489_v37  ;;  %v13399_v10 = vpop.f32.mrb[105].mxu1 }
 0xcbf   : > { %13762 = vst.msk [vmem:[%s24502_s9 + $0x340] sm:$0xff] %vm13657_vm2, %v13633_v14  ;;  %v18314_v16 = vadd.f32 %v24489_v37, %v13399_v10 }
 0xcc0   : > { %v13636_v49 = vmax.f32 %v18313_v55, 0.0 }
 0xcc1   : > { %v13635_v57 = vmax.f32 %v18314_v16, 0.0  ;;  %v17897_v7 = vpop.f32.mrb[106].mxu1 }
 0xcc2   : > { %13765 = vst.msk [vmem:[%s24502_s9 + $0x358] sm:$0xff] %vm13657_vm2, %v13636_v49  ;;  %v18315_v4 = vadd.f32 %v17897_v7, %v24489_v37  ;;  %v13411_v51 = vpop.f32.mrb[107].mxu1 }
 0xcc3   : > { %13764 = vst.msk [vmem:[%s24502_s9 + $0x350] sm:$0xff] %vm13657_vm2, %v13635_v57  ;;  %v18316_v59 = vadd.f32 %v24489_v37, %v13411_v51 }
 0xcc4   : > { %v13638_v12 = vmax.f32 %v18315_v4, 0.0 }
 0xcc5   : > { %v13637_v1 = vmax.f32 %v18316_v59, 0.0  ;;  %v17900_v38 = vpop.f32.mrb[108].mxu1 }
 0xcc6   : > { %13767 = vst.msk [vmem:[%s24502_s9 + $0x368] sm:$0xff] %vm13657_vm2, %v13638_v12  ;;  %v18317_v18 = vadd.f32 %v17900_v38, %v24489_v37  ;;  %v13423_v48 = vpop.f32.mrb[109].mxu1 }
 0xcc7   : > { %13766 = vst.msk [vmem:[%s24502_s9 + $0x360] sm:$0xff] %vm13657_vm2, %v13637_v1  ;;  %v18318_v11 = vadd.f32 %v24489_v37, %v13423_v48 }
 0xcc8   : > { %v13640_v62 = vmax.f32 %v18317_v18, 0.0 }
 0xcc9   : > { %v13639_v39 = vmax.f32 %v18318_v11, 0.0  ;;  %v17903_v46 = vpop.f32.mrb[110].mxu1 }
 0xcca   : > { %13769 = vst.msk [vmem:[%s24502_s9 + $0x378] sm:$0xff] %vm13657_vm2, %v13640_v62  ;;  %v18319_v44 = vadd.f32 %v17903_v46, %v24489_v37  ;;  %v13435_v9 = vpop.f32.mrb[111].mxu1 }
 0xccb   : > { %13768 = vst.msk [vmem:[%s24502_s9 + $0x370] sm:$0xff] %vm13657_vm2, %v13639_v39  ;;  %v18320_v36 = vadd.f32 %v24489_v37, %v13435_v9 }
 0xccc   : > { %v13642_v2 = vmax.f32 %v18319_v44, 0.0 }
 0xccd   : > { %v13641_v17 = vmax.f32 %v18320_v36, 0.0  ;;  %v17906_v19 = vpop.f32.mrb[112].mxu1 }
 0xcce   : > { %13771 = vst.msk [vmem:[%s24502_s9 + $0x388] sm:$0xff] %vm13657_vm2, %v13642_v2  ;;  %v18321_v63 = vadd.f32 %v17906_v19, %v24489_v37  ;;  %v13447_v22 = vpop.f32.mrb[113].mxu1 }
 0xccf   : > { %13770 = vst.msk [vmem:[%s24502_s9 + $0x380] sm:$0xff] %vm13657_vm2, %v13641_v17  ;;  %v18322_v23 = vadd.f32 %v24489_v37, %v13447_v22 }
 0xcd0   : > { %v13644_v31 = vmax.f32 %v18321_v63, 0.0 }
 0xcd1   : > { %v13643_v5 = vmax.f32 %v18322_v23, 0.0  ;;  %v17909_v33 = vpop.f32.mrb[114].mxu1 }
 0xcd2   : > { %13773 = vst.msk [vmem:[%s24502_s9 + $0x398] sm:$0xff] %vm13657_vm2, %v13644_v31  ;;  %v18323_v15 = vadd.f32 %v17909_v33, %v24489_v37  ;;  %v13459_v24 = vpop.f32.mrb[115].mxu1 }
 0xcd3   : > { %13772 = vst.msk [vmem:[%s24502_s9 + $0x390] sm:$0xff] %vm13657_vm2, %v13643_v5  ;;  %v18324_v35 = vadd.f32 %v24489_v37, %v13459_v24 }
 0xcd4   : > { %v13646_v25 = vmax.f32 %v18323_v15, 0.0 }
 0xcd5   : > { %v13645_v13 = vmax.f32 %v18324_v35, 0.0  ;;  %v17912_v45 = vpop.f32.mrb[116].mxu1 }
 0xcd6   : > { %13775 = vst.msk [vmem:[%s24502_s9 + $0x3a8] sm:$0xff] %vm13657_vm2, %v13646_v25  ;;  %v18325_v0 = vadd.f32 %v17912_v45, %v24489_v37  ;;  %v13471_v54 = vpop.f32.mrb[117].mxu1 }
 0xcd7   : > { %13774 = vst.msk [vmem:[%s24502_s9 + $0x3a0] sm:$0xff] %vm13657_vm2, %v13645_v13  ;;  %v18326_v30 = vadd.f32 %v24489_v37, %v13471_v54 }
 0xcd8   : > { %v13648_v26 = vmax.f32 %v18325_v0, 0.0 }
 0xcd9   : > { %v13647_v47 = vmax.f32 %v18326_v30, 0.0  ;;  %v17915_v41 = vpop.f32.mrb[118].mxu1 }
 0xcda   : > { %13777 = vst.msk [vmem:[%s24502_s9 + $0x3b8] sm:$0xff] %vm13657_vm2, %v13648_v26  ;;  %v18327_v42 = vadd.f32 %v17915_v41, %v24489_v37  ;;  %v13483_v21 = vpop.f32.mrb[119].mxu1 }
 0xcdb   : > { %13776 = vst.msk [vmem:[%s24502_s9 + $0x3b0] sm:$0xff] %vm13657_vm2, %v13647_v47  ;;  %v18328_v8 = vadd.f32 %v24489_v37, %v13483_v21 }
 0xcdc   : > { %v13650_v58 = vmax.f32 %v18327_v42, 0.0 }
 0xcdd   : > { %v13649_v6 = vmax.f32 %v18328_v8, 0.0  ;;  %v17918_v40 = vpop.f32.mrb[120].mxu1 }
 0xcde   : > { %13779 = vst.msk [vmem:[%s24502_s9 + $0x3c8] sm:$0xff] %vm13657_vm2, %v13650_v58  ;;  %v18329_v29 = vadd.f32 %v19629_v50, %v17918_v40  ;;  %v13495_v53 = vpop.f32.mrb[121].mxu1 }
 0xcdf   : > { %13778 = vst.msk [vmem:[%s24502_s9 + $0x3c0] sm:$0xff] %vm13657_vm2, %v13649_v6  ;;  %v18330_v32 = vadd.f32 %v19629_v50, %v13495_v53 }
 0xce0   : > { %v13652_v61 = vmax.f32 %v18329_v29, 0.0 }
 0xce1   : > { %v13651_v20 = vmax.f32 %v18330_v32, 0.0  ;;  %v17921_v37 = vpop.f32.mrb[122].mxu1 }
 0xce2   : > { %13781 = vst.msk [vmem:[%s24502_s9 + $0x3d8] sm:$0xff] %vm13657_vm2, %v13652_v61  ;;  %v18331_v28 = vadd.f32 %v19629_v50, %v17921_v37  ;;  %v13507_v27 = vpop.f32.mrb[123].mxu1 }
 0xce3   : > { %13780 = vst.msk [vmem:[%s24502_s9 + $0x3d0] sm:$0xff] %vm13657_vm2, %v13651_v20  ;;  %v18332_v34 = vadd.f32 %v19629_v50, %v13507_v27 }
 0xce4   : > { %v13654_v52 = vmax.f32 %v18331_v28, 0.0 }
 0xce5   : > { %v13653_v3 = vmax.f32 %v18332_v34, 0.0  ;;  %v17924_v43 = vpop.f32.mrb[124].mxu1 }
 0xce6   : > { %13783 = vst.msk [vmem:[%s24502_s9 + $0x3e8] sm:$0xff] %vm13657_vm2, %v13654_v52  ;;  %v18333_v56 = vadd.f32 %v19629_v50, %v17924_v43  ;;  %v13519_v14 = vpop.f32.mrb[125].mxu1 }
 0xce7   : > { %13782 = vst.msk [vmem:[%s24502_s9 + $0x3e0] sm:$0xff] %vm13657_vm2, %v13653_v3  ;;  %v18334_v60 = vadd.f32 %v19629_v50, %v13519_v14 }
 0xce8   : > { %v13656_v55 = vmax.f32 %v18333_v56, 0.0 }
 0xce9   : > { %v13655_v10 = vmax.f32 %v18334_v60, 0.0 }
 0xcea   : > { %13785 = vst.msk [vmem:[%s24502_s9 + $0x3f8] sm:$0xff] %vm13657_vm2, %v13656_v55 }
 0xceb   : > { %13784 = vst.msk [vmem:[%s24502_s9 + $0x3f0] sm:$0xff] %vm13657_vm2, %v13655_v10 }
 0xcec PF: > { %s16_s21 = sadd.s32 1, %s19636_s21  }
 0xced   : > { %p13_p4 = scmp.ge.s32.totalorder %s16_s21, 4  }
 0xcef   :  { %15 = sbr.rel (!%p13_p4) target bundleno = 1 (0x1), region = 77 }

</bundles_post_ra>
